<compile_context>
chip_gen: v7x
topology: tpu7x:2x2x1
jax: 0.10.0
libtpu: 0.0.40
codegen_flags: <defaults>
</compile_context>

<pallas_src>
import jax
import jax.numpy as jnp
from jax.experimental import pallas as pl
from jax.experimental.pallas import tpu as pltpu

EPS = 1e-5  # nn.BatchNorm2d default


# ----------------------------- fused Pallas kernel ------------------------------

def _make_c2f_kernel(n, H, W, c1, c, c2, shortcut):
    """Builds the fused C2f kernel for static (n, H, W, channels, shortcut)."""
    HW = H * W

    def kernel(*refs):
        # refs layout:
        #   [0]                 x        (1, H, W, c1)            NHWC input tile
        #   [1], [2]            cv1      (c1, 2c), (1, 2c)
        #   [3+4i .. 6+4i]      m[i]     (9c, c), (1, c), (9c, c), (1, c)
        #   [3+4n], [4+4n]      cv2^T    (c2, (2+n)c), (c2, 1)    transposed form
        #   [5+4n]              output   (1, c2, H*W)             NCHW(flattened), 256 lanes
        #   [6+4n]              scratch  (H+2, W+2, c)            zero-padded image buffer
        x_ref = refs[0]
        w_cv1, b_cv1 = refs[1], refs[2]
        w_cv2t, b_cv2 = refs[3 + 4 * n], refs[4 + 4 * n]
        o_ref = refs[5 + 4 * n]
        xp_ref = refs[6 + 4 * n]

        # Zero once per grid step; the interior is overwritten before every conv, so only
        # the 1-pixel border must stay zero (== conv padding).  Kept per-step (not hoisted
        # to step 0) so it stays correct when the batch axis is split across TensorCores.
        xp_ref[...] = jnp.zeros_like(xp_ref)

        def mm_bias_silu(a, w_r, b_r):
            # Default MXU precision (bf16 multiply, f32 accumulate).
            acc = jnp.dot(a, w_r[...], preferred_element_type=jnp.float32) + b_r[...]
            return acc * jax.nn.sigmoid(acc)

        def conv3x3_bias_silu(flat, w_r, b_r):
            # flat: (HW, c) activation; w_r: (9c, c) tap-major (ky, kx, cin) weights.
            # Write the image into the interior of the zero-padded VMEM scratch, then
            # accumulate 9 shifted matmuls — everything stays in VMEM (no HBM im2col).
            xp_ref[1:H + 1, 1:W + 1, :] = flat.reshape(H, W, c)

            def tap_mm(ky, kx):
                t = 3 * ky + kx
                tap = xp_ref[ky:ky + H, kx:kx + W, :].reshape(HW, c)
                return jnp.dot(tap, w_r[t * c:(t + 1) * c, :],
                               preferred_element_type=jnp.float32)

            acc = tap_mm(0, 0)
            for ky in range(3):
                for kx in range(3):
                    if ky == 0 and kx == 0:
                        continue
                    acc = acc + tap_mm(ky, kx)
            acc = acc + b_r[...]
            return acc * jax.nn.sigmoid(acc)

        # cv1: 1x1 Conv+BN+SiLU, then chunk(2, dim=channels)
        x = x_ref[0].reshape(HW, c1)
        y = mm_bias_silu(x, w_cv1, b_cv1)
        y0 = y[:, :c]
        cur = y[:, c:]
        outs = [y0, cur]

        # n Bottleneck blocks: Conv3x3+BN+SiLU -> Conv3x3+BN+SiLU (+ residual if shortcut)
        for i in range(n):
            w1, b1 = refs[3 + 4 * i], refs[4 + 4 * i]
            w2, b2 = refs[5 + 4 * i], refs[6 + 4 * i]
            t = conv3x3_bias_silu(cur, w1, b1)
            t = conv3x3_bias_silu(t, w2, b2)
            cur = (cur + t) if shortcut else t
            outs.append(cur)

        # cv2 in transposed (channels-first) form so the store is lane-dense (HW lanes)
        # and the kernel emits NCHW(flattened) directly:
        #   out_t (c2, HW) = W2^T (c2, (2+n)c) @ cat^T ((2+n)c, HW) + b (c2, 1)
        cat = jnp.concatenate(outs, axis=1)                    # (HW, (2+n)c), 128-lane dense
        cat_t = cat.T                                          # single full-tile transpose
        acc = jnp.dot(w_cv2t[...], cat_t,
                      preferred_element_type=jnp.float32) + b_cv2[...]
        out_t = acc * jax.nn.sigmoid(acc)                      # (c2, HW)
        o_ref[0] = out_t.astype(o_ref.dtype)

    return kernel


# ------------------------------ JAX glue (exact) --------------------------------

def fold_bn(w, gamma, beta, mean, var, eps=EPS):
    """Fold inference-mode BatchNorm into a (bias-free) conv weight -> (w', b')."""
    scale = gamma / jnp.sqrt(var + eps)
    w_f = w * scale.reshape(-1, 1, 1, 1)
    b_f = beta - mean * scale
    return w_f, b_f


def w_to_mat_1x1(w):                       # (O, I, 1, 1) -> (I, O)
    return jnp.transpose(w[:, :, 0, 0], (1, 0))


def w_to_mat_3x3(w):                       # (O, I, 3, 3) -> (9I, O), tap-major (ky, kx, cin)
    return jnp.transpose(w, (2, 3, 1, 0)).reshape(9 * w.shape[1], w.shape[0])


def c2f_forward_pallas(x_nchw, p, shortcut=False):
    B, c1, H, W = x_nchw.shape
    c, n = p['c'], p['n']
    c2 = p['cv2_w'].shape[0]
    # Input-side layout plumbing in the wrapper (cheap, one small pass): NCHW -> NHWC.
    x = jnp.transpose(x_nchw, (0, 2, 3, 1))

    # Fold BN into every conv and convert to matmul form (tiny, exact, one-time glue).
    w, b = fold_bn(p['cv1_w'], *p['cv1_bn'])
    mats = [w_to_mat_1x1(w), b.reshape(1, -1)]
    for m in p['m']:
        w1, b1 = fold_bn(m['cv1_w'], *m['cv1_bn'])
        w2, b2 = fold_bn(m['cv2_w'], *m['cv2_bn'])
        mats += [w_to_mat_3x3(w1), b1.reshape(1, -1),
                 w_to_mat_3x3(w2), b2.reshape(1, -1)]
    w, b = fold_bn(p['cv2_w'], *p['cv2_bn'])
    # cv2 is applied in transposed (channels-first) form inside the kernel.
    mats += [w_to_mat_1x1(w).T, b.reshape(-1, 1)]

    in_specs = [pl.BlockSpec((1, H, W, c1), lambda bi: (bi, 0, 0, 0))]
    # Weights use constant index maps -> fetched once and kept resident across grid steps.
    in_specs += [pl.BlockSpec(m.shape, lambda bi: (0, 0)) for m in mats]

    out_flat = pl.pallas_call(
        _make_c2f_kernel(n, H, W, c1, c, c2, shortcut),
        out_shape=jax.ShapeDtypeStruct((B, c2, H * W), x.dtype),
        grid_spec=pltpu.PrefetchScalarGridSpec(
            num_scalar_prefetch=0,
            grid=(B,),                                   # one image per grid step
            in_specs=in_specs,
            out_specs=pl.BlockSpec((1, c2, H * W), lambda bi: (bi, 0, 0)),
            scratch_shapes=[pltpu.VMEM((H + 2, W + 2, c), jnp.float32)]),
        compiler_params=pltpu.CompilerParams(
            dimension_semantics=("parallel",)),
    )(x, *mats)
    # Kernel already produced NCHW(flattened); this reshape is metadata-only.
    return out_flat.reshape(B, c2, H, W)


# --------------------------- parameters (random, BN running stats) ---------------

def init_params(key, c1, c2, n=2, e=0.5):
    c = int(c2 * e)
    ks = iter(jax.random.split(key, 16 + 16 * n))

    def w(shape, s=0.1):
        return s * jax.random.normal(next(ks), shape, jnp.float32)

    def bn(ch):
        return (1.0 + 0.1 * jax.random.normal(next(ks), (ch,), jnp.float32),   # gamma
                0.1 * jax.random.normal(next(ks), (ch,), jnp.float32),          # beta
                0.1 * jax.random.normal(next(ks), (ch,), jnp.float32),          # running mean
                0.5 + jax.random.uniform(next(ks), (ch,), jnp.float32))         # running var

    p = dict(c=c, n=n)
    p['cv1_w'] = w((2 * c, c1, 1, 1)); p['cv1_bn'] = bn(2 * c)
    p['m'] = [dict(cv1_w=w((c, c, 3, 3)), cv1_bn=bn(c),
                   cv2_w=w((c, c, 3, 3)), cv2_bn=bn(c)) for _ in range(n)]
    p['cv2_w'] = w((c2, (2 + n) * c, 1, 1)); p['cv2_bn'] = bn(c2)
    return p


# ----------------------- pure-JAX reference (NCHW, ground truth) -----------------

def _bn_ref(x, gamma, beta, mean, var, eps=EPS):
    inv = gamma / jnp.sqrt(var + eps)
    return (x - mean[None, :, None, None]) * inv[None, :, None, None] \
        + beta[None, :, None, None]


def _conv_bn_silu_ref(x, w, bn, pad):
    y = jax.lax.conv_general_dilated(
        x, w, window_strides=(1, 1), padding=[(pad, pad), (pad, pad)],
        dimension_numbers=('NCHW', 'OIHW', 'NCHW'),
        precision=jax.lax.Precision.HIGHEST)
    y = _bn_ref(y, *bn)
    return y * jax.nn.sigmoid(y)


def c2f_forward_ref(x, p, shortcut=False):
    c = p['c']
    y = _conv_bn_silu_ref(x, p['cv1_w'], p['cv1_bn'], pad=0)
    y0, cur = y[:, :c], y[:, c:]
    outs = [y0, cur]
    for m in p['m']:
        t = _conv_bn_silu_ref(cur, m['cv1_w'], m['cv1_bn'], pad=1)
        t = _conv_bn_silu_ref(t, m['cv2_w'], m['cv2_bn'], pad=1)
        cur = cur + t if shortcut else t
        outs.append(cur)
    return _conv_bn_silu_ref(jnp.concatenate(outs, axis=1), p['cv2_w'], p['cv2_bn'], pad=0)


# --------------------------------- main -------------------------------------------

if __name__ == "__main__":
    key = jax.random.PRNGKey(0)
    kx, kp = jax.random.split(key)

    # C2f(c1=32, c2=64, n=2)  ->  c = 32, concat width (2+n)*c = 128 (lane dense)
    B, c1, c2, H, W, n = 2, 32, 64, 16, 16, 2
    x = jax.random.normal(kx, (B, c1, H, W), jnp.float32)
    params = init_params(kp, c1, c2, n=n)

    # Tolerance note: the Pallas kernel uses default MXU precision (bf16 multiply,
    # f32 accumulate), while the reference runs at HIGHEST, so small (~1e-3 .. 1e-2)
    # deviations are expected and acceptable here.
    for shortcut in (False, True):
        out = jax.block_until_ready(c2f_forward_pallas(x, params, shortcut=shortcut))
        ref = jax.block_until_ready(c2f_forward_ref(x, params, shortcut=shortcut))
        assert out.shape == (B, c2, H, W), out.shape
        if not jnp.allclose(out, ref, atol=5e-2, rtol=5e-2):
            max_err = float(jnp.max(jnp.abs(out - ref)))
            raise AssertionError(
                f"Pallas output mismatch (shortcut={shortcut}), max abs err = {max_err}")

    print("KERNEL_OK")
</pallas_src>

<mosaic_0001>
module attributes {stable_mosaic.version = 11 : i64} {
  func.func @kernel(%arg0: i32, %arg1: memref<1x16x16x32xf32, #tpu.memory_space<vmem>>, %arg2: memref<32x64xf32, #tpu.memory_space<vmem>>, %arg3: memref<1x64xf32, #tpu.memory_space<vmem>>, %arg4: memref<288x32xf32, #tpu.memory_space<vmem>>, %arg5: memref<1x32xf32, #tpu.memory_space<vmem>>, %arg6: memref<288x32xf32, #tpu.memory_space<vmem>>, %arg7: memref<1x32xf32, #tpu.memory_space<vmem>>, %arg8: memref<288x32xf32, #tpu.memory_space<vmem>>, %arg9: memref<1x32xf32, #tpu.memory_space<vmem>>, %arg10: memref<288x32xf32, #tpu.memory_space<vmem>>, %arg11: memref<1x32xf32, #tpu.memory_space<vmem>>, %arg12: memref<64x128xf32, #tpu.memory_space<vmem>>, %arg13: memref<64x1xf32, #tpu.memory_space<vmem>>, %arg14: memref<1x64x256xf32, #tpu.memory_space<vmem>>, %arg15: memref<18x18x32xf32, #tpu.memory_space<vmem>>) attributes {dimension_semantics = [#tpu.dimension_semantics<parallel>], iteration_bounds = array<i64: 2>, scalar_prefetch = 0 : i64, scratch_operands = 1 : i64, tpu.core_type = #tpu.core_type<tc>, window_params = [{transform_indices = @transform_0, window_bounds = array<i64: 1, 16, 16, 32>}, {pipeline_mode = #tpu.pipeline_mode<synchronous>, transform_indices = @transform_1, window_bounds = array<i64: 32, 64>}, {pipeline_mode = #tpu.pipeline_mode<synchronous>, transform_indices = @transform_2, window_bounds = array<i64: 1, 64>}, {pipeline_mode = #tpu.pipeline_mode<synchronous>, transform_indices = @transform_3, window_bounds = array<i64: 288, 32>}, {pipeline_mode = #tpu.pipeline_mode<synchronous>, transform_indices = @transform_4, window_bounds = array<i64: 1, 32>}, {pipeline_mode = #tpu.pipeline_mode<synchronous>, transform_indices = @transform_5, window_bounds = array<i64: 288, 32>}, {pipeline_mode = #tpu.pipeline_mode<synchronous>, transform_indices = @transform_6, window_bounds = array<i64: 1, 32>}, {pipeline_mode = #tpu.pipeline_mode<synchronous>, transform_indices = @transform_7, window_bounds = array<i64: 288, 32>}, {pipeline_mode = #tpu.pipeline_mode<synchronous>, transform_indices = @transform_8, window_bounds = array<i64: 1, 32>}, {pipeline_mode = #tpu.pipeline_mode<synchronous>, transform_indices = @transform_9, window_bounds = array<i64: 288, 32>}, {pipeline_mode = #tpu.pipeline_mode<synchronous>, transform_indices = @transform_10, window_bounds = array<i64: 1, 32>}, {pipeline_mode = #tpu.pipeline_mode<synchronous>, transform_indices = @transform_11, window_bounds = array<i64: 64, 128>}, {pipeline_mode = #tpu.pipeline_mode<synchronous>, transform_indices = @transform_12, window_bounds = array<i64: 64, 1>}, {transform_indices = @transform_13, window_bounds = array<i64: 1, 64, 256>}]} {
    %cst = arith.constant 0.000000e+00 : f32
    %0 = vector.broadcast %cst : f32 to vector<18x18x32xf32>
    %c0 = arith.constant 0 : index
    %c0_0 = arith.constant 0 : index
    %c0_1 = arith.constant 0 : index
    %1 = vector.load %arg15[%c0, %c0_0, %c0_1] : memref<18x18x32xf32, #tpu.memory_space<vmem>>, vector<18x18x32xf32>
    tpu.vector_store %arg15[%c0, %c0_0, %c0_1], %0 {strides = array<i32>} : memref<18x18x32xf32, #tpu.memory_space<vmem>>, vector<18x18x32xf32>,
    %c0_2 = arith.constant 0 : index
    %c0_3 = arith.constant 0 : index
    %c0_4 = arith.constant 0 : index
    %c0_5 = arith.constant 0 : index
    %2 = vector.load %arg1[%c0_2, %c0_3, %c0_4, %c0_5] : memref<1x16x16x32xf32, #tpu.memory_space<vmem>>, vector<1x16x16x32xf32>
    %3 = vector.shape_cast %2 : vector<1x16x16x32xf32> to vector<16x16x32xf32>
    %4 = vector.shape_cast %3 : vector<16x16x32xf32> to vector<256x32xf32>
    %c0_6 = arith.constant 0 : index
    %c0_7 = arith.constant 0 : index
    %5 = vector.load %arg2[%c0_6, %c0_7] : memref<32x64xf32, #tpu.memory_space<vmem>>, vector<32x64xf32>
    %cst_8 = arith.constant dense<0.000000e+00> : vector<256x64xf32>
    %6 = tpu.matmul %4, %5, %cst_8 {dimension_numbers = #tpu.dot_dimension_numbers<[1], [0], [0], [1], [0, 0, 1, 1], [], []>} : vector<256x32xf32>, vector<32x64xf32>, vector<256x64xf32> -> vector<256x64xf32>
    %c0_9 = arith.constant 0 : index
    %c0_10 = arith.constant 0 : index
    %7 = vector.load %arg3[%c0_9, %c0_10] : memref<1x64xf32, #tpu.memory_space<vmem>>, vector<1x64xf32>
    %8 = vector.broadcast %7 : vector<1x64xf32> to vector<256x64xf32>
    %9 = arith.addf %6, %8 : vector<256x64xf32>
    %10 = arith.negf %9 : vector<256x64xf32>
    %11 = math.exp %10 : vector<256x64xf32>
    %cst_11 = arith.constant 1.000000e+00 : f32
    %12 = vector.broadcast %cst_11 : f32 to vector<256x64xf32>
    %13 = arith.addf %12, %11 : vector<256x64xf32>
    %14 = arith.divf %12, %13 : vector<256x64xf32>
    %15 = arith.mulf %9, %14 : vector<256x64xf32>
    %16 = vector.extract_strided_slice %15 {offsets = [0, 0], sizes = [256, 32], strides = [1, 1]} : vector<256x64xf32> to vector<256x32xf32>
    %17 = vector.extract_strided_slice %15 {offsets = [0, 32], sizes = [256, 32], strides = [1, 1]} : vector<256x64xf32> to vector<256x32xf32>
    %18 = vector.shape_cast %17 : vector<256x32xf32> to vector<16x16x32xf32>
    %c1 = arith.constant 1 : index
    %c1_12 = arith.constant 1 : index
    %c0_13 = arith.constant 0 : index
    %19 = vector.load %arg15[%c1, %c1_12, %c0_13] : memref<18x18x32xf32, #tpu.memory_space<vmem>>, vector<16x16x32xf32>
    tpu.vector_store %arg15[%c1, %c1_12, %c0_13], %18 {strides = array<i32>} : memref<18x18x32xf32, #tpu.memory_space<vmem>>, vector<16x16x32xf32>,
    %c0_14 = arith.constant 0 : index
    %c0_15 = arith.constant 0 : index
    %c0_16 = arith.constant 0 : index
    %20 = vector.load %arg15[%c0_14, %c0_15, %c0_16] : memref<18x18x32xf32, #tpu.memory_space<vmem>>, vector<16x16x32xf32>
    %21 = vector.shape_cast %20 : vector<16x16x32xf32> to vector<256x32xf32>
    %c0_17 = arith.constant 0 : index
    %c0_18 = arith.constant 0 : index
    %22 = vector.load %arg4[%c0_17, %c0_18] : memref<288x32xf32, #tpu.memory_space<vmem>>, vector<32x32xf32>
    %cst_19 = arith.constant dense<0.000000e+00> : vector<256x32xf32>
    %23 = tpu.matmul %21, %22, %cst_19 {dimension_numbers = #tpu.dot_dimension_numbers<[1], [0], [0], [1], [0, 0, 1, 1], [], []>} : vector<256x32xf32>, vector<32x32xf32>, vector<256x32xf32> -> vector<256x32xf32>
    %c0_20 = arith.constant 0 : index
    %c1_21 = arith.constant 1 : index
    %c0_22 = arith.constant 0 : index
    %24 = vector.load %arg15[%c0_20, %c1_21, %c0_22] : memref<18x18x32xf32, #tpu.memory_space<vmem>>, vector<16x16x32xf32>
    %25 = vector.shape_cast %24 : vector<16x16x32xf32> to vector<256x32xf32>
    %c32 = arith.constant 32 : index
    %c0_23 = arith.constant 0 : index
    %26 = vector.load %arg4[%c32, %c0_23] : memref<288x32xf32, #tpu.memory_space<vmem>>, vector<32x32xf32>
    %cst_24 = arith.constant dense<0.000000e+00> : vector<256x32xf32>
    %27 = tpu.matmul %25, %26, %cst_24 {dimension_numbers = #tpu.dot_dimension_numbers<[1], [0], [0], [1], [0, 0, 1, 1], [], []>} : vector<256x32xf32>, vector<32x32xf32>, vector<256x32xf32> -> vector<256x32xf32>
    %28 = arith.addf %23, %27 : vector<256x32xf32>
    %c0_25 = arith.constant 0 : index
    %c2 = arith.constant 2 : index
    %c0_26 = arith.constant 0 : index
    %29 = vector.load %arg15[%c0_25, %c2, %c0_26] : memref<18x18x32xf32, #tpu.memory_space<vmem>>, vector<16x16x32xf32>
    %30 = vector.shape_cast %29 : vector<16x16x32xf32> to vector<256x32xf32>
    %c64 = arith.constant 64 : index
    %c0_27 = arith.constant 0 : index
    %31 = vector.load %arg4[%c64, %c0_27] : memref<288x32xf32, #tpu.memory_space<vmem>>, vector<32x32xf32>
    %cst_28 = arith.constant dense<0.000000e+00> : vector<256x32xf32>
    %32 = tpu.matmul %30, %31, %cst_28 {dimension_numbers = #tpu.dot_dimension_numbers<[1], [0], [0], [1], [0, 0, 1, 1], [], []>} : vector<256x32xf32>, vector<32x32xf32>, vector<256x32xf32> -> vector<256x32xf32>
    %33 = arith.addf %28, %32 : vector<256x32xf32>
    %c1_29 = arith.constant 1 : index
    %c0_30 = arith.constant 0 : index
    %c0_31 = arith.constant 0 : index
    %34 = vector.load %arg15[%c1_29, %c0_30, %c0_31] : memref<18x18x32xf32, #tpu.memory_space<vmem>>, vector<16x16x32xf32>
    %35 = vector.shape_cast %34 : vector<16x16x32xf32> to vector<256x32xf32>
    %c96 = arith.constant 96 : index
    %c0_32 = arith.constant 0 : index
    %36 = vector.load %arg4[%c96, %c0_32] : memref<288x32xf32, #tpu.memory_space<vmem>>, vector<32x32xf32>
    %cst_33 = arith.constant dense<0.000000e+00> : vector<256x32xf32>
    %37 = tpu.matmul %35, %36, %cst_33 {dimension_numbers = #tpu.dot_dimension_numbers<[1], [0], [0], [1], [0, 0, 1, 1], [], []>} : vector<256x32xf32>, vector<32x32xf32>, vector<256x32xf32> -> vector<256x32xf32>
    %38 = arith.addf %33, %37 : vector<256x32xf32>
    %c1_34 = arith.constant 1 : index
    %c1_35 = arith.constant 1 : index
    %c0_36 = arith.constant 0 : index
    %39 = vector.load %arg15[%c1_34, %c1_35, %c0_36] : memref<18x18x32xf32, #tpu.memory_space<vmem>>, vector<16x16x32xf32>
    %40 = vector.shape_cast %39 : vector<16x16x32xf32> to vector<256x32xf32>
    %c128 = arith.constant 128 : index
    %c0_37 = arith.constant 0 : index
    %41 = vector.load %arg4[%c128, %c0_37] : memref<288x32xf32, #tpu.memory_space<vmem>>, vector<32x32xf32>
    %cst_38 = arith.constant dense<0.000000e+00> : vector<256x32xf32>
    %42 = tpu.matmul %40, %41, %cst_38 {dimension_numbers = #tpu.dot_dimension_numbers<[1], [0], [0], [1], [0, 0, 1, 1], [], []>} : vector<256x32xf32>, vector<32x32xf32>, vector<256x32xf32> -> vector<256x32xf32>
    %43 = arith.addf %38, %42 : vector<256x32xf32>
    %c1_39 = arith.constant 1 : index
    %c2_40 = arith.constant 2 : index
    %c0_41 = arith.constant 0 : index
    %44 = vector.load %arg15[%c1_39, %c2_40, %c0_41] : memref<18x18x32xf32, #tpu.memory_space<vmem>>, vector<16x16x32xf32>
    %45 = vector.shape_cast %44 : vector<16x16x32xf32> to vector<256x32xf32>
    %c160 = arith.constant 160 : index
    %c0_42 = arith.constant 0 : index
    %46 = vector.load %arg4[%c160, %c0_42] : memref<288x32xf32, #tpu.memory_space<vmem>>, vector<32x32xf32>
    %cst_43 = arith.constant dense<0.000000e+00> : vector<256x32xf32>
    %47 = tpu.matmul %45, %46, %cst_43 {dimension_numbers = #tpu.dot_dimension_numbers<[1], [0], [0], [1], [0, 0, 1, 1], [], []>} : vector<256x32xf32>, vector<32x32xf32>, vector<256x32xf32> -> vector<256x32xf32>
    %48 = arith.addf %43, %47 : vector<256x32xf32>
    %c2_44 = arith.constant 2 : index
    %c0_45 = arith.constant 0 : index
    %c0_46 = arith.constant 0 : index
    %49 = vector.load %arg15[%c2_44, %c0_45, %c0_46] : memref<18x18x32xf32, #tpu.memory_space<vmem>>, vector<16x16x32xf32>
    %50 = vector.shape_cast %49 : vector<16x16x32xf32> to vector<256x32xf32>
    %c192 = arith.constant 192 : index
    %c0_47 = arith.constant 0 : index
    %51 = vector.load %arg4[%c192, %c0_47] : memref<288x32xf32, #tpu.memory_space<vmem>>, vector<32x32xf32>
    %cst_48 = arith.constant dense<0.000000e+00> : vector<256x32xf32>
    %52 = tpu.matmul %50, %51, %cst_48 {dimension_numbers = #tpu.dot_dimension_numbers<[1], [0], [0], [1], [0, 0, 1, 1], [], []>} : vector<256x32xf32>, vector<32x32xf32>, vector<256x32xf32> -> vector<256x32xf32>
    %53 = arith.addf %48, %52 : vector<256x32xf32>
    %c2_49 = arith.constant 2 : index
    %c1_50 = arith.constant 1 : index
    %c0_51 = arith.constant 0 : index
    %54 = vector.load %arg15[%c2_49, %c1_50, %c0_51] : memref<18x18x32xf32, #tpu.memory_space<vmem>>, vector<16x16x32xf32>
    %55 = vector.shape_cast %54 : vector<16x16x32xf32> to vector<256x32xf32>
    %c224 = arith.constant 224 : index
    %c0_52 = arith.constant 0 : index
    %56 = vector.load %arg4[%c224, %c0_52] : memref<288x32xf32, #tpu.memory_space<vmem>>, vector<32x32xf32>
    %cst_53 = arith.constant dense<0.000000e+00> : vector<256x32xf32>
    %57 = tpu.matmul %55, %56, %cst_53 {dimension_numbers = #tpu.dot_dimension_numbers<[1], [0], [0], [1], [0, 0, 1, 1], [], []>} : vector<256x32xf32>, vector<32x32xf32>, vector<256x32xf32> -> vector<256x32xf32>
    %58 = arith.addf %53, %57 : vector<256x32xf32>
    %c2_54 = arith.constant 2 : index
    %c2_55 = arith.constant 2 : index
    %c0_56 = arith.constant 0 : index
    %59 = vector.load %arg15[%c2_54, %c2_55, %c0_56] : memref<18x18x32xf32, #tpu.memory_space<vmem>>, vector<16x16x32xf32>
    %60 = vector.shape_cast %59 : vector<16x16x32xf32> to vector<256x32xf32>
    %c256 = arith.constant 256 : index
    %c0_57 = arith.constant 0 : index
    %61 = vector.load %arg4[%c256, %c0_57] : memref<288x32xf32, #tpu.memory_space<vmem>>, vector<32x32xf32>
    %cst_58 = arith.constant dense<0.000000e+00> : vector<256x32xf32>
    %62 = tpu.matmul %60, %61, %cst_58 {dimension_numbers = #tpu.dot_dimension_numbers<[1], [0], [0], [1], [0, 0, 1, 1], [], []>} : vector<256x32xf32>, vector<32x32xf32>, vector<256x32xf32> -> vector<256x32xf32>
    %63 = arith.addf %58, %62 : vector<256x32xf32>
    %c0_59 = arith.constant 0 : index
    %c0_60 = arith.constant 0 : index
    %64 = vector.load %arg5[%c0_59, %c0_60] : memref<1x32xf32, #tpu.memory_space<vmem>>, vector<1x32xf32>
    %65 = vector.broadcast %64 : vector<1x32xf32> to vector<256x32xf32>
    %66 = arith.addf %63, %65 : vector<256x32xf32>
    %67 = arith.negf %66 : vector<256x32xf32>
    %68 = math.exp %67 : vector<256x32xf32>
    %cst_61 = arith.constant 1.000000e+00 : f32
    %69 = vector.broadcast %cst_61 : f32 to vector<256x32xf32>
    %70 = arith.addf %69, %68 : vector<256x32xf32>
    %71 = arith.divf %69, %70 : vector<256x32xf32>
    %72 = arith.mulf %66, %71 : vector<256x32xf32>
    %73 = vector.shape_cast %72 : vector<256x32xf32> to vector<16x16x32xf32>
    %c1_62 = arith.constant 1 : index
    %c1_63 = arith.constant 1 : index
    %c0_64 = arith.constant 0 : index
    %74 = vector.load %arg15[%c1_62, %c1_63, %c0_64] : memref<18x18x32xf32, #tpu.memory_space<vmem>>, vector<16x16x32xf32>
    tpu.vector_store %arg15[%c1_62, %c1_63, %c0_64], %73 {strides = array<i32>} : memref<18x18x32xf32, #tpu.memory_space<vmem>>, vector<16x16x32xf32>,
    %c0_65 = arith.constant 0 : index
    %c0_66 = arith.constant 0 : index
    %c0_67 = arith.constant 0 : index
    %75 = vector.load %arg15[%c0_65, %c0_66, %c0_67] : memref<18x18x32xf32, #tpu.memory_space<vmem>>, vector<16x16x32xf32>
    %76 = vector.shape_cast %75 : vector<16x16x32xf32> to vector<256x32xf32>
    %c0_68 = arith.constant 0 : index
    %c0_69 = arith.constant 0 : index
    %77 = vector.load %arg6[%c0_68, %c0_69] : memref<288x32xf32, #tpu.memory_space<vmem>>, vector<32x32xf32>
    %cst_70 = arith.constant dense<0.000000e+00> : vector<256x32xf32>
    %78 = tpu.matmul %76, %77, %cst_70 {dimension_numbers = #tpu.dot_dimension_numbers<[1], [0], [0], [1], [0, 0, 1, 1], [], []>} : vector<256x32xf32>, vector<32x32xf32>, vector<256x32xf32> -> vector<256x32xf32>
    %c0_71 = arith.constant 0 : index
    %c1_72 = arith.constant 1 : index
    %c0_73 = arith.constant 0 : index
    %79 = vector.load %arg15[%c0_71, %c1_72, %c0_73] : memref<18x18x32xf32, #tpu.memory_space<vmem>>, vector<16x16x32xf32>
    %80 = vector.shape_cast %79 : vector<16x16x32xf32> to vector<256x32xf32>
    %c32_74 = arith.constant 32 : index
    %c0_75 = arith.constant 0 : index
    %81 = vector.load %arg6[%c32_74, %c0_75] : memref<288x32xf32, #tpu.memory_space<vmem>>, vector<32x32xf32>
    %cst_76 = arith.constant dense<0.000000e+00> : vector<256x32xf32>
    %82 = tpu.matmul %80, %81, %cst_76 {dimension_numbers = #tpu.dot_dimension_numbers<[1], [0], [0], [1], [0, 0, 1, 1], [], []>} : vector<256x32xf32>, vector<32x32xf32>, vector<256x32xf32> -> vector<256x32xf32>
    %83 = arith.addf %78, %82 : vector<256x32xf32>
    %c0_77 = arith.constant 0 : index
    %c2_78 = arith.constant 2 : index
    %c0_79 = arith.constant 0 : index
    %84 = vector.load %arg15[%c0_77, %c2_78, %c0_79] : memref<18x18x32xf32, #tpu.memory_space<vmem>>, vector<16x16x32xf32>
    %85 = vector.shape_cast %84 : vector<16x16x32xf32> to vector<256x32xf32>
    %c64_80 = arith.constant 64 : index
    %c0_81 = arith.constant 0 : index
    %86 = vector.load %arg6[%c64_80, %c0_81] : memref<288x32xf32, #tpu.memory_space<vmem>>, vector<32x32xf32>
    %cst_82 = arith.constant dense<0.000000e+00> : vector<256x32xf32>
    %87 = tpu.matmul %85, %86, %cst_82 {dimension_numbers = #tpu.dot_dimension_numbers<[1], [0], [0], [1], [0, 0, 1, 1], [], []>} : vector<256x32xf32>, vector<32x32xf32>, vector<256x32xf32> -> vector<256x32xf32>
    %88 = arith.addf %83, %87 : vector<256x32xf32>
    %c1_83 = arith.constant 1 : index
    %c0_84 = arith.constant 0 : index
    %c0_85 = arith.constant 0 : index
    %89 = vector.load %arg15[%c1_83, %c0_84, %c0_85] : memref<18x18x32xf32, #tpu.memory_space<vmem>>, vector<16x16x32xf32>
    %90 = vector.shape_cast %89 : vector<16x16x32xf32> to vector<256x32xf32>
    %c96_86 = arith.constant 96 : index
    %c0_87 = arith.constant 0 : index
    %91 = vector.load %arg6[%c96_86, %c0_87] : memref<288x32xf32, #tpu.memory_space<vmem>>, vector<32x32xf32>
    %cst_88 = arith.constant dense<0.000000e+00> : vector<256x32xf32>
    %92 = tpu.matmul %90, %91, %cst_88 {dimension_numbers = #tpu.dot_dimension_numbers<[1], [0], [0], [1], [0, 0, 1, 1], [], []>} : vector<256x32xf32>, vector<32x32xf32>, vector<256x32xf32> -> vector<256x32xf32>
    %93 = arith.addf %88, %92 : vector<256x32xf32>
    %c1_89 = arith.constant 1 : index
    %c1_90 = arith.constant 1 : index
    %c0_91 = arith.constant 0 : index
    %94 = vector.load %arg15[%c1_89, %c1_90, %c0_91] : memref<18x18x32xf32, #tpu.memory_space<vmem>>, vector<16x16x32xf32>
    %95 = vector.shape_cast %94 : vector<16x16x32xf32> to vector<256x32xf32>
    %c128_92 = arith.constant 128 : index
    %c0_93 = arith.constant 0 : index
    %96 = vector.load %arg6[%c128_92, %c0_93] : memref<288x32xf32, #tpu.memory_space<vmem>>, vector<32x32xf32>
    %cst_94 = arith.constant dense<0.000000e+00> : vector<256x32xf32>
    %97 = tpu.matmul %95, %96, %cst_94 {dimension_numbers = #tpu.dot_dimension_numbers<[1], [0], [0], [1], [0, 0, 1, 1], [], []>} : vector<256x32xf32>, vector<32x32xf32>, vector<256x32xf32> -> vector<256x32xf32>
    %98 = arith.addf %93, %97 : vector<256x32xf32>
    %c1_95 = arith.constant 1 : index
    %c2_96 = arith.constant 2 : index
    %c0_97 = arith.constant 0 : index
    %99 = vector.load %arg15[%c1_95, %c2_96, %c0_97] : memref<18x18x32xf32, #tpu.memory_space<vmem>>, vector<16x16x32xf32>
    %100 = vector.shape_cast %99 : vector<16x16x32xf32> to vector<256x32xf32>
    %c160_98 = arith.constant 160 : index
    %c0_99 = arith.constant 0 : index
    %101 = vector.load %arg6[%c160_98, %c0_99] : memref<288x32xf32, #tpu.memory_space<vmem>>, vector<32x32xf32>
    %cst_100 = arith.constant dense<0.000000e+00> : vector<256x32xf32>
    %102 = tpu.matmul %100, %101, %cst_100 {dimension_numbers = #tpu.dot_dimension_numbers<[1], [0], [0], [1], [0, 0, 1, 1], [], []>} : vector<256x32xf32>, vector<32x32xf32>, vector<256x32xf32> -> vector<256x32xf32>
    %103 = arith.addf %98, %102 : vector<256x32xf32>
    %c2_101 = arith.constant 2 : index
    %c0_102 = arith.constant 0 : index
    %c0_103 = arith.constant 0 : index
    %104 = vector.load %arg15[%c2_101, %c0_102, %c0_103] : memref<18x18x32xf32, #tpu.memory_space<vmem>>, vector<16x16x32xf32>
    %105 = vector.shape_cast %104 : vector<16x16x32xf32> to vector<256x32xf32>
    %c192_104 = arith.constant 192 : index
    %c0_105 = arith.constant 0 : index
    %106 = vector.load %arg6[%c192_104, %c0_105] : memref<288x32xf32, #tpu.memory_space<vmem>>, vector<32x32xf32>
    %cst_106 = arith.constant dense<0.000000e+00> : vector<256x32xf32>
    %107 = tpu.matmul %105, %106, %cst_106 {dimension_numbers = #tpu.dot_dimension_numbers<[1], [0], [0], [1], [0, 0, 1, 1], [], []>} : vector<256x32xf32>, vector<32x32xf32>, vector<256x32xf32> -> vector<256x32xf32>
    %108 = arith.addf %103, %107 : vector<256x32xf32>
    %c2_107 = arith.constant 2 : index
    %c1_108 = arith.constant 1 : index
    %c0_109 = arith.constant 0 : index
    %109 = vector.load %arg15[%c2_107, %c1_108, %c0_109] : memref<18x18x32xf32, #tpu.memory_space<vmem>>, vector<16x16x32xf32>
    %110 = vector.shape_cast %109 : vector<16x16x32xf32> to vector<256x32xf32>
    %c224_110 = arith.constant 224 : index
    %c0_111 = arith.constant 0 : index
    %111 = vector.load %arg6[%c224_110, %c0_111] : memref<288x32xf32, #tpu.memory_space<vmem>>, vector<32x32xf32>
    %cst_112 = arith.constant dense<0.000000e+00> : vector<256x32xf32>
    %112 = tpu.matmul %110, %111, %cst_112 {dimension_numbers = #tpu.dot_dimension_numbers<[1], [0], [0], [1], [0, 0, 1, 1], [], []>} : vector<256x32xf32>, vector<32x32xf32>, vector<256x32xf32> -> vector<256x32xf32>
    %113 = arith.addf %108, %112 : vector<256x32xf32>
    %c2_113 = arith.constant 2 : index
    %c2_114 = arith.constant 2 : index
    %c0_115 = arith.constant 0 : index
    %114 = vector.load %arg15[%c2_113, %c2_114, %c0_115] : memref<18x18x32xf32, #tpu.memory_space<vmem>>, vector<16x16x32xf32>
    %115 = vector.shape_cast %114 : vector<16x16x32xf32> to vector<256x32xf32>
    %c256_116 = arith.constant 256 : index
    %c0_117 = arith.constant 0 : index
    %116 = vector.load %arg6[%c256_116, %c0_117] : memref<288x32xf32, #tpu.memory_space<vmem>>, vector<32x32xf32>
    %cst_118 = arith.constant dense<0.000000e+00> : vector<256x32xf32>
    %117 = tpu.matmul %115, %116, %cst_118 {dimension_numbers = #tpu.dot_dimension_numbers<[1], [0], [0], [1], [0, 0, 1, 1], [], []>} : vector<256x32xf32>, vector<32x32xf32>, vector<256x32xf32> -> vector<256x32xf32>
    %118 = arith.addf %113, %117 : vector<256x32xf32>
    %c0_119 = arith.constant 0 : index
    %c0_120 = arith.constant 0 : index
    %119 = vector.load %arg7[%c0_119, %c0_120] : memref<1x32xf32, #tpu.memory_space<vmem>>, vector<1x32xf32>
    %120 = vector.broadcast %119 : vector<1x32xf32> to vector<256x32xf32>
    %121 = arith.addf %118, %120 : vector<256x32xf32>
    %122 = arith.negf %121 : vector<256x32xf32>
    %123 = math.exp %122 : vector<256x32xf32>
    %cst_121 = arith.constant 1.000000e+00 : f32
    %124 = vector.broadcast %cst_121 : f32 to vector<256x32xf32>
    %125 = arith.addf %124, %123 : vector<256x32xf32>
    %126 = arith.divf %124, %125 : vector<256x32xf32>
    %127 = arith.mulf %121, %126 : vector<256x32xf32>
    %128 = vector.shape_cast %127 : vector<256x32xf32> to vector<16x16x32xf32>
    %c1_122 = arith.constant 1 : index
    %c1_123 = arith.constant 1 : index
    %c0_124 = arith.constant 0 : index
    %129 = vector.load %arg15[%c1_122, %c1_123, %c0_124] : memref<18x18x32xf32, #tpu.memory_space<vmem>>, vector<16x16x32xf32>
    tpu.vector_store %arg15[%c1_122, %c1_123, %c0_124], %128 {strides = array<i32>} : memref<18x18x32xf32, #tpu.memory_space<vmem>>, vector<16x16x32xf32>,
    %c0_125 = arith.constant 0 : index
    %c0_126 = arith.constant 0 : index
    %c0_127 = arith.constant 0 : index
    %130 = vector.load %arg15[%c0_125, %c0_126, %c0_127] : memref<18x18x32xf32, #tpu.memory_space<vmem>>, vector<16x16x32xf32>
    %131 = vector.shape_cast %130 : vector<16x16x32xf32> to vector<256x32xf32>
    %c0_128 = arith.constant 0 : index
    %c0_129 = arith.constant 0 : index
    %132 = vector.load %arg8[%c0_128, %c0_129] : memref<288x32xf32, #tpu.memory_space<vmem>>, vector<32x32xf32>
    %cst_130 = arith.constant dense<0.000000e+00> : vector<256x32xf32>
    %133 = tpu.matmul %131, %132, %cst_130 {dimension_numbers = #tpu.dot_dimension_numbers<[1], [0], [0], [1], [0, 0, 1, 1], [], []>} : vector<256x32xf32>, vector<32x32xf32>, vector<256x32xf32> -> vector<256x32xf32>
    %c0_131 = arith.constant 0 : index
    %c1_132 = arith.constant 1 : index
    %c0_133 = arith.constant 0 : index
    %134 = vector.load %arg15[%c0_131, %c1_132, %c0_133] : memref<18x18x32xf32, #tpu.memory_space<vmem>>, vector<16x16x32xf32>
    %135 = vector.shape_cast %134 : vector<16x16x32xf32> to vector<256x32xf32>
    %c32_134 = arith.constant 32 : index
    %c0_135 = arith.constant 0 : index
    %136 = vector.load %arg8[%c32_134, %c0_135] : memref<288x32xf32, #tpu.memory_space<vmem>>, vector<32x32xf32>
    %cst_136 = arith.constant dense<0.000000e+00> : vector<256x32xf32>
    %137 = tpu.matmul %135, %136, %cst_136 {dimension_numbers = #tpu.dot_dimension_numbers<[1], [0], [0], [1], [0, 0, 1, 1], [], []>} : vector<256x32xf32>, vector<32x32xf32>, vector<256x32xf32> -> vector<256x32xf32>
    %138 = arith.addf %133, %137 : vector<256x32xf32>
    %c0_137 = arith.constant 0 : index
    %c2_138 = arith.constant 2 : index
    %c0_139 = arith.constant 0 : index
    %139 = vector.load %arg15[%c0_137, %c2_138, %c0_139] : memref<18x18x32xf32, #tpu.memory_space<vmem>>, vector<16x16x32xf32>
    %140 = vector.shape_cast %139 : vector<16x16x32xf32> to vector<256x32xf32>
    %c64_140 = arith.constant 64 : index
    %c0_141 = arith.constant 0 : index
    %141 = vector.load %arg8[%c64_140, %c0_141] : memref<288x32xf32, #tpu.memory_space<vmem>>, vector<32x32xf32>
    %cst_142 = arith.constant dense<0.000000e+00> : vector<256x32xf32>
    %142 = tpu.matmul %140, %141, %cst_142 {dimension_numbers = #tpu.dot_dimension_numbers<[1], [0], [0], [1], [0, 0, 1, 1], [], []>} : vector<256x32xf32>, vector<32x32xf32>, vector<256x32xf32> -> vector<256x32xf32>
    %143 = arith.addf %138, %142 : vector<256x32xf32>
    %c1_143 = arith.constant 1 : index
    %c0_144 = arith.constant 0 : index
    %c0_145 = arith.constant 0 : index
    %144 = vector.load %arg15[%c1_143, %c0_144, %c0_145] : memref<18x18x32xf32, #tpu.memory_space<vmem>>, vector<16x16x32xf32>
    %145 = vector.shape_cast %144 : vector<16x16x32xf32> to vector<256x32xf32>
    %c96_146 = arith.constant 96 : index
    %c0_147 = arith.constant 0 : index
    %146 = vector.load %arg8[%c96_146, %c0_147] : memref<288x32xf32, #tpu.memory_space<vmem>>, vector<32x32xf32>
    %cst_148 = arith.constant dense<0.000000e+00> : vector<256x32xf32>
    %147 = tpu.matmul %145, %146, %cst_148 {dimension_numbers = #tpu.dot_dimension_numbers<[1], [0], [0], [1], [0, 0, 1, 1], [], []>} : vector<256x32xf32>, vector<32x32xf32>, vector<256x32xf32> -> vector<256x32xf32>
    %148 = arith.addf %143, %147 : vector<256x32xf32>
    %c1_149 = arith.constant 1 : index
    %c1_150 = arith.constant 1 : index
    %c0_151 = arith.constant 0 : index
    %149 = vector.load %arg15[%c1_149, %c1_150, %c0_151] : memref<18x18x32xf32, #tpu.memory_space<vmem>>, vector<16x16x32xf32>
    %150 = vector.shape_cast %149 : vector<16x16x32xf32> to vector<256x32xf32>
    %c128_152 = arith.constant 128 : index
    %c0_153 = arith.constant 0 : index
    %151 = vector.load %arg8[%c128_152, %c0_153] : memref<288x32xf32, #tpu.memory_space<vmem>>, vector<32x32xf32>
    %cst_154 = arith.constant dense<0.000000e+00> : vector<256x32xf32>
    %152 = tpu.matmul %150, %151, %cst_154 {dimension_numbers = #tpu.dot_dimension_numbers<[1], [0], [0], [1], [0, 0, 1, 1], [], []>} : vector<256x32xf32>, vector<32x32xf32>, vector<256x32xf32> -> vector<256x32xf32>
    %153 = arith.addf %148, %152 : vector<256x32xf32>
    %c1_155 = arith.constant 1 : index
    %c2_156 = arith.constant 2 : index
    %c0_157 = arith.constant 0 : index
    %154 = vector.load %arg15[%c1_155, %c2_156, %c0_157] : memref<18x18x32xf32, #tpu.memory_space<vmem>>, vector<16x16x32xf32>
    %155 = vector.shape_cast %154 : vector<16x16x32xf32> to vector<256x32xf32>
    %c160_158 = arith.constant 160 : index
    %c0_159 = arith.constant 0 : index
    %156 = vector.load %arg8[%c160_158, %c0_159] : memref<288x32xf32, #tpu.memory_space<vmem>>, vector<32x32xf32>
    %cst_160 = arith.constant dense<0.000000e+00> : vector<256x32xf32>
    %157 = tpu.matmul %155, %156, %cst_160 {dimension_numbers = #tpu.dot_dimension_numbers<[1], [0], [0], [1], [0, 0, 1, 1], [], []>} : vector<256x32xf32>, vector<32x32xf32>, vector<256x32xf32> -> vector<256x32xf32>
    %158 = arith.addf %153, %157 : vector<256x32xf32>
    %c2_161 = arith.constant 2 : index
    %c0_162 = arith.constant 0 : index
    %c0_163 = arith.constant 0 : index
    %159 = vector.load %arg15[%c2_161, %c0_162, %c0_163] : memref<18x18x32xf32, #tpu.memory_space<vmem>>, vector<16x16x32xf32>
    %160 = vector.shape_cast %159 : vector<16x16x32xf32> to vector<256x32xf32>
    %c192_164 = arith.constant 192 : index
    %c0_165 = arith.constant 0 : index
    %161 = vector.load %arg8[%c192_164, %c0_165] : memref<288x32xf32, #tpu.memory_space<vmem>>, vector<32x32xf32>
    %cst_166 = arith.constant dense<0.000000e+00> : vector<256x32xf32>
    %162 = tpu.matmul %160, %161, %cst_166 {dimension_numbers = #tpu.dot_dimension_numbers<[1], [0], [0], [1], [0, 0, 1, 1], [], []>} : vector<256x32xf32>, vector<32x32xf32>, vector<256x32xf32> -> vector<256x32xf32>
    %163 = arith.addf %158, %162 : vector<256x32xf32>
    %c2_167 = arith.constant 2 : index
    %c1_168 = arith.constant 1 : index
    %c0_169 = arith.constant 0 : index
    %164 = vector.load %arg15[%c2_167, %c1_168, %c0_169] : memref<18x18x32xf32, #tpu.memory_space<vmem>>, vector<16x16x32xf32>
    %165 = vector.shape_cast %164 : vector<16x16x32xf32> to vector<256x32xf32>
    %c224_170 = arith.constant 224 : index
    %c0_171 = arith.constant 0 : index
    %166 = vector.load %arg8[%c224_170, %c0_171] : memref<288x32xf32, #tpu.memory_space<vmem>>, vector<32x32xf32>
    %cst_172 = arith.constant dense<0.000000e+00> : vector<256x32xf32>
    %167 = tpu.matmul %165, %166, %cst_172 {dimension_numbers = #tpu.dot_dimension_numbers<[1], [0], [0], [1], [0, 0, 1, 1], [], []>} : vector<256x32xf32>, vector<32x32xf32>, vector<256x32xf32> -> vector<256x32xf32>
    %168 = arith.addf %163, %167 : vector<256x32xf32>
    %c2_173 = arith.constant 2 : index
    %c2_174 = arith.constant 2 : index
    %c0_175 = arith.constant 0 : index
    %169 = vector.load %arg15[%c2_173, %c2_174, %c0_175] : memref<18x18x32xf32, #tpu.memory_space<vmem>>, vector<16x16x32xf32>
    %170 = vector.shape_cast %169 : vector<16x16x32xf32> to vector<256x32xf32>
    %c256_176 = arith.constant 256 : index
    %c0_177 = arith.constant 0 : index
    %171 = vector.load %arg8[%c256_176, %c0_177] : memref<288x32xf32, #tpu.memory_space<vmem>>, vector<32x32xf32>
    %cst_178 = arith.constant dense<0.000000e+00> : vector<256x32xf32>
    %172 = tpu.matmul %170, %171, %cst_178 {dimension_numbers = #tpu.dot_dimension_numbers<[1], [0], [0], [1], [0, 0, 1, 1], [], []>} : vector<256x32xf32>, vector<32x32xf32>, vector<256x32xf32> -> vector<256x32xf32>
    %173 = arith.addf %168, %172 : vector<256x32xf32>
    %c0_179 = arith.constant 0 : index
    %c0_180 = arith.constant 0 : index
    %174 = vector.load %arg9[%c0_179, %c0_180] : memref<1x32xf32, #tpu.memory_space<vmem>>, vector<1x32xf32>
    %175 = vector.broadcast %174 : vector<1x32xf32> to vector<256x32xf32>
    %176 = arith.addf %173, %175 : vector<256x32xf32>
    %177 = arith.negf %176 : vector<256x32xf32>
    %178 = math.exp %177 : vector<256x32xf32>
    %cst_181 = arith.constant 1.000000e+00 : f32
    %179 = vector.broadcast %cst_181 : f32 to vector<256x32xf32>
    %180 = arith.addf %179, %178 : vector<256x32xf32>
    %181 = arith.divf %179, %180 : vector<256x32xf32>
    %182 = arith.mulf %176, %181 : vector<256x32xf32>
    %183 = vector.shape_cast %182 : vector<256x32xf32> to vector<16x16x32xf32>
    %c1_182 = arith.constant 1 : index
    %c1_183 = arith.constant 1 : index
    %c0_184 = arith.constant 0 : index
    %184 = vector.load %arg15[%c1_182, %c1_183, %c0_184] : memref<18x18x32xf32, #tpu.memory_space<vmem>>, vector<16x16x32xf32>
    tpu.vector_store %arg15[%c1_182, %c1_183, %c0_184], %183 {strides = array<i32>} : memref<18x18x32xf32, #tpu.memory_space<vmem>>, vector<16x16x32xf32>,
    %c0_185 = arith.constant 0 : index
    %c0_186 = arith.constant 0 : index
    %c0_187 = arith.constant 0 : index
    %185 = vector.load %arg15[%c0_185, %c0_186, %c0_187] : memref<18x18x32xf32, #tpu.memory_space<vmem>>, vector<16x16x32xf32>
    %186 = vector.shape_cast %185 : vector<16x16x32xf32> to vector<256x32xf32>
    %c0_188 = arith.constant 0 : index
    %c0_189 = arith.constant 0 : index
    %187 = vector.load %arg10[%c0_188, %c0_189] : memref<288x32xf32, #tpu.memory_space<vmem>>, vector<32x32xf32>
    %cst_190 = arith.constant dense<0.000000e+00> : vector<256x32xf32>
    %188 = tpu.matmul %186, %187, %cst_190 {dimension_numbers = #tpu.dot_dimension_numbers<[1], [0], [0], [1], [0, 0, 1, 1], [], []>} : vector<256x32xf32>, vector<32x32xf32>, vector<256x32xf32> -> vector<256x32xf32>
    %c0_191 = arith.constant 0 : index
    %c1_192 = arith.constant 1 : index
    %c0_193 = arith.constant 0 : index
    %189 = vector.load %arg15[%c0_191, %c1_192, %c0_193] : memref<18x18x32xf32, #tpu.memory_space<vmem>>, vector<16x16x32xf32>
    %190 = vector.shape_cast %189 : vector<16x16x32xf32> to vector<256x32xf32>
    %c32_194 = arith.constant 32 : index
    %c0_195 = arith.constant 0 : index
    %191 = vector.load %arg10[%c32_194, %c0_195] : memref<288x32xf32, #tpu.memory_space<vmem>>, vector<32x32xf32>
    %cst_196 = arith.constant dense<0.000000e+00> : vector<256x32xf32>
    %192 = tpu.matmul %190, %191, %cst_196 {dimension_numbers = #tpu.dot_dimension_numbers<[1], [0], [0], [1], [0, 0, 1, 1], [], []>} : vector<256x32xf32>, vector<32x32xf32>, vector<256x32xf32> -> vector<256x32xf32>
    %193 = arith.addf %188, %192 : vector<256x32xf32>
    %c0_197 = arith.constant 0 : index
    %c2_198 = arith.constant 2 : index
    %c0_199 = arith.constant 0 : index
    %194 = vector.load %arg15[%c0_197, %c2_198, %c0_199] : memref<18x18x32xf32, #tpu.memory_space<vmem>>, vector<16x16x32xf32>
    %195 = vector.shape_cast %194 : vector<16x16x32xf32> to vector<256x32xf32>
    %c64_200 = arith.constant 64 : index
    %c0_201 = arith.constant 0 : index
    %196 = vector.load %arg10[%c64_200, %c0_201] : memref<288x32xf32, #tpu.memory_space<vmem>>, vector<32x32xf32>
    %cst_202 = arith.constant dense<0.000000e+00> : vector<256x32xf32>
    %197 = tpu.matmul %195, %196, %cst_202 {dimension_numbers = #tpu.dot_dimension_numbers<[1], [0], [0], [1], [0, 0, 1, 1], [], []>} : vector<256x32xf32>, vector<32x32xf32>, vector<256x32xf32> -> vector<256x32xf32>
    %198 = arith.addf %193, %197 : vector<256x32xf32>
    %c1_203 = arith.constant 1 : index
    %c0_204 = arith.constant 0 : index
    %c0_205 = arith.constant 0 : index
    %199 = vector.load %arg15[%c1_203, %c0_204, %c0_205] : memref<18x18x32xf32, #tpu.memory_space<vmem>>, vector<16x16x32xf32>
    %200 = vector.shape_cast %199 : vector<16x16x32xf32> to vector<256x32xf32>
    %c96_206 = arith.constant 96 : index
    %c0_207 = arith.constant 0 : index
    %201 = vector.load %arg10[%c96_206, %c0_207] : memref<288x32xf32, #tpu.memory_space<vmem>>, vector<32x32xf32>
    %cst_208 = arith.constant dense<0.000000e+00> : vector<256x32xf32>
    %202 = tpu.matmul %200, %201, %cst_208 {dimension_numbers = #tpu.dot_dimension_numbers<[1], [0], [0], [1], [0, 0, 1, 1], [], []>} : vector<256x32xf32>, vector<32x32xf32>, vector<256x32xf32> -> vector<256x32xf32>
    %203 = arith.addf %198, %202 : vector<256x32xf32>
    %c1_209 = arith.constant 1 : index
    %c1_210 = arith.constant 1 : index
    %c0_211 = arith.constant 0 : index
    %204 = vector.load %arg15[%c1_209, %c1_210, %c0_211] : memref<18x18x32xf32, #tpu.memory_space<vmem>>, vector<16x16x32xf32>
    %205 = vector.shape_cast %204 : vector<16x16x32xf32> to vector<256x32xf32>
    %c128_212 = arith.constant 128 : index
    %c0_213 = arith.constant 0 : index
    %206 = vector.load %arg10[%c128_212, %c0_213] : memref<288x32xf32, #tpu.memory_space<vmem>>, vector<32x32xf32>
    %cst_214 = arith.constant dense<0.000000e+00> : vector<256x32xf32>
    %207 = tpu.matmul %205, %206, %cst_214 {dimension_numbers = #tpu.dot_dimension_numbers<[1], [0], [0], [1], [0, 0, 1, 1], [], []>} : vector<256x32xf32>, vector<32x32xf32>, vector<256x32xf32> -> vector<256x32xf32>
    %208 = arith.addf %203, %207 : vector<256x32xf32>
    %c1_215 = arith.constant 1 : index
    %c2_216 = arith.constant 2 : index
    %c0_217 = arith.constant 0 : index
    %209 = vector.load %arg15[%c1_215, %c2_216, %c0_217] : memref<18x18x32xf32, #tpu.memory_space<vmem>>, vector<16x16x32xf32>
    %210 = vector.shape_cast %209 : vector<16x16x32xf32> to vector<256x32xf32>
    %c160_218 = arith.constant 160 : index
    %c0_219 = arith.constant 0 : index
    %211 = vector.load %arg10[%c160_218, %c0_219] : memref<288x32xf32, #tpu.memory_space<vmem>>, vector<32x32xf32>
    %cst_220 = arith.constant dense<0.000000e+00> : vector<256x32xf32>
    %212 = tpu.matmul %210, %211, %cst_220 {dimension_numbers = #tpu.dot_dimension_numbers<[1], [0], [0], [1], [0, 0, 1, 1], [], []>} : vector<256x32xf32>, vector<32x32xf32>, vector<256x32xf32> -> vector<256x32xf32>
    %213 = arith.addf %208, %212 : vector<256x32xf32>
    %c2_221 = arith.constant 2 : index
    %c0_222 = arith.constant 0 : index
    %c0_223 = arith.constant 0 : index
    %214 = vector.load %arg15[%c2_221, %c0_222, %c0_223] : memref<18x18x32xf32, #tpu.memory_space<vmem>>, vector<16x16x32xf32>
    %215 = vector.shape_cast %214 : vector<16x16x32xf32> to vector<256x32xf32>
    %c192_224 = arith.constant 192 : index
    %c0_225 = arith.constant 0 : index
    %216 = vector.load %arg10[%c192_224, %c0_225] : memref<288x32xf32, #tpu.memory_space<vmem>>, vector<32x32xf32>
    %cst_226 = arith.constant dense<0.000000e+00> : vector<256x32xf32>
    %217 = tpu.matmul %215, %216, %cst_226 {dimension_numbers = #tpu.dot_dimension_numbers<[1], [0], [0], [1], [0, 0, 1, 1], [], []>} : vector<256x32xf32>, vector<32x32xf32>, vector<256x32xf32> -> vector<256x32xf32>
    %218 = arith.addf %213, %217 : vector<256x32xf32>
    %c2_227 = arith.constant 2 : index
    %c1_228 = arith.constant 1 : index
    %c0_229 = arith.constant 0 : index
    %219 = vector.load %arg15[%c2_227, %c1_228, %c0_229] : memref<18x18x32xf32, #tpu.memory_space<vmem>>, vector<16x16x32xf32>
    %220 = vector.shape_cast %219 : vector<16x16x32xf32> to vector<256x32xf32>
    %c224_230 = arith.constant 224 : index
    %c0_231 = arith.constant 0 : index
    %221 = vector.load %arg10[%c224_230, %c0_231] : memref<288x32xf32, #tpu.memory_space<vmem>>, vector<32x32xf32>
    %cst_232 = arith.constant dense<0.000000e+00> : vector<256x32xf32>
    %222 = tpu.matmul %220, %221, %cst_232 {dimension_numbers = #tpu.dot_dimension_numbers<[1], [0], [0], [1], [0, 0, 1, 1], [], []>} : vector<256x32xf32>, vector<32x32xf32>, vector<256x32xf32> -> vector<256x32xf32>
    %223 = arith.addf %218, %222 : vector<256x32xf32>
    %c2_233 = arith.constant 2 : index
    %c2_234 = arith.constant 2 : index
    %c0_235 = arith.constant 0 : index
    %224 = vector.load %arg15[%c2_233, %c2_234, %c0_235] : memref<18x18x32xf32, #tpu.memory_space<vmem>>, vector<16x16x32xf32>
    %225 = vector.shape_cast %224 : vector<16x16x32xf32> to vector<256x32xf32>
    %c256_236 = arith.constant 256 : index
    %c0_237 = arith.constant 0 : index
    %226 = vector.load %arg10[%c256_236, %c0_237] : memref<288x32xf32, #tpu.memory_space<vmem>>, vector<32x32xf32>
    %cst_238 = arith.constant dense<0.000000e+00> : vector<256x32xf32>
    %227 = tpu.matmul %225, %226, %cst_238 {dimension_numbers = #tpu.dot_dimension_numbers<[1], [0], [0], [1], [0, 0, 1, 1], [], []>} : vector<256x32xf32>, vector<32x32xf32>, vector<256x32xf32> -> vector<256x32xf32>
    %228 = arith.addf %223, %227 : vector<256x32xf32>
    %c0_239 = arith.constant 0 : index
    %c0_240 = arith.constant 0 : index
    %229 = vector.load %arg11[%c0_239, %c0_240] : memref<1x32xf32, #tpu.memory_space<vmem>>, vector<1x32xf32>
    %230 = vector.broadcast %229 : vector<1x32xf32> to vector<256x32xf32>
    %231 = arith.addf %228, %230 : vector<256x32xf32>
    %232 = arith.negf %231 : vector<256x32xf32>
    %233 = math.exp %232 : vector<256x32xf32>
    %cst_241 = arith.constant 1.000000e+00 : f32
    %234 = vector.broadcast %cst_241 : f32 to vector<256x32xf32>
    %235 = arith.addf %234, %233 : vector<256x32xf32>
    %236 = arith.divf %234, %235 : vector<256x32xf32>
    %237 = arith.mulf %231, %236 : vector<256x32xf32>
    %238 = tpu.concatenate %16, %17, %127, %237 in 1 : vector<256x32xf32>, vector<256x32xf32>, vector<256x32xf32>, vector<256x32xf32> -> vector<256x128xf32>
    %239 = tpu.transpose %238, [1, 0] : vector<256x128xf32> -> vector<128x256xf32>
    %c0_242 = arith.constant 0 : index
    %c0_243 = arith.constant 0 : index
    %240 = vector.load %arg12[%c0_242, %c0_243] : memref<64x128xf32, #tpu.memory_space<vmem>>, vector<64x128xf32>
    %cst_244 = arith.constant dense<0.000000e+00> : vector<64x256xf32>
    %241 = tpu.matmul %240, %239, %cst_244 {dimension_numbers = #tpu.dot_dimension_numbers<[1], [0], [0], [1], [0, 0, 1, 1], [], []>} : vector<64x128xf32>, vector<128x256xf32>, vector<64x256xf32> -> vector<64x256xf32>
    %c0_245 = arith.constant 0 : index
    %c0_246 = arith.constant 0 : index
    %242 = vector.load %arg13[%c0_245, %c0_246] : memref<64x1xf32, #tpu.memory_space<vmem>>, vector<64x1xf32>
    %243 = vector.broadcast %242 : vector<64x1xf32> to vector<64x256xf32>
    %244 = arith.addf %241, %243 : vector<64x256xf32>
    %245 = arith.negf %244 : vector<64x256xf32>
    %246 = math.exp %245 : vector<64x256xf32>
    %cst_247 = arith.constant 1.000000e+00 : f32
    %247 = vector.broadcast %cst_247 : f32 to vector<64x256xf32>
    %248 = arith.addf %247, %246 : vector<64x256xf32>
    %249 = arith.divf %247, %248 : vector<64x256xf32>
    %250 = arith.mulf %244, %249 : vector<64x256xf32>
    %c0_248 = arith.constant 0 : index
    %c0_249 = arith.constant 0 : index
    %c0_250 = arith.constant 0 : index
    %251 = vector.load %arg14[%c0_248, %c0_249, %c0_250] : memref<1x64x256xf32, #tpu.memory_space<vmem>>, vector<1x64x256xf32>
    %252 = vector.shape_cast %251 : vector<1x64x256xf32> to vector<64x256xf32>
    %253 = vector.shape_cast %250 : vector<64x256xf32> to vector<1x64x256xf32>
    tpu.vector_store %arg14[%c0_248, %c0_249, %c0_250], %253 {strides = array<i32>} : memref<1x64x256xf32, #tpu.memory_space<vmem>>, vector<1x64x256xf32>,
    return
  }
  func.func @transform_0(%arg0: i32) -> (i32, i32, i32, i32) {
    %c0_i32 = arith.constant 0 : i32
    %c0_i32_0 = arith.constant 0 : i32
    %c0_i32_1 = arith.constant 0 : i32
    %c0_i32_2 = arith.constant 0 : i32
    return %arg0, %c0_i32, %c0_i32_0, %c0_i32_1 : i32, i32, i32, i32
  }
  func.func @transform_1(%arg0: i32) -> (i32, i32) {
    %c0_i32 = arith.constant 0 : i32
    %c0_i32_0 = arith.constant 0 : i32
    %c0_i32_1 = arith.constant 0 : i32
    return %c0_i32, %c0_i32_0 : i32, i32
  }
  func.func @transform_2(%arg0: i32) -> (i32, i32) {
    %c0_i32 = arith.constant 0 : i32
    %c0_i32_0 = arith.constant 0 : i32
    %c0_i32_1 = arith.constant 0 : i32
    return %c0_i32, %c0_i32_0 : i32, i32
  }
  func.func @transform_3(%arg0: i32) -> (i32, i32) {
    %c0_i32 = arith.constant 0 : i32
    %c0_i32_0 = arith.constant 0 : i32
    %c0_i32_1 = arith.constant 0 : i32
    return %c0_i32, %c0_i32_0 : i32, i32
  }
  func.func @transform_4(%arg0: i32) -> (i32, i32) {
    %c0_i32 = arith.constant 0 : i32
    %c0_i32_0 = arith.constant 0 : i32
    %c0_i32_1 = arith.constant 0 : i32
    return %c0_i32, %c0_i32_0 : i32, i32
  }
  func.func @transform_5(%arg0: i32) -> (i32, i32) {
    %c0_i32 = arith.constant 0 : i32
    %c0_i32_0 = arith.constant 0 : i32
    %c0_i32_1 = arith.constant 0 : i32
    return %c0_i32, %c0_i32_0 : i32, i32
  }
  func.func @transform_6(%arg0: i32) -> (i32, i32) {
    %c0_i32 = arith.constant 0 : i32
    %c0_i32_0 = arith.constant 0 : i32
    %c0_i32_1 = arith.constant 0 : i32
    return %c0_i32, %c0_i32_0 : i32, i32
  }
  func.func @transform_7(%arg0: i32) -> (i32, i32) {
    %c0_i32 = arith.constant 0 : i32
    %c0_i32_0 = arith.constant 0 : i32
    %c0_i32_1 = arith.constant 0 : i32
    return %c0_i32, %c0_i32_0 : i32, i32
  }
  func.func @transform_8(%arg0: i32) -> (i32, i32) {
    %c0_i32 = arith.constant 0 : i32
    %c0_i32_0 = arith.constant 0 : i32
    %c0_i32_1 = arith.constant 0 : i32
    return %c0_i32, %c0_i32_0 : i32, i32
  }
  func.func @transform_9(%arg0: i32) -> (i32, i32) {
    %c0_i32 = arith.constant 0 : i32
    %c0_i32_0 = arith.constant 0 : i32
    %c0_i32_1 = arith.constant 0 : i32
    return %c0_i32, %c0_i32_0 : i32, i32
  }
  func.func @transform_10(%arg0: i32) -> (i32, i32) {
    %c0_i32 = arith.constant 0 : i32
    %c0_i32_0 = arith.constant 0 : i32
    %c0_i32_1 = arith.constant 0 : i32
    return %c0_i32, %c0_i32_0 : i32, i32
  }
  func.func @transform_11(%arg0: i32) -> (i32, i32) {
    %c0_i32 = arith.constant 0 : i32
    %c0_i32_0 = arith.constant 0 : i32
    %c0_i32_1 = arith.constant 0 : i32
    return %c0_i32, %c0_i32_0 : i32, i32
  }
  func.func @transform_12(%arg0: i32) -> (i32, i32) {
    %c0_i32 = arith.constant 0 : i32
    %c0_i32_0 = arith.constant 0 : i32
    %c0_i32_1 = arith.constant 0 : i32
    return %c0_i32, %c0_i32_0 : i32, i32
  }
  func.func @transform_13(%arg0: i32) -> (i32, i32, i32) {
    %c0_i32 = arith.constant 0 : i32
    %c0_i32_0 = arith.constant 0 : i32
    %c0_i32_1 = arith.constant 0 : i32
    return %arg0, %c0_i32, %c0_i32_0 : i32, i32, i32
  }
}

</mosaic_0001>

<bundles_post_ra>
// kernel: tpu_custom_call.1
= control target key start
LH: loop header
LB: loop body
LE: loop exit
PB: predicated region body
PF: predicated region fallthrough
CT: control target
= control target key end

     0   :  { %s29371_s0 = inlined_call_operand.vmem [shape: f32[2,16,16,32], index: 0, kind: input, shape index: {}]   ;;  %s29372_s1 = inlined_call_operand.vmem [shape: f32[32,64], index: 1, kind: input, shape index: {}]   ;;  %s29373_s2 = inlined_call_operand.vmem [shape: f32[1,64], index: 2, kind: input, shape index: {}]   ;;  %s29374_s3 = inlined_call_operand.vmem [shape: f32[288,32], index: 3, kind: input, shape index: {}]   ;;  %s29375_s4 = inlined_call_operand.vmem [shape: f32[1,32], index: 4, kind: input, shape index: {}]   ;;  %s29376_s5 = inlined_call_operand.vmem [shape: f32[288,32], index: 5, kind: input, shape index: {}]   ;;  %s29377_s6 = inlined_call_operand.vmem [shape: f32[1,32], index: 6, kind: input, shape index: {}]   ;;  %s29378_s7 = inlined_call_operand.vmem [shape: f32[288,32], index: 7, kind: input, shape index: {}]   ;;  %s29379_s8 = inlined_call_operand.vmem [shape: f32[1,32], index: 8, kind: input, shape index: {}]   ;;  %s29380_s9 = inlined_call_operand.vmem [shape: f32[288,32], index: 9, kind: input, shape index: {}]   ;;  %s29381_s10 = inlined_call_operand.vmem [shape: f32[1,32], index: 10, kind: input, shape index: {}]   ;;  %s29382_s11 = inlined_call_operand.vmem [shape: f32[64,128], index: 11, kind: input, shape index: {}]   ;;  %s29383_s12 = inlined_call_operand.vmem [shape: f32[64,1], index: 12, kind: input, shape index: {}]   ;;  %s29384_s13 = inlined_call_operand.hbm [shape: f32[2,64,256], index: 13, kind: output, shape index: {}]  }
   0x1   :  { %29709 = sst [smem:[#allocation100_spill]] %s29371_s0 }
   0x2   :  { %18 = vsyncpa [#allocation4], 0 }
   0x3   :  { %20 = vsyncpa [#allocation4 + $0x1], 0  ;;  %s24075_s25 = smov 0   ;;  %s24077_s26 = smov 0  }
   0x4   :  { %s24079_s27 = smov 0   ;;  %s24081_s28 = smov 0  }
   0x5 LB: > { %s24096_s29 = sadd.s32 4294967295, %s23996_s28   ;;  %s16836_s30 = sadd.s32 4294967294, %s23996_s28   ;;  %s23996_s28 = sphi %s24081_s28, %s30183_s28   ;;  %s23992_s27 = sphi %s24079_s27, %s30182_s27   ;;  %s23988_s26 = sphi %s24077_s26, %s30181_s26   ;;  %s23984_s25 = sphi %s24075_s25, %s30180_s25  }
   0x6   : > { %s24100_s14 = sadd.s32 1, %s23996_s28   ;;  %s311_s15 = sadd.s32 1, %s23992_s27 }
   0x7   : > { %s308_s16 = ssub.s32 %s23996_s28, %s24100_s14  ;;  %p321_p0 = scmp.ne.s32.totalorder %s23992_s27, %s23988_s26 }
   0x8   : > { %p309_p1 = scmp.eq.s32.totalorder %s308_s16, 0  ;;  %p322_p2 = scmp.eq.s32.totalorder %s24096_s29, 1 }
   0x9   : > { %p327_p3 = scmp.ne.s32.totalorder %s23988_s26, %s23984_s25  ;;  %p328_p4 = scmp.eq.s32.totalorder %s16836_s30, 1 }
   0xa   : > { %s24111_s17 = scalar_select %p309_p1, %s23992_s27, %s311_s15  }
   0xb   : > { %p24113_p5 = por %p322_p2, %p321_p0  ;;  %p24117_p6 = por %p328_p4, %p327_p3 }
   0xc   : > { %29710 = sst [smem:[#allocation6_spill]] %s24111_s17  ;;  %p16839_p7 = scmp.ge.s32.totalorder %s23996_s28, 1 }
   0xd   : > { %p390_p8 = scmp.lt.s32.totalorder %s23996_s28, 3 }
   0xf   : > { %p391_p9 = pnand %p16839_p7, %p390_p8 }
  0x11   : > { %394 = sbr.rel (%p391_p9) target bundleno = 3958 (0xf76), region = 72 }
  0x18   : > { %v527_v0 = vld [vmem:[%s29372_s1] sm:$0xff]  ;;  %v528_v1 = vld [vmem:[%s29372_s1 + $0x8] sm:$0xff]  ;;  %v529_v2 = vld [vmem:[%s29372_s1 + $0x10] sm:$0xff]  ;;  %p434_p10 = scmp.lt.s32.totalorder %s24096_s29, 1  ;;  %vm439_vm0 = vcmask 261120   ;;  %s29713_s0 = sld [smem:[#allocation100_spill]] }
  0x19   : > { %v21667_v3 = vpack.c.bf16 %v528_v1, %v527_v0  ;;  %v530_v4 = vld [vmem:[%s29372_s1 + $0x18] sm:$0xff]  ;;  %v1312_v38 = vld [vmem:[%s29374_s3 + $0x20] sm:$0xff]  ;;  %v1313_v39 = vld [vmem:[%s29374_s3 + $0x28] sm:$0xff]  ;;  %v23998_v41 = vmov 0.0   ;;  %vm442_vm1 = vcmask 254976   ;;  %s29549_s24 = smov 64  }
  0x1a   : > { %v21671_v5 = vpack.c.bf16 %v530_v4, %v529_v2  ;;  %s435_s17 = scalar_select %p434_p10, %s24096_s29, 1  ;;  %v21675_v40 = vpack.c.bf16 %v1313_v39, %v1312_v38  ;;  %444 = vst.msk [vmem:[#allocation2 + $0x18] sm:$0xff] %vm439_vm0, %v23998_v41  ;;  %445 = vst.msk [vmem:[#allocation2 + $0x20] sm:$0xff] %vm439_vm0, %v23998_v41  ;;  %v24287_v42 = vld [vmem:[%s29373_s2] ss:$0 sm:$0xff]  ;;  %vm16397_vm2 = vcmask 523264  }
  0x1b   : > { %21668 = vmatprep.subr.bf16.mxu0 %v21667_v3  ;;  %21995 = vmatprep.subr.bf16.mxu1 %v21667_v3  ;;  %440 = vst.msk [vmem:[#allocation2] sm:$0xff] %vm439_vm0, %v23998_v41  ;;  %441 = vst.msk [vmem:[#allocation2 + $0x8] sm:$0xff] %vm439_vm0, %v23998_v41  ;;  %vm16430_vm3 = vcmask 785408  }
  0x1c   : > { %21670 = vmatpush3.bf16.msra.mxu0 %v21667_v3  ;;  %s18213_s20 = sshll.u32 %s435_s17, 8  ;;  %21997 = vmatpush3.bf16.msra.mxu1 %v21667_v3  ;;  %447 = vst.msk [vmem:[#allocation2 + $0x30] sm:$0xff] %vm439_vm0, %v23998_v41  ;;  %448 = vst.msk [vmem:[#allocation2 + $0x38] sm:$0xff] %vm439_vm0, %v23998_v41 }
  0x1d   : > { %21672 = vmatprep.subr.bf16.mxu0 %v21671_v5  ;;  %21996 = vmatprep.subr.bf16.mxu1 %v21671_v5  ;;  %450 = vst.msk [vmem:[#allocation2 + $0x48] sm:$0xff] %vm439_vm0, %v23998_v41  ;;  %451 = vst.msk [vmem:[#allocation2 + $0x50] sm:$0xff] %vm439_vm0, %v23998_v41 }
  0x1e   : > { %s24140_s23 = scalar_lea.vmem %s29713_s0, %s18213_s20  ;;  %453 = vst.msk [vmem:[#allocation2 + $0x60] sm:$0xff] %vm439_vm0, %v23998_v41  ;;  %454 = vst.msk [vmem:[#allocation2 + $0x68] sm:$0xff] %vm439_vm0, %v23998_v41  ;;  %s23999_s20 = smov 96  }
  0x1f   : > { %v495_v6 = vld [vmem:[%s24140_s23] sm:$0xff]  ;;  %v496_v7 = vld [vmem:[%s24140_s23 + $0x8] sm:$0xff]  ;;  %v497_v8 = vld [vmem:[%s24140_s23 + $0x10] sm:$0xff]  ;;  %456 = vst.msk [vmem:[#allocation2 + $0x78] sm:$0xff] %vm439_vm0, %v23998_v41 }
  0x20   : > { %19603 = vmatprep.mubr.msk.f32.mxu0 %vm439_vm0, %v495_v6  ;;  %21674 = vmatpush3.bf16.msra.mxu0 %v21671_v5  ;;  %v519_v9 = vld [vmem:[%s24140_s23 + $0xc0] sm:$0xff]  ;;  %v520_v10 = vld [vmem:[%s24140_s23 + $0xc8] sm:$0xff]  ;;  %v521_v11 = vld [vmem:[%s24140_s23 + $0xd0] sm:$0xff]  ;;  %457 = vst.msk [vmem:[#allocation2 + $0x80] sm:$0xff] %vm439_vm0, %v23998_v41 }
  0x21   : > { %21998 = vmatpush3.bf16.msra.mxu1 %v21671_v5  ;;  %19639 = vmatprep.mubr.msk.f32.mxu1 %vm439_vm0, %v519_v9  ;;  %v498_v12 = vld [vmem:[%s24140_s23 + $0x18] sm:$0xff]  ;;  %v499_v13 = vld [vmem:[%s24140_s23 + $0x20] sm:$0xff]  ;;  %v500_v16 = vld [vmem:[%s24140_s23 + $0x28] sm:$0xff]  ;;  %459 = vst.msk [vmem:[#allocation2 + $0x90] sm:$0xff] %vm439_vm0, %v23998_v41 }
  0x22   : > { %v522_v14 = vld [vmem:[%s24140_s23 + $0xd8] sm:$0xff]  ;;  %v523_v15 = vld [vmem:[%s24140_s23 + $0xe0] sm:$0xff]  ;;  %v501_v17 = vld [vmem:[%s24140_s23 + $0x30] sm:$0xff]  ;;  %460 = vst.msk [vmem:[#allocation2 + $0x98] sm:$0xff] %vm439_vm0, %v23998_v41  ;;  %21676 = vmatprep.subr.bf16.mxu1 %v21675_v40 }
  0x23   : > { %19604 = vmatmul.mubr.msk.f32.vlgmr.msra.gmra.mrb[0].mxu0 %vm439_vm0, %v496_v7  ;;  %v524_v18 = vld [vmem:[%s24140_s23 + $0xe8] sm:$0xff]  ;;  %v502_v19 = vld [vmem:[%s24140_s23 + $0x38] sm:$0xff]  ;;  %v503_v20 = vld [vmem:[%s24140_s23 + $0x40] sm:$0xff]  ;;  %462 = vst.msk [vmem:[#allocation2 + $0xa8] sm:$0xff] %vm439_vm0, %v23998_v41 }
  0x24   : > { %19606 = vmatprep.mubr.msk.f32.mxu0 %vm439_vm0, %v497_v8  ;;  %19640 = vmatmul.mubr.msk.f32.vlgmr.msra.gmra.mrb[0].mxu1 %vm439_vm0, %v520_v10  ;;  %v504_v21 = vld [vmem:[%s24140_s23 + $0x48] sm:$0xff]  ;;  %v505_v22 = vld [vmem:[%s24140_s23 + $0x50] sm:$0xff]  ;;  %v506_v23 = vld [vmem:[%s24140_s23 + $0x58] sm:$0xff]  ;;  %463 = vst.msk [vmem:[#allocation2 + $0xb0] sm:$0xff] %vm439_vm0, %v23998_v41 }
  0x25   : > { %19642 = vmatprep.mubr.msk.f32.mxu1 %vm439_vm0, %v521_v11  ;;  %v507_v24 = vld [vmem:[%s24140_s23 + $0x60] sm:$0xff]  ;;  %v508_v25 = vld [vmem:[%s24140_s23 + $0x68] sm:$0xff]  ;;  %v509_v26 = vld [vmem:[%s24140_s23 + $0x70] sm:$0xff]  ;;  %465 = vst.msk [vmem:[#allocation2 + $0xc0] sm:$0xff] %vm439_vm0, %v23998_v41  ;;  %21678 = vmatpush3.bf16.msra.mxu1 %v21675_v40 }
  0x26   : > { %v510_v27 = vld [vmem:[%s24140_s23 + $0x78] sm:$0xff]  ;;  %v511_v28 = vld [vmem:[%s24140_s23 + $0x80] sm:$0xff]  ;;  %v512_v29 = vld [vmem:[%s24140_s23 + $0x88] sm:$0xff]  ;;  %466 = vst.msk [vmem:[#allocation2 + $0xc8] sm:$0xff] %vm439_vm0, %v23998_v41 }
  0x27   : > { %19607 = vmatmul.mubr.msk.f32.gmra.mrb[2].mxu0 %vm439_vm0, %v498_v12  ;;  %v513_v30 = vld [vmem:[%s24140_s23 + $0x90] sm:$0xff]  ;;  %v514_v31 = vld [vmem:[%s24140_s23 + $0x98] sm:$0xff]  ;;  %v515_v32 = vld [vmem:[%s24140_s23 + $0xa0] sm:$0xff]  ;;  %468 = vst.msk [vmem:[#allocation2 + $0xd8] sm:$0xff] %vm439_vm0, %v23998_v41 }
  0x28   : > { %19609 = vmatprep.mubr.msk.f32.mxu0 %vm439_vm0, %v499_v13  ;;  %19643 = vmatmul.mubr.msk.f32.gmra.mrb[2].mxu1 %vm439_vm0, %v522_v14  ;;  %v516_v33 = vld [vmem:[%s24140_s23 + $0xa8] sm:$0xff]  ;;  %v517_v34 = vld [vmem:[%s24140_s23 + $0xb0] sm:$0xff]  ;;  %v518_v35 = vld [vmem:[%s24140_s23 + $0xb8] sm:$0xff]  ;;  %469 = vst.msk [vmem:[#allocation2 + $0xe0] sm:$0xff] %vm439_vm0, %v23998_v41 }
  0x29   : > { %19645 = vmatprep.mubr.msk.f32.mxu1 %vm439_vm0, %v523_v15  ;;  %v525_v36 = vld [vmem:[%s24140_s23 + $0xf0] sm:$0xff]  ;;  %v526_v37 = vld [vmem:[%s24140_s23 + $0xf8] sm:$0xff]  ;;  %471 = vst.msk [vmem:[#allocation2 + $0xf0] sm:$0xff] %vm439_vm0, %v23998_v41  ;;  %472 = vst.msk [vmem:[#allocation2 + $0xf8] sm:$0xff] %vm439_vm0, %v23998_v41  ;;  %s431_s23 = sand.u32 1, %s23988_s26  }
  0x2a   : > { %474 = vst.msk [vmem:[#allocation2 + $0x108] sm:$0xff] %vm439_vm0, %v23998_v41  ;;  %475 = vst.msk [vmem:[#allocation2 + $0x110] sm:$0xff] %vm439_vm0, %v23998_v41  ;;  %s16840_s17 = sshll.u32 %s431_s23, 7 }
  0x2b   : > { %19610 = vmatmul.mubr.msk.f32.gmra.mrb[4].mxu0 %vm439_vm0, %v500_v16  ;;  %477 = vst.msk [vmem:[#allocation2 + $0x120] sm:$0xff] %vm439_vm0, %v23998_v41  ;;  %478 = vst.msk [vmem:[#allocation2 + $0x128] sm:$0xff] %vm439_vm0, %v23998_v41 }
  0x2c   : > { %19612 = vmatprep.mubr.msk.f32.mxu0 %vm439_vm0, %v501_v17  ;;  %19646 = vmatmul.mubr.msk.f32.gmra.mrb[4].mxu1 %vm439_vm0, %v524_v18  ;;  %480 = vst.msk [vmem:[#allocation2 + $0x138] sm:$0xff] %vm439_vm0, %v23998_v41  ;;  %481 = vst.msk [vmem:[#allocation2 + $0x140] sm:$0xff] %vm439_vm0, %v23998_v41 }
  0x2d   : > { %19648 = vmatprep.mubr.msk.f32.mxu1 %vm439_vm0, %v525_v36  ;;  %483 = vst.msk [vmem:[#allocation2 + $0x150] sm:$0xff] %vm439_vm0, %v23998_v41  ;;  %484 = vst.msk [vmem:[#allocation2 + $0x158] sm:$0xff] %vm439_vm0, %v23998_v41 }
  0x2e   : > { %486 = vst.msk [vmem:[#allocation2 + $0x168] sm:$0xff] %vm439_vm0, %v23998_v41  ;;  %487 = vst.msk [vmem:[#allocation2 + $0x170] sm:$0xff] %vm439_vm0, %v23998_v41 }
  0x2f   : > { %19613 = vmatmul.mubr.msk.f32.gmra.mrb[6].mxu0 %vm439_vm0, %v502_v19  ;;  %489 = vst.msk [vmem:[#allocation2 + $0x180] sm:$0xff] %vm439_vm0, %v23998_v41  ;;  %490 = vst.msk [vmem:[#allocation2 + $0x188] sm:$0xff] %vm439_vm0, %v23998_v41  ;;  %v1314_v19 = vld [vmem:[%s29374_s3 + $0x30] sm:$0xff] }
  0x30   : > { %19615 = vmatprep.mubr.msk.f32.mxu0 %vm439_vm0, %v503_v20  ;;  %19649 = vmatmul.mubr.msk.f32.gmra.mrb[6].mxu1 %vm439_vm0, %v526_v37  ;;  %492 = vst.msk [vmem:[#allocation2 + $0x198] sm:$0xff] %vm439_vm0, %v23998_v41  ;;  %493 = vst.msk [vmem:[#allocation2 + $0x1a0] sm:$0xff] %vm439_vm0, %v23998_v41  ;;  %v1315_v20 = vld [vmem:[%s29374_s3 + $0x38] sm:$0xff] }
  0x31   : > { %446 = vst.msk [vmem:[#allocation2 + $0x28] sm:$0x3] %vm442_vm1, %v23998_v41  ;;  %443 = vst.msk [vmem:[#allocation2 + $0x10] sm:$0x3] %vm442_vm1, %v23998_v41 }
  0x32   : > { %449 = vst.msk [vmem:[#allocation2 + $0x40] sm:$0x3] %vm442_vm1, %v23998_v41  ;;  %452 = vst.msk [vmem:[#allocation2 + $0x58] sm:$0x3] %vm442_vm1, %v23998_v41 }
  0x33   : > { %19616 = vmatmul.mubr.msk.f32.gmra.mrb[8].mxu0 %vm439_vm0, %v504_v21  ;;  %455 = vst.msk [vmem:[#allocation2 + $0x70] sm:$0x3] %vm442_vm1, %v23998_v41  ;;  %458 = vst.msk [vmem:[#allocation2 + $0x88] sm:$0x3] %vm442_vm1, %v23998_v41 }
  0x34   : > { %19618 = vmatprep.mubr.msk.f32.mxu0 %vm439_vm0, %v505_v22  ;;  %461 = vst.msk [vmem:[#allocation2 + $0xa0] sm:$0x3] %vm442_vm1, %v23998_v41  ;;  %464 = vst.msk [vmem:[#allocation2 + $0xb8] sm:$0x3] %vm442_vm1, %v23998_v41 }
  0x35   : > { %467 = vst.msk [vmem:[#allocation2 + $0xd0] sm:$0x3] %vm442_vm1, %v23998_v41  ;;  %470 = vst.msk [vmem:[#allocation2 + $0xe8] sm:$0x3] %vm442_vm1, %v23998_v41 }
  0x36   : > { %473 = vst.msk [vmem:[#allocation2 + $0x100] sm:$0x3] %vm442_vm1, %v23998_v41  ;;  %476 = vst.msk [vmem:[#allocation2 + $0x118] sm:$0x3] %vm442_vm1, %v23998_v41 }
  0x37   : > { %19619 = vmatmul.mubr.msk.f32.gmra.mrb[10].mxu0 %vm439_vm0, %v506_v23  ;;  %479 = vst.msk [vmem:[#allocation2 + $0x130] sm:$0x3] %vm442_vm1, %v23998_v41  ;;  %482 = vst.msk [vmem:[#allocation2 + $0x148] sm:$0x3] %vm442_vm1, %v23998_v41 }
  0x38   : > { %19621 = vmatprep.mubr.msk.f32.mxu0 %vm439_vm0, %v507_v24  ;;  %485 = vst.msk [vmem:[#allocation2 + $0x160] sm:$0x3] %vm442_vm1, %v23998_v41  ;;  %488 = vst.msk [vmem:[#allocation2 + $0x178] sm:$0x3] %vm442_vm1, %v23998_v41 }
  0x39   : > { %491 = vst.msk [vmem:[#allocation2 + $0x190] sm:$0x3] %vm442_vm1, %v23998_v41  ;;  %494 = vst.msk [vmem:[#allocation2 + $0x1a8] sm:$0x3] %vm442_vm1, %v23998_v41  ;;  %v1276_v41 = vld [vmem:[%s29374_s3] sm:$0xff] }
  0x3b   : > { %19622 = vmatmul.mubr.msk.f32.gmra.mrb[12].mxu0 %vm439_vm0, %v508_v25  ;;  %v21679_v25 = vpack.c.bf16 %v1315_v20, %v1314_v19 }
  0x3c   : > { %19624 = vmatprep.mubr.msk.f32.mxu0 %vm439_vm0, %v509_v26 }
  0x3d   : > { %21680 = vmatprep.subr.bf16.mxu1 %v21679_v25 }
  0x3e   : > { %21682 = vmatpush3.bf16.msra.mxu1 %v21679_v25 }
  0x3f   : > { %19625 = vmatmul.mubr.msk.f32.gmra.mrb[14].mxu0 %vm439_vm0, %v510_v27 }
  0x40   : > { %19627 = vmatprep.mubr.msk.f32.mxu0 %vm439_vm0, %v511_v28 }
  0x43   : > { %19628 = vmatmul.mubr.msk.f32.gmra.mrb[16].mxu0 %vm439_vm0, %v512_v29 }
  0x44   : > { %19630 = vmatprep.mubr.msk.f32.mxu0 %vm439_vm0, %v513_v30 }
  0x47   : > { %19631 = vmatmul.mubr.msk.f32.gmra.mrb[18].mxu0 %vm439_vm0, %v514_v31 }
  0x48   : > { %19633 = vmatprep.mubr.msk.f32.mxu0 %vm439_vm0, %v515_v32  ;;  %v1280_v32 = vld [vmem:[#allocation2 + $0x1] sm:$0xff] }
  0x49   : > { %19659 = vmatprep.mubr.msk.f32.mxu1 %vm439_vm0, %v1280_v32 }
  0x4b   : > { %19634 = vmatmul.mubr.msk.f32.gmra.mrb[20].mxu0 %vm439_vm0, %v516_v33 }
  0x4c   : > { %19636 = vmatprep.mubr.msk.f32.mxu0 %vm439_vm0, %v517_v34 }
  0x4f   : > { %19637 = vmatmul.mubr.msk.f32.gmra.mrb[22].mxu0 %vm439_vm0, %v518_v35 }
  0xf6   : > { %v19605_v43 = vpop.f32.mrb[0].mxu0 }
  0xf7   : > { %v24290_v44 = vadd.f32 %v19605_v43, %v24287_v42  ;;  %v700_v45 = vpop.f32.mrb[1].mxu0  ;;  %v24292_v46 = vpop.f32.mrb[0].mxu1 }
  0xf8   : > { %v24295_v47 = vadd.f32 %v24287_v42, %v700_v45  ;;  %v24297_v48 = vpop.f32.mrb[1].mxu1  ;;  %v24441_v32 = vadd.f32 %v24292_v46, %v24287_v42 }
  0xf9   : > { %v16877_v49 = vmul.f32 -1.442695, %v24290_v44 }
  0xfa   : > { %v16876_v50 = vmul.f32 -1.442695, %v24295_v47  ;;  %v19608_v51 = vpop.f32.mrb[2].mxu0 }
  0xfb   : > { %23230 = vpow2.f32 %v16877_v49  ;;  %v24302_v52 = vadd.f32 %v19608_v51, %v24287_v42  ;;  %v710_v53 = vpop.f32.mrb[3].mxu0  ;;  %v24304_v54 = vpop.f32.mrb[2].mxu1  ;;  %v1277_v49 = vld [vmem:[%s29374_s3 + $0x8] sm:$0xff] }
  0xfc   : > { %23232 = vpow2.f32 %v16876_v50  ;;  %v24307_v55 = vadd.f32 %v24287_v42, %v710_v53  ;;  %v24309_v56 = vpop.f32.mrb[3].mxu1 }
  0xfd   : > { %v16879_v57 = vmul.f32 -1.442695, %v24302_v52 }
  0xfe   : > { %v16878_v58 = vmul.f32 -1.442695, %v24307_v55  ;;  %v19611_v59 = vpop.f32.mrb[4].mxu0 }
  0xff   : > { %23234 = vpow2.f32 %v16879_v57  ;;  %v24314_v60 = vadd.f32 %v19611_v59, %v24287_v42  ;;  %v720_v61 = vpop.f32.mrb[5].mxu0  ;;  %v24316_v62 = vpop.f32.mrb[4].mxu1 }
 0x100   : > { %23236 = vpow2.f32 %v16878_v58  ;;  %v24319_v63 = vadd.f32 %v24287_v42, %v720_v61  ;;  %v24321_v0 = vpop.f32.mrb[5].mxu1  ;;  %v21683_v58 = vpack.c.bf16 %v1277_v49, %v1276_v41 }
 0x101   : > { %v16881_v1 = vmul.f32 -1.442695, %v24314_v60 }
 0x102   : > { %v16880_v2 = vmul.f32 -1.442695, %v24319_v63  ;;  %v19614_v3 = vpop.f32.mrb[6].mxu0  ;;  %21684 = vmatprep.subr.bf16.mxu1 %v21683_v58 }
 0x103   : > { %23238 = vpow2.f32 %v16881_v1  ;;  %v24326_v4 = vadd.f32 %v19614_v3, %v24287_v42  ;;  %v730_v5 = vpop.f32.mrb[7].mxu0 }
 0x104   : > { %23240 = vpow2.f32 %v16880_v2  ;;  %v24329_v6 = vadd.f32 %v24287_v42, %v730_v5 }
 0x105   : > { %v23231_v7 = vpop.eup %23230  ;;  %v16883_v8 = vmul.f32 -1.442695, %v24326_v4 }
 0x106   : > { %v23233_v9 = vpop.eup %23232  ;;  %v956_v10 = vadd.f32 1.0, %v23231_v7  ;;  %v16882_v11 = vmul.f32 -1.442695, %v24329_v6  ;;  %v19617_v12 = vpop.f32.mrb[8].mxu0 }
 0x107   : > { %v955_v13 = vadd.f32 1.0, %v23233_v9  ;;  %23242 = vpow2.f32 %v16883_v8  ;;  %v24334_v14 = vadd.f32 %v19617_v12, %v24287_v42  ;;  %v740_v15 = vpop.f32.mrb[9].mxu0  ;;  %v1281_v8 = vld [vmem:[#allocation2 + $0x9] sm:$0xff] }
 0x108   : > { %23244 = vrcp.f32 %v956_v10  ;;  %v24337_v16 = vadd.f32 %v24287_v42, %v740_v15  ;;  %19660 = vmatmul.mubr.msk.f32.vlgmr.msra.gmra.mrb[8].mxu1 %vm439_vm0, %v1281_v8 }
 0x109   : > { %v23235_v17 = vpop.eup %23234  ;;  %23246 = vrcp.f32 %v955_v13  ;;  %v16885_v18 = vmul.f32 -1.442695, %v24334_v14  ;;  %21686 = vmatpush3.bf16.msra.mxu1 %v21683_v58 }
 0x10a   : > { %v23237_v21 = vpop.eup %23236  ;;  %v958_v22 = vadd.f32 1.0, %v23235_v17  ;;  %23248 = vpow2.f32 %v16882_v11  ;;  %v16884_v23 = vmul.f32 -1.442695, %v24337_v16  ;;  %v19620_v24 = vpop.f32.mrb[10].mxu0 }
 0x10b   : > { %v957_v26 = vadd.f32 1.0, %v23237_v21  ;;  %23250 = vpow2.f32 %v16885_v18  ;;  %v24348_v27 = vadd.f32 %v19620_v24, %v24287_v42  ;;  %v750_v28 = vpop.f32.mrb[11].mxu0 }
 0x10c   : > { %23252 = vrcp.f32 %v958_v22  ;;  %v24351_v29 = vadd.f32 %v24287_v42, %v750_v28 }
 0x10d   : > { %v23239_v30 = vpop.eup %23238  ;;  %23254 = vrcp.f32 %v957_v26  ;;  %v16887_v31 = vmul.f32 -1.442695, %v24348_v27 }
 0x10e   : > { %v23241_v33 = vpop.eup %23240  ;;  %v960_v34 = vadd.f32 1.0, %v23239_v30  ;;  %23256 = vpow2.f32 %v16884_v23  ;;  %v16886_v35 = vmul.f32 -1.442695, %v24351_v29  ;;  %v19623_v36 = vpop.f32.mrb[12].mxu0 }
 0x10f   : > { %v959_v37 = vadd.f32 1.0, %v23241_v33  ;;  %23258 = vpow2.f32 %v16887_v31  ;;  %v24393_v38 = vadd.f32 %v19623_v36, %v24287_v42  ;;  %v760_v39 = vpop.f32.mrb[13].mxu0 }
 0x110   : > { %23260 = vrcp.f32 %v960_v34  ;;  %v24396_v40 = vadd.f32 %v24287_v42, %v760_v39 }
 0x111   : > { %v23243_v43 = vpop.eup %23242  ;;  %23262 = vrcp.f32 %v959_v37  ;;  %v16889_v45 = vmul.f32 -1.442695, %v24393_v38  ;;  %v24448_v37 = vadd.f32 %v24287_v42, %v24297_v48  ;;  %v16901_v48 = vmul.f32 -1.442695, %v24441_v32 }
 0x112   : > { %v23245_v50 = vpop.eup %23244  ;;  %v962_v51 = vadd.f32 1.0, %v23243_v43  ;;  %23264 = vpow2.f32 %v16886_v35  ;;  %v16888_v53 = vmul.f32 -1.442695, %v24396_v40  ;;  %v19626_v57 = vpop.f32.mrb[14].mxu0 }
 0x113   : > { %v23247_v59 = vpop.eup %23246  ;;  %23266 = vpow2.f32 %v16889_v45  ;;  %v24407_v61 = vadd.f32 %v19626_v57, %v24287_v42  ;;  %v770_v1 = vpop.f32.mrb[15].mxu0  ;;  %v24420_v18 = vmul.f32 %v23245_v50, %v24290_v44  ;;  %v16900_v58 = vmul.f32 -1.442695, %v24448_v37 }
 0x114   : > { %v23249_v2 = vpop.eup %23248  ;;  %v24410_v3 = vmul.f32 %v23247_v59, %v24295_v47  ;;  %23268 = vrcp.f32 %v962_v51  ;;  %v24414_v12 = vadd.f32 %v24287_v42, %v770_v1 }
 0x115   : > { %v23251_v5 = vpop.eup %23250  ;;  %v961_v7 = vadd.f32 1.0, %v23249_v2  ;;  %23270 = vpow2.f32 %v16888_v53  ;;  %v16891_v11 = vmul.f32 -1.442695, %v24407_v61  ;;  %29715 = vst [vmem:[#allocation8_spill] sm:$0xff] %v24420_v18 }
 0x116   : > { %29714 = vst [vmem:[#allocation7_spill] sm:$0xff] %v24410_v3  ;;  %v23253_v9 = vpop.eup %23252  ;;  %v964_v10 = vadd.f32 1.0, %v23251_v5  ;;  %v19629_v13 = vpop.f32.mrb[16].mxu0  ;;  %1115 = vrot.lane.b32.xlu0 %v24410_v3, %s23999_s20  ;;  %v16890_v24 = vmul.f32 -1.442695, %v24414_v12  ;;  %v2381_v3 = vld [vmem:[%s29374_s3 + $0x70] sm:$0xff] }
 0x117   : > { %v23255_v47 = vpop.eup %23254  ;;  %23272 = vrcp.f32 %v961_v7  ;;  %v780_v15 = vpop.f32.mrb[17].mxu0  ;;  %v24427_v25 = vadd.f32 %v19629_v13, %v24287_v42  ;;  %v24434_v30 = vmul.f32 %v23253_v9, %v24302_v52 }
 0x118   : > { %v23257_v17 = vpop.eup %23256  ;;  %v24423_v19 = vmul.f32 %v23255_v47, %v24307_v55  ;;  %23274 = vrcp.f32 %v964_v10  ;;  %v24444_v35 = vadd.f32 %v24287_v42, %v780_v15 }
 0x119   : > { %v23259_v20 = vpop.eup %23258  ;;  %v963_v21 = vadd.f32 1.0, %v23257_v17  ;;  %23276 = vpow2.f32 %v16891_v11  ;;  %29717 = vst [vmem:[#allocation10_spill] sm:$0xff] %v24434_v30  ;;  %v16893_v52 = vmul.f32 -1.442695, %v24427_v25 }
 0x11a   : > { %29716 = vst [vmem:[#allocation9_spill] sm:$0xff] %v24423_v19  ;;  %v23261_v22 = vpop.eup %23260  ;;  %v966_v23 = vadd.f32 1.0, %v23259_v20  ;;  %v19632_v26 = vpop.f32.mrb[18].mxu0  ;;  %1119 = vrot.lane.b32.xlu1 %v24423_v19, %s23999_s20  ;;  %1117 = vrot.lane.b32.xlu0 %v24420_v18, %s23999_s20  ;;  %v16892_v51 = vmul.f32 -1.442695, %v24444_v35  ;;  %v2382_v18 = vld [vmem:[%s29374_s3 + $0x78] sm:$0xff] }
 0x11b   : > { %v23263_v44 = vpop.eup %23262  ;;  %23278 = vrcp.f32 %v963_v21  ;;  %v790_v55 = vpop.f32.mrb[19].mxu0  ;;  %v24456_v45 = vmul.f32 %v23261_v22, %v24314_v60  ;;  %v24460_v41 = vadd.f32 %v19632_v26, %v24287_v42  ;;  %v24502_v22 = vadd.f32 %v24304_v54, %v24287_v42 }
 0x11c   : > { %v23265_v28 = vpop.eup %23264  ;;  %v24437_v31 = vmul.f32 %v23263_v44, %v24319_v63  ;;  %23280 = vrcp.f32 %v966_v23  ;;  %v24464_v53 = vadd.f32 %v24287_v42, %v790_v55  ;;  %v24509_v26 = vadd.f32 %v24287_v42, %v24309_v56 }
 0x11d   : > { %v23267_v33 = vpop.eup %23266  ;;  %v965_v34 = vadd.f32 1.0, %v23265_v28  ;;  %23282 = vpow2.f32 %v16890_v24  ;;  %29719 = vst [vmem:[#allocation12_spill] sm:$0xff] %v24456_v45  ;;  %v24520_v28 = vadd.f32 %v24316_v62, %v24287_v42 }
 0x11e   : > { %29718 = vst [vmem:[#allocation11_spill] sm:$0xff] %v24437_v31  ;;  %v968_v36 = vadd.f32 1.0, %v23267_v33  ;;  %v19635_v63 = vpop.f32.mrb[20].mxu0  ;;  %1121 = vrot.lane.b32.xlu1 %v24434_v30, %s23999_s20  ;;  %1123 = vrot.lane.b32.xlu0 %v24437_v31, %s23999_s20  ;;  %v23269_v46 = vpop.eup %23268  ;;  %v16894_v11 = vmul.f32 -1.442695, %v24464_v53 }
 0x11f   : > { %23284 = vrcp.f32 %v965_v34  ;;  %v800_v39 = vpop.f32.mrb[21].mxu0  ;;  %v23271_v43 = vpop.eup %23270  ;;  %v24471_v60 = vadd.f32 %v19635_v63, %v24287_v42  ;;  %v24476_v7 = vmul.f32 %v23269_v46, %v24326_v4  ;;  %v16903_v34 = vmul.f32 -1.442695, %v24502_v22 }
 0x120   : > { %23286 = vrcp.f32 %v968_v36  ;;  %v967_v50 = vadd.f32 1.0, %v23271_v43  ;;  %v24480_v8 = vadd.f32 %v24287_v42, %v800_v39 }
 0x121   : > { %v23273_v49 = vpop.eup %23272  ;;  %23288 = vpow2.f32 %v16893_v52  ;;  %29721 = vst [vmem:[#allocation14_spill] sm:$0xff] %v24476_v7  ;;  %v16897_v47 = vmul.f32 -1.442695, %v24471_v60  ;;  %v16902_v52 = vmul.f32 -1.442695, %v24509_v26 }
 0x122   : > { %v24467_v57 = vmul.f32 %v23273_v49, %v24329_v6  ;;  %v19638_v59 = vpop.f32.mrb[22].mxu0  ;;  %1125 = vrot.lane.b32.xlu1 %v24456_v45, %s23999_s20  ;;  %v23275_v1 = vpop.eup %23274  ;;  %23290 = vrcp.f32 %v967_v50  ;;  %v16895_v6 = vmul.f32 -1.442695, %v24460_v41 }
 0x123   : > { %v810_v2 = vpop.f32.mrb[23].mxu0  ;;  %v23277_v5 = vpop.eup %23276  ;;  %23292 = vpow2.f32 %v16901_v48  ;;  %v24486_v13 = vadd.f32 %v19638_v59, %v24287_v42  ;;  %v24498_v21 = vmul.f32 %v23275_v1, %v24334_v14 }
 0x124   : > { %29720 = vst [vmem:[#allocation13_spill] sm:$0xff] %v24467_v57  ;;  %1127 = vrot.lane.b32.xlu0 %v24467_v57, %s23999_s20  ;;  %v970_v10 = vadd.f32 1.0, %v23277_v5  ;;  %23294 = vpow2.f32 %v16892_v51  ;;  %v24493_v15 = vadd.f32 %v24287_v42, %v810_v2 }
 0x125   : > { %v23279_v9 = vpop.eup %23278  ;;  %23296 = vpow2.f32 %v16900_v58  ;;  %29723 = vst [vmem:[#allocation16_spill] sm:$0xff] %v24498_v21  ;;  %v16899_v14 = vmul.f32 -1.442695, %v24486_v13 }
 0x126   : > { %v24489_v4 = vmul.f32 %v23279_v9, %v24337_v16  ;;  %1129 = vrot.lane.b32.xlu1 %v24476_v7, %s23999_s20  ;;  %v23281_v17 = vpop.eup %23280  ;;  %23298 = vrcp.f32 %v970_v10  ;;  %v16896_v16 = vmul.f32 -1.442695, %v24480_v8  ;;  %v16898_v54 = vmul.f32 -1.442695, %v24493_v15 }
 0x127   : > { %v23283_v20 = vpop.eup %23282  ;;  %23300 = vpow2.f32 %v16895_v6  ;;  %v24523_v33 = vmul.f32 %v23281_v17, %v24348_v27 }
 0x128   : > { %29722 = vst [vmem:[#allocation15_spill] sm:$0xff] %v24489_v4  ;;  %1131 = vrot.lane.b32.xlu0 %v24489_v4, %s23999_s20  ;;  %v969_v24 = vadd.f32 1.0, %v23283_v20  ;;  %23302 = vpow2.f32 %v16894_v11 }
 0x129   : > { %v23285_v23 = vpop.eup %23284  ;;  %23304 = vpow2.f32 %v16897_v47  ;;  %29725 = vst [vmem:[#allocation18_spill] sm:$0xff] %v24523_v33 }
 0x12a   : > { %v24513_v44 = vmul.f32 %v23285_v23, %v24351_v29  ;;  %1133 = vrot.lane.b32.xlu1 %v24498_v21, %s23999_s20  ;;  %v23287_v55 = vpop.eup %23286  ;;  %23306 = vrcp.f32 %v969_v24  ;;  %v24528_v29 = vadd.f32 %v24287_v42, %v24321_v0  ;;  %v16905_v0 = vmul.f32 -1.442695, %v24520_v28  ;;  %v1279_v24 = vld [vmem:[%s29374_s3 + $0x18] sm:$0xff] }
 0x12b   : > { %v23289_v56 = vpop.eup %23288  ;;  %23308 = vpow2.f32 %v16896_v16  ;;  %v24540_v43 = vmul.f32 %v23287_v55, %v24393_v38 }
 0x12c   : > { %29724 = vst [vmem:[#allocation17_spill] sm:$0xff] %v24513_v44  ;;  %1135 = vrot.lane.b32.xlu0 %v24513_v44, %s23999_s20  ;;  %v23291_v36 = vpop.eup %23290  ;;  %v972_v63 = vadd.f32 1.0, %v23289_v56  ;;  %23310 = vpow2.f32 %v16899_v14  ;;  %v16904_v49 = vmul.f32 -1.442695, %v24528_v29 }
 0x12d   : > { %v23293_v62 = vpop.eup %23292  ;;  %v24534_v46 = vmul.f32 %v23291_v36, %v24396_v40  ;;  %23312 = vpow2.f32 %v16898_v54  ;;  %29727 = vst [vmem:[#allocation20_spill] sm:$0xff] %v24540_v43 }
 0x12e   : > { %1137 = vrot.lane.b32.xlu1 %v24523_v33, %s23999_s20  ;;  %v23295_v27 = vpop.eup %23294  ;;  %23314 = vrcp.f32 %v972_v63  ;;  %v980_v54 = vadd.f32 1.0, %v23293_v62 }
 0x12f   : > { %29726 = vst [vmem:[#allocation19_spill] sm:$0xff] %v24534_v46  ;;  %v23297_v39 = vpop.eup %23296  ;;  %23316 = vpow2.f32 %v16903_v34  ;;  %v971_v48 = vadd.f32 1.0, %v23295_v27 }
 0x130   : > { %1139 = vrot.lane.b32.xlu0 %v24534_v46, %s23999_s20  ;;  %v23299_v40 = vpop.eup %23298  ;;  %23318 = vpow2.f32 %v16902_v52  ;;  %v979_v34 = vadd.f32 1.0, %v23297_v39 }
 0x131   : > { %v23301_v50 = vpop.eup %23300  ;;  %23320 = vrcp.f32 %v971_v48  ;;  %v24548_v38 = vmul.f32 %v23299_v40, %v24407_v61 }
 0x132   : > { %1141 = vrot.lane.b32.xlu1 %v24540_v43, %s23999_s20  ;;  %v23303_v51 = vpop.eup %23302  ;;  %23322 = vpow2.f32 %v16905_v0  ;;  %v974_v58 = vadd.f32 1.0, %v23301_v50 }
 0x133   : > { %v23305_v59 = vpop.eup %23304  ;;  %29728 = vst [vmem:[#allocation21_spill] sm:$0xff] %v24548_v38  ;;  %23324 = vpow2.f32 %v16904_v49  ;;  %v973_v1 = vadd.f32 1.0, %v23303_v51 }
 0x134   : > { %v23307_v2 = vpop.eup %23306  ;;  %23326 = vrcp.f32 %v974_v58  ;;  %v976_v5 = vadd.f32 1.0, %v23305_v59 }
 0x135   : > { %v23309_v6 = vpop.eup %23308  ;;  %v24551_v9 = vmul.f32 %v23307_v2, %v24414_v12  ;;  %23328 = vrcp.f32 %v973_v1  ;;  %v1278_v12 = vld [vmem:[%s29374_s3 + $0x10] sm:$0xff] }
 0x136   : > { %1145 = vrot.lane.b32.xlu1 %v24548_v38, %s23999_s20  ;;  %v23311_v10 = vpop.eup %23310  ;;  %23330 = vrcp.f32 %v976_v5  ;;  %v975_v11 = vadd.f32 1.0, %v23309_v6  ;;  %v21687_v55 = vpack.c.bf16 %v1279_v24, %v1278_v12 }
 0x137   : > { %29729 = vst [vmem:[#allocation22_spill] sm:$0xff] %v24551_v9  ;;  %v23313_v47 = vpop.eup %23312  ;;  %v978_v17 = vadd.f32 1.0, %v23311_v10  ;;  %1143 = vrot.lane.b32.xlu0 %v24551_v9, %s23999_s20  ;;  %v1245_v9 = vld [vmem:[#allocation2 + $0x8] sm:$0xff] }
 0x138   : > { %v23315_v61 = vpop.eup %23314  ;;  %23332 = vrcp.f32 %v975_v11  ;;  %v977_v20 = vadd.f32 1.0, %v23313_v47  ;;  %21688 = vmatprep.subr.bf16.mxu1 %v21687_v55 }
 0x139   : > { %v23317_v16 = vpop.eup %23316  ;;  %v24558_v23 = vmul.f32 %v23315_v61, %v24427_v25  ;;  %23334 = vrcp.f32 %v978_v17  ;;  %21690 = vmatpush3.bf16.msra.mxu1 %v21687_v55 }
 0x13a   : > { %v23319_v14 = vpop.eup %23318  ;;  %23336 = vrcp.f32 %v977_v20  ;;  %v982_v27 = vadd.f32 1.0, %v23317_v16 }
 0x13b   : > { %29730 = vst [vmem:[#allocation23_spill] sm:$0xff] %v24558_v23  ;;  %v23321_v56 = vpop.eup %23320  ;;  %1149 = vrot.lane.b32.xlu1 %v24558_v23, %s23999_s20  ;;  %23338 = vrcp.f32 %v980_v54  ;;  %v981_v0 = vadd.f32 1.0, %v23319_v14 }
 0x13c   : > { %v23323_v25 = vpop.eup %23322  ;;  %v24569_v36 = vmul.f32 %v23321_v56, %v24444_v35  ;;  %23340 = vrcp.f32 %v979_v34 }
 0x13d   : > { %v23325_v52 = vpop.eup %23324  ;;  %23342 = vrcp.f32 %v982_v27  ;;  %v984_v40 = vadd.f32 1.0, %v23323_v25 }
 0x13e   : > { %29731 = vst [vmem:[#allocation24_spill] sm:$0xff] %v24569_v36  ;;  %v23327_v63 = vpop.eup %23326  ;;  %1147 = vrot.lane.b32.xlu0 %v24569_v36, %s23999_s20  ;;  %23344 = vrcp.f32 %v981_v0  ;;  %v983_v51 = vadd.f32 1.0, %v23325_v52  ;;  %v1958_v36 = vld [vmem:[#allocation2 + $0x2] sm:$0xff] }
 0x13f   : > { %v23329_v62 = vpop.eup %23328  ;;  %v24574_v39 = vmul.f32 %v23327_v63, %v24460_v41  ;;  %23346 = vrcp.f32 %v984_v40 }
 0x140   : > { %v23331_v48 = vpop.eup %23330  ;;  %v24577_v49 = vmul.f32 %v23329_v62, %v24464_v53  ;;  %23348 = vrcp.f32 %v983_v51 }
 0x141   : > { %29732 = vst [vmem:[#allocation25_spill] sm:$0xff] %v24574_v39  ;;  %1153 = vrot.lane.b32.xlu1 %v24574_v39, %s23999_s20  ;;  %v24584_v58 = vmul.f32 %v23331_v48, %v24471_v60 }
 0x142   : > { %29733 = vst [vmem:[#allocation26_spill] sm:$0xff] %v24577_v49  ;;  %v23333_v35 = vpop.eup %23332  ;;  %1151 = vrot.lane.b32.xlu0 %v24577_v49, %s23999_s20 }
 0x143   : > { %v23335_v50 = vpop.eup %23334  ;;  %29734 = vst [vmem:[#allocation27_spill] sm:$0xff] %v24584_v58  ;;  %v24587_v41 = vmul.f32 %v23333_v35, %v24480_v8 }
 0x144   : > { %v23337_v53 = vpop.eup %23336  ;;  %v24597_v1 = vmul.f32 %v23335_v50, %v24486_v13 }
 0x145   : > { %29735 = vst [vmem:[#allocation28_spill] sm:$0xff] %v24587_v41  ;;  %1157 = vrot.lane.b32.xlu1 %v24584_v58, %s23999_s20  ;;  %v24592_v59 = vmul.f32 %v23337_v53, %v24493_v15  ;;  %v23339_v60 = vpop.eup %23338 }
 0x146   : > { %1155 = vrot.lane.b32.xlu0 %v24587_v41, %s23999_s20  ;;  %29737 = vst [vmem:[#allocation30_spill] sm:$0xff] %v24597_v1  ;;  %v23341_v2 = vpop.eup %23340  ;;  %v24604_v8 = vmul.f32 %v23339_v60, %v24441_v32 }
 0x147   : > { %29736 = vst [vmem:[#allocation29_spill] sm:$0xff] %v24592_v59  ;;  %v23343_v15 = vpop.eup %23342  ;;  %v24607_v5 = vmul.f32 %v23341_v2, %v24448_v37 }
 0x148   : > { %29738 = vst [vmem:[#allocation31_spill] sm:$0xff] %v24604_v8  ;;  %v23345_v6 = vpop.eup %23344  ;;  %v24614_v13 = vmul.f32 %v23343_v15, %v24502_v22  ;;  %v1990_v22 = vld [vmem:[%s29374_s3 + $0x40] sm:$0xff] }
 0x149   : > { %1161 = vrot.lane.b32.xlu1 %v24597_v1, %s23999_s20  ;;  %29739 = vst [vmem:[#allocation32_spill] sm:$0xff] %v24607_v5  ;;  %v23347_v10 = vpop.eup %23346  ;;  %v24617_v11 = vmul.f32 %v23345_v6, %v24509_v26  ;;  %v1991_v26 = vld [vmem:[%s29374_s3 + $0x48] sm:$0xff] }
 0x14a   : > { %1159 = vrot.lane.b32.xlu0 %v24592_v59, %s23999_s20  ;;  %29740 = vst [vmem:[#allocation33_spill] sm:$0xff] %v24614_v13  ;;  %v23349_v32 = vpop.eup %23348  ;;  %v24624_v37 = vmul.f32 %v23347_v10, %v24520_v28  ;;  %v24639_v17 = vpack.c.bf16 %v1991_v26, %v1990_v22  ;;  %v19650_v28 = vpop.f32.mrb[6].mxu1 }
 0x14b   : > { %29741 = vst [vmem:[#allocation34_spill] sm:$0xff] %v24617_v11  ;;  %v24627_v47 = vmul.f32 %v23349_v32, %v24528_v29  ;;  %v856_v29 = vadd.f32 %v19650_v28, %v24287_v42  ;;  %v850_v61 = vpop.f32.mrb[7].mxu1 }
 0x14c   : > { %29742 = vst [vmem:[#allocation35_spill] sm:$0xff] %v24624_v37  ;;  %21692 = vmatprep.subr.bf16.mxu1 %v24639_v17  ;;  %v851_v20 = vadd.f32 %v24287_v42, %v850_v61 }
 0x14d   : > { %1165 = vrot.lane.b32.xlu1 %v24604_v8, %s23999_s20  ;;  %29743 = vst [vmem:[#allocation36_spill] sm:$0xff] %v24627_v47  ;;  %v16907_v16 = vmul.f32 -1.442695, %v856_v29 }
 0x14e   : > { %1163 = vrot.lane.b32.xlu0 %v24607_v5, %s23999_s20  ;;  %v16906_v12 = vmul.f32 -1.442695, %v851_v20 }
 0x14f   : > { %23350 = vpow2.f32 %v16907_v16 }
 0x150   : > { %23352 = vpow2.f32 %v16906_v12 }
 0x151   : > { %1169 = vrot.lane.b32.xlu1 %v24614_v13, %s23999_s20 }
 0x152   : > { %1167 = vrot.lane.b32.xlu0 %v24617_v11, %s23999_s20 }
 0x155   : > { %1173 = vrot.lane.b32.xlu1 %v24624_v37, %s23999_s20  ;;  %v2380_v37 = vld [vmem:[%s29374_s3 + $0x68] sm:$0xff] }
 0x156   : > { %1171 = vrot.lane.b32.xlu0 %v24627_v47, %s23999_s20  ;;  %v2379_v47 = vld [vmem:[%s29374_s3 + $0x60] sm:$0xff] }
 0x159   : > { %v23351_v24 = vpop.eup %23350 }
 0x15a   : > { %v23353_v14 = vpop.eup %23352  ;;  %v986_v54 = vadd.f32 1.0, %v23351_v24 }
 0x15b   : > { %v985_v55 = vadd.f32 1.0, %v23353_v14 }
 0x15c   : > { %23354 = vrcp.f32 %v986_v54 }
 0x15d   : > { %23356 = vrcp.f32 %v985_v55 }
 0x166   : > { %v23355_v56 = vpop.eup %23354 }
 0x167   : > { %v23357_v34 = vpop.eup %23356  ;;  %v24644_v25 = vmul.f32 %v23355_v56, %v856_v29 }
 0x168   : > { %v24646_v52 = vmul.f32 %v23357_v34, %v851_v20 }
 0x169   : > { %29744 = vst [vmem:[#allocation37_spill] sm:$0xff] %v24644_v25  ;;  %1177 = vrot.lane.b32.xlu1 %v24644_v25, %s23999_s20  ;;  %v1993_v25 = vld [vmem:[%s29374_s3 + $0x58] sm:$0xff] }
 0x16a   : > { %29745 = vst [vmem:[#allocation38_spill] sm:$0xff] %v24646_v52  ;;  %1175 = vrot.lane.b32.xlu0 %v24646_v52, %s23999_s20  ;;  %v1992_v52 = vld [vmem:[%s29374_s3 + $0x50] sm:$0xff] }
 0x16b   : > { %v21695_v38 = vpack.c.bf16 %v1993_v25, %v1992_v52 }
 0x188   : > { %v1116_v42 = vpop.permute.xlu0 %1115 }
 0x189   : > { %1212 = vst.msk [vmem:[#allocation2 + $0x19] sm:$0xff] %vm439_vm0, %v1116_v42 }
 0x18c   : > { %v1120_v63 = vpop.permute.xlu1 %1119  ;;  %v1118_v27 = vpop.permute.xlu0 %1117 }
 0x18d   : > { %1214 = vst.msk [vmem:[#allocation2 + $0x31] sm:$0xff] %vm439_vm0, %v1120_v63  ;;  %1213 = vst.msk [vmem:[#allocation2 + $0x21] sm:$0xff] %vm439_vm0, %v1118_v27 }
 0x190   : > { %v1122_v62 = vpop.permute.xlu1 %1121  ;;  %v1124_v0 = vpop.permute.xlu0 %1123  ;;  %v24655_v48 = vld [vmem:[#allocation2 + $0x19] sm:$0xff] }
 0x191   : > { %1215 = vst.msk [vmem:[#allocation2 + $0x39] sm:$0xff] %vm439_vm0, %v1122_v62  ;;  %1216 = vst.msk [vmem:[#allocation2 + $0x49] sm:$0xff] %vm439_vm0, %v1124_v0  ;;  %19662 = vmatprep.mubr.msk.f32.mxu1 %vm439_vm0, %v24655_v48  ;;  %v24816_v46 = vld [vmem:[#allocation2 + $0x18] sm:$0xff] }
 0x194   : > { %v1126_v35 = vpop.permute.xlu1 %1125  ;;  %v24661_v40 = vld [vmem:[#allocation2 + $0x21] sm:$0xff]  ;;  %v24663_v50 = vld [vmem:[#allocation2 + $0x31] sm:$0xff] }
 0x195   : > { %1217 = vst.msk [vmem:[#allocation2 + $0x51] sm:$0xff] %vm439_vm0, %v1126_v35  ;;  %19663 = vmatmul.mubr.msk.f32.gmra.mrb[10].mxu1 %vm439_vm0, %v24661_v40  ;;  %v24823_v25 = vld [vmem:[#allocation2 + $0x20] sm:$0xff]  ;;  %v24827_v52 = vld [vmem:[#allocation2 + $0x30] sm:$0xff] }
 0x196   : > { %v1128_v51 = vpop.permute.xlu0 %1127  ;;  %19665 = vmatprep.mubr.msk.f32.mxu1 %vm439_vm0, %v24663_v50 }
 0x197   : > { %1218 = vst.msk [vmem:[#allocation2 + $0x61] sm:$0xff] %vm439_vm0, %v1128_v51 }
 0x198   : > { %v1130_v53 = vpop.permute.xlu1 %1129  ;;  %v24671_v60 = vld [vmem:[#allocation2 + $0x39] sm:$0xff]  ;;  %v24673_v2 = vld [vmem:[#allocation2 + $0x49] sm:$0xff] }
 0x199   : > { %1219 = vst.msk [vmem:[#allocation2 + $0x69] sm:$0xff] %vm439_vm0, %v1130_v53  ;;  %19666 = vmatmul.mubr.msk.f32.gmra.mrb[12].mxu1 %vm439_vm0, %v24671_v60 }
 0x19a   : > { %v1132_v15 = vpop.permute.xlu0 %1131  ;;  %19668 = vmatprep.mubr.msk.f32.mxu1 %vm439_vm0, %v24673_v2 }
 0x19b   : > { %1220 = vst.msk [vmem:[#allocation2 + $0x79] sm:$0xff] %vm439_vm0, %v1132_v15 }
 0x19c   : > { %v1134_v6 = vpop.permute.xlu1 %1133  ;;  %v24681_v10 = vld [vmem:[#allocation2 + $0x51] sm:$0xff] }
 0x19d   : > { %1221 = vst.msk [vmem:[#allocation2 + $0x81] sm:$0xff] %vm439_vm0, %v1134_v6  ;;  %19669 = vmatmul.mubr.msk.f32.gmra.mrb[14].mxu1 %vm439_vm0, %v24681_v10 }
 0x19e   : > { %v1136_v32 = vpop.permute.xlu0 %1135  ;;  %v24686_v22 = vld [vmem:[#allocation2 + $0x61] sm:$0xff] }
 0x19f   : > { %1222 = vst.msk [vmem:[#allocation2 + $0x91] sm:$0xff] %vm439_vm0, %v1136_v32  ;;  %19671 = vmatprep.mubr.msk.f32.mxu1 %vm439_vm0, %v24686_v22 }
 0x1a0   : > { %v1138_v26 = vpop.permute.xlu1 %1137  ;;  %v24691_v28 = vld [vmem:[#allocation2 + $0x69] sm:$0xff] }
 0x1a1   : > { %1223 = vst.msk [vmem:[#allocation2 + $0x99] sm:$0xff] %vm439_vm0, %v1138_v26  ;;  %19672 = vmatmul.mubr.msk.f32.gmra.mrb[16].mxu1 %vm439_vm0, %v24691_v28 }
 0x1a2   : > { %v1140_v29 = vpop.permute.xlu0 %1139  ;;  %v24696_v61 = vld [vmem:[#allocation2 + $0x79] sm:$0xff] }
 0x1a3   : > { %1224 = vst.msk [vmem:[#allocation2 + $0xa9] sm:$0xff] %vm439_vm0, %v1140_v29  ;;  %19674 = vmatprep.mubr.msk.f32.mxu1 %vm439_vm0, %v24696_v61  ;;  %v24852_v43 = vld [vmem:[#allocation2 + $0x78] sm:$0xff] }
 0x1a4   : > { %v1142_v20 = vpop.permute.xlu1 %1141  ;;  %v24701_v16 = vld [vmem:[#allocation2 + $0x81] sm:$0xff] }
 0x1a5   : > { %1225 = vst.msk [vmem:[#allocation2 + $0xb1] sm:$0xff] %vm439_vm0, %v1142_v20  ;;  %19675 = vmatmul.mubr.msk.f32.gmra.mrb[18].mxu1 %vm439_vm0, %v24701_v16  ;;  %v24856_v11 = vld [vmem:[#allocation2 + $0x80] sm:$0xff] }
 0x1a6   : > { %v24706_v12 = vld [vmem:[#allocation2 + $0x91] sm:$0xff] }
 0x1a7   : > { %19677 = vmatprep.mubr.msk.f32.mxu1 %vm439_vm0, %v24706_v12  ;;  %v24860_v13 = vld [vmem:[#allocation2 + $0x90] sm:$0xff] }
 0x1a8   : > { %v1146_v24 = vpop.permute.xlu1 %1145  ;;  %v24710_v14 = vld [vmem:[#allocation2 + $0x99] sm:$0xff] }
 0x1a9   : > { %1227 = vst.msk [vmem:[#allocation2 + $0xc9] sm:$0xff] %vm439_vm0, %v1146_v24  ;;  %19678 = vmatmul.mubr.msk.f32.gmra.mrb[20].mxu1 %vm439_vm0, %v24710_v14  ;;  %v1144_v54 = vpop.permute.xlu0 %1143  ;;  %v24865_v5 = vld [vmem:[#allocation2 + $0x98] sm:$0xff] }
 0x1aa   : > { %v24715_v55 = vld [vmem:[#allocation2 + $0xa9] sm:$0xff]  ;;  %1226 = vst.msk [vmem:[#allocation2 + $0xc1] sm:$0xff] %vm439_vm0, %v1144_v54 }
 0x1ab   : > { %19680 = vmatprep.mubr.msk.f32.mxu1 %vm439_vm0, %v24715_v55  ;;  %v24870_v8 = vld [vmem:[#allocation2 + $0xa8] sm:$0xff] }
 0x1ac   : > { %v24720_v56 = vld [vmem:[#allocation2 + $0xb1] sm:$0xff] }
 0x1ad   : > { %19681 = vmatmul.mubr.msk.f32.gmra.mrb[22].mxu1 %vm439_vm0, %v24720_v56  ;;  %v1150_v34 = vpop.permute.xlu1 %1149  ;;  %v24874_v4 = vld [vmem:[#allocation2 + $0xb0] sm:$0xff] }
 0x1ae   : > { %1229 = vst.msk [vmem:[#allocation2 + $0xe1] sm:$0xff] %vm439_vm0, %v1150_v34 }
 0x1b0   : > { %v1148_v42 = vpop.permute.xlu0 %1147  ;;  %v24725_v63 = vld [vmem:[#allocation2 + $0xc9] sm:$0xff] }
 0x1b1   : > { %1228 = vst.msk [vmem:[#allocation2 + $0xd9] sm:$0xff] %vm439_vm0, %v1148_v42  ;;  %v24728_v27 = vld [vmem:[#allocation2 + $0xc1] sm:$0xff] }
 0x1b2   : > { %19683 = vmatprep.mubr.msk.f32.mxu1 %vm439_vm0, %v24728_v27  ;;  %v24878_v21 = vld [vmem:[#allocation2 + $0xc0] sm:$0xff] }
 0x1b3   : > { %v1154_v62 = vpop.permute.xlu1 %1153  ;;  %19684 = vmatmul.mubr.msk.f32.gmra.mrb[24].mxu1 %vm439_vm0, %v24725_v63 }
 0x1b4   : > { %v1152_v0 = vpop.permute.xlu0 %1151  ;;  %1231 = vst.msk [vmem:[#allocation2 + $0xf9] sm:$0xff] %vm439_vm0, %v1154_v62 }
 0x1b5   : > { %1230 = vst.msk [vmem:[#allocation2 + $0xf1] sm:$0xff] %vm439_vm0, %v1152_v0  ;;  %v24736_v51 = vld [vmem:[#allocation2 + $0xe1] sm:$0xff] }
 0x1b7   : > { %v1158_v35 = vpop.permute.xlu1 %1157 }
 0x1b8   : > { %v1156_v53 = vpop.permute.xlu0 %1155  ;;  %v24738_v15 = vld [vmem:[#allocation2 + $0xd9] sm:$0xff]  ;;  %1233 = vst.msk [vmem:[#allocation2 + $0x111] sm:$0xff] %vm439_vm0, %v1158_v35 }
 0x1b9   : > { %1232 = vst.msk [vmem:[#allocation2 + $0x109] sm:$0xff] %vm439_vm0, %v1156_v53  ;;  %19686 = vmatprep.mubr.msk.f32.mxu1 %vm439_vm0, %v24738_v15  ;;  %v24890_v59 = vld [vmem:[#allocation2 + $0xe0] sm:$0xff] }
 0x1ba   : > { %19687 = vmatmul.mubr.msk.f32.gmra.mrb[26].mxu1 %vm439_vm0, %v24736_v51 }
 0x1bb   : > { %v1162_v6 = vpop.permute.xlu1 %1161  ;;  %v24746_v32 = vld [vmem:[#allocation2 + $0xf9] sm:$0xff] }
 0x1bc   : > { %v1160_v26 = vpop.permute.xlu0 %1159  ;;  %v24748_v29 = vld [vmem:[#allocation2 + $0xf1] sm:$0xff]  ;;  %1235 = vst.msk [vmem:[#allocation2 + $0x129] sm:$0xff] %vm439_vm0, %v1162_v6 }
 0x1bd   : > { %1234 = vst.msk [vmem:[#allocation2 + $0x121] sm:$0xff] %vm439_vm0, %v1160_v26  ;;  %19689 = vmatprep.mubr.msk.f32.mxu1 %vm439_vm0, %v24748_v29  ;;  %v24894_v1 = vld [vmem:[#allocation2 + $0xf0] sm:$0xff]  ;;  %v24898_v57 = vld [vmem:[#allocation2 + $0xf8] sm:$0xff] }
 0x1be   : > { %19690 = vmatmul.mubr.msk.f32.gmra.mrb[28].mxu1 %vm439_vm0, %v24746_v32 }
 0x1bf   : > { %v1166_v20 = vpop.permute.xlu1 %1165  ;;  %v24756_v24 = vld [vmem:[#allocation2 + $0x111] sm:$0xff] }
 0x1c0   : > { %v1164_v54 = vpop.permute.xlu0 %1163  ;;  %v24758_v34 = vld [vmem:[#allocation2 + $0x109] sm:$0xff]  ;;  %1237 = vst.msk [vmem:[#allocation2 + $0x141] sm:$0xff] %vm439_vm0, %v1166_v20 }
 0x1c1   : > { %1236 = vst.msk [vmem:[#allocation2 + $0x139] sm:$0xff] %vm439_vm0, %v1164_v54  ;;  %19692 = vmatprep.mubr.msk.f32.mxu1 %vm439_vm0, %v24758_v34  ;;  %v24902_v7 = vld [vmem:[#allocation2 + $0x108] sm:$0xff]  ;;  %v24906_v41 = vld [vmem:[#allocation2 + $0x110] sm:$0xff] }
 0x1c2   : > { %19693 = vmatmul.mubr.msk.f32.gmra.mrb[30].mxu1 %vm439_vm0, %v24756_v24 }
 0x1c3   : > { %v1170_v42 = vpop.permute.xlu1 %1169  ;;  %v24766_v62 = vld [vmem:[#allocation2 + $0x129] sm:$0xff] }
 0x1c4   : > { %v1168_v0 = vpop.permute.xlu0 %1167  ;;  %v24768_v35 = vld [vmem:[#allocation2 + $0x121] sm:$0xff]  ;;  %1239 = vst.msk [vmem:[#allocation2 + $0x159] sm:$0xff] %vm439_vm0, %v1170_v42 }
 0x1c5   : > { %1238 = vst.msk [vmem:[#allocation2 + $0x151] sm:$0xff] %vm439_vm0, %v1168_v0  ;;  %19695 = vmatprep.mubr.msk.f32.mxu1 %vm439_vm0, %v24768_v35  ;;  %v24910_v58 = vld [vmem:[#allocation2 + $0x120] sm:$0xff]  ;;  %v24914_v31 = vld [vmem:[#allocation2 + $0x128] sm:$0xff] }
 0x1c6   : > { %19696 = vmatmul.mubr.msk.f32.gmra.mrb[32].mxu1 %vm439_vm0, %v24766_v62 }
 0x1c7   : > { %v1174_v53 = vpop.permute.xlu1 %1173  ;;  %v24776_v6 = vld [vmem:[#allocation2 + $0x141] sm:$0xff] }
 0x1c8   : > { %29746 = vst [vmem:[#allocation39_spill] sm:$0xff] %v24776_v6  ;;  %v1172_v26 = vpop.permute.xlu0 %1171  ;;  %v24778_v20 = vld [vmem:[#allocation2 + $0x139] sm:$0xff]  ;;  %1241 = vst.msk [vmem:[#allocation2 + $0x171] sm:$0xff] %vm439_vm0, %v1174_v53 }
 0x1c9   : > { %1240 = vst.msk [vmem:[#allocation2 + $0x169] sm:$0xff] %vm439_vm0, %v1172_v26  ;;  %19698 = vmatprep.mubr.msk.f32.mxu1 %vm439_vm0, %v24778_v20  ;;  %v1244_v26 = vld [vmem:[#allocation2] sm:$0xff]  ;;  %v24918_v45 = vld [vmem:[#allocation2 + $0x138] sm:$0xff] }
 0x1ca   : > { %19699 = vmatmul.mubr.msk.f32.gmra.mrb[34].mxu1 %vm439_vm0, %v24776_v6  ;;  %v24922_v49 = vld [vmem:[#allocation2 + $0x140] sm:$0xff] }
 0x1cb   : > { %v24786_v54 = vld [vmem:[#allocation2 + $0x159] sm:$0xff] }
 0x1cc   : > { %29747 = vst [vmem:[#allocation40_spill] sm:$0xff] %v24786_v54  ;;  %v24788_v42 = vld [vmem:[#allocation2 + $0x151] sm:$0xff]  ;;  %v24956_v6 = vld [vmem:[#allocation2 + $0x1a] sm:$0xff] }
 0x1cd   : > { %29748 = vst [vmem:[#allocation41_spill] sm:$0xff] %v24788_v42  ;;  %19701 = vmatprep.mubr.msk.f32.mxu1 %vm439_vm0, %v24788_v42  ;;  %v24926_v39 = vld [vmem:[#allocation2 + $0x150] sm:$0xff]  ;;  %v24930_v19 = vld [vmem:[#allocation2 + $0x158] sm:$0xff]  ;;  %v2769_v42 = vld [vmem:[%s29374_s3 + $0x88] sm:$0xff] }
 0x1ce   : > { %19702 = vmatmul.mubr.msk.f32.gmra.mrb[36].mxu1 %vm439_vm0, %v24786_v54  ;;  %v2768_v54 = vld [vmem:[%s29374_s3 + $0x80] sm:$0xff] }
 0x1cf   : > { %v24794_v0 = vld [vmem:[#allocation2 + $0x171] sm:$0xff] }
 0x1d0   : > { %29749 = vst [vmem:[#allocation42_spill] sm:$0xff] %v24794_v0  ;;  %v24796_v53 = vld [vmem:[#allocation2 + $0x169] sm:$0xff] }
 0x1d1   : > { %29750 = vst [vmem:[#allocation43_spill] sm:$0xff] %v24796_v53  ;;  %19704 = vmatprep.mubr.msk.f32.mxu1 %vm439_vm0, %v24796_v53  ;;  %v24934_v30 = vld [vmem:[#allocation2 + $0x168] sm:$0xff]  ;;  %v24938_v23 = vld [vmem:[#allocation2 + $0x170] sm:$0xff]  ;;  %v21703_v53 = vpack.c.bf16 %v2382_v18, %v2381_v3 }
 0x1d2   : > { %19705 = vmatmul.mubr.msk.f32.gmra.mrb[38].mxu1 %vm439_vm0, %v24794_v0  ;;  %v1959_v0 = vld [vmem:[#allocation2 + $0xa] sm:$0xff]  ;;  %v24963_v3 = vld [vmem:[#allocation2 + $0x22] sm:$0xff]  ;;  %v24967_v18 = vld [vmem:[#allocation2 + $0x32] sm:$0xff] }
 0x1d3   : > { %19715 = vmatprep.mubr.msk.f32.mxu1 %vm439_vm0, %v1244_v26  ;;  %v24821_v26 = vpack.c.bf16 %v2380_v37, %v2379_v47  ;;  %v24836_v37 = vld [vmem:[#allocation2 + $0x48] sm:$0xff]  ;;  %v24840_v47 = vld [vmem:[#allocation2 + $0x50] sm:$0xff]  ;;  %29751 = vst [vmem:[#allocation44_spill] sm:$0xff] %v24967_v18 }
 0x1d6   : > { %19716 = vmatmul.mubr.msk.f32.vlgmr.msra.gmra.mrb[8].mxu1 %vm439_vm0, %v1245_v9  ;;  %v24832_v9 = vld [vmem:[#allocation2 + $0x38] sm:$0xff] }
 0x1d7   : > { %19718 = vmatprep.mubr.msk.f32.mxu1 %vm439_vm0, %v24816_v46  ;;  %21694 = vmatpush3.bf16.msra.mxu1 %v24639_v17  ;;  %v24844_v17 = vld [vmem:[#allocation2 + $0x60] sm:$0xff] }
 0x1d8   : > { %21696 = vmatprep.subr.bf16.mxu1 %v21695_v38 }
 0x1da   : > { %19719 = vmatmul.mubr.msk.f32.gmra.mrb[10].mxu1 %vm439_vm0, %v24823_v25 }
 0x1db   : > { %19721 = vmatprep.mubr.msk.f32.mxu1 %vm439_vm0, %v24827_v52  ;;  %21698 = vmatpush3.bf16.msra.mxu1 %v21695_v38  ;;  %v24848_v38 = vld [vmem:[#allocation2 + $0x68] sm:$0xff]  ;;  %v1178_v44 = vpop.permute.xlu1 %1177 }
 0x1dc   : > { %21700 = vmatprep.subr.bf16.mxu1 %v24821_v26  ;;  %1243 = vst.msk [vmem:[#allocation2 + $0x189] sm:$0xff] %vm439_vm0, %v1178_v44  ;;  %v1176_v33 = vpop.permute.xlu0 %1175  ;;  %v24882_v44 = vld [vmem:[#allocation2 + $0xc8] sm:$0xff] }
 0x1dd   : > { %1242 = vst.msk [vmem:[#allocation2 + $0x181] sm:$0xff] %vm439_vm0, %v1176_v33  ;;  %v24886_v33 = vld [vmem:[#allocation2 + $0xd8] sm:$0xff] }
 0x1de   : > { %19722 = vmatmul.mubr.msk.f32.gmra.mrb[12].mxu1 %vm439_vm0, %v24832_v9 }
 0x1df   : > { %19724 = vmatprep.mubr.msk.f32.mxu1 %vm439_vm0, %v24836_v37 }
 0x1e2   : > { %19725 = vmatmul.mubr.msk.f32.gmra.mrb[14].mxu1 %vm439_vm0, %v24840_v47 }
 0x1e3   : > { %19727 = vmatprep.mubr.msk.f32.mxu1 %vm439_vm0, %v24844_v17 }
 0x1e6   : > { %19728 = vmatmul.mubr.msk.f32.gmra.mrb[16].mxu1 %vm439_vm0, %v24848_v38 }
 0x1e7   : > { %19730 = vmatprep.mubr.msk.f32.mxu1 %vm439_vm0, %v24852_v43 }
 0x1ea   : > { %19731 = vmatmul.mubr.msk.f32.gmra.mrb[18].mxu1 %vm439_vm0, %v24856_v11 }
 0x1eb   : > { %19733 = vmatprep.mubr.msk.f32.mxu1 %vm439_vm0, %v24860_v13 }
 0x1ee   : > { %19734 = vmatmul.mubr.msk.f32.gmra.mrb[20].mxu1 %vm439_vm0, %v24865_v5 }
 0x1ef   : > { %19736 = vmatprep.mubr.msk.f32.mxu1 %vm439_vm0, %v24870_v8 }
 0x1f2   : > { %19737 = vmatmul.mubr.msk.f32.gmra.mrb[22].mxu1 %vm439_vm0, %v24874_v4 }
 0x1f3   : > { %19739 = vmatprep.mubr.msk.f32.mxu1 %vm439_vm0, %v24878_v21 }
 0x1f6   : > { %19740 = vmatmul.mubr.msk.f32.gmra.mrb[24].mxu1 %vm439_vm0, %v24882_v44 }
 0x1f7   : > { %19742 = vmatprep.mubr.msk.f32.mxu1 %vm439_vm0, %v24886_v33 }
 0x1fa   : > { %19743 = vmatmul.mubr.msk.f32.gmra.mrb[26].mxu1 %vm439_vm0, %v24890_v59 }
 0x1fb   : > { %19745 = vmatprep.mubr.msk.f32.mxu1 %vm439_vm0, %v24894_v1 }
 0x1fe   : > { %19746 = vmatmul.mubr.msk.f32.gmra.mrb[28].mxu1 %vm439_vm0, %v24898_v57 }
 0x1ff   : > { %19748 = vmatprep.mubr.msk.f32.mxu1 %vm439_vm0, %v24902_v7 }
 0x202   : > { %19749 = vmatmul.mubr.msk.f32.gmra.mrb[30].mxu1 %vm439_vm0, %v24906_v41 }
 0x203   : > { %19751 = vmatprep.mubr.msk.f32.mxu1 %vm439_vm0, %v24910_v58 }
 0x206   : > { %19752 = vmatmul.mubr.msk.f32.gmra.mrb[32].mxu1 %vm439_vm0, %v24914_v31 }
 0x207   : > { %19754 = vmatprep.mubr.msk.f32.mxu1 %vm439_vm0, %v24918_v45 }
 0x20a   : > { %19755 = vmatmul.mubr.msk.f32.gmra.mrb[34].mxu1 %vm439_vm0, %v24922_v49 }
 0x20b   : > { %19757 = vmatprep.mubr.msk.f32.mxu1 %vm439_vm0, %v24926_v39 }
 0x20e   : > { %19758 = vmatmul.mubr.msk.f32.gmra.mrb[36].mxu1 %vm439_vm0, %v24930_v19 }
 0x20f   : > { %19760 = vmatprep.mubr.msk.f32.mxu1 %vm439_vm0, %v24934_v30 }
 0x212   : > { %19761 = vmatmul.mubr.msk.f32.gmra.mrb[38].mxu1 %vm439_vm0, %v24938_v23 }
 0x213   : > { %19771 = vmatprep.mubr.msk.f32.mxu1 %vm439_vm0, %v1958_v36  ;;  %v24961_v36 = vpack.c.bf16 %v2769_v42, %v2768_v54  ;;  %v24976_v54 = vld [vmem:[#allocation2 + $0x4a] sm:$0xff]  ;;  %v24980_v42 = vld [vmem:[#allocation2 + $0x52] sm:$0xff] }
 0x214   : > { %29753 = vst [vmem:[#allocation46_spill] sm:$0xff] %v24976_v54  ;;  %29754 = vst [vmem:[#allocation47_spill] sm:$0xff] %v24980_v42 }
 0x216   : > { %19772 = vmatmul.mubr.msk.f32.vlgmr.msra.gmra.mrb[8].mxu1 %vm439_vm0, %v1959_v0  ;;  %v24972_v0 = vld [vmem:[#allocation2 + $0x3a] sm:$0xff] }
 0x217   : > { %19774 = vmatprep.mubr.msk.f32.mxu1 %vm439_vm0, %v24956_v6  ;;  %21702 = vmatpush3.bf16.msra.mxu1 %v24821_v26  ;;  %29752 = vst [vmem:[#allocation45_spill] sm:$0xff] %v24972_v0  ;;  %v24984_v26 = vld [vmem:[#allocation2 + $0x62] sm:$0xff] }
 0x218   : > { %21704 = vmatprep.subr.bf16.mxu1 %v21703_v53  ;;  %29755 = vst [vmem:[#allocation48_spill] sm:$0xff] %v24984_v26 }
 0x21a   : > { %19775 = vmatmul.mubr.msk.f32.gmra.mrb[10].mxu1 %vm439_vm0, %v24963_v3 }
 0x21b   : > { %19777 = vmatprep.mubr.msk.f32.mxu1 %vm439_vm0, %v24967_v18  ;;  %21706 = vmatpush3.bf16.msra.mxu1 %v21703_v53  ;;  %v24988_v53 = vld [vmem:[#allocation2 + $0x6a] sm:$0xff] }
 0x21c   : > { %21708 = vmatprep.subr.bf16.mxu1 %v24961_v36  ;;  %29756 = vst [vmem:[#allocation49_spill] sm:$0xff] %v24988_v53  ;;  %v3158_v18 = vld [vmem:[%s29374_s3 + $0xa8] sm:$0xff] }
 0x21e   : > { %19778 = vmatmul.mubr.msk.f32.gmra.mrb[12].mxu1 %vm439_vm0, %v24972_v0  ;;  %v24992_v0 = vld [vmem:[#allocation2 + $0x7a] sm:$0xff] }
 0x21f   : > { %19780 = vmatprep.mubr.msk.f32.mxu1 %vm439_vm0, %v24976_v54  ;;  %29757 = vst [vmem:[#allocation50_spill] sm:$0xff] %v24992_v0  ;;  %v24996_v54 = vld [vmem:[#allocation2 + $0x82] sm:$0xff] }
 0x220   : > { %29758 = vst [vmem:[#allocation51_spill] sm:$0xff] %v24996_v54 }
 0x222   : > { %19781 = vmatmul.mubr.msk.f32.gmra.mrb[14].mxu1 %vm439_vm0, %v24980_v42  ;;  %v25000_v42 = vld [vmem:[#allocation2 + $0x92] sm:$0xff] }
 0x223   : > { %19783 = vmatprep.mubr.msk.f32.mxu1 %vm439_vm0, %v24984_v26  ;;  %29759 = vst [vmem:[#allocation52_spill] sm:$0xff] %v25000_v42  ;;  %v25004_v26 = vld [vmem:[#allocation2 + $0x9a] sm:$0xff] }
 0x224   : > { %29760 = vst [vmem:[#allocation53_spill] sm:$0xff] %v25004_v26 }
 0x226   : > { %19784 = vmatmul.mubr.msk.f32.gmra.mrb[16].mxu1 %vm439_vm0, %v24988_v53  ;;  %v25008_v53 = vld [vmem:[#allocation2 + $0xaa] sm:$0xff] }
 0x227   : > { %19786 = vmatprep.mubr.msk.f32.mxu1 %vm439_vm0, %v24992_v0  ;;  %29761 = vst [vmem:[#allocation54_spill] sm:$0xff] %v25008_v53  ;;  %v25012_v0 = vld [vmem:[#allocation2 + $0xb2] sm:$0xff] }
 0x228   : > { %29762 = vst [vmem:[#allocation55_spill] sm:$0xff] %v25012_v0 }
 0x22a   : > { %19787 = vmatmul.mubr.msk.f32.gmra.mrb[18].mxu1 %vm439_vm0, %v24996_v54  ;;  %v25016_v54 = vld [vmem:[#allocation2 + $0xc2] sm:$0xff] }
 0x22b   : > { %19789 = vmatprep.mubr.msk.f32.mxu1 %vm439_vm0, %v25000_v42  ;;  %29763 = vst [vmem:[#allocation56_spill] sm:$0xff] %v25016_v54  ;;  %v25020_v42 = vld [vmem:[#allocation2 + $0xca] sm:$0xff] }
 0x22c   : > { %29764 = vst [vmem:[#allocation57_spill] sm:$0xff] %v25020_v42 }
 0x22e   : > { %19790 = vmatmul.mubr.msk.f32.gmra.mrb[20].mxu1 %vm439_vm0, %v25004_v26  ;;  %v25024_v26 = vld [vmem:[#allocation2 + $0xda] sm:$0xff] }
 0x22f   : > { %19792 = vmatprep.mubr.msk.f32.mxu1 %vm439_vm0, %v25008_v53  ;;  %29765 = vst [vmem:[#allocation58_spill] sm:$0xff] %v25024_v26  ;;  %v25028_v53 = vld [vmem:[#allocation2 + $0xe2] sm:$0xff] }
 0x230   : > { %29766 = vst [vmem:[#allocation59_spill] sm:$0xff] %v25028_v53 }
 0x232   : > { %19793 = vmatmul.mubr.msk.f32.gmra.mrb[22].mxu1 %vm439_vm0, %v25012_v0  ;;  %v25032_v0 = vld [vmem:[#allocation2 + $0xf2] sm:$0xff] }
 0x233   : > { %19795 = vmatprep.mubr.msk.f32.mxu1 %vm439_vm0, %v25016_v54  ;;  %29767 = vst [vmem:[#allocation60_spill] sm:$0xff] %v25032_v0  ;;  %v25036_v54 = vld [vmem:[#allocation2 + $0xfa] sm:$0xff] }
 0x234   : > { %29768 = vst [vmem:[#allocation61_spill] sm:$0xff] %v25036_v54 }
 0x236   : > { %19796 = vmatmul.mubr.msk.f32.gmra.mrb[24].mxu1 %vm439_vm0, %v25020_v42  ;;  %v25040_v42 = vld [vmem:[#allocation2 + $0x10a] sm:$0xff] }
 0x237   : > { %19798 = vmatprep.mubr.msk.f32.mxu1 %vm439_vm0, %v25024_v26  ;;  %29769 = vst [vmem:[#allocation62_spill] sm:$0xff] %v25040_v42  ;;  %v25044_v26 = vld [vmem:[#allocation2 + $0x112] sm:$0xff] }
 0x238   : > { %29770 = vst [vmem:[#allocation63_spill] sm:$0xff] %v25044_v26 }
 0x23a   : > { %19799 = vmatmul.mubr.msk.f32.gmra.mrb[26].mxu1 %vm439_vm0, %v25028_v53  ;;  %v25048_v53 = vld [vmem:[#allocation2 + $0x122] sm:$0xff] }
 0x23b   : > { %19801 = vmatprep.mubr.msk.f32.mxu1 %vm439_vm0, %v25032_v0  ;;  %29771 = vst [vmem:[#allocation64_spill] sm:$0xff] %v25048_v53  ;;  %v25052_v0 = vld [vmem:[#allocation2 + $0x12a] sm:$0xff] }
 0x23c   : > { %29772 = vst [vmem:[#allocation65_spill] sm:$0xff] %v25052_v0 }
 0x23e   : > { %19802 = vmatmul.mubr.msk.f32.gmra.mrb[28].mxu1 %vm439_vm0, %v25036_v54  ;;  %v25056_v54 = vld [vmem:[#allocation2 + $0x13a] sm:$0xff] }
 0x23f   : > { %19804 = vmatprep.mubr.msk.f32.mxu1 %vm439_vm0, %v25040_v42  ;;  %29773 = vst [vmem:[#allocation66_spill] sm:$0xff] %v25056_v54  ;;  %v25060_v42 = vld [vmem:[#allocation2 + $0x142] sm:$0xff] }
 0x240   : > { %29774 = vst [vmem:[#allocation67_spill] sm:$0xff] %v25060_v42 }
 0x242   : > { %19805 = vmatmul.mubr.msk.f32.gmra.mrb[30].mxu1 %vm439_vm0, %v25044_v26  ;;  %v25064_v26 = vld [vmem:[#allocation2 + $0x152] sm:$0xff] }
 0x243   : > { %19807 = vmatprep.mubr.msk.f32.mxu1 %vm439_vm0, %v25048_v53  ;;  %29775 = vst [vmem:[#allocation68_spill] sm:$0xff] %v25064_v26  ;;  %v25068_v53 = vld [vmem:[#allocation2 + $0x15a] sm:$0xff] }
 0x244   : > { %29776 = vst [vmem:[#allocation69_spill] sm:$0xff] %v25068_v53 }
 0x246   : > { %19808 = vmatmul.mubr.msk.f32.gmra.mrb[32].mxu1 %vm439_vm0, %v25052_v0  ;;  %v25072_v0 = vld [vmem:[#allocation2 + $0x16a] sm:$0xff] }
 0x247   : > { %19810 = vmatprep.mubr.msk.f32.mxu1 %vm439_vm0, %v25056_v54  ;;  %29777 = vst [vmem:[#allocation70_spill] sm:$0xff] %v25072_v0  ;;  %v25076_v54 = vld [vmem:[#allocation2 + $0x172] sm:$0xff] }
 0x248   : > { %29778 = vst [vmem:[#allocation71_spill] sm:$0xff] %v25076_v54 }
 0x24a   : > { %19811 = vmatmul.mubr.msk.f32.gmra.mrb[34].mxu1 %vm439_vm0, %v25060_v42  ;;  %v2770_v42 = vld [vmem:[%s29374_s3 + $0x90] sm:$0xff] }
 0x24b   : > { %19813 = vmatprep.mubr.msk.f32.mxu1 %vm439_vm0, %v25064_v26  ;;  %v2771_v26 = vld [vmem:[%s29374_s3 + $0x98] sm:$0xff] }
 0x24e   : > { %19814 = vmatmul.mubr.msk.f32.gmra.mrb[36].mxu1 %vm439_vm0, %v25068_v53  ;;  %v21711_v53 = vpack.c.bf16 %v2771_v26, %v2770_v42  ;;  %v3547_v42 = vld [vmem:[%s29374_s3 + $0xc0] sm:$0xff]  ;;  %v3548_v26 = vld [vmem:[%s29374_s3 + $0xc8] sm:$0xff] }
 0x24f   : > { %19816 = vmatprep.mubr.msk.f32.mxu1 %vm439_vm0, %v25072_v0  ;;  %v3157_v0 = vld [vmem:[%s29374_s3 + $0xa0] sm:$0xff] }
 0x252   : > { %19817 = vmatmul.mubr.msk.f32.gmra.mrb[38].mxu1 %vm439_vm0, %v25076_v54  ;;  %v21715_v54 = vpack.c.bf16 %v3158_v18, %v3157_v0  ;;  %v3160_v18 = vld [vmem:[%s29374_s3 + $0xb8] sm:$0xff] }
 0x253   : > { %19827 = vmatprep.mubr.msk.f32.mxu1 %vm439_vm0, %v24816_v46  ;;  %v25153_v46 = vld [vmem:[#allocation2 + $0x180] sm:$0xff] }
 0x256   : > { %19828 = vmatmul.mubr.msk.f32.vlgmr.msra.gmra.mrb[8].mxu1 %vm439_vm0, %v24823_v25  ;;  %v25157_v25 = vld [vmem:[#allocation2 + $0x188] sm:$0xff] }
 0x257   : > { %19830 = vmatprep.mubr.msk.f32.mxu1 %vm439_vm0, %v24827_v52  ;;  %21710 = vmatpush3.bf16.msra.mxu1 %v24961_v36  ;;  %v3159_v36 = vld [vmem:[%s29374_s3 + $0xb0] sm:$0xff] }
 0x258   : > { %21712 = vmatprep.subr.bf16.mxu1 %v21711_v53  ;;  %v21719_v0 = vpack.c.bf16 %v3160_v18, %v3159_v36  ;;  %v29799_v36 = vld [vmem:[#allocation59_spill] sm:$0xff]  ;;  %v29800_v18 = vld [vmem:[#allocation60_spill] sm:$0xff] }
 0x25a   : > { %19831 = vmatmul.mubr.msk.f32.gmra.mrb[10].mxu1 %vm439_vm0, %v24832_v9 }
 0x25b   : > { %19833 = vmatprep.mubr.msk.f32.mxu1 %vm439_vm0, %v24836_v37  ;;  %21714 = vmatpush3.bf16.msra.mxu1 %v21711_v53  ;;  %v21723_v53 = vpack.c.bf16 %v3548_v26, %v3547_v42  ;;  %v29802_v42 = vld [vmem:[#allocation62_spill] sm:$0xff]  ;;  %v29803_v26 = vld [vmem:[#allocation63_spill] sm:$0xff] }
 0x25c   : > { %21716 = vmatprep.subr.bf16.mxu1 %v21715_v54 }
 0x25e   : > { %19834 = vmatmul.mubr.msk.f32.gmra.mrb[12].mxu1 %vm439_vm0, %v24840_v47 }
 0x25f   : > { %19836 = vmatprep.mubr.msk.f32.mxu1 %vm439_vm0, %v24844_v17 }
 0x262   : > { %19837 = vmatmul.mubr.msk.f32.gmra.mrb[14].mxu1 %vm439_vm0, %v24848_v38 }
 0x263   : > { %19839 = vmatprep.mubr.msk.f32.mxu1 %vm439_vm0, %v24852_v43 }
 0x266   : > { %19840 = vmatmul.mubr.msk.f32.gmra.mrb[16].mxu1 %vm439_vm0, %v24856_v11 }
 0x267   : > { %19842 = vmatprep.mubr.msk.f32.mxu1 %vm439_vm0, %v24860_v13 }
 0x26a   : > { %19843 = vmatmul.mubr.msk.f32.gmra.mrb[18].mxu1 %vm439_vm0, %v24865_v5 }
 0x26b   : > { %19845 = vmatprep.mubr.msk.f32.mxu1 %vm439_vm0, %v24870_v8 }
 0x26e   : > { %19846 = vmatmul.mubr.msk.f32.gmra.mrb[20].mxu1 %vm439_vm0, %v24874_v4 }
 0x26f   : > { %19848 = vmatprep.mubr.msk.f32.mxu1 %vm439_vm0, %v24878_v21 }
 0x272   : > { %19849 = vmatmul.mubr.msk.f32.gmra.mrb[22].mxu1 %vm439_vm0, %v24882_v44 }
 0x273   : > { %19851 = vmatprep.mubr.msk.f32.mxu1 %vm439_vm0, %v24886_v33 }
 0x276   : > { %19852 = vmatmul.mubr.msk.f32.gmra.mrb[24].mxu1 %vm439_vm0, %v24890_v59 }
 0x277   : > { %19854 = vmatprep.mubr.msk.f32.mxu1 %vm439_vm0, %v24894_v1 }
 0x27a   : > { %19855 = vmatmul.mubr.msk.f32.gmra.mrb[26].mxu1 %vm439_vm0, %v24898_v57 }
 0x27b   : > { %19857 = vmatprep.mubr.msk.f32.mxu1 %vm439_vm0, %v24902_v7 }
 0x27e   : > { %19858 = vmatmul.mubr.msk.f32.gmra.mrb[28].mxu1 %vm439_vm0, %v24906_v41 }
 0x27f   : > { %19860 = vmatprep.mubr.msk.f32.mxu1 %vm439_vm0, %v24910_v58 }
 0x282   : > { %19861 = vmatmul.mubr.msk.f32.gmra.mrb[30].mxu1 %vm439_vm0, %v24914_v31 }
 0x283   : > { %19863 = vmatprep.mubr.msk.f32.mxu1 %vm439_vm0, %v24918_v45 }
 0x286   : > { %19864 = vmatmul.mubr.msk.f32.gmra.mrb[32].mxu1 %vm439_vm0, %v24922_v49 }
 0x287   : > { %19866 = vmatprep.mubr.msk.f32.mxu1 %vm439_vm0, %v24926_v39 }
 0x28a   : > { %19867 = vmatmul.mubr.msk.f32.gmra.mrb[34].mxu1 %vm439_vm0, %v24930_v19 }
 0x28b   : > { %19869 = vmatprep.mubr.msk.f32.mxu1 %vm439_vm0, %v24934_v30 }
 0x28e   : > { %19870 = vmatmul.mubr.msk.f32.gmra.mrb[36].mxu1 %vm439_vm0, %v24938_v23 }
 0x28f   : > { %19872 = vmatprep.mubr.msk.f32.mxu1 %vm439_vm0, %v25153_v46 }
 0x292   : > { %19873 = vmatmul.mubr.msk.f32.gmra.mrb[38].mxu1 %vm439_vm0, %v25157_v25 }
 0x293   : > { %19883 = vmatprep.mubr.msk.f32.mxu1 %vm439_vm0, %v24655_v48  ;;  %v29779_v48 = vld [vmem:[#allocation39_spill] sm:$0xff] }
 0x296   : > { %19884 = vmatmul.mubr.msk.f32.vlgmr.msra.gmra.mrb[8].mxu1 %vm439_vm0, %v24661_v40  ;;  %v29780_v40 = vld [vmem:[#allocation41_spill] sm:$0xff] }
 0x297   : > { %19886 = vmatprep.mubr.msk.f32.mxu1 %vm439_vm0, %v24663_v50  ;;  %21718 = vmatpush3.bf16.msra.mxu1 %v21715_v54  ;;  %v29781_v50 = vld [vmem:[#allocation40_spill] sm:$0xff]  ;;  %v29798_v54 = vld [vmem:[#allocation58_spill] sm:$0xff] }
 0x298   : > { %21720 = vmatprep.subr.bf16.mxu1 %v21719_v0 }
 0x29a   : > { %19887 = vmatmul.mubr.msk.f32.gmra.mrb[10].mxu1 %vm439_vm0, %v24671_v60  ;;  %v29782_v60 = vld [vmem:[#allocation43_spill] sm:$0xff] }
 0x29b   : > { %19889 = vmatprep.mubr.msk.f32.mxu1 %vm439_vm0, %v24673_v2  ;;  %21722 = vmatpush3.bf16.msra.mxu1 %v21719_v0  ;;  %v29783_v2 = vld [vmem:[#allocation42_spill] sm:$0xff]  ;;  %v29801_v0 = vld [vmem:[#allocation61_spill] sm:$0xff] }
 0x29c   : > { %21724 = vmatprep.subr.bf16.mxu1 %v21723_v53 }
 0x29e   : > { %19890 = vmatmul.mubr.msk.f32.gmra.mrb[12].mxu1 %vm439_vm0, %v24681_v10  ;;  %v25233_v10 = vld [vmem:[#allocation2 + $0x181] sm:$0xff] }
 0x29f   : > { %19892 = vmatprep.mubr.msk.f32.mxu1 %vm439_vm0, %v24686_v22  ;;  %v25237_v22 = vld [vmem:[#allocation2 + $0x189] sm:$0xff] }
 0x2a2   : > { %19893 = vmatmul.mubr.msk.f32.gmra.mrb[14].mxu1 %vm439_vm0, %v24691_v28  ;;  %v3549_v28 = vld [vmem:[%s29374_s3 + $0xd0] sm:$0xff] }
 0x2a3   : > { %19895 = vmatprep.mubr.msk.f32.mxu1 %vm439_vm0, %v24696_v61  ;;  %v3550_v61 = vld [vmem:[%s29374_s3 + $0xd8] sm:$0xff] }
 0x2a6   : > { %19896 = vmatmul.mubr.msk.f32.gmra.mrb[16].mxu1 %vm439_vm0, %v24701_v16  ;;  %v21727_v16 = vpack.c.bf16 %v3550_v61, %v3549_v28  ;;  %v29810_v28 = vld [vmem:[#allocation70_spill] sm:$0xff]  ;;  %v29811_v61 = vld [vmem:[#allocation71_spill] sm:$0xff] }
 0x2a7   : > { %19898 = vmatprep.mubr.msk.f32.mxu1 %vm439_vm0, %v24706_v12  ;;  %v3936_v12 = vld [vmem:[%s29374_s3 + $0xe0] sm:$0xff] }
 0x2aa   : > { %19899 = vmatmul.mubr.msk.f32.gmra.mrb[18].mxu1 %vm439_vm0, %v24710_v14  ;;  %v3937_v14 = vld [vmem:[%s29374_s3 + $0xe8] sm:$0xff] }
 0x2ab   : > { %19901 = vmatprep.mubr.msk.f32.mxu1 %vm439_vm0, %v24715_v55  ;;  %v29784_v55 = vld [vmem:[#allocation44_spill] sm:$0xff] }
 0x2ae   : > { %19902 = vmatmul.mubr.msk.f32.gmra.mrb[20].mxu1 %vm439_vm0, %v24720_v56  ;;  %v21731_v56 = vpack.c.bf16 %v3937_v14, %v3936_v12  ;;  %v25317_v12 = vld [vmem:[#allocation2 + $0x18a] sm:$0xff] }
 0x2af   : > { %19904 = vmatprep.mubr.msk.f32.mxu1 %vm439_vm0, %v24728_v27  ;;  %v29786_v27 = vld [vmem:[#allocation46_spill] sm:$0xff]  ;;  %29813 = vst [vmem:[#allocation41_spill] sm:$0xff] %v25317_v12  ;;  %v3938_v14 = vld [vmem:[%s29374_s3 + $0xf0] sm:$0xff] }
 0x2b2   : > { %19905 = vmatmul.mubr.msk.f32.gmra.mrb[22].mxu1 %vm439_vm0, %v24725_v63  ;;  %v29785_v63 = vld [vmem:[#allocation45_spill] sm:$0xff] }
 0x2b3   : > { %19907 = vmatprep.mubr.msk.f32.mxu1 %vm439_vm0, %v24738_v15  ;;  %v29788_v15 = vld [vmem:[#allocation48_spill] sm:$0xff] }
 0x2b6   : > { %19908 = vmatmul.mubr.msk.f32.gmra.mrb[24].mxu1 %vm439_vm0, %v24736_v51  ;;  %v29787_v51 = vld [vmem:[#allocation47_spill] sm:$0xff] }
 0x2b7   : > { %19910 = vmatprep.mubr.msk.f32.mxu1 %vm439_vm0, %v24748_v29  ;;  %v29790_v29 = vld [vmem:[#allocation50_spill] sm:$0xff] }
 0x2ba   : > { %19911 = vmatmul.mubr.msk.f32.gmra.mrb[26].mxu1 %vm439_vm0, %v24746_v32  ;;  %v29789_v32 = vld [vmem:[#allocation49_spill] sm:$0xff] }
 0x2bb   : > { %19913 = vmatprep.mubr.msk.f32.mxu1 %vm439_vm0, %v24758_v34  ;;  %v29792_v34 = vld [vmem:[#allocation52_spill] sm:$0xff] }
 0x2be   : > { %19914 = vmatmul.mubr.msk.f32.gmra.mrb[28].mxu1 %vm439_vm0, %v24756_v24  ;;  %v29791_v24 = vld [vmem:[#allocation51_spill] sm:$0xff] }
 0x2bf   : > { %19916 = vmatprep.mubr.msk.f32.mxu1 %vm439_vm0, %v24768_v35  ;;  %v29794_v35 = vld [vmem:[#allocation54_spill] sm:$0xff] }
 0x2c2   : > { %19917 = vmatmul.mubr.msk.f32.gmra.mrb[30].mxu1 %vm439_vm0, %v24766_v62  ;;  %v29793_v62 = vld [vmem:[#allocation53_spill] sm:$0xff] }
 0x2c3   : > { %19919 = vmatprep.mubr.msk.f32.mxu1 %vm439_vm0, %v24778_v20  ;;  %v29796_v20 = vld [vmem:[#allocation56_spill] sm:$0xff] }
 0x2c6   : > { %19920 = vmatmul.mubr.msk.f32.gmra.mrb[32].mxu1 %vm439_vm0, %v29779_v48  ;;  %v29805_v48 = vld [vmem:[#allocation65_spill] sm:$0xff] }
 0x2c7   : > { %19922 = vmatprep.mubr.msk.f32.mxu1 %vm439_vm0, %v29780_v40  ;;  %v29806_v40 = vld [vmem:[#allocation66_spill] sm:$0xff] }
 0x2ca   : > { %19923 = vmatmul.mubr.msk.f32.gmra.mrb[34].mxu1 %vm439_vm0, %v29781_v50  ;;  %v29807_v50 = vld [vmem:[#allocation67_spill] sm:$0xff] }
 0x2cb   : > { %19925 = vmatprep.mubr.msk.f32.mxu1 %vm439_vm0, %v29782_v60  ;;  %v29808_v60 = vld [vmem:[#allocation68_spill] sm:$0xff] }
 0x2ce   : > { %19926 = vmatmul.mubr.msk.f32.gmra.mrb[36].mxu1 %vm439_vm0, %v29783_v2  ;;  %v29809_v2 = vld [vmem:[#allocation69_spill] sm:$0xff] }
 0x2cf   : > { %19928 = vmatprep.mubr.msk.f32.mxu1 %vm439_vm0, %v25233_v10 }
 0x2d2   : > { %19929 = vmatmul.mubr.msk.f32.gmra.mrb[38].mxu1 %vm439_vm0, %v25237_v22 }
 0x2d3   : > { %19939 = vmatprep.mubr.msk.f32.mxu1 %vm439_vm0, %v24956_v6  ;;  %v29795_v6 = vld [vmem:[#allocation55_spill] sm:$0xff] }
 0x2d6   : > { %19940 = vmatmul.mubr.msk.f32.vlgmr.msra.gmra.mrb[8].mxu1 %vm439_vm0, %v24963_v3  ;;  %v29797_v3 = vld [vmem:[#allocation57_spill] sm:$0xff] }
 0x2d7   : > { %19942 = vmatprep.mubr.msk.f32.mxu1 %vm439_vm0, %v29784_v55  ;;  %21726 = vmatpush3.bf16.msra.mxu1 %v21723_v53  ;;  %v29804_v53 = vld [vmem:[#allocation64_spill] sm:$0xff] }
 0x2d8   : > { %21728 = vmatprep.subr.bf16.mxu1 %v21727_v16 }
 0x2da   : > { %19943 = vmatmul.mubr.msk.f32.gmra.mrb[10].mxu1 %vm439_vm0, %v29785_v63 }
 0x2db   : > { %19945 = vmatprep.mubr.msk.f32.mxu1 %vm439_vm0, %v29786_v27  ;;  %21730 = vmatpush3.bf16.msra.mxu1 %v21727_v16  ;;  %v25313_v16 = vld [vmem:[#allocation2 + $0x182] sm:$0xff] }
 0x2dc   : > { %21732 = vmatprep.subr.bf16.mxu1 %v21731_v56  ;;  %29812 = vst [vmem:[#allocation39_spill] sm:$0xff] %v25313_v16 }
 0x2de   : > { %19946 = vmatmul.mubr.msk.f32.gmra.mrb[12].mxu1 %vm439_vm0, %v29787_v51 }
 0x2df   : > { %19948 = vmatprep.mubr.msk.f32.mxu1 %vm439_vm0, %v29788_v15 }
 0x2e2   : > { %19949 = vmatmul.mubr.msk.f32.gmra.mrb[14].mxu1 %vm439_vm0, %v29789_v32 }
 0x2e3   : > { %19951 = vmatprep.mubr.msk.f32.mxu1 %vm439_vm0, %v29790_v29 }
 0x2e6   : > { %19952 = vmatmul.mubr.msk.f32.gmra.mrb[16].mxu1 %vm439_vm0, %v29791_v24 }
 0x2e7   : > { %19954 = vmatprep.mubr.msk.f32.mxu1 %vm439_vm0, %v29792_v34 }
 0x2ea   : > { %19955 = vmatmul.mubr.msk.f32.gmra.mrb[18].mxu1 %vm439_vm0, %v29793_v62 }
 0x2eb   : > { %19957 = vmatprep.mubr.msk.f32.mxu1 %vm439_vm0, %v29794_v35 }
 0x2ee   : > { %19958 = vmatmul.mubr.msk.f32.gmra.mrb[20].mxu1 %vm439_vm0, %v29795_v6 }
 0x2ef   : > { %19960 = vmatprep.mubr.msk.f32.mxu1 %vm439_vm0, %v29796_v20 }
 0x2f2   : > { %19961 = vmatmul.mubr.msk.f32.gmra.mrb[22].mxu1 %vm439_vm0, %v29797_v3 }
 0x2f3   : > { %19963 = vmatprep.mubr.msk.f32.mxu1 %vm439_vm0, %v29798_v54 }
 0x2f6   : > { %19964 = vmatmul.mubr.msk.f32.gmra.mrb[24].mxu1 %vm439_vm0, %v29799_v36 }
 0x2f7   : > { %19966 = vmatprep.mubr.msk.f32.mxu1 %vm439_vm0, %v29800_v18 }
 0x2fa   : > { %19967 = vmatmul.mubr.msk.f32.gmra.mrb[26].mxu1 %vm439_vm0, %v29801_v0 }
 0x2fb   : > { %19969 = vmatprep.mubr.msk.f32.mxu1 %vm439_vm0, %v29802_v42 }
 0x2fe   : > { %19970 = vmatmul.mubr.msk.f32.gmra.mrb[28].mxu1 %vm439_vm0, %v29803_v26 }
 0x2ff   : > { %19972 = vmatprep.mubr.msk.f32.mxu1 %vm439_vm0, %v29804_v53 }
 0x302   : > { %19973 = vmatmul.mubr.msk.f32.gmra.mrb[30].mxu1 %vm439_vm0, %v29805_v48 }
 0x303   : > { %19975 = vmatprep.mubr.msk.f32.mxu1 %vm439_vm0, %v29806_v40 }
 0x306   : > { %19976 = vmatmul.mubr.msk.f32.gmra.mrb[32].mxu1 %vm439_vm0, %v29807_v50 }
 0x307   : > { %19978 = vmatprep.mubr.msk.f32.mxu1 %vm439_vm0, %v29808_v60 }
 0x30a   : > { %19979 = vmatmul.mubr.msk.f32.gmra.mrb[34].mxu1 %vm439_vm0, %v29809_v2  ;;  %v3939_v2 = vld [vmem:[%s29374_s3 + $0xf8] sm:$0xff] }
 0x30b   : > { %19981 = vmatprep.mubr.msk.f32.mxu1 %vm439_vm0, %v29810_v28  ;;  %v4326_v28 = vld [vmem:[%s29374_s3 + $0x108] sm:$0xff] }
 0x30e   : > { %19982 = vmatmul.mubr.msk.f32.gmra.mrb[36].mxu1 %vm439_vm0, %v29811_v61  ;;  %v21735_v61 = vpack.c.bf16 %v3939_v2, %v3938_v14  ;;  %v3927_v2 = vld [vmem:[#allocation2 + $0x141] sm:$0xff]  ;;  %v3934_v14 = vld [vmem:[#allocation2 + $0x199] sm:$0xff] }
 0x30f   : > { %19984 = vmatprep.mubr.msk.f32.mxu1 %vm439_vm0, %v25313_v16  ;;  %v4325_v16 = vld [vmem:[%s29374_s3 + $0x100] sm:$0xff] }
 0x312   : > { %19985 = vmatmul.mubr.msk.f32.gmra.mrb[38].mxu1 %vm439_vm0, %v25317_v12  ;;  %v21739_v12 = vpack.c.bf16 %v4326_v28, %v4325_v16  ;;  %v3928_v28 = vld [vmem:[#allocation2 + $0x151] sm:$0xff]  ;;  %v3930_v16 = vld [vmem:[#allocation2 + $0x169] sm:$0xff] }
 0x313   : > { %19995 = vmatprep.mubr.msk.f32.mxu1 %vm439_vm0, %v24827_v52  ;;  %v3916_v52 = vld [vmem:[#allocation2 + $0xc1] sm:$0xff] }
 0x316   : > { %19996 = vmatmul.mubr.msk.f32.vlgmr.msra.gmra.mrb[8].mxu1 %vm439_vm0, %v24832_v9  ;;  %v3917_v9 = vld [vmem:[#allocation2 + $0xc9] sm:$0xff] }
 0x317   : > { %19998 = vmatprep.mubr.msk.f32.mxu1 %vm439_vm0, %v24836_v37  ;;  %21734 = vmatpush3.bf16.msra.mxu1 %v21731_v56  ;;  %v3918_v37 = vld [vmem:[#allocation2 + $0xd9] sm:$0xff] }
 0x318   : > { %21736 = vmatprep.subr.bf16.mxu1 %v21735_v61  ;;  %v3926_v56 = vld [vmem:[#allocation2 + $0x139] sm:$0xff] }
 0x31a   : > { %19999 = vmatmul.mubr.msk.f32.gmra.mrb[10].mxu1 %vm439_vm0, %v24840_v47  ;;  %v3919_v47 = vld [vmem:[#allocation2 + $0xe1] sm:$0xff] }
 0x31b   : > { %20001 = vmatprep.mubr.msk.f32.mxu1 %vm439_vm0, %v24844_v17  ;;  %21738 = vmatpush3.bf16.msra.mxu1 %v21735_v61  ;;  %v3920_v17 = vld [vmem:[#allocation2 + $0xf1] sm:$0xff]  ;;  %v3929_v61 = vld [vmem:[#allocation2 + $0x159] sm:$0xff] }
 0x31c   : > { %21740 = vmatprep.subr.bf16.mxu1 %v21739_v12 }
 0x31e   : > { %20002 = vmatmul.mubr.msk.f32.gmra.mrb[12].mxu1 %vm439_vm0, %v24848_v38  ;;  %v3921_v38 = vld [vmem:[#allocation2 + $0xf9] sm:$0xff] }
 0x31f   : > { %20004 = vmatprep.mubr.msk.f32.mxu1 %vm439_vm0, %v24852_v43 }
 0x322   : > { %20005 = vmatmul.mubr.msk.f32.gmra.mrb[14].mxu1 %vm439_vm0, %v24856_v11  ;;  %v3915_v11 = vld [vmem:[#allocation2 + $0xb1] sm:$0xff] }
 0x323   : > { %20007 = vmatprep.mubr.msk.f32.mxu1 %vm439_vm0, %v24860_v13  ;;  %v3914_v13 = vld [vmem:[#allocation2 + $0xa9] sm:$0xff] }
 0x326   : > { %20008 = vmatmul.mubr.msk.f32.gmra.mrb[16].mxu1 %vm439_vm0, %v24865_v5  ;;  %v3913_v5 = vld [vmem:[#allocation2 + $0x99] sm:$0xff] }
 0x327   : > { %20010 = vmatprep.mubr.msk.f32.mxu1 %vm439_vm0, %v24870_v8  ;;  %v3912_v8 = vld [vmem:[#allocation2 + $0x91] sm:$0xff] }
 0x32a   : > { %20011 = vmatmul.mubr.msk.f32.gmra.mrb[18].mxu1 %vm439_vm0, %v24874_v4  ;;  %v5046_v4 = vld [vmem:[%s29376_s5 + $0x28] sm:$0xff] }
 0x32b   : > { %20013 = vmatprep.mubr.msk.f32.mxu1 %vm439_vm0, %v24878_v21 }
 0x32e   : > { %20014 = vmatmul.mubr.msk.f32.gmra.mrb[20].mxu1 %vm439_vm0, %v24882_v44  ;;  %v3922_v44 = vld [vmem:[#allocation2 + $0x109] sm:$0xff] }
 0x32f   : > { %20016 = vmatprep.mubr.msk.f32.mxu1 %vm439_vm0, %v24886_v33  ;;  %v3923_v33 = vld [vmem:[#allocation2 + $0x111] sm:$0xff] }
 0x332   : > { %20017 = vmatmul.mubr.msk.f32.gmra.mrb[22].mxu1 %vm439_vm0, %v24890_v59  ;;  %v3910_v59 = vld [vmem:[#allocation2 + $0x79] sm:$0xff] }
 0x333   : > { %20019 = vmatprep.mubr.msk.f32.mxu1 %vm439_vm0, %v24894_v1  ;;  %v3911_v1 = vld [vmem:[#allocation2 + $0x81] sm:$0xff] }
 0x336   : > { %20020 = vmatmul.mubr.msk.f32.gmra.mrb[24].mxu1 %vm439_vm0, %v24898_v57  ;;  %v3904_v57 = vld [vmem:[#allocation2 + $0x31] sm:$0xff] }
 0x337   : > { %20022 = vmatprep.mubr.msk.f32.mxu1 %vm439_vm0, %v24902_v7  ;;  %v5045_v7 = vld [vmem:[%s29376_s5 + $0x20] sm:$0xff] }
 0x338   : > { %v21747_v21 = vpack.c.bf16 %v5046_v4, %v5045_v7 }
 0x33a   : > { %20023 = vmatmul.mubr.msk.f32.gmra.mrb[26].mxu1 %vm439_vm0, %v24906_v41  ;;  %21748 = vmatprep.subr.bf16.mxu0 %v21747_v21  ;;  %v3909_v41 = vld [vmem:[#allocation2 + $0x69] sm:$0xff] }
 0x33b   : > { %20025 = vmatprep.mubr.msk.f32.mxu1 %vm439_vm0, %v24910_v58  ;;  %21750 = vmatpush3.bf16.msra.mxu0 %v21747_v21  ;;  %v3908_v58 = vld [vmem:[#allocation2 + $0x61] sm:$0xff] }
 0x33e   : > { %20026 = vmatmul.mubr.msk.f32.gmra.mrb[28].mxu1 %vm439_vm0, %v24914_v31  ;;  %v3545_v31 = vld [vmem:[#allocation2 + $0x198] sm:$0xff] }
 0x33f   : > { %20028 = vmatprep.mubr.msk.f32.mxu1 %vm439_vm0, %v24918_v45  ;;  %v3546_v45 = vld [vmem:[#allocation2 + $0x1a0] sm:$0xff] }
 0x342   : > { %20029 = vmatmul.mubr.msk.f32.gmra.mrb[30].mxu1 %vm439_vm0, %v24922_v49  ;;  %v3907_v49 = vld [vmem:[#allocation2 + $0x51] sm:$0xff] }
 0x343   : > { %20031 = vmatprep.mubr.msk.f32.mxu1 %vm439_vm0, %v24926_v39  ;;  %v3906_v39 = vld [vmem:[#allocation2 + $0x49] sm:$0xff] }
 0x346   : > { %20032 = vmatmul.mubr.msk.f32.gmra.mrb[32].mxu1 %vm439_vm0, %v24930_v19  ;;  %v4327_v19 = vld [vmem:[%s29374_s3 + $0x110] sm:$0xff] }
 0x347   : > { %20034 = vmatprep.mubr.msk.f32.mxu1 %vm439_vm0, %v24934_v30  ;;  %v4328_v30 = vld [vmem:[%s29374_s3 + $0x118] sm:$0xff] }
 0x348   : > { %v21743_v43 = vpack.c.bf16 %v4328_v30, %v4327_v19 }
 0x34a   : > { %20035 = vmatmul.mubr.msk.f32.gmra.mrb[34].mxu1 %vm439_vm0, %v24938_v23  ;;  %v3905_v23 = vld [vmem:[#allocation2 + $0x39] sm:$0xff] }
 0x34b   : > { %20037 = vmatprep.mubr.msk.f32.mxu1 %vm439_vm0, %v25153_v46  ;;  %v3924_v46 = vld [vmem:[#allocation2 + $0x121] sm:$0xff] }
 0x34e   : > { %20038 = vmatmul.mubr.msk.f32.gmra.mrb[36].mxu1 %vm439_vm0, %v25157_v25  ;;  %v3925_v25 = vld [vmem:[#allocation2 + $0x129] sm:$0xff] }
 0x34f   : > { %20040 = vmatprep.mubr.msk.f32.mxu1 %vm439_vm0, %v3545_v31  ;;  %v3935_v31 = vld [vmem:[#allocation2 + $0x1a1] sm:$0xff] }
 0x352   : > { %20041 = vmatmul.mubr.msk.f32.gmra.mrb[38].mxu1 %vm439_vm0, %v3546_v45 }
 0x353   : > { %20051 = vmatprep.mubr.msk.f32.mxu1 %vm439_vm0, %v3904_v57 }
 0x356   : > { %20052 = vmatmul.mubr.msk.f32.vlgmr.msra.gmra.mrb[8].mxu1 %vm439_vm0, %v3905_v23 }
 0x357   : > { %20054 = vmatprep.mubr.msk.f32.mxu1 %vm439_vm0, %v3906_v39  ;;  %21742 = vmatpush3.bf16.msra.mxu1 %v21739_v12  ;;  %v3931_v12 = vld [vmem:[#allocation2 + $0x171] sm:$0xff] }
 0x358   : > { %21744 = vmatprep.subr.bf16.mxu1 %v21743_v43 }
 0x35a   : > { %20055 = vmatmul.mubr.msk.f32.gmra.mrb[10].mxu1 %vm439_vm0, %v3907_v49 }
 0x35b   : > { %20057 = vmatprep.mubr.msk.f32.mxu1 %vm439_vm0, %v3908_v58  ;;  %21746 = vmatpush3.bf16.msra.mxu1 %v21743_v43 }
 0x35e   : > { %20058 = vmatmul.mubr.msk.f32.gmra.mrb[12].mxu1 %vm439_vm0, %v3909_v41 }
 0x35f   : > { %20060 = vmatprep.mubr.msk.f32.mxu1 %vm439_vm0, %v3910_v59 }
 0x362   : > { %20061 = vmatmul.mubr.msk.f32.gmra.mrb[14].mxu1 %vm439_vm0, %v3911_v1 }
 0x363   : > { %20063 = vmatprep.mubr.msk.f32.mxu1 %vm439_vm0, %v3912_v8 }
 0x366   : > { %20064 = vmatmul.mubr.msk.f32.gmra.mrb[16].mxu1 %vm439_vm0, %v3913_v5 }
 0x367   : > { %20066 = vmatprep.mubr.msk.f32.mxu1 %vm439_vm0, %v3914_v13 }
 0x36a   : > { %20067 = vmatmul.mubr.msk.f32.gmra.mrb[18].mxu1 %vm439_vm0, %v3915_v11 }
 0x36b   : > { %20069 = vmatprep.mubr.msk.f32.mxu1 %vm439_vm0, %v3916_v52 }
 0x36e   : > { %20070 = vmatmul.mubr.msk.f32.gmra.mrb[20].mxu1 %vm439_vm0, %v3917_v9 }
 0x36f   : > { %20072 = vmatprep.mubr.msk.f32.mxu1 %vm439_vm0, %v3918_v37 }
 0x372   : > { %20073 = vmatmul.mubr.msk.f32.gmra.mrb[22].mxu1 %vm439_vm0, %v3919_v47 }
 0x373   : > { %20075 = vmatprep.mubr.msk.f32.mxu1 %vm439_vm0, %v3920_v17 }
 0x376   : > { %20076 = vmatmul.mubr.msk.f32.gmra.mrb[24].mxu1 %vm439_vm0, %v3921_v38 }
 0x377   : > { %20078 = vmatprep.mubr.msk.f32.mxu1 %vm439_vm0, %v3922_v44 }
 0x37a   : > { %20079 = vmatmul.mubr.msk.f32.gmra.mrb[26].mxu1 %vm439_vm0, %v3923_v33 }
 0x37b   : > { %20081 = vmatprep.mubr.msk.f32.mxu1 %vm439_vm0, %v3924_v46 }
 0x37e   : > { %20082 = vmatmul.mubr.msk.f32.gmra.mrb[28].mxu1 %vm439_vm0, %v3925_v25 }
 0x37f   : > { %20084 = vmatprep.mubr.msk.f32.mxu1 %vm439_vm0, %v3926_v56 }
 0x382   : > { %20085 = vmatmul.mubr.msk.f32.gmra.mrb[30].mxu1 %vm439_vm0, %v3927_v2 }
 0x383   : > { %20087 = vmatprep.mubr.msk.f32.mxu1 %vm439_vm0, %v3928_v28 }
 0x386   : > { %20088 = vmatmul.mubr.msk.f32.gmra.mrb[32].mxu1 %vm439_vm0, %v3929_v61 }
 0x387   : > { %20090 = vmatprep.mubr.msk.f32.mxu1 %vm439_vm0, %v3930_v16 }
 0x38a   : > { %20091 = vmatmul.mubr.msk.f32.gmra.mrb[34].mxu1 %vm439_vm0, %v3931_v12 }
 0x38b   : > { %20093 = vmatprep.mubr.msk.f32.mxu1 %vm439_vm0, %v25233_v10  ;;  %v29814_v10 = vld [vmem:[#allocation69_spill] sm:$0xff] }
 0x38e   : > { %20094 = vmatmul.mubr.msk.f32.gmra.mrb[36].mxu1 %vm439_vm0, %v25237_v22  ;;  %v29815_v22 = vld [vmem:[#allocation70_spill] sm:$0xff] }
 0x38f   : > { %20096 = vmatprep.mubr.msk.f32.mxu1 %vm439_vm0, %v3934_v14 }
 0x392   : > { %20097 = vmatmul.mubr.msk.f32.gmra.mrb[38].mxu1 %vm439_vm0, %v3935_v31 }
 0x393   : > { %20107 = vmatprep.mubr.msk.f32.mxu1 %vm439_vm0, %v29784_v55  ;;  %v29816_v55 = vld [vmem:[#allocation71_spill] sm:$0xff] }
 0x396   : > { %20108 = vmatmul.mubr.msk.f32.vlgmr.msra.gmra.mrb[8].mxu1 %vm439_vm0, %v29785_v63  ;;  %v29817_v63 = vld [vmem:[#allocation39_spill] sm:$0xff] }
 0x397   : > { %20110 = vmatprep.mubr.msk.f32.mxu1 %vm439_vm0, %v29786_v27  ;;  %v4323_v27 = vld [vmem:[#allocation2 + $0x19a] sm:$0xff] }
 0x39a   : > { %20111 = vmatmul.mubr.msk.f32.gmra.mrb[10].mxu1 %vm439_vm0, %v29787_v51  ;;  %v29818_v51 = vld [vmem:[#allocation41_spill] sm:$0xff] }
 0x39b   : > { %20113 = vmatprep.mubr.msk.f32.mxu1 %vm439_vm0, %v29788_v15  ;;  %v4324_v15 = vld [vmem:[#allocation2 + $0x1a2] sm:$0xff] }
 0x39e   : > { %20114 = vmatmul.mubr.msk.f32.gmra.mrb[12].mxu1 %vm439_vm0, %v29789_v32  ;;  %v5047_v32 = vld [vmem:[%s29376_s5 + $0x30] sm:$0xff] }
 0x39f   : > { %20116 = vmatprep.mubr.msk.f32.mxu1 %vm439_vm0, %v29790_v29  ;;  %v5048_v29 = vld [vmem:[%s29376_s5 + $0x38] sm:$0xff] }
 0x3a2   : > { %20117 = vmatmul.mubr.msk.f32.gmra.mrb[14].mxu1 %vm439_vm0, %v29791_v24  ;;  %v21751_v24 = vpack.c.bf16 %v5048_v29, %v5047_v32 }
 0x3a3   : > { %20119 = vmatprep.mubr.msk.f32.mxu1 %vm439_vm0, %v29792_v34  ;;  %v5013_v34 = vld [vmem:[#allocation2 + $0x1] sm:$0xff] }
 0x3a4   : > { %21752 = vmatprep.subr.bf16.mxu0 %v21751_v24  ;;  %20163 = vmatprep.mubr.msk.f32.mxu0 %vm439_vm0, %v5013_v34 }
 0x3a5   : > { %21754 = vmatpush3.bf16.msra.mxu0 %v21751_v24 }
 0x3a6   : > { %20120 = vmatmul.mubr.msk.f32.gmra.mrb[16].mxu1 %vm439_vm0, %v29793_v62  ;;  %v5014_v62 = vld [vmem:[#allocation2 + $0x9] sm:$0xff] }
 0x3a7   : > { %20122 = vmatprep.mubr.msk.f32.mxu1 %vm439_vm0, %v29794_v35  ;;  %v5009_v35 = vld [vmem:[%s29376_s5] sm:$0xff] }
 0x3a8   : > { %20164 = vmatmul.mubr.msk.f32.vlgmr.msra.gmra.mrb[24].mxu0 %vm439_vm0, %v5014_v62 }
 0x3aa   : > { %20123 = vmatmul.mubr.msk.f32.gmra.mrb[18].mxu1 %vm439_vm0, %v29795_v6  ;;  %v5010_v6 = vld [vmem:[%s29376_s5 + $0x8] sm:$0xff] }
 0x3ab   : > { %20125 = vmatprep.mubr.msk.f32.mxu1 %vm439_vm0, %v29796_v20  ;;  %v21755_v20 = vpack.c.bf16 %v5010_v6, %v5009_v35 }
 0x3ad   : > { %21756 = vmatprep.subr.bf16.mxu0 %v21755_v20 }
 0x3ae   : > { %20126 = vmatmul.mubr.msk.f32.gmra.mrb[20].mxu1 %vm439_vm0, %v29797_v3  ;;  %21758 = vmatpush3.bf16.msra.mxu0 %v21755_v20  ;;  %v5011_v3 = vld [vmem:[%s29376_s5 + $0x10] sm:$0xff] }
 0x3af   : > { %20128 = vmatprep.mubr.msk.f32.mxu1 %vm439_vm0, %v29798_v54  ;;  %v5012_v54 = vld [vmem:[%s29376_s5 + $0x18] sm:$0xff] }
 0x3b2   : > { %20129 = vmatmul.mubr.msk.f32.gmra.mrb[22].mxu1 %vm439_vm0, %v29799_v36  ;;  %v21759_v36 = vpack.c.bf16 %v5012_v54, %v5011_v3 }
 0x3b3   : > { %20131 = vmatprep.mubr.msk.f32.mxu1 %vm439_vm0, %v29800_v18  ;;  %v5723_v18 = vld [vmem:[%s29376_s5 + $0x40] sm:$0xff] }
 0x3b4   : > { %21760 = vmatprep.subr.bf16.mxu0 %v21759_v36 }
 0x3b5   : > { %21762 = vmatpush3.bf16.msra.mxu0 %v21759_v36 }
 0x3b6   : > { %20132 = vmatmul.mubr.msk.f32.gmra.mrb[24].mxu1 %vm439_vm0, %v29801_v0  ;;  %v5724_v0 = vld [vmem:[%s29376_s5 + $0x48] sm:$0xff] }
 0x3b7   : > { %20134 = vmatprep.mubr.msk.f32.mxu1 %vm439_vm0, %v29802_v42  ;;  %v25529_v42 = vpack.c.bf16 %v5724_v0, %v5723_v18 }
 0x3b9   : > { %21764 = vmatprep.subr.bf16.mxu0 %v25529_v42 }
 0x3ba   : > { %20135 = vmatmul.mubr.msk.f32.gmra.mrb[26].mxu1 %vm439_vm0, %v29803_v26  ;;  %v25535_v26 = vld [vmem:[%s29375_s4] ss:$0 sm:$0xff] }
 0x3bb   : > { %20137 = vmatprep.mubr.msk.f32.mxu1 %vm439_vm0, %v29804_v53 }
 0x3be   : > { %20138 = vmatmul.mubr.msk.f32.gmra.mrb[28].mxu1 %vm439_vm0, %v29805_v48 }
 0x3bf   : > { %20140 = vmatprep.mubr.msk.f32.mxu1 %vm439_vm0, %v29806_v40 }
 0x3c2   : > { %20141 = vmatmul.mubr.msk.f32.gmra.mrb[30].mxu1 %vm439_vm0, %v29807_v50 }
 0x3c3   : > { %20143 = vmatprep.mubr.msk.f32.mxu1 %vm439_vm0, %v29808_v60 }
 0x3c6   : > { %20144 = vmatmul.mubr.msk.f32.gmra.mrb[32].mxu1 %vm439_vm0, %v29814_v10 }
 0x3c7   : > { %20146 = vmatprep.mubr.msk.f32.mxu1 %vm439_vm0, %v29815_v22 }
 0x3ca   : > { %20147 = vmatmul.mubr.msk.f32.gmra.mrb[34].mxu1 %vm439_vm0, %v29816_v55 }
 0x3cb   : > { %20149 = vmatprep.mubr.msk.f32.mxu1 %vm439_vm0, %v29817_v63 }
 0x3ce   : > { %20150 = vmatmul.mubr.msk.f32.gmra.mrb[36].mxu1 %vm439_vm0, %v29818_v51 }
 0x3cf   : > { %20152 = vmatprep.mubr.msk.f32.mxu1 %vm439_vm0, %v4323_v27 }
 0x3d2   : > { %20153 = vmatmul.mubr.msk.f32.gmra.mrb[38].mxu1 %vm439_vm0, %v4324_v15 }
 0x469   : > { %v20109_v53 = vpop.f32.mrb[8].mxu1 }
 0x46a   : > { %v25538_v48 = vadd.f32 %v20109_v53, %v25535_v26  ;;  %v4491_v40 = vpop.f32.mrb[9].mxu1 }
 0x46b   : > { %v25541_v50 = vadd.f32 %v25535_v26, %v4491_v40 }
 0x46c   : > { %v17198_v60 = vmul.f32 -1.442695, %v25538_v48 }
 0x46d   : > { %v17197_v45 = vmul.f32 -1.442695, %v25541_v50  ;;  %v20112_v19 = vpop.f32.mrb[10].mxu1 }
 0x46e   : > { %23358 = vpow2.f32 %v17198_v60  ;;  %v25546_v30 = vadd.f32 %v20112_v19, %v25535_v26  ;;  %v4501_v57 = vpop.f32.mrb[11].mxu1 }
 0x46f   : > { %23360 = vpow2.f32 %v17197_v45  ;;  %v25549_v7 = vadd.f32 %v25535_v26, %v4501_v57 }
 0x470   : > { %v17200_v4 = vmul.f32 -1.442695, %v25546_v30 }
 0x471   : > { %v17199_v21 = vmul.f32 -1.442695, %v25549_v7  ;;  %v20115_v43 = vpop.f32.mrb[12].mxu1 }
 0x472   : > { %23362 = vpow2.f32 %v17200_v4  ;;  %v25554_v23 = vadd.f32 %v20115_v43, %v25535_v26  ;;  %v4511_v39 = vpop.f32.mrb[13].mxu1 }
 0x473   : > { %23364 = vpow2.f32 %v17199_v21  ;;  %v25557_v49 = vadd.f32 %v25535_v26, %v4511_v39 }
 0x474   : > { %v17202_v58 = vmul.f32 -1.442695, %v25554_v23 }
 0x475   : > { %v17201_v41 = vmul.f32 -1.442695, %v25557_v49  ;;  %v20118_v59 = vpop.f32.mrb[14].mxu1 }
 0x476   : > { %23366 = vpow2.f32 %v17202_v58  ;;  %v25562_v1 = vadd.f32 %v20118_v59, %v25535_v26  ;;  %v4521_v8 = vpop.f32.mrb[15].mxu1 }
 0x477   : > { %23368 = vpow2.f32 %v17201_v41  ;;  %v25565_v5 = vadd.f32 %v25535_v26, %v4521_v8 }
 0x478   : > { %v23359_v13 = vpop.eup %23358  ;;  %v17204_v11 = vmul.f32 -1.442695, %v25562_v1 }
 0x479   : > { %v23361_v52 = vpop.eup %23360  ;;  %v4818_v9 = vadd.f32 1.0, %v23359_v13  ;;  %v17203_v37 = vmul.f32 -1.442695, %v25565_v5  ;;  %v20121_v47 = vpop.f32.mrb[16].mxu1 }
 0x47a   : > { %v4817_v17 = vadd.f32 1.0, %v23361_v52  ;;  %23370 = vpow2.f32 %v17204_v11  ;;  %v25570_v38 = vadd.f32 %v20121_v47, %v25535_v26  ;;  %v4531_v44 = vpop.f32.mrb[17].mxu1 }
 0x47b   : > { %23372 = vrcp.f32 %v4818_v9  ;;  %v25573_v33 = vadd.f32 %v25535_v26, %v4531_v44 }
 0x47c   : > { %v23363_v46 = vpop.eup %23362  ;;  %23374 = vrcp.f32 %v4817_v17  ;;  %v17206_v25 = vmul.f32 -1.442695, %v25570_v38 }
 0x47d   : > { %v23365_v56 = vpop.eup %23364  ;;  %v4820_v2 = vadd.f32 1.0, %v23363_v46  ;;  %23376 = vpow2.f32 %v17203_v37  ;;  %v17205_v28 = vmul.f32 -1.442695, %v25573_v33  ;;  %v20124_v61 = vpop.f32.mrb[18].mxu1 }
 0x47e   : > { %v4819_v16 = vadd.f32 1.0, %v23365_v56  ;;  %23378 = vpow2.f32 %v17206_v25  ;;  %v25578_v12 = vadd.f32 %v20124_v61, %v25535_v26  ;;  %v4541_v14 = vpop.f32.mrb[19].mxu1 }
 0x47f   : > { %23380 = vrcp.f32 %v4820_v2  ;;  %v25581_v31 = vadd.f32 %v25535_v26, %v4541_v14 }
 0x480   : > { %v23367_v10 = vpop.eup %23366  ;;  %23382 = vrcp.f32 %v4819_v16  ;;  %v17208_v22 = vmul.f32 -1.442695, %v25578_v12 }
 0x481   : > { %v23369_v55 = vpop.eup %23368  ;;  %v4822_v63 = vadd.f32 1.0, %v23367_v10  ;;  %23384 = vpow2.f32 %v17205_v28  ;;  %v17207_v27 = vmul.f32 -1.442695, %v25581_v31  ;;  %v20127_v51 = vpop.f32.mrb[20].mxu1 }
 0x482   : > { %v4821_v15 = vadd.f32 1.0, %v23369_v55  ;;  %23386 = vpow2.f32 %v17208_v22  ;;  %v25586_v32 = vadd.f32 %v20127_v51, %v25535_v26  ;;  %v4551_v29 = vpop.f32.mrb[21].mxu1 }
 0x483   : > { %23388 = vrcp.f32 %v4822_v63  ;;  %v25589_v24 = vadd.f32 %v25535_v26, %v4551_v29 }
 0x484   : > { %v23371_v34 = vpop.eup %23370  ;;  %23390 = vrcp.f32 %v4821_v15  ;;  %v17210_v62 = vmul.f32 -1.442695, %v25586_v32 }
 0x485   : > { %v23373_v35 = vpop.eup %23372  ;;  %v4824_v6 = vadd.f32 1.0, %v23371_v34  ;;  %23392 = vpow2.f32 %v17207_v27  ;;  %v17209_v20 = vmul.f32 -1.442695, %v25589_v24  ;;  %v20130_v3 = vpop.f32.mrb[22].mxu1 }
 0x486   : > { %v23375_v54 = vpop.eup %23374  ;;  %v4914_v36 = vmul.f32 %v23373_v35, %v25538_v48  ;;  %23394 = vpow2.f32 %v17210_v62  ;;  %v25595_v18 = vadd.f32 %v20130_v3, %v25535_v26  ;;  %v4561_v0 = vpop.f32.mrb[23].mxu1 }
 0x487   : > { %v23377_v53 = vpop.eup %23376  ;;  %v4913_v40 = vmul.f32 %v23375_v54, %v25541_v50  ;;  %23396 = vrcp.f32 %v4824_v6  ;;  %v25599_v60 = vadd.f32 %v25535_v26, %v4561_v0 }
 0x488   : > { %v23379_v45 = vpop.eup %23378  ;;  %4946 = vst.msk [vmem:[#allocation2 + $0x21] sm:$0xff] %vm439_vm0, %v4914_v36  ;;  %v4823_v19 = vadd.f32 1.0, %v23377_v53  ;;  %23398 = vpow2.f32 %v17209_v20  ;;  %v17212_v57 = vmul.f32 -1.442695, %v25595_v18 }
 0x489   : > { %v23381_v48 = vpop.eup %23380  ;;  %4945 = vst.msk [vmem:[#allocation2 + $0x19] sm:$0xff] %vm439_vm0, %v4913_v40  ;;  %v4826_v4 = vadd.f32 1.0, %v23379_v45  ;;  %v17211_v21 = vmul.f32 -1.442695, %v25599_v60  ;;  %v20133_v43 = vpop.f32.mrb[24].mxu1 }
 0x48a   : > { %v23383_v39 = vpop.eup %23382  ;;  %v4916_v50 = vmul.f32 %v23381_v48, %v25546_v30  ;;  %23400 = vrcp.f32 %v4823_v19  ;;  %v25607_v58 = vadd.f32 %v20133_v43, %v25535_v26  ;;  %v4571_v41 = vpop.f32.mrb[25].mxu1 }
 0x48b   : > { %v23385_v59 = vpop.eup %23384  ;;  %v4915_v8 = vmul.f32 %v23383_v39, %v25549_v7  ;;  %23402 = vrcp.f32 %v4826_v4  ;;  %v25611_v13 = vadd.f32 %v25535_v26, %v4571_v41 }
 0x48c   : > { %v23387_v11 = vpop.eup %23386  ;;  %4948 = vst.msk [vmem:[#allocation2 + $0x39] sm:$0xff] %vm439_vm0, %v4916_v50  ;;  %v4825_v52 = vadd.f32 1.0, %v23385_v59  ;;  %23404 = vpow2.f32 %v17212_v57  ;;  %v17214_v9 = vmul.f32 -1.442695, %v25607_v58 }
 0x48d   : > { %v23389_v30 = vpop.eup %23388  ;;  %4947 = vst.msk [vmem:[#allocation2 + $0x31] sm:$0xff] %vm439_vm0, %v4915_v8  ;;  %v4828_v37 = vadd.f32 1.0, %v23387_v11  ;;  %23406 = vpow2.f32 %v17211_v21  ;;  %v17213_v47 = vmul.f32 -1.442695, %v25611_v13  ;;  %v20136_v17 = vpop.f32.mrb[26].mxu1 }
 0x48e   : > { %v23391_v7 = vpop.eup %23390  ;;  %v4918_v44 = vmul.f32 %v23389_v30, %v25554_v23  ;;  %23408 = vrcp.f32 %v4825_v52  ;;  %v25619_v46 = vadd.f32 %v20136_v17, %v25535_v26  ;;  %v4581_v25 = vpop.f32.mrb[27].mxu1 }
 0x48f   : > { %v23393_v56 = vpop.eup %23392  ;;  %v4917_v2 = vmul.f32 %v23391_v7, %v25557_v49  ;;  %23410 = vrcp.f32 %v4828_v37  ;;  %v25623_v28 = vadd.f32 %v25535_v26, %v4581_v25  ;;  %v25632_v49 = vld [vmem:[#allocation2 + $0x21] sm:$0xff] }
 0x490   : > { %v23395_v61 = vpop.eup %23394  ;;  %4950 = vst.msk [vmem:[#allocation2 + $0x51] sm:$0xff] %vm439_vm0, %v4918_v44  ;;  %v4827_v16 = vadd.f32 1.0, %v23393_v56  ;;  %23412 = vpow2.f32 %v17214_v9  ;;  %v17216_v14 = vmul.f32 -1.442695, %v25619_v46  ;;  %v25627_v23 = vld [vmem:[#allocation2 + $0x19] sm:$0xff] }
 0x491   : > { %v23397_v10 = vpop.eup %23396  ;;  %4949 = vst.msk [vmem:[#allocation2 + $0x49] sm:$0xff] %vm439_vm0, %v4917_v2  ;;  %v4830_v22 = vadd.f32 1.0, %v23395_v61  ;;  %23414 = vpow2.f32 %v17213_v47  ;;  %v20139_v55 = vpop.f32.mrb[28].mxu1  ;;  %20166 = vmatprep.mubr.msk.f32.mxu0 %vm439_vm0, %v25627_v23  ;;  %v17215_v51 = vmul.f32 -1.442695, %v25623_v28 }
 0x492   : > { %v23399_v63 = vpop.eup %23398  ;;  %v4920_v27 = vmul.f32 %v23397_v10, %v25562_v1  ;;  %23416 = vrcp.f32 %v4827_v16  ;;  %v25637_v15 = vadd.f32 %v20139_v55, %v25535_v26  ;;  %v4591_v29 = vpop.f32.mrb[29].mxu1  ;;  %20167 = vmatmul.mubr.msk.f32.gmra.mrb[26].mxu0 %vm439_vm0, %v25632_v49 }
 0x493   : > { %23418 = vrcp.f32 %v4830_v22  ;;  %v4829_v34 = vadd.f32 1.0, %v23399_v63  ;;  %v25642_v62 = vadd.f32 %v25535_v26, %v4591_v29  ;;  %v25652_v0 = vld [vmem:[#allocation2 + $0x39] sm:$0xff] }
 0x494   : > { %v23401_v35 = vpop.eup %23400  ;;  %4952 = vst.msk [vmem:[#allocation2 + $0x69] sm:$0xff] %vm439_vm0, %v4920_v27  ;;  %23420 = vpow2.f32 %v17216_v14  ;;  %v17218_v1 = vmul.f32 -1.442695, %v25637_v15  ;;  %v25646_v6 = vld [vmem:[#allocation2 + $0x31] sm:$0xff] }
 0x495   : > { %v23403_v20 = vpop.eup %23402  ;;  %v4919_v3 = vmul.f32 %v23401_v35, %v25565_v5  ;;  %23422 = vrcp.f32 %v4829_v34  ;;  %v17217_v54 = vmul.f32 -1.442695, %v25642_v62  ;;  %v20142_v36 = vpop.f32.mrb[30].mxu1  ;;  %20169 = vmatprep.mubr.msk.f32.mxu0 %vm439_vm0, %v25646_v6 }
 0x496   : > { %v23405_v53 = vpop.eup %23404  ;;  %v4922_v40 = vmul.f32 %v23403_v20, %v25570_v38  ;;  %23424 = vpow2.f32 %v17215_v51  ;;  %v25656_v45 = vadd.f32 %v20142_v36, %v25535_v26  ;;  %v4601_v19 = vpop.f32.mrb[31].mxu1  ;;  %20170 = vmatmul.mubr.msk.f32.gmra.mrb[28].mxu0 %vm439_vm0, %v25652_v0 }
 0x497   : > { %v23407_v5 = vpop.eup %23406  ;;  %4951 = vst.msk [vmem:[#allocation2 + $0x61] sm:$0xff] %vm439_vm0, %v4919_v3  ;;  %v4832_v57 = vadd.f32 1.0, %v23405_v53  ;;  %23426 = vpow2.f32 %v17218_v1  ;;  %v25662_v48 = vadd.f32 %v25535_v26, %v4601_v19  ;;  %v25672_v8 = vld [vmem:[#allocation2 + $0x51] sm:$0xff] }
 0x498   : > { %v23409_v4 = vpop.eup %23408  ;;  %4954 = vst.msk [vmem:[#allocation2 + $0x81] sm:$0xff] %vm439_vm0, %v4922_v40  ;;  %v4831_v38 = vadd.f32 1.0, %v23407_v5  ;;  %23428 = vpow2.f32 %v17217_v54  ;;  %v17220_v21 = vmul.f32 -1.442695, %v25656_v45  ;;  %v25666_v43 = vld [vmem:[#allocation2 + $0x49] sm:$0xff] }
 0x499   : > { %v23411_v39 = vpop.eup %23410  ;;  %v4921_v50 = vmul.f32 %v23409_v4, %v25573_v33  ;;  %23430 = vrcp.f32 %v4832_v57  ;;  %v17219_v41 = vmul.f32 -1.442695, %v25662_v48  ;;  %v20145_v59 = vpop.f32.mrb[32].mxu1  ;;  %20172 = vmatprep.mubr.msk.f32.mxu0 %vm439_vm0, %v25666_v43 }
 0x49a   : > { %v23413_v11 = vpop.eup %23412  ;;  %v4924_v52 = vmul.f32 %v23411_v39, %v25578_v12  ;;  %23432 = vrcp.f32 %v4831_v38  ;;  %v25676_v9 = vadd.f32 %v20145_v59, %v25535_v26  ;;  %v4611_v30 = vpop.f32.mrb[33].mxu1  ;;  %20173 = vmatmul.mubr.msk.f32.gmra.mrb[30].mxu0 %vm439_vm0, %v25672_v8 }
 0x49b   : > { %v23415_v33 = vpop.eup %23414  ;;  %4953 = vst.msk [vmem:[#allocation2 + $0x79] sm:$0xff] %vm439_vm0, %v4921_v50  ;;  %v4834_v37 = vadd.f32 1.0, %v23413_v11  ;;  %23434 = vpow2.f32 %v17220_v21  ;;  %v25682_v47 = vadd.f32 %v25535_v26, %v4611_v30  ;;  %v25700_v27 = vld [vmem:[#allocation2 + $0x69] sm:$0xff] }
 0x49c   : > { %v23417_v17 = vpop.eup %23416  ;;  %4956 = vst.msk [vmem:[#allocation2 + $0x99] sm:$0xff] %vm439_vm0, %v4924_v52  ;;  %v4833_v12 = vadd.f32 1.0, %v23415_v33  ;;  %23436 = vpow2.f32 %v17219_v41  ;;  %v17222_v7 = vmul.f32 -1.442695, %v25676_v9 }
 0x49d   : > { %v23419_v44 = vpop.eup %23418  ;;  %v4923_v25 = vmul.f32 %v23417_v17, %v25581_v31  ;;  %23438 = vrcp.f32 %v4834_v37  ;;  %v17221_v56 = vmul.f32 -1.442695, %v25682_v47  ;;  %v20148_v2 = vpop.f32.mrb[34].mxu1 }
 0x49e   : > { %v23421_v61 = vpop.eup %23420  ;;  %v4926_v16 = vmul.f32 %v23419_v44, %v25586_v32  ;;  %23440 = vrcp.f32 %v4833_v12  ;;  %v25690_v14 = vadd.f32 %v20148_v2, %v25535_v26  ;;  %v25692_v10 = vld [vmem:[#allocation2 + $0x61] sm:$0xff]  ;;  %v4621_v22 = vpop.f32.mrb[35].mxu1 }
 0x49f   : > { %v23423_v55 = vpop.eup %23422  ;;  %4955 = vst.msk [vmem:[#allocation2 + $0x91] sm:$0xff] %vm439_vm0, %v4923_v25  ;;  %v4836_v63 = vadd.f32 1.0, %v23421_v61  ;;  %23442 = vpow2.f32 %v17222_v7  ;;  %20175 = vmatprep.mubr.msk.f32.mxu0 %vm439_vm0, %v25692_v10  ;;  %v25698_v31 = vadd.f32 %v25535_v26, %v4621_v22  ;;  %v25719_v57 = vld [vmem:[#allocation2 + $0x81] sm:$0xff] }
 0x4a0   : > { %v23425_v32 = vpop.eup %23424  ;;  %4958 = vst.msk [vmem:[#allocation2 + $0xb1] sm:$0xff] %vm439_vm0, %v4926_v16  ;;  %v4925_v51 = vmul.f32 %v23423_v55, %v25589_v24  ;;  %23444 = vpow2.f32 %v17221_v56  ;;  %v17224_v29 = vmul.f32 -1.442695, %v25690_v14  ;;  %20176 = vmatmul.mubr.msk.f32.gmra.mrb[32].mxu0 %vm439_vm0, %v25700_v27 }
 0x4a1   : > { %v23427_v34 = vpop.eup %23426  ;;  %23446 = vrcp.f32 %v4836_v63  ;;  %v4835_v35 = vadd.f32 1.0, %v23425_v32  ;;  %v20151_v1 = vpop.f32.mrb[36].mxu1  ;;  %v17223_v54 = vmul.f32 -1.442695, %v25698_v31 }
 0x4a2   : > { %v23429_v20 = vpop.eup %23428  ;;  %4957 = vst.msk [vmem:[#allocation2 + $0xa9] sm:$0xff] %vm439_vm0, %v4925_v51  ;;  %v4838_v3 = vadd.f32 1.0, %v23427_v34  ;;  %23448 = vpow2.f32 %v17224_v29  ;;  %v25710_v36 = vadd.f32 %v20151_v1, %v25535_v26  ;;  %v25712_v24 = vld [vmem:[#allocation2 + $0x79] sm:$0xff]  ;;  %v4631_v53 = vpop.f32.mrb[37].mxu1 }
 0x4a3   : > { %v23431_v40 = vpop.eup %23430  ;;  %23450 = vrcp.f32 %v4835_v35  ;;  %v4837_v19 = vadd.f32 1.0, %v23429_v20  ;;  %20178 = vmatprep.mubr.msk.f32.mxu0 %vm439_vm0, %v25712_v24  ;;  %v25717_v5 = vadd.f32 %v25535_v26, %v4631_v53  ;;  %v25739_v12 = vld [vmem:[#allocation2 + $0x99] sm:$0xff] }
 0x4a4   : > { %v23433_v4 = vpop.eup %23432  ;;  %v4928_v38 = vmul.f32 %v23431_v40, %v25595_v18  ;;  %23452 = vrcp.f32 %v4838_v3  ;;  %v17226_v21 = vmul.f32 -1.442695, %v25710_v36  ;;  %20179 = vmatmul.mubr.msk.f32.gmra.mrb[34].mxu0 %vm439_vm0, %v25719_v57 }
 0x4a5   : > { %v23435_v39 = vpop.eup %23434  ;;  %v4927_v50 = vmul.f32 %v23433_v4, %v25599_v60  ;;  %23454 = vrcp.f32 %v4837_v19  ;;  %v20154_v41 = vpop.f32.mrb[38].mxu1  ;;  %v17225_v52 = vmul.f32 -1.442695, %v25717_v5 }
 0x4a6   : > { %v23437_v59 = vpop.eup %23436  ;;  %4960 = vst.msk [vmem:[#allocation2 + $0xc9] sm:$0xff] %vm439_vm0, %v4928_v38  ;;  %v4840_v11 = vadd.f32 1.0, %v23435_v39  ;;  %23456 = vpow2.f32 %v17223_v54  ;;  %v25729_v18 = vadd.f32 %v20154_v41, %v25535_v26  ;;  %v25731_v30 = vld [vmem:[#allocation2 + $0x91] sm:$0xff]  ;;  %v4641_v33 = vpop.f32.mrb[39].mxu1 }
 0x4a7   : > { %v23439_v37 = vpop.eup %23438  ;;  %4959 = vst.msk [vmem:[#allocation2 + $0xc1] sm:$0xff] %vm439_vm0, %v4927_v50  ;;  %v4839_v17 = vadd.f32 1.0, %v23437_v59  ;;  %23458 = vpow2.f32 %v17226_v21  ;;  %20181 = vmatprep.mubr.msk.f32.mxu0 %vm439_vm0, %v25731_v30  ;;  %v25737_v60 = vadd.f32 %v25535_v26, %v4641_v33  ;;  %v25753_v63 = vld [vmem:[#allocation2 + $0xb1] sm:$0xff] }
 0x4a8   : > { %v23441_v7 = vpop.eup %23440  ;;  %v4930_v44 = vmul.f32 %v23439_v37, %v25607_v58  ;;  %23460 = vrcp.f32 %v4840_v11  ;;  %v17228_v25 = vmul.f32 -1.442695, %v25729_v18  ;;  %20182 = vmatmul.mubr.msk.f32.gmra.mrb[36].mxu0 %vm439_vm0, %v25739_v12 }
 0x4a9   : > { %v23443_v56 = vpop.eup %23442  ;;  %v4929_v2 = vmul.f32 %v23441_v7, %v25611_v13  ;;  %23462 = vrcp.f32 %v4839_v17  ;;  %v25746_v61 = vld [vmem:[#allocation2 + $0xa9] sm:$0xff]  ;;  %v17227_v22 = vmul.f32 -1.442695, %v25737_v60 }
 0x4aa   : > { %v23445_v16 = vpop.eup %23444  ;;  %4962 = vst.msk [vmem:[#allocation2 + $0xe1] sm:$0xff] %vm439_vm0, %v4930_v44  ;;  %v4842_v26 = vadd.f32 1.0, %v23443_v56  ;;  %23464 = vpow2.f32 %v17225_v52  ;;  %20184 = vmatprep.mubr.msk.f32.mxu0 %vm439_vm0, %v25746_v61 }
 0x4ab   : > { %v23447_v58 = vpop.eup %23446  ;;  %4961 = vst.msk [vmem:[#allocation2 + $0xd9] sm:$0xff] %vm439_vm0, %v4929_v2  ;;  %v4841_v55 = vadd.f32 1.0, %v23445_v16  ;;  %23466 = vpow2.f32 %v17228_v25 }
 0x4ac   : > { %v23449_v13 = vpop.eup %23448  ;;  %v4932_v32 = vmul.f32 %v23447_v58, %v25619_v46  ;;  %23468 = vrcp.f32 %v4842_v26  ;;  %20185 = vmatmul.mubr.msk.f32.gmra.mrb[38].mxu0 %vm439_vm0, %v25753_v63 }
 0x4ad   : > { %v23451_v51 = vpop.eup %23450  ;;  %23470 = vrcp.f32 %v4841_v55  ;;  %v4844_v29 = vadd.f32 1.0, %v23449_v13  ;;  %v25765_v46 = vld [vmem:[#allocation2 + $0xc9] sm:$0xff] }
 0x4ae   : > { %v23453_v34 = vpop.eup %23452  ;;  %4964 = vst.msk [vmem:[#allocation2 + $0xf9] sm:$0xff] %vm439_vm0, %v4932_v32  ;;  %v4931_v35 = vmul.f32 %v23451_v51, %v25623_v28  ;;  %23472 = vpow2.f32 %v17227_v22  ;;  %v25760_v1 = vld [vmem:[#allocation2 + $0xc1] sm:$0xff] }
 0x4af   : > { %v23455_v20 = vpop.eup %23454  ;;  %v4934_v3 = vmul.f32 %v23453_v34, %v25637_v15  ;;  %23474 = vrcp.f32 %v4844_v29  ;;  %20187 = vmatprep.mubr.msk.f32.mxu0 %vm439_vm0, %v25760_v1 }
 0x4b0   : > { %v23457_v54 = vpop.eup %23456  ;;  %4963 = vst.msk [vmem:[#allocation2 + $0xf1] sm:$0xff] %vm439_vm0, %v4931_v35  ;;  %v4933_v53 = vmul.f32 %v23455_v20, %v25642_v62  ;;  %20188 = vmatmul.mubr.msk.f32.gmra.mrb[40].mxu0 %vm439_vm0, %v25765_v46  ;;  %v4977_v20 = vld [vmem:[#allocation2] sm:$0xff] }
 0x4b1   : > { %v23459_v28 = vpop.eup %23458  ;;  %4966 = vst.msk [vmem:[#allocation2 + $0x111] sm:$0xff] %vm439_vm0, %v4934_v3  ;;  %v4843_v40 = vadd.f32 1.0, %v23457_v54  ;;  %v25778_v62 = vld [vmem:[#allocation2 + $0xe1] sm:$0xff]  ;;  %v5726_v54 = vld [vmem:[%s29376_s5 + $0x58] sm:$0xff] }
 0x4b2   : > { %v23461_v19 = vpop.eup %23460  ;;  %4965 = vst.msk [vmem:[#allocation2 + $0x109] sm:$0xff] %vm439_vm0, %v4933_v53  ;;  %v4846_v15 = vadd.f32 1.0, %v23459_v28  ;;  %v25773_v4 = vld [vmem:[#allocation2 + $0xd9] sm:$0xff]  ;;  %v4978_v53 = vld [vmem:[#allocation2 + $0x8] sm:$0xff] }
 0x4b3   : > { %v23463_v38 = vpop.eup %23462  ;;  %v4936_v21 = vmul.f32 %v23461_v19, %v25656_v45  ;;  %23476 = vrcp.f32 %v4843_v40  ;;  %20190 = vmatprep.mubr.msk.f32.mxu0 %vm439_vm0, %v25773_v4  ;;  %v6112_v40 = vld [vmem:[%s29376_s5 + $0x60] sm:$0xff]  ;;  %v6113_v19 = vld [vmem:[%s29376_s5 + $0x68] sm:$0xff] }
 0x4b4   : > { %v23465_v39 = vpop.eup %23464  ;;  %v4935_v50 = vmul.f32 %v23463_v38, %v25662_v48  ;;  %23478 = vrcp.f32 %v4846_v15  ;;  %20191 = vmatmul.mubr.msk.f32.gmra.mrb[42].mxu0 %vm439_vm0, %v25778_v62  ;;  %v25863_v15 = vld [vmem:[#allocation2 + $0x18] sm:$0xff]  ;;  %v25868_v38 = vpack.c.bf16 %v6113_v19, %v6112_v40  ;;  %v6114_v40 = vld [vmem:[%s29376_s5 + $0x70] sm:$0xff] }
 0x4b5   : > { %v23467_v41 = vpop.eup %23466  ;;  %4968 = vst.msk [vmem:[#allocation2 + $0x129] sm:$0xff] %vm439_vm0, %v4936_v21  ;;  %v4845_v59 = vadd.f32 1.0, %v23465_v39  ;;  %v25791_v7 = vld [vmem:[#allocation2 + $0xf9] sm:$0xff]  ;;  %v25874_v39 = vld [vmem:[#allocation2 + $0x30] sm:$0xff] }
 0x4b6   : > { %v23469_v11 = vpop.eup %23468  ;;  %4967 = vst.msk [vmem:[#allocation2 + $0x121] sm:$0xff] %vm439_vm0, %v4935_v50  ;;  %v4848_v45 = vadd.f32 1.0, %v23467_v41  ;;  %v25870_v21 = vld [vmem:[#allocation2 + $0x20] sm:$0xff]  ;;  %v25879_v50 = vld [vmem:[#allocation2 + $0x38] sm:$0xff]  ;;  %v25887_v41 = vld [vmem:[#allocation2 + $0x50] sm:$0xff] }
 0x4b7   : > { %v23471_v52 = vpop.eup %23470  ;;  %v4938_v33 = vmul.f32 %v23469_v11, %v25676_v9  ;;  %23480 = vrcp.f32 %v4845_v59  ;;  %v25786_v37 = vld [vmem:[#allocation2 + $0xf1] sm:$0xff]  ;;  %v25891_v59 = vld [vmem:[#allocation2 + $0x60] sm:$0xff]  ;;  %v25895_v11 = vld [vmem:[#allocation2 + $0x68] sm:$0xff] }
 0x4b8   : > { %v23473_v17 = vpop.eup %23472  ;;  %v4937_v48 = vmul.f32 %v23471_v52, %v25682_v47  ;;  %23482 = vrcp.f32 %v4848_v45  ;;  %20193 = vmatprep.mubr.msk.f32.mxu0 %vm439_vm0, %v25786_v37  ;;  %v25803_v47 = vld [vmem:[#allocation2 + $0x111] sm:$0xff]  ;;  %v25903_v52 = vld [vmem:[#allocation2 + $0x80] sm:$0xff] }
 0x4b9   : > { %v23475_v44 = vpop.eup %23474  ;;  %4970 = vst.msk [vmem:[#allocation2 + $0x141] sm:$0xff] %vm439_vm0, %v4938_v33  ;;  %v4847_v25 = vadd.f32 1.0, %v23473_v17  ;;  %20194 = vmatmul.mubr.msk.f32.gmra.mrb[44].mxu0 %vm439_vm0, %v25791_v7  ;;  %v25796_v9 = vld [vmem:[#allocation2 + $0x109] sm:$0xff]  ;;  %v25899_v45 = vld [vmem:[#allocation2 + $0x78] sm:$0xff] }
 0x4ba   : > { %4969 = vst.msk [vmem:[#allocation2 + $0x139] sm:$0xff] %vm439_vm0, %v4937_v48  ;;  %v4940_v56 = vmul.f32 %v23475_v44, %v25690_v14  ;;  %20196 = vmatprep.mubr.msk.f32.mxu0 %vm439_vm0, %v25796_v9  ;;  %v25907_v33 = vld [vmem:[#allocation2 + $0x90] sm:$0xff]  ;;  %v25911_v17 = vld [vmem:[#allocation2 + $0x98] sm:$0xff]  ;;  %v25915_v48 = vld [vmem:[#allocation2 + $0xa8] sm:$0xff] }
 0x4bb   : > { %23484 = vrcp.f32 %v4847_v25  ;;  %v25919_v44 = vld [vmem:[#allocation2 + $0xb0] sm:$0xff]  ;;  %v25923_v25 = vld [vmem:[#allocation2 + $0xc0] sm:$0xff]  ;;  %v6115_v19 = vld [vmem:[%s29376_s5 + $0x78] sm:$0xff] }
 0x4bc   : > { %4972 = vst.msk [vmem:[#allocation2 + $0x159] sm:$0xff] %vm439_vm0, %v4940_v56  ;;  %v25814_v58 = vld [vmem:[#allocation2 + $0x129] sm:$0xff] }
 0x4bd   : > { %v23477_v2 = vpop.eup %23476  ;;  %20197 = vmatmul.mubr.msk.f32.gmra.mrb[46].mxu0 %vm439_vm0, %v25803_v47  ;;  %v25807_v16 = vld [vmem:[#allocation2 + $0x121] sm:$0xff] }
 0x4be   : > { %v23479_v26 = vpop.eup %23478  ;;  %v4939_v22 = vmul.f32 %v23477_v2, %v25698_v31  ;;  %20199 = vmatprep.mubr.msk.f32.mxu0 %vm439_vm0, %v25807_v16  ;;  %v25927_v56 = vld [vmem:[#allocation2 + $0xc8] sm:$0xff]  ;;  %v25931_v2 = vld [vmem:[#allocation2 + $0xd8] sm:$0xff] }
 0x4bf   : > { %v4942_v14 = vmul.f32 %v23479_v26, %v25710_v36  ;;  %v25935_v26 = vld [vmem:[#allocation2 + $0xe0] sm:$0xff] }
 0x4c0   : > { %4971 = vst.msk [vmem:[#allocation2 + $0x151] sm:$0xff] %vm439_vm0, %v4939_v22  ;;  %v25826_v51 = vld [vmem:[#allocation2 + $0x141] sm:$0xff]  ;;  %v25939_v22 = vld [vmem:[#allocation2 + $0xf0] sm:$0xff] }
 0x4c1   : > { %v23481_v55 = vpop.eup %23480  ;;  %4974 = vst.msk [vmem:[#allocation2 + $0x171] sm:$0xff] %vm439_vm0, %v4942_v14  ;;  %20200 = vmatmul.mubr.msk.f32.gmra.mrb[48].mxu0 %vm439_vm0, %v25814_v58  ;;  %v25819_v13 = vld [vmem:[#allocation2 + $0x139] sm:$0xff]  ;;  %29819 = vst [vmem:[#allocation40_spill] sm:$0xff] %v25826_v51 }
 0x4c2   : > { %v23483_v32 = vpop.eup %23482  ;;  %v4941_v31 = vmul.f32 %v23481_v55, %v25717_v5  ;;  %20202 = vmatprep.mubr.msk.f32.mxu0 %vm439_vm0, %v25819_v13  ;;  %v25943_v14 = vld [vmem:[#allocation2 + $0xf8] sm:$0xff]  ;;  %v25947_v55 = vld [vmem:[#allocation2 + $0x108] sm:$0xff] }
 0x4c3   : > { %v4944_v36 = vmul.f32 %v23483_v32, %v25729_v18  ;;  %v25837_v5 = vld [vmem:[#allocation2 + $0x159] sm:$0xff]  ;;  %v25951_v32 = vld [vmem:[#allocation2 + $0x110] sm:$0xff] }
 0x4c4   : > { %4973 = vst.msk [vmem:[#allocation2 + $0x169] sm:$0xff] %vm439_vm0, %v4941_v31  ;;  %29821 = vst [vmem:[#allocation42_spill] sm:$0xff] %v25837_v5  ;;  %v25955_v31 = vld [vmem:[#allocation2 + $0x120] sm:$0xff] }
 0x4c5   : > { %v23485_v29 = vpop.eup %23484  ;;  %4976 = vst.msk [vmem:[#allocation2 + $0x189] sm:$0xff] %vm439_vm0, %v4944_v36  ;;  %20203 = vmatmul.mubr.msk.f32.gmra.mrb[50].mxu0 %vm439_vm0, %v25826_v51  ;;  %v25959_v36 = vld [vmem:[#allocation2 + $0x128] sm:$0xff]  ;;  %v26001_v51 = vld [vmem:[#allocation2 + $0x1a] sm:$0xff] }
 0x4c6   : > { %v4943_v34 = vmul.f32 %v23485_v29, %v25737_v60  ;;  %v5725_v60 = vld [vmem:[%s29376_s5 + $0x50] sm:$0xff]  ;;  %v25963_v29 = vld [vmem:[#allocation2 + $0x138] sm:$0xff] }
 0x4c7   : > { %v25832_v35 = vld [vmem:[#allocation2 + $0x151] sm:$0xff]  ;;  %v21767_v28 = vpack.c.bf16 %v5726_v54, %v5725_v60 }
 0x4c8   : > { %29820 = vst [vmem:[#allocation43_spill] sm:$0xff] %v25832_v35  ;;  %4975 = vst.msk [vmem:[#allocation2 + $0x181] sm:$0xff] %vm439_vm0, %v4943_v34  ;;  %20205 = vmatprep.mubr.msk.f32.mxu0 %vm439_vm0, %v25832_v35  ;;  %v25845_v3 = vld [vmem:[#allocation2 + $0x171] sm:$0xff]  ;;  %v25967_v34 = vld [vmem:[#allocation2 + $0x140] sm:$0xff] }
 0x4c9   : > { %20206 = vmatmul.mubr.msk.f32.gmra.mrb[52].mxu0 %vm439_vm0, %v25837_v5  ;;  %29823 = vst [vmem:[#allocation45_spill] sm:$0xff] %v25845_v3  ;;  %v25975_v60 = vld [vmem:[#allocation2 + $0x158] sm:$0xff]  ;;  %v6501_v5 = vld [vmem:[%s29376_s5 + $0x80] sm:$0xff]  ;;  %v6502_v35 = vld [vmem:[%s29376_s5 + $0x88] sm:$0xff] }
 0x4cb   : > { %v25841_v18 = vld [vmem:[#allocation2 + $0x169] sm:$0xff] }
 0x4cc   : > { %29822 = vst [vmem:[#allocation44_spill] sm:$0xff] %v25841_v18  ;;  %20208 = vmatprep.mubr.msk.f32.mxu0 %vm439_vm0, %v25841_v18  ;;  %v25979_v54 = vld [vmem:[#allocation2 + $0x168] sm:$0xff]  ;;  %v21775_v18 = vpack.c.bf16 %v6115_v19, %v6114_v40  ;;  %v26012_v19 = vld [vmem:[#allocation2 + $0x32] sm:$0xff] }
 0x4cd   : > { %20209 = vmatmul.mubr.msk.f32.gmra.mrb[54].mxu0 %vm439_vm0, %v25845_v3  ;;  %v5692_v3 = vld [vmem:[#allocation2 + $0xa] sm:$0xff]  ;;  %v26008_v40 = vld [vmem:[#allocation2 + $0x22] sm:$0xff]  ;;  %29824 = vst [vmem:[#allocation46_spill] sm:$0xff] %v26012_v19 }
 0x4ce   : > { %20219 = vmatprep.mubr.msk.f32.mxu0 %vm439_vm0, %v4977_v20  ;;  %v25971_v20 = vld [vmem:[#allocation2 + $0x150] sm:$0xff] }
 0x4d1   : > { %20220 = vmatmul.mubr.msk.f32.vlgmr.msra.gmra.mrb[24].mxu0 %vm439_vm0, %v4978_v53  ;;  %v5691_v53 = vld [vmem:[#allocation2 + $0x2] sm:$0xff] }
 0x4d2   : > { %20222 = vmatprep.mubr.msk.f32.mxu0 %vm439_vm0, %v25863_v15  ;;  %21766 = vmatpush3.bf16.msra.mxu0 %v25529_v42  ;;  %v25883_v42 = vld [vmem:[#allocation2 + $0x48] sm:$0xff] }
 0x4d3   : > { %21768 = vmatprep.subr.bf16.mxu0 %v21767_v28 }
 0x4d5   : > { %20223 = vmatmul.mubr.msk.f32.gmra.mrb[26].mxu0 %vm439_vm0, %v25870_v21 }
 0x4d6   : > { %20225 = vmatprep.mubr.msk.f32.mxu0 %vm439_vm0, %v25874_v39  ;;  %21770 = vmatpush3.bf16.msra.mxu0 %v21767_v28  ;;  %v25983_v28 = vld [vmem:[#allocation2 + $0x170] sm:$0xff] }
 0x4d7   : > { %21772 = vmatprep.subr.bf16.mxu0 %v25868_v38 }
 0x4d9   : > { %20226 = vmatmul.mubr.msk.f32.gmra.mrb[28].mxu0 %vm439_vm0, %v25879_v50 }
 0x4da   : > { %20228 = vmatprep.mubr.msk.f32.mxu0 %vm439_vm0, %v25883_v42 }
 0x4dd   : > { %20229 = vmatmul.mubr.msk.f32.gmra.mrb[30].mxu0 %vm439_vm0, %v25887_v41 }
 0x4de   : > { %20231 = vmatprep.mubr.msk.f32.mxu0 %vm439_vm0, %v25891_v59 }
 0x4e1   : > { %20232 = vmatmul.mubr.msk.f32.gmra.mrb[32].mxu0 %vm439_vm0, %v25895_v11 }
 0x4e2   : > { %20234 = vmatprep.mubr.msk.f32.mxu0 %vm439_vm0, %v25899_v45 }
 0x4e5   : > { %20235 = vmatmul.mubr.msk.f32.gmra.mrb[34].mxu0 %vm439_vm0, %v25903_v52 }
 0x4e6   : > { %20237 = vmatprep.mubr.msk.f32.mxu0 %vm439_vm0, %v25907_v33 }
 0x4e9   : > { %20238 = vmatmul.mubr.msk.f32.gmra.mrb[36].mxu0 %vm439_vm0, %v25911_v17 }
 0x4ea   : > { %20240 = vmatprep.mubr.msk.f32.mxu0 %vm439_vm0, %v25915_v48 }
 0x4ed   : > { %20241 = vmatmul.mubr.msk.f32.gmra.mrb[38].mxu0 %vm439_vm0, %v25919_v44 }
 0x4ee   : > { %20243 = vmatprep.mubr.msk.f32.mxu0 %vm439_vm0, %v25923_v25 }
 0x4f1   : > { %20244 = vmatmul.mubr.msk.f32.gmra.mrb[40].mxu0 %vm439_vm0, %v25927_v56 }
 0x4f2   : > { %20246 = vmatprep.mubr.msk.f32.mxu0 %vm439_vm0, %v25931_v2 }
 0x4f5   : > { %20247 = vmatmul.mubr.msk.f32.gmra.mrb[42].mxu0 %vm439_vm0, %v25935_v26 }
 0x4f6   : > { %20249 = vmatprep.mubr.msk.f32.mxu0 %vm439_vm0, %v25939_v22 }
 0x4f9   : > { %20250 = vmatmul.mubr.msk.f32.gmra.mrb[44].mxu0 %vm439_vm0, %v25943_v14 }
 0x4fa   : > { %20252 = vmatprep.mubr.msk.f32.mxu0 %vm439_vm0, %v25947_v55 }
 0x4fd   : > { %20253 = vmatmul.mubr.msk.f32.gmra.mrb[46].mxu0 %vm439_vm0, %v25951_v32 }
 0x4fe   : > { %20255 = vmatprep.mubr.msk.f32.mxu0 %vm439_vm0, %v25955_v31 }
 0x501   : > { %20256 = vmatmul.mubr.msk.f32.gmra.mrb[48].mxu0 %vm439_vm0, %v25959_v36 }
 0x502   : > { %20258 = vmatprep.mubr.msk.f32.mxu0 %vm439_vm0, %v25963_v29 }
 0x505   : > { %20259 = vmatmul.mubr.msk.f32.gmra.mrb[50].mxu0 %vm439_vm0, %v25967_v34 }
 0x506   : > { %20261 = vmatprep.mubr.msk.f32.mxu0 %vm439_vm0, %v25971_v20 }
 0x509   : > { %20262 = vmatmul.mubr.msk.f32.gmra.mrb[52].mxu0 %vm439_vm0, %v25975_v60 }
 0x50a   : > { %20264 = vmatprep.mubr.msk.f32.mxu0 %vm439_vm0, %v25979_v54 }
 0x50d   : > { %20265 = vmatmul.mubr.msk.f32.gmra.mrb[54].mxu0 %vm439_vm0, %v25983_v28 }
 0x50e   : > { %20275 = vmatprep.mubr.msk.f32.mxu0 %vm439_vm0, %v5691_v53  ;;  %v26006_v53 = vpack.c.bf16 %v6502_v35, %v6501_v5  ;;  %v26021_v35 = vld [vmem:[#allocation2 + $0x4a] sm:$0xff]  ;;  %v26025_v5 = vld [vmem:[#allocation2 + $0x52] sm:$0xff] }
 0x50f   : > { %29826 = vst [vmem:[#allocation48_spill] sm:$0xff] %v26021_v35  ;;  %29827 = vst [vmem:[#allocation49_spill] sm:$0xff] %v26025_v5 }
 0x511   : > { %20276 = vmatmul.mubr.msk.f32.vlgmr.msra.gmra.mrb[24].mxu0 %vm439_vm0, %v5692_v3  ;;  %v26017_v3 = vld [vmem:[#allocation2 + $0x3a] sm:$0xff] }
 0x512   : > { %20278 = vmatprep.mubr.msk.f32.mxu0 %vm439_vm0, %v26001_v51  ;;  %21774 = vmatpush3.bf16.msra.mxu0 %v25868_v38  ;;  %29825 = vst [vmem:[#allocation47_spill] sm:$0xff] %v26017_v3  ;;  %v26029_v38 = vld [vmem:[#allocation2 + $0x62] sm:$0xff] }
 0x513   : > { %21776 = vmatprep.subr.bf16.mxu0 %v21775_v18  ;;  %29828 = vst [vmem:[#allocation50_spill] sm:$0xff] %v26029_v38 }
 0x515   : > { %20279 = vmatmul.mubr.msk.f32.gmra.mrb[26].mxu0 %vm439_vm0, %v26008_v40 }
 0x516   : > { %20281 = vmatprep.mubr.msk.f32.mxu0 %vm439_vm0, %v26012_v19  ;;  %21778 = vmatpush3.bf16.msra.mxu0 %v21775_v18  ;;  %v26033_v18 = vld [vmem:[#allocation2 + $0x6a] sm:$0xff] }
 0x517   : > { %21780 = vmatprep.subr.bf16.mxu0 %v26006_v53  ;;  %29829 = vst [vmem:[#allocation51_spill] sm:$0xff] %v26033_v18  ;;  %v6891_v19 = vld [vmem:[%s29376_s5 + $0xa8] sm:$0xff] }
 0x519   : > { %20282 = vmatmul.mubr.msk.f32.gmra.mrb[28].mxu0 %vm439_vm0, %v26017_v3  ;;  %v26037_v3 = vld [vmem:[#allocation2 + $0x7a] sm:$0xff] }
 0x51a   : > { %20284 = vmatprep.mubr.msk.f32.mxu0 %vm439_vm0, %v26021_v35  ;;  %29830 = vst [vmem:[#allocation52_spill] sm:$0xff] %v26037_v3  ;;  %v26041_v35 = vld [vmem:[#allocation2 + $0x82] sm:$0xff] }
 0x51b   : > { %29831 = vst [vmem:[#allocation53_spill] sm:$0xff] %v26041_v35 }
 0x51d   : > { %20285 = vmatmul.mubr.msk.f32.gmra.mrb[30].mxu0 %vm439_vm0, %v26025_v5  ;;  %v26045_v5 = vld [vmem:[#allocation2 + $0x92] sm:$0xff] }
 0x51e   : > { %20287 = vmatprep.mubr.msk.f32.mxu0 %vm439_vm0, %v26029_v38  ;;  %29832 = vst [vmem:[#allocation54_spill] sm:$0xff] %v26045_v5  ;;  %v26049_v38 = vld [vmem:[#allocation2 + $0x9a] sm:$0xff] }
 0x51f   : > { %29833 = vst [vmem:[#allocation55_spill] sm:$0xff] %v26049_v38 }
 0x521   : > { %20288 = vmatmul.mubr.msk.f32.gmra.mrb[32].mxu0 %vm439_vm0, %v26033_v18  ;;  %v26053_v18 = vld [vmem:[#allocation2 + $0xaa] sm:$0xff] }
 0x522   : > { %20290 = vmatprep.mubr.msk.f32.mxu0 %vm439_vm0, %v26037_v3  ;;  %29834 = vst [vmem:[#allocation56_spill] sm:$0xff] %v26053_v18  ;;  %v26057_v3 = vld [vmem:[#allocation2 + $0xb2] sm:$0xff] }
 0x523   : > { %29835 = vst [vmem:[#allocation57_spill] sm:$0xff] %v26057_v3 }
 0x525   : > { %20291 = vmatmul.mubr.msk.f32.gmra.mrb[34].mxu0 %vm439_vm0, %v26041_v35  ;;  %v26061_v35 = vld [vmem:[#allocation2 + $0xc2] sm:$0xff] }
 0x526   : > { %20293 = vmatprep.mubr.msk.f32.mxu0 %vm439_vm0, %v26045_v5  ;;  %29836 = vst [vmem:[#allocation58_spill] sm:$0xff] %v26061_v35  ;;  %v26065_v5 = vld [vmem:[#allocation2 + $0xca] sm:$0xff] }
 0x527   : > { %29837 = vst [vmem:[#allocation59_spill] sm:$0xff] %v26065_v5 }
 0x529   : > { %20294 = vmatmul.mubr.msk.f32.gmra.mrb[36].mxu0 %vm439_vm0, %v26049_v38  ;;  %v26069_v38 = vld [vmem:[#allocation2 + $0xda] sm:$0xff] }
 0x52a   : > { %20296 = vmatprep.mubr.msk.f32.mxu0 %vm439_vm0, %v26053_v18  ;;  %29838 = vst [vmem:[#allocation60_spill] sm:$0xff] %v26069_v38  ;;  %v26073_v18 = vld [vmem:[#allocation2 + $0xe2] sm:$0xff] }
 0x52b   : > { %29839 = vst [vmem:[#allocation61_spill] sm:$0xff] %v26073_v18 }
 0x52d   : > { %20297 = vmatmul.mubr.msk.f32.gmra.mrb[38].mxu0 %vm439_vm0, %v26057_v3  ;;  %v26077_v3 = vld [vmem:[#allocation2 + $0xf2] sm:$0xff] }
 0x52e   : > { %20299 = vmatprep.mubr.msk.f32.mxu0 %vm439_vm0, %v26061_v35  ;;  %29840 = vst [vmem:[#allocation62_spill] sm:$0xff] %v26077_v3  ;;  %v26081_v35 = vld [vmem:[#allocation2 + $0xfa] sm:$0xff] }
 0x52f   : > { %29841 = vst [vmem:[#allocation63_spill] sm:$0xff] %v26081_v35 }
 0x531   : > { %20300 = vmatmul.mubr.msk.f32.gmra.mrb[40].mxu0 %vm439_vm0, %v26065_v5  ;;  %v26085_v5 = vld [vmem:[#allocation2 + $0x10a] sm:$0xff] }
 0x532   : > { %20302 = vmatprep.mubr.msk.f32.mxu0 %vm439_vm0, %v26069_v38  ;;  %29842 = vst [vmem:[#allocation64_spill] sm:$0xff] %v26085_v5  ;;  %v26089_v38 = vld [vmem:[#allocation2 + $0x112] sm:$0xff] }
 0x533   : > { %29843 = vst [vmem:[#allocation65_spill] sm:$0xff] %v26089_v38 }
 0x535   : > { %20303 = vmatmul.mubr.msk.f32.gmra.mrb[42].mxu0 %vm439_vm0, %v26073_v18  ;;  %v26093_v18 = vld [vmem:[#allocation2 + $0x122] sm:$0xff] }
 0x536   : > { %20305 = vmatprep.mubr.msk.f32.mxu0 %vm439_vm0, %v26077_v3  ;;  %29844 = vst [vmem:[#allocation66_spill] sm:$0xff] %v26093_v18  ;;  %v26097_v3 = vld [vmem:[#allocation2 + $0x12a] sm:$0xff] }
 0x537   : > { %29845 = vst [vmem:[#allocation67_spill] sm:$0xff] %v26097_v3 }
 0x539   : > { %20306 = vmatmul.mubr.msk.f32.gmra.mrb[44].mxu0 %vm439_vm0, %v26081_v35  ;;  %v26101_v35 = vld [vmem:[#allocation2 + $0x13a] sm:$0xff] }
 0x53a   : > { %20308 = vmatprep.mubr.msk.f32.mxu0 %vm439_vm0, %v26085_v5  ;;  %29846 = vst [vmem:[#allocation68_spill] sm:$0xff] %v26101_v35  ;;  %v26105_v5 = vld [vmem:[#allocation2 + $0x142] sm:$0xff] }
 0x53b   : > { %29847 = vst [vmem:[#allocation69_spill] sm:$0xff] %v26105_v5 }
 0x53d   : > { %20309 = vmatmul.mubr.msk.f32.gmra.mrb[46].mxu0 %vm439_vm0, %v26089_v38  ;;  %v26109_v38 = vld [vmem:[#allocation2 + $0x152] sm:$0xff] }
 0x53e   : > { %20311 = vmatprep.mubr.msk.f32.mxu0 %vm439_vm0, %v26093_v18  ;;  %29848 = vst [vmem:[#allocation70_spill] sm:$0xff] %v26109_v38  ;;  %v26113_v18 = vld [vmem:[#allocation2 + $0x15a] sm:$0xff] }
 0x53f   : > { %29849 = vst [vmem:[#allocation71_spill] sm:$0xff] %v26113_v18 }
 0x541   : > { %20312 = vmatmul.mubr.msk.f32.gmra.mrb[48].mxu0 %vm439_vm0, %v26097_v3  ;;  %v26117_v3 = vld [vmem:[#allocation2 + $0x16a] sm:$0xff] }
 0x542   : > { %20314 = vmatprep.mubr.msk.f32.mxu0 %vm439_vm0, %v26101_v35  ;;  %29850 = vst [vmem:[#allocation39_spill] sm:$0xff] %v26117_v3  ;;  %v26121_v35 = vld [vmem:[#allocation2 + $0x172] sm:$0xff] }
 0x543   : > { %29851 = vst [vmem:[#allocation41_spill] sm:$0xff] %v26121_v35 }
 0x545   : > { %20315 = vmatmul.mubr.msk.f32.gmra.mrb[50].mxu0 %vm439_vm0, %v26105_v5  ;;  %v6503_v5 = vld [vmem:[%s29376_s5 + $0x90] sm:$0xff] }
 0x546   : > { %20317 = vmatprep.mubr.msk.f32.mxu0 %vm439_vm0, %v26109_v38  ;;  %v6504_v38 = vld [vmem:[%s29376_s5 + $0x98] sm:$0xff] }
 0x549   : > { %20318 = vmatmul.mubr.msk.f32.gmra.mrb[52].mxu0 %vm439_vm0, %v26113_v18  ;;  %v21783_v18 = vpack.c.bf16 %v6504_v38, %v6503_v5  ;;  %v7279_v5 = vld [vmem:[%s29376_s5 + $0xc0] sm:$0xff]  ;;  %v7280_v38 = vld [vmem:[%s29376_s5 + $0xc8] sm:$0xff] }
 0x54a   : > { %20320 = vmatprep.mubr.msk.f32.mxu0 %vm439_vm0, %v26117_v3  ;;  %v6890_v3 = vld [vmem:[%s29376_s5 + $0xa0] sm:$0xff] }
 0x54d   : > { %20321 = vmatmul.mubr.msk.f32.gmra.mrb[54].mxu0 %vm439_vm0, %v26121_v35  ;;  %v21787_v35 = vpack.c.bf16 %v6891_v19, %v6890_v3  ;;  %v6893_v19 = vld [vmem:[%s29376_s5 + $0xb8] sm:$0xff] }
 0x54e   : > { %20331 = vmatprep.mubr.msk.f32.mxu0 %vm439_vm0, %v25863_v15  ;;  %v26198_v15 = vld [vmem:[#allocation2 + $0x180] sm:$0xff] }
 0x551   : > { %20332 = vmatmul.mubr.msk.f32.vlgmr.msra.gmra.mrb[24].mxu0 %vm439_vm0, %v25870_v21  ;;  %v26202_v21 = vld [vmem:[#allocation2 + $0x188] sm:$0xff] }
 0x552   : > { %20334 = vmatprep.mubr.msk.f32.mxu0 %vm439_vm0, %v25874_v39  ;;  %21782 = vmatpush3.bf16.msra.mxu0 %v26006_v53  ;;  %v6892_v53 = vld [vmem:[%s29376_s5 + $0xb0] sm:$0xff] }
 0x553   : > { %21784 = vmatprep.subr.bf16.mxu0 %v21783_v18  ;;  %v21791_v3 = vpack.c.bf16 %v6893_v19, %v6892_v53  ;;  %v29857_v53 = vld [vmem:[#allocation46_spill] sm:$0xff] }
 0x555   : > { %20335 = vmatmul.mubr.msk.f32.gmra.mrb[26].mxu0 %vm439_vm0, %v25879_v50 }
 0x556   : > { %20337 = vmatprep.mubr.msk.f32.mxu0 %vm439_vm0, %v25883_v42  ;;  %21786 = vmatpush3.bf16.msra.mxu0 %v21783_v18  ;;  %v21795_v18 = vpack.c.bf16 %v7280_v38, %v7279_v5  ;;  %v29860_v5 = vld [vmem:[#allocation49_spill] sm:$0xff]  ;;  %v29861_v38 = vld [vmem:[#allocation50_spill] sm:$0xff] }
 0x557   : > { %21788 = vmatprep.subr.bf16.mxu0 %v21787_v35 }
 0x559   : > { %20338 = vmatmul.mubr.msk.f32.gmra.mrb[28].mxu0 %vm439_vm0, %v25887_v41 }
 0x55a   : > { %20340 = vmatprep.mubr.msk.f32.mxu0 %vm439_vm0, %v25891_v59 }
 0x55d   : > { %20341 = vmatmul.mubr.msk.f32.gmra.mrb[30].mxu0 %vm439_vm0, %v25895_v11 }
 0x55e   : > { %20343 = vmatprep.mubr.msk.f32.mxu0 %vm439_vm0, %v25899_v45 }
 0x561   : > { %20344 = vmatmul.mubr.msk.f32.gmra.mrb[32].mxu0 %vm439_vm0, %v25903_v52 }
 0x562   : > { %20346 = vmatprep.mubr.msk.f32.mxu0 %vm439_vm0, %v25907_v33 }
 0x565   : > { %20347 = vmatmul.mubr.msk.f32.gmra.mrb[34].mxu0 %vm439_vm0, %v25911_v17 }
 0x566   : > { %20349 = vmatprep.mubr.msk.f32.mxu0 %vm439_vm0, %v25915_v48 }
 0x569   : > { %20350 = vmatmul.mubr.msk.f32.gmra.mrb[36].mxu0 %vm439_vm0, %v25919_v44 }
 0x56a   : > { %20352 = vmatprep.mubr.msk.f32.mxu0 %vm439_vm0, %v25923_v25 }
 0x56d   : > { %20353 = vmatmul.mubr.msk.f32.gmra.mrb[38].mxu0 %vm439_vm0, %v25927_v56 }
 0x56e   : > { %20355 = vmatprep.mubr.msk.f32.mxu0 %vm439_vm0, %v25931_v2 }
 0x571   : > { %20356 = vmatmul.mubr.msk.f32.gmra.mrb[40].mxu0 %vm439_vm0, %v25935_v26 }
 0x572   : > { %20358 = vmatprep.mubr.msk.f32.mxu0 %vm439_vm0, %v25939_v22 }
 0x575   : > { %20359 = vmatmul.mubr.msk.f32.gmra.mrb[42].mxu0 %vm439_vm0, %v25943_v14 }
 0x576   : > { %20361 = vmatprep.mubr.msk.f32.mxu0 %vm439_vm0, %v25947_v55 }
 0x579   : > { %20362 = vmatmul.mubr.msk.f32.gmra.mrb[44].mxu0 %vm439_vm0, %v25951_v32 }
 0x57a   : > { %20364 = vmatprep.mubr.msk.f32.mxu0 %vm439_vm0, %v25955_v31 }
 0x57d   : > { %20365 = vmatmul.mubr.msk.f32.gmra.mrb[46].mxu0 %vm439_vm0, %v25959_v36 }
 0x57e   : > { %20367 = vmatprep.mubr.msk.f32.mxu0 %vm439_vm0, %v25963_v29 }
 0x581   : > { %20368 = vmatmul.mubr.msk.f32.gmra.mrb[48].mxu0 %vm439_vm0, %v25967_v34 }
 0x582   : > { %20370 = vmatprep.mubr.msk.f32.mxu0 %vm439_vm0, %v25971_v20 }
 0x585   : > { %20371 = vmatmul.mubr.msk.f32.gmra.mrb[50].mxu0 %vm439_vm0, %v25975_v60 }
 0x586   : > { %20373 = vmatprep.mubr.msk.f32.mxu0 %vm439_vm0, %v25979_v54 }
 0x589   : > { %20374 = vmatmul.mubr.msk.f32.gmra.mrb[52].mxu0 %vm439_vm0, %v25983_v28 }
 0x58a   : > { %20376 = vmatprep.mubr.msk.f32.mxu0 %vm439_vm0, %v26198_v15 }
 0x58d   : > { %20377 = vmatmul.mubr.msk.f32.gmra.mrb[54].mxu0 %vm439_vm0, %v26202_v21 }
 0x58e   : > { %20387 = vmatprep.mubr.msk.f32.mxu0 %vm439_vm0, %v25627_v23  ;;  %v29852_v23 = vld [vmem:[#allocation40_spill] sm:$0xff] }
 0x591   : > { %20388 = vmatmul.mubr.msk.f32.vlgmr.msra.gmra.mrb[24].mxu0 %vm439_vm0, %v25632_v49  ;;  %v29853_v49 = vld [vmem:[#allocation43_spill] sm:$0xff] }
 0x592   : > { %20390 = vmatprep.mubr.msk.f32.mxu0 %vm439_vm0, %v25646_v6  ;;  %21790 = vmatpush3.bf16.msra.mxu0 %v21787_v35  ;;  %v29854_v6 = vld [vmem:[#allocation42_spill] sm:$0xff] }
 0x593   : > { %21792 = vmatprep.subr.bf16.mxu0 %v21791_v3  ;;  %v7669_v35 = vld [vmem:[%s29376_s5 + $0xe8] sm:$0xff] }
 0x595   : > { %20391 = vmatmul.mubr.msk.f32.gmra.mrb[26].mxu0 %vm439_vm0, %v25652_v0  ;;  %v29855_v0 = vld [vmem:[#allocation44_spill] sm:$0xff] }
 0x596   : > { %20393 = vmatprep.mubr.msk.f32.mxu0 %vm439_vm0, %v25666_v43  ;;  %21794 = vmatpush3.bf16.msra.mxu0 %v21791_v3  ;;  %v29856_v43 = vld [vmem:[#allocation45_spill] sm:$0xff]  ;;  %v29858_v3 = vld [vmem:[#allocation47_spill] sm:$0xff] }
 0x597   : > { %21796 = vmatprep.subr.bf16.mxu0 %v21795_v18 }
 0x599   : > { %20394 = vmatmul.mubr.msk.f32.gmra.mrb[28].mxu0 %vm439_vm0, %v25672_v8  ;;  %v26278_v8 = vld [vmem:[#allocation2 + $0x181] sm:$0xff] }
 0x59a   : > { %20396 = vmatprep.mubr.msk.f32.mxu0 %vm439_vm0, %v25692_v10  ;;  %v26282_v10 = vld [vmem:[#allocation2 + $0x189] sm:$0xff] }
 0x59d   : > { %20397 = vmatmul.mubr.msk.f32.gmra.mrb[30].mxu0 %vm439_vm0, %v25700_v27  ;;  %v7281_v27 = vld [vmem:[%s29376_s5 + $0xd0] sm:$0xff] }
 0x59e   : > { %20399 = vmatprep.mubr.msk.f32.mxu0 %vm439_vm0, %v25712_v24  ;;  %v7282_v24 = vld [vmem:[%s29376_s5 + $0xd8] sm:$0xff] }
 0x5a1   : > { %20400 = vmatmul.mubr.msk.f32.gmra.mrb[32].mxu0 %vm439_vm0, %v25719_v57  ;;  %v21799_v57 = vpack.c.bf16 %v7282_v24, %v7281_v27  ;;  %v29864_v27 = vld [vmem:[#allocation53_spill] sm:$0xff]  ;;  %v29865_v24 = vld [vmem:[#allocation54_spill] sm:$0xff] }
 0x5a2   : > { %20402 = vmatprep.mubr.msk.f32.mxu0 %vm439_vm0, %v25731_v30  ;;  %v7668_v30 = vld [vmem:[%s29376_s5 + $0xe0] sm:$0xff] }
 0x5a3   : > { %v21803_v19 = vpack.c.bf16 %v7669_v35, %v7668_v30  ;;  %v29867_v30 = vld [vmem:[#allocation56_spill] sm:$0xff]  ;;  %v29868_v35 = vld [vmem:[#allocation57_spill] sm:$0xff] }
 0x5a5   : > { %20403 = vmatmul.mubr.msk.f32.gmra.mrb[34].mxu0 %vm439_vm0, %v25739_v12 }
 0x5a6   : > { %20405 = vmatprep.mubr.msk.f32.mxu0 %vm439_vm0, %v25746_v61 }
 0x5a9   : > { %20406 = vmatmul.mubr.msk.f32.gmra.mrb[36].mxu0 %vm439_vm0, %v25753_v63 }
 0x5aa   : > { %20408 = vmatprep.mubr.msk.f32.mxu0 %vm439_vm0, %v25760_v1 }
 0x5ad   : > { %20409 = vmatmul.mubr.msk.f32.gmra.mrb[38].mxu0 %vm439_vm0, %v25765_v46 }
 0x5ae   : > { %20411 = vmatprep.mubr.msk.f32.mxu0 %vm439_vm0, %v25773_v4 }
 0x5b1   : > { %20412 = vmatmul.mubr.msk.f32.gmra.mrb[40].mxu0 %vm439_vm0, %v25778_v62 }
 0x5b2   : > { %20414 = vmatprep.mubr.msk.f32.mxu0 %vm439_vm0, %v25786_v37 }
 0x5b5   : > { %20415 = vmatmul.mubr.msk.f32.gmra.mrb[42].mxu0 %vm439_vm0, %v25791_v7 }
 0x5b6   : > { %20417 = vmatprep.mubr.msk.f32.mxu0 %vm439_vm0, %v25796_v9 }
 0x5b9   : > { %20418 = vmatmul.mubr.msk.f32.gmra.mrb[44].mxu0 %vm439_vm0, %v25803_v47 }
 0x5ba   : > { %20420 = vmatprep.mubr.msk.f32.mxu0 %vm439_vm0, %v25807_v16 }
 0x5bd   : > { %20421 = vmatmul.mubr.msk.f32.gmra.mrb[46].mxu0 %vm439_vm0, %v25814_v58 }
 0x5be   : > { %20423 = vmatprep.mubr.msk.f32.mxu0 %vm439_vm0, %v25819_v13 }
 0x5c1   : > { %20424 = vmatmul.mubr.msk.f32.gmra.mrb[48].mxu0 %vm439_vm0, %v29852_v23 }
 0x5c2   : > { %20426 = vmatprep.mubr.msk.f32.mxu0 %vm439_vm0, %v29853_v49 }
 0x5c5   : > { %20427 = vmatmul.mubr.msk.f32.gmra.mrb[50].mxu0 %vm439_vm0, %v29854_v6 }
 0x5c6   : > { %20429 = vmatprep.mubr.msk.f32.mxu0 %vm439_vm0, %v29855_v0 }
 0x5c9   : > { %20430 = vmatmul.mubr.msk.f32.gmra.mrb[52].mxu0 %vm439_vm0, %v29856_v43 }
 0x5ca   : > { %20432 = vmatprep.mubr.msk.f32.mxu0 %vm439_vm0, %v26278_v8 }
 0x5cd   : > { %20433 = vmatmul.mubr.msk.f32.gmra.mrb[54].mxu0 %vm439_vm0, %v26282_v10 }
 0x5ce   : > { %20443 = vmatprep.mubr.msk.f32.mxu0 %vm439_vm0, %v26001_v51  ;;  %v29859_v51 = vld [vmem:[#allocation48_spill] sm:$0xff] }
 0x5d1   : > { %20444 = vmatmul.mubr.msk.f32.vlgmr.msra.gmra.mrb[24].mxu0 %vm439_vm0, %v26008_v40  ;;  %v29862_v40 = vld [vmem:[#allocation51_spill] sm:$0xff] }
 0x5d2   : > { %20446 = vmatprep.mubr.msk.f32.mxu0 %vm439_vm0, %v29857_v53  ;;  %21798 = vmatpush3.bf16.msra.mxu0 %v21795_v18  ;;  %v29863_v18 = vld [vmem:[#allocation52_spill] sm:$0xff] }
 0x5d3   : > { %21800 = vmatprep.subr.bf16.mxu0 %v21799_v57 }
 0x5d5   : > { %20447 = vmatmul.mubr.msk.f32.gmra.mrb[26].mxu0 %vm439_vm0, %v29858_v3 }
 0x5d6   : > { %20449 = vmatprep.mubr.msk.f32.mxu0 %vm439_vm0, %v29859_v51  ;;  %21802 = vmatpush3.bf16.msra.mxu0 %v21799_v57  ;;  %v29866_v57 = vld [vmem:[#allocation55_spill] sm:$0xff] }
 0x5d7   : > { %21804 = vmatprep.subr.bf16.mxu0 %v21803_v19 }
 0x5d9   : > { %20450 = vmatmul.mubr.msk.f32.gmra.mrb[28].mxu0 %vm439_vm0, %v29860_v5 }
 0x5da   : > { %20452 = vmatprep.mubr.msk.f32.mxu0 %vm439_vm0, %v29861_v38  ;;  %v29869_v38 = vld [vmem:[#allocation58_spill] sm:$0xff] }
 0x5dd   : > { %20453 = vmatmul.mubr.msk.f32.gmra.mrb[30].mxu0 %vm439_vm0, %v29862_v40  ;;  %v29870_v40 = vld [vmem:[#allocation59_spill] sm:$0xff] }
 0x5de   : > { %20455 = vmatprep.mubr.msk.f32.mxu0 %vm439_vm0, %v29863_v18  ;;  %v29871_v18 = vld [vmem:[#allocation60_spill] sm:$0xff] }
 0x5e1   : > { %20456 = vmatmul.mubr.msk.f32.gmra.mrb[32].mxu0 %vm439_vm0, %v29864_v27  ;;  %v29872_v27 = vld [vmem:[#allocation61_spill] sm:$0xff] }
 0x5e2   : > { %20458 = vmatprep.mubr.msk.f32.mxu0 %vm439_vm0, %v29865_v24  ;;  %v29873_v24 = vld [vmem:[#allocation62_spill] sm:$0xff] }
 0x5e5   : > { %20459 = vmatmul.mubr.msk.f32.gmra.mrb[34].mxu0 %vm439_vm0, %v29866_v57  ;;  %v29874_v57 = vld [vmem:[#allocation63_spill] sm:$0xff] }
 0x5e6   : > { %20461 = vmatprep.mubr.msk.f32.mxu0 %vm439_vm0, %v29867_v30  ;;  %v29875_v30 = vld [vmem:[#allocation64_spill] sm:$0xff] }
 0x5e9   : > { %20462 = vmatmul.mubr.msk.f32.gmra.mrb[36].mxu0 %vm439_vm0, %v29868_v35  ;;  %v29876_v35 = vld [vmem:[#allocation65_spill] sm:$0xff] }
 0x5ea   : > { %20464 = vmatprep.mubr.msk.f32.mxu0 %vm439_vm0, %v29869_v38  ;;  %v29877_v38 = vld [vmem:[#allocation66_spill] sm:$0xff] }
 0x5ed   : > { %20465 = vmatmul.mubr.msk.f32.gmra.mrb[38].mxu0 %vm439_vm0, %v29870_v40  ;;  %v29878_v40 = vld [vmem:[#allocation67_spill] sm:$0xff] }
 0x5ee   : > { %20467 = vmatprep.mubr.msk.f32.mxu0 %vm439_vm0, %v29871_v18  ;;  %v29879_v18 = vld [vmem:[#allocation68_spill] sm:$0xff] }
 0x5f1   : > { %20468 = vmatmul.mubr.msk.f32.gmra.mrb[40].mxu0 %vm439_vm0, %v29872_v27  ;;  %v29880_v27 = vld [vmem:[#allocation69_spill] sm:$0xff] }
 0x5f2   : > { %20470 = vmatprep.mubr.msk.f32.mxu0 %vm439_vm0, %v29873_v24  ;;  %v29881_v24 = vld [vmem:[#allocation70_spill] sm:$0xff] }
 0x5f5   : > { %20471 = vmatmul.mubr.msk.f32.gmra.mrb[42].mxu0 %vm439_vm0, %v29874_v57  ;;  %v29882_v57 = vld [vmem:[#allocation71_spill] sm:$0xff] }
 0x5f6   : > { %20473 = vmatprep.mubr.msk.f32.mxu0 %vm439_vm0, %v29875_v30  ;;  %v29883_v30 = vld [vmem:[#allocation39_spill] sm:$0xff] }
 0x5f9   : > { %20474 = vmatmul.mubr.msk.f32.gmra.mrb[44].mxu0 %vm439_vm0, %v29876_v35  ;;  %v29884_v35 = vld [vmem:[#allocation41_spill] sm:$0xff] }
 0x5fa   : > { %20476 = vmatprep.mubr.msk.f32.mxu0 %vm439_vm0, %v29877_v38  ;;  %v26358_v38 = vld [vmem:[#allocation2 + $0x182] sm:$0xff] }
 0x5fb   : > { %29885 = vst [vmem:[#allocation40_spill] sm:$0xff] %v26358_v38 }
 0x5fd   : > { %20477 = vmatmul.mubr.msk.f32.gmra.mrb[46].mxu0 %vm439_vm0, %v29878_v40 }
 0x5fe   : > { %20479 = vmatprep.mubr.msk.f32.mxu0 %vm439_vm0, %v29879_v18  ;;  %v26362_v18 = vld [vmem:[#allocation2 + $0x18a] sm:$0xff] }
 0x5ff   : > { %29886 = vst [vmem:[#allocation43_spill] sm:$0xff] %v26362_v18 }
 0x601   : > { %20480 = vmatmul.mubr.msk.f32.gmra.mrb[48].mxu0 %vm439_vm0, %v29880_v27 }
 0x602   : > { %20482 = vmatprep.mubr.msk.f32.mxu0 %vm439_vm0, %v29881_v24  ;;  %v7670_v24 = vld [vmem:[%s29376_s5 + $0xf0] sm:$0xff] }
 0x605   : > { %20483 = vmatmul.mubr.msk.f32.gmra.mrb[50].mxu0 %vm439_vm0, %v29882_v57  ;;  %v7671_v57 = vld [vmem:[%s29376_s5 + $0xf8] sm:$0xff] }
 0x606   : > { %20485 = vmatprep.mubr.msk.f32.mxu0 %vm439_vm0, %v29883_v30  ;;  %v8058_v30 = vld [vmem:[%s29376_s5 + $0x108] sm:$0xff] }
 0x609   : > { %20486 = vmatmul.mubr.msk.f32.gmra.mrb[52].mxu0 %vm439_vm0, %v29884_v35  ;;  %v21807_v35 = vpack.c.bf16 %v7671_v57, %v7670_v24 }
 0x60a   : > { %20488 = vmatprep.mubr.msk.f32.mxu0 %vm439_vm0, %v26358_v38  ;;  %v8057_v38 = vld [vmem:[%s29376_s5 + $0x100] sm:$0xff] }
 0x60d   : > { %20489 = vmatmul.mubr.msk.f32.gmra.mrb[54].mxu0 %vm439_vm0, %v26362_v18  ;;  %v21811_v18 = vpack.c.bf16 %v8058_v30, %v8057_v38  ;;  %v9455_v38 = vld [vmem:[%s29378_s7 + $0x40] sm:$0xff] }
 0x60e   : > { %20499 = vmatprep.mubr.msk.f32.mxu0 %vm439_vm0, %v25874_v39  ;;  %v7277_v39 = vld [vmem:[#allocation2 + $0x198] sm:$0xff] }
 0x611   : > { %20500 = vmatmul.mubr.msk.f32.vlgmr.msra.gmra.mrb[24].mxu0 %vm439_vm0, %v25879_v50  ;;  %v7278_v50 = vld [vmem:[#allocation2 + $0x1a0] sm:$0xff] }
 0x612   : > { %20502 = vmatprep.mubr.msk.f32.mxu0 %vm439_vm0, %v25883_v42  ;;  %21806 = vmatpush3.bf16.msra.mxu0 %v21803_v19  ;;  %v8059_v42 = vld [vmem:[%s29376_s5 + $0x110] sm:$0xff] }
 0x613   : > { %21808 = vmatprep.subr.bf16.mxu0 %v21807_v35 }
 0x615   : > { %20503 = vmatmul.mubr.msk.f32.gmra.mrb[26].mxu0 %vm439_vm0, %v25887_v41  ;;  %v8060_v41 = vld [vmem:[%s29376_s5 + $0x118] sm:$0xff] }
 0x616   : > { %20505 = vmatprep.mubr.msk.f32.mxu0 %vm439_vm0, %v25891_v59  ;;  %21810 = vmatpush3.bf16.msra.mxu0 %v21807_v35  ;;  %v7636_v59 = vld [vmem:[#allocation2 + $0x31] sm:$0xff] }
 0x617   : > { %21812 = vmatprep.subr.bf16.mxu0 %v21811_v18 }
 0x619   : > { %20506 = vmatmul.mubr.msk.f32.gmra.mrb[28].mxu0 %vm439_vm0, %v25895_v11  ;;  %v8777_v11 = vld [vmem:[%s29378_s7 + $0x20] sm:$0xff] }
 0x61a   : > { %20508 = vmatprep.mubr.msk.f32.mxu0 %vm439_vm0, %v25899_v45  ;;  %v8778_v45 = vld [vmem:[%s29378_s7 + $0x28] sm:$0xff] }
 0x61d   : > { %20509 = vmatmul.mubr.msk.f32.gmra.mrb[30].mxu0 %vm439_vm0, %v25903_v52  ;;  %v21819_v52 = vpack.c.bf16 %v8778_v45, %v8777_v11 }
 0x61e   : > { %20511 = vmatprep.mubr.msk.f32.mxu0 %vm439_vm0, %v25907_v33  ;;  %v21815_v33 = vpack.c.bf16 %v8060_v41, %v8059_v42 }
 0x61f   : > { %21820 = vmatprep.subr.bf16.mxu1 %v21819_v52 }
 0x620   : > { %21822 = vmatpush3.bf16.msra.mxu1 %v21819_v52 }
 0x621   : > { %20512 = vmatmul.mubr.msk.f32.gmra.mrb[32].mxu0 %vm439_vm0, %v25911_v17  ;;  %v7637_v17 = vld [vmem:[#allocation2 + $0x39] sm:$0xff] }
 0x622   : > { %20514 = vmatprep.mubr.msk.f32.mxu0 %vm439_vm0, %v25915_v48  ;;  %v7638_v48 = vld [vmem:[#allocation2 + $0x49] sm:$0xff] }
 0x625   : > { %20515 = vmatmul.mubr.msk.f32.gmra.mrb[34].mxu0 %vm439_vm0, %v25919_v44  ;;  %v7639_v44 = vld [vmem:[#allocation2 + $0x51] sm:$0xff] }
 0x626   : > { %20517 = vmatprep.mubr.msk.f32.mxu0 %vm439_vm0, %v25923_v25  ;;  %v7640_v25 = vld [vmem:[#allocation2 + $0x61] sm:$0xff] }
 0x629   : > { %20518 = vmatmul.mubr.msk.f32.gmra.mrb[36].mxu0 %vm439_vm0, %v25927_v56  ;;  %v7641_v56 = vld [vmem:[#allocation2 + $0x69] sm:$0xff] }
 0x62a   : > { %20520 = vmatprep.mubr.msk.f32.mxu0 %vm439_vm0, %v25931_v2  ;;  %v7642_v2 = vld [vmem:[#allocation2 + $0x79] sm:$0xff] }
 0x62d   : > { %20521 = vmatmul.mubr.msk.f32.gmra.mrb[38].mxu0 %vm439_vm0, %v25935_v26  ;;  %v7643_v26 = vld [vmem:[#allocation2 + $0x81] sm:$0xff] }
 0x62e   : > { %20523 = vmatprep.mubr.msk.f32.mxu0 %vm439_vm0, %v25939_v22  ;;  %v7644_v22 = vld [vmem:[#allocation2 + $0x91] sm:$0xff] }
 0x631   : > { %20524 = vmatmul.mubr.msk.f32.gmra.mrb[40].mxu0 %vm439_vm0, %v25943_v14  ;;  %v29899_v14 = vld [vmem:[#allocation62_spill] sm:$0xff] }
 0x632   : > { %20526 = vmatprep.mubr.msk.f32.mxu0 %vm439_vm0, %v25947_v55  ;;  %v29900_v55 = vld [vmem:[#allocation63_spill] sm:$0xff] }
 0x635   : > { %20527 = vmatmul.mubr.msk.f32.gmra.mrb[42].mxu0 %vm439_vm0, %v25951_v32  ;;  %v29901_v32 = vld [vmem:[#allocation64_spill] sm:$0xff] }
 0x636   : > { %20529 = vmatprep.mubr.msk.f32.mxu0 %vm439_vm0, %v25955_v31  ;;  %v29902_v31 = vld [vmem:[#allocation65_spill] sm:$0xff] }
 0x639   : > { %20530 = vmatmul.mubr.msk.f32.gmra.mrb[44].mxu0 %vm439_vm0, %v25959_v36  ;;  %v29903_v36 = vld [vmem:[#allocation66_spill] sm:$0xff] }
 0x63a   : > { %20532 = vmatprep.mubr.msk.f32.mxu0 %vm439_vm0, %v25963_v29  ;;  %v29904_v29 = vld [vmem:[#allocation68_spill] sm:$0xff] }
 0x63d   : > { %20533 = vmatmul.mubr.msk.f32.gmra.mrb[46].mxu0 %vm439_vm0, %v25967_v34  ;;  %v29905_v34 = vld [vmem:[#allocation70_spill] sm:$0xff] }
 0x63e   : > { %20535 = vmatprep.mubr.msk.f32.mxu0 %vm439_vm0, %v25971_v20  ;;  %v29906_v20 = vld [vmem:[#allocation71_spill] sm:$0xff] }
 0x641   : > { %20536 = vmatmul.mubr.msk.f32.gmra.mrb[48].mxu0 %vm439_vm0, %v25975_v60  ;;  %v29907_v60 = vld [vmem:[#allocation39_spill] sm:$0xff] }
 0x642   : > { %20538 = vmatprep.mubr.msk.f32.mxu0 %vm439_vm0, %v25979_v54  ;;  %v29908_v54 = vld [vmem:[#allocation41_spill] sm:$0xff] }
 0x645   : > { %20539 = vmatmul.mubr.msk.f32.gmra.mrb[50].mxu0 %vm439_vm0, %v25983_v28  ;;  %v29909_v28 = vld [vmem:[#allocation40_spill] sm:$0xff] }
 0x646   : > { %20541 = vmatprep.mubr.msk.f32.mxu0 %vm439_vm0, %v26198_v15  ;;  %v8055_v15 = vld [vmem:[#allocation2 + $0x19a] sm:$0xff] }
 0x649   : > { %20542 = vmatmul.mubr.msk.f32.gmra.mrb[52].mxu0 %vm439_vm0, %v26202_v21  ;;  %v29910_v21 = vld [vmem:[#allocation43_spill] sm:$0xff] }
 0x64a   : > { %20544 = vmatprep.mubr.msk.f32.mxu0 %vm439_vm0, %v7277_v39 }
 0x64d   : > { %20545 = vmatmul.mubr.msk.f32.gmra.mrb[54].mxu0 %vm439_vm0, %v7278_v50 }
 0x64e   : > { %20555 = vmatprep.mubr.msk.f32.mxu0 %vm439_vm0, %v7636_v59 }
 0x651   : > { %20556 = vmatmul.mubr.msk.f32.vlgmr.msra.gmra.mrb[24].mxu0 %vm439_vm0, %v7637_v17 }
 0x652   : > { %20558 = vmatprep.mubr.msk.f32.mxu0 %vm439_vm0, %v7638_v48  ;;  %21814 = vmatpush3.bf16.msra.mxu0 %v21811_v18 }
 0x653   : > { %21816 = vmatprep.subr.bf16.mxu0 %v21815_v33 }
 0x655   : > { %20559 = vmatmul.mubr.msk.f32.gmra.mrb[26].mxu0 %vm439_vm0, %v7639_v44 }
 0x656   : > { %20561 = vmatprep.mubr.msk.f32.mxu0 %vm439_vm0, %v7640_v25  ;;  %21818 = vmatpush3.bf16.msra.mxu0 %v21815_v33 }
 0x659   : > { %20562 = vmatmul.mubr.msk.f32.gmra.mrb[28].mxu0 %vm439_vm0, %v7641_v56 }
 0x65a   : > { %20564 = vmatprep.mubr.msk.f32.mxu0 %vm439_vm0, %v7642_v2 }
 0x65d   : > { %20565 = vmatmul.mubr.msk.f32.gmra.mrb[30].mxu0 %vm439_vm0, %v7643_v26 }
 0x65e   : > { %20567 = vmatprep.mubr.msk.f32.mxu0 %vm439_vm0, %v7644_v22 }
 0x661   : > { %20568 = vmatmul.mubr.msk.f32.gmra.mrb[32].mxu0 %vm439_vm0, %v25739_v12  ;;  %v7666_v12 = vld [vmem:[#allocation2 + $0x199] sm:$0xff] }
 0x662   : > { %20570 = vmatprep.mubr.msk.f32.mxu0 %vm439_vm0, %v25746_v61  ;;  %v7667_v61 = vld [vmem:[#allocation2 + $0x1a1] sm:$0xff] }
 0x665   : > { %20571 = vmatmul.mubr.msk.f32.gmra.mrb[34].mxu0 %vm439_vm0, %v25753_v63  ;;  %v29887_v63 = vld [vmem:[#allocation50_spill] sm:$0xff] }
 0x666   : > { %20573 = vmatprep.mubr.msk.f32.mxu0 %vm439_vm0, %v25760_v1  ;;  %v29888_v1 = vld [vmem:[#allocation51_spill] sm:$0xff] }
 0x669   : > { %20574 = vmatmul.mubr.msk.f32.gmra.mrb[36].mxu0 %vm439_vm0, %v25765_v46  ;;  %v29889_v46 = vld [vmem:[#allocation52_spill] sm:$0xff] }
 0x66a   : > { %20576 = vmatprep.mubr.msk.f32.mxu0 %vm439_vm0, %v25773_v4  ;;  %v29890_v4 = vld [vmem:[#allocation53_spill] sm:$0xff] }
 0x66d   : > { %20577 = vmatmul.mubr.msk.f32.gmra.mrb[38].mxu0 %vm439_vm0, %v25778_v62  ;;  %v29891_v62 = vld [vmem:[#allocation54_spill] sm:$0xff] }
 0x66e   : > { %20579 = vmatprep.mubr.msk.f32.mxu0 %vm439_vm0, %v25786_v37  ;;  %v29892_v37 = vld [vmem:[#allocation55_spill] sm:$0xff] }
 0x671   : > { %20580 = vmatmul.mubr.msk.f32.gmra.mrb[40].mxu0 %vm439_vm0, %v25791_v7  ;;  %v29893_v7 = vld [vmem:[#allocation56_spill] sm:$0xff] }
 0x672   : > { %20582 = vmatprep.mubr.msk.f32.mxu0 %vm439_vm0, %v25796_v9  ;;  %v29894_v9 = vld [vmem:[#allocation57_spill] sm:$0xff] }
 0x675   : > { %20583 = vmatmul.mubr.msk.f32.gmra.mrb[42].mxu0 %vm439_vm0, %v25803_v47  ;;  %v29895_v47 = vld [vmem:[#allocation58_spill] sm:$0xff] }
 0x676   : > { %20585 = vmatprep.mubr.msk.f32.mxu0 %vm439_vm0, %v25807_v16  ;;  %v29896_v16 = vld [vmem:[#allocation59_spill] sm:$0xff] }
 0x679   : > { %20586 = vmatmul.mubr.msk.f32.gmra.mrb[44].mxu0 %vm439_vm0, %v25814_v58  ;;  %v29897_v58 = vld [vmem:[#allocation60_spill] sm:$0xff] }
 0x67a   : > { %20588 = vmatprep.mubr.msk.f32.mxu0 %vm439_vm0, %v25819_v13  ;;  %v29898_v13 = vld [vmem:[#allocation61_spill] sm:$0xff] }
 0x67d   : > { %20589 = vmatmul.mubr.msk.f32.gmra.mrb[46].mxu0 %vm439_vm0, %v29852_v23  ;;  %v8056_v23 = vld [vmem:[#allocation2 + $0x1a2] sm:$0xff] }
 0x67e   : > { %20591 = vmatprep.mubr.msk.f32.mxu0 %vm439_vm0, %v29853_v49  ;;  %v8779_v49 = vld [vmem:[%s29378_s7 + $0x30] sm:$0xff] }
 0x681   : > { %20592 = vmatmul.mubr.msk.f32.gmra.mrb[48].mxu0 %vm439_vm0, %v29854_v6  ;;  %v8780_v6 = vld [vmem:[%s29378_s7 + $0x38] sm:$0xff] }
 0x682   : > { %20594 = vmatprep.mubr.msk.f32.mxu0 %vm439_vm0, %v29855_v0  ;;  %v21823_v0 = vpack.c.bf16 %v8780_v6, %v8779_v49 }
 0x684   : > { %21824 = vmatprep.subr.bf16.mxu1 %v21823_v0 }
 0x685   : > { %20595 = vmatmul.mubr.msk.f32.gmra.mrb[50].mxu0 %vm439_vm0, %v29856_v43  ;;  %21826 = vmatpush3.bf16.msra.mxu1 %v21823_v0  ;;  %v8745_v43 = vld [vmem:[#allocation2 + $0x1] sm:$0xff] }
 0x686   : > { %20597 = vmatprep.mubr.msk.f32.mxu0 %vm439_vm0, %v26278_v8  ;;  %20667 = vmatprep.mubr.msk.f32.mxu1 %vm439_vm0, %v8745_v43  ;;  %v8746_v8 = vld [vmem:[#allocation2 + $0x9] sm:$0xff] }
 0x688   : > { %20668 = vmatmul.mubr.msk.f32.vlgmr.msra.gmra.mrb[40].mxu1 %vm439_vm0, %v8746_v8 }
 0x689   : > { %20598 = vmatmul.mubr.msk.f32.gmra.mrb[52].mxu0 %vm439_vm0, %v26282_v10  ;;  %v8741_v10 = vld [vmem:[%s29378_s7] sm:$0xff] }
 0x68a   : > { %20600 = vmatprep.mubr.msk.f32.mxu0 %vm439_vm0, %v7666_v12 }
 0x68d   : > { %20601 = vmatmul.mubr.msk.f32.gmra.mrb[54].mxu0 %vm439_vm0, %v7667_v61 }
 0x68e   : > { %20611 = vmatprep.mubr.msk.f32.mxu0 %vm439_vm0, %v29857_v53  ;;  %v8742_v53 = vld [vmem:[%s29378_s7 + $0x8] sm:$0xff] }
 0x68f   : > { %v21827_v19 = vpack.c.bf16 %v8742_v53, %v8741_v10 }
 0x691   : > { %20612 = vmatmul.mubr.msk.f32.vlgmr.msra.gmra.mrb[24].mxu0 %vm439_vm0, %v29858_v3  ;;  %21828 = vmatprep.subr.bf16.mxu1 %v21827_v19  ;;  %v8743_v3 = vld [vmem:[%s29378_s7 + $0x10] sm:$0xff] }
 0x692   : > { %20614 = vmatprep.mubr.msk.f32.mxu0 %vm439_vm0, %v29859_v51  ;;  %21830 = vmatpush3.bf16.msra.mxu1 %v21827_v19  ;;  %v8744_v51 = vld [vmem:[%s29378_s7 + $0x18] sm:$0xff] }
 0x695   : > { %20615 = vmatmul.mubr.msk.f32.gmra.mrb[26].mxu0 %vm439_vm0, %v29860_v5  ;;  %v21831_v5 = vpack.c.bf16 %v8744_v51, %v8743_v3 }
 0x696   : > { %20617 = vmatprep.mubr.msk.f32.mxu0 %vm439_vm0, %v29887_v63 }
 0x697   : > { %21832 = vmatprep.subr.bf16.mxu1 %v21831_v5 }
 0x698   : > { %21834 = vmatpush3.bf16.msra.mxu1 %v21831_v5 }
 0x699   : > { %20618 = vmatmul.mubr.msk.f32.gmra.mrb[28].mxu0 %vm439_vm0, %v29888_v1 }
 0x69a   : > { %20620 = vmatprep.mubr.msk.f32.mxu0 %vm439_vm0, %v29889_v46 }
 0x69d   : > { %20621 = vmatmul.mubr.msk.f32.gmra.mrb[30].mxu0 %vm439_vm0, %v29890_v4 }
 0x69e   : > { %20623 = vmatprep.mubr.msk.f32.mxu0 %vm439_vm0, %v29891_v62 }
 0x6a1   : > { %20624 = vmatmul.mubr.msk.f32.gmra.mrb[32].mxu0 %vm439_vm0, %v29892_v37 }
 0x6a2   : > { %20626 = vmatprep.mubr.msk.f32.mxu0 %vm439_vm0, %v29893_v7 }
 0x6a5   : > { %20627 = vmatmul.mubr.msk.f32.gmra.mrb[34].mxu0 %vm439_vm0, %v29894_v9 }
 0x6a6   : > { %20629 = vmatprep.mubr.msk.f32.mxu0 %vm439_vm0, %v29895_v47 }
 0x6a9   : > { %20630 = vmatmul.mubr.msk.f32.gmra.mrb[36].mxu0 %vm439_vm0, %v29896_v16 }
 0x6aa   : > { %20632 = vmatprep.mubr.msk.f32.mxu0 %vm439_vm0, %v29897_v58 }
 0x6ad   : > { %20633 = vmatmul.mubr.msk.f32.gmra.mrb[38].mxu0 %vm439_vm0, %v29898_v13 }
 0x6ae   : > { %20635 = vmatprep.mubr.msk.f32.mxu0 %vm439_vm0, %v29899_v14 }
 0x6b1   : > { %20636 = vmatmul.mubr.msk.f32.gmra.mrb[40].mxu0 %vm439_vm0, %v29900_v55 }
 0x6b2   : > { %20638 = vmatprep.mubr.msk.f32.mxu0 %vm439_vm0, %v29901_v32 }
 0x6b5   : > { %20639 = vmatmul.mubr.msk.f32.gmra.mrb[42].mxu0 %vm439_vm0, %v29902_v31 }
 0x6b6   : > { %20641 = vmatprep.mubr.msk.f32.mxu0 %vm439_vm0, %v29903_v36 }
 0x6b9   : > { %20642 = vmatmul.mubr.msk.f32.gmra.mrb[44].mxu0 %vm439_vm0, %v29878_v40  ;;  %v9456_v40 = vld [vmem:[%s29378_s7 + $0x48] sm:$0xff] }
 0x6ba   : > { %20644 = vmatprep.mubr.msk.f32.mxu0 %vm439_vm0, %v29904_v29  ;;  %v26593_v18 = vpack.c.bf16 %v9456_v40, %v9455_v38 }
 0x6bc   : > { %21836 = vmatprep.subr.bf16.mxu1 %v26593_v18 }
 0x6bd   : > { %20645 = vmatmul.mubr.msk.f32.gmra.mrb[46].mxu0 %vm439_vm0, %v29880_v27  ;;  %v26599_v27 = vld [vmem:[%s29377_s6] ss:$0 sm:$0xff] }
 0x6be   : > { %20647 = vmatprep.mubr.msk.f32.mxu0 %vm439_vm0, %v29905_v34 }
 0x6c1   : > { %20648 = vmatmul.mubr.msk.f32.gmra.mrb[48].mxu0 %vm439_vm0, %v29906_v20 }
 0x6c2   : > { %20650 = vmatprep.mubr.msk.f32.mxu0 %vm439_vm0, %v29907_v60 }
 0x6c5   : > { %20651 = vmatmul.mubr.msk.f32.gmra.mrb[50].mxu0 %vm439_vm0, %v29908_v54 }
 0x6c6   : > { %20653 = vmatprep.mubr.msk.f32.mxu0 %vm439_vm0, %v29909_v28 }
 0x6c9   : > { %20654 = vmatmul.mubr.msk.f32.gmra.mrb[52].mxu0 %vm439_vm0, %v29910_v21 }
 0x6ca   : > { %20656 = vmatprep.mubr.msk.f32.mxu0 %vm439_vm0, %v8055_v15 }
 0x6cd   : > { %20657 = vmatmul.mubr.msk.f32.gmra.mrb[54].mxu0 %vm439_vm0, %v8056_v23 }
 0x764   : > { %v20613_v24 = vpop.f32.mrb[24].mxu0 }
 0x765   : > { %v26602_v57 = vadd.f32 %v20613_v24, %v26599_v27  ;;  %v8223_v30 = vpop.f32.mrb[25].mxu0 }
 0x766   : > { %v26605_v35 = vadd.f32 %v26599_v27, %v8223_v30 }
 0x767   : > { %v17519_v39 = vmul.f32 -1.442695, %v26602_v57 }
 0x768   : > { %v17518_v50 = vmul.f32 -1.442695, %v26605_v35  ;;  %v20616_v42 = vpop.f32.mrb[26].mxu0 }
 0x769   : > { %23486 = vpow2.f32 %v17519_v39  ;;  %v26610_v41 = vadd.f32 %v20616_v42, %v26599_v27  ;;  %v8233_v59 = vpop.f32.mrb[27].mxu0 }
 0x76a   : > { %23488 = vpow2.f32 %v17518_v50  ;;  %v26613_v11 = vadd.f32 %v26599_v27, %v8233_v59 }
 0x76b   : > { %v17521_v45 = vmul.f32 -1.442695, %v26610_v41 }
 0x76c   : > { %v17520_v52 = vmul.f32 -1.442695, %v26613_v11  ;;  %v20619_v33 = vpop.f32.mrb[28].mxu0 }
 0x76d   : > { %23490 = vpow2.f32 %v17521_v45  ;;  %v26618_v17 = vadd.f32 %v20619_v33, %v26599_v27  ;;  %v8243_v48 = vpop.f32.mrb[29].mxu0 }
 0x76e   : > { %23492 = vpow2.f32 %v17520_v52  ;;  %v26621_v44 = vadd.f32 %v26599_v27, %v8243_v48 }
 0x76f   : > { %v17523_v25 = vmul.f32 -1.442695, %v26618_v17 }
 0x770   : > { %v17522_v56 = vmul.f32 -1.442695, %v26621_v44  ;;  %v20622_v2 = vpop.f32.mrb[30].mxu0 }
 0x771   : > { %23494 = vpow2.f32 %v17523_v25  ;;  %v26626_v26 = vadd.f32 %v20622_v2, %v26599_v27  ;;  %v8253_v22 = vpop.f32.mrb[31].mxu0 }
 0x772   : > { %23496 = vpow2.f32 %v17522_v56  ;;  %v26629_v12 = vadd.f32 %v26599_v27, %v8253_v22 }
 0x773   : > { %v23487_v61 = vpop.eup %23486  ;;  %v17525_v63 = vmul.f32 -1.442695, %v26626_v26 }
 0x774   : > { %v23489_v1 = vpop.eup %23488  ;;  %v8550_v46 = vadd.f32 1.0, %v23487_v61  ;;  %v17524_v4 = vmul.f32 -1.442695, %v26629_v12  ;;  %v20625_v62 = vpop.f32.mrb[32].mxu0 }
 0x775   : > { %v8549_v37 = vadd.f32 1.0, %v23489_v1  ;;  %23498 = vpow2.f32 %v17525_v63  ;;  %v26634_v7 = vadd.f32 %v20625_v62, %v26599_v27  ;;  %v8263_v9 = vpop.f32.mrb[33].mxu0 }
 0x776   : > { %23500 = vrcp.f32 %v8550_v46  ;;  %v26637_v47 = vadd.f32 %v26599_v27, %v8263_v9 }
 0x777   : > { %v23491_v16 = vpop.eup %23490  ;;  %23502 = vrcp.f32 %v8549_v37  ;;  %v17527_v58 = vmul.f32 -1.442695, %v26634_v7 }
 0x778   : > { %v23493_v13 = vpop.eup %23492  ;;  %v8552_v14 = vadd.f32 1.0, %v23491_v16  ;;  %23504 = vpow2.f32 %v17524_v4  ;;  %v17526_v55 = vmul.f32 -1.442695, %v26637_v47  ;;  %v20628_v32 = vpop.f32.mrb[34].mxu0 }
 0x779   : > { %v8551_v31 = vadd.f32 1.0, %v23493_v13  ;;  %23506 = vpow2.f32 %v17527_v58  ;;  %v26642_v36 = vadd.f32 %v20628_v32, %v26599_v27  ;;  %v8273_v29 = vpop.f32.mrb[35].mxu0 }
 0x77a   : > { %23508 = vrcp.f32 %v8552_v14  ;;  %v26645_v34 = vadd.f32 %v26599_v27, %v8273_v29 }
 0x77b   : > { %v23495_v20 = vpop.eup %23494  ;;  %23510 = vrcp.f32 %v8551_v31  ;;  %v17529_v60 = vmul.f32 -1.442695, %v26642_v36 }
 0x77c   : > { %v23497_v54 = vpop.eup %23496  ;;  %v8554_v28 = vadd.f32 1.0, %v23495_v20  ;;  %23512 = vpow2.f32 %v17526_v55  ;;  %v17528_v15 = vmul.f32 -1.442695, %v26645_v34  ;;  %v20631_v21 = vpop.f32.mrb[36].mxu0 }
 0x77d   : > { %v8553_v23 = vadd.f32 1.0, %v23497_v54  ;;  %23514 = vpow2.f32 %v17529_v60  ;;  %v26650_v49 = vadd.f32 %v20631_v21, %v26599_v27  ;;  %v8283_v6 = vpop.f32.mrb[37].mxu0  ;;  %v9458_v21 = vld [vmem:[%s29378_s7 + $0x58] sm:$0xff] }
 0x77e   : > { %23516 = vrcp.f32 %v8554_v28  ;;  %v26653_v0 = vadd.f32 %v26599_v27, %v8283_v6 }
 0x77f   : > { %v23499_v43 = vpop.eup %23498  ;;  %23518 = vrcp.f32 %v8553_v23  ;;  %v17531_v8 = vmul.f32 -1.442695, %v26650_v49 }
 0x780   : > { %v23501_v10 = vpop.eup %23500  ;;  %v8556_v53 = vadd.f32 1.0, %v23499_v43  ;;  %23520 = vpow2.f32 %v17528_v15  ;;  %v17530_v19 = vmul.f32 -1.442695, %v26653_v0  ;;  %v20634_v3 = vpop.f32.mrb[38].mxu0 }
 0x781   : > { %v23503_v51 = vpop.eup %23502  ;;  %v8646_v5 = vmul.f32 %v23501_v10, %v26602_v57  ;;  %23522 = vpow2.f32 %v17531_v8  ;;  %v26659_v38 = vadd.f32 %v20634_v3, %v26599_v27  ;;  %v8293_v40 = vpop.f32.mrb[39].mxu0 }
 0x782   : > { %v23505_v24 = vpop.eup %23504  ;;  %v8645_v30 = vmul.f32 %v23503_v51, %v26605_v35  ;;  %23524 = vrcp.f32 %v8556_v53  ;;  %v26663_v39 = vadd.f32 %v26599_v27, %v8293_v40 }
 0x783   : > { %v23507_v50 = vpop.eup %23506  ;;  %8678 = vst.msk [vmem:[#allocation2 + $0x21] sm:$0xff] %vm439_vm0, %v8646_v5  ;;  %v8555_v42 = vadd.f32 1.0, %v23505_v24  ;;  %23526 = vpow2.f32 %v17530_v19  ;;  %v17533_v59 = vmul.f32 -1.442695, %v26659_v38 }
 0x784   : > { %v23509_v57 = vpop.eup %23508  ;;  %8677 = vst.msk [vmem:[#allocation2 + $0x19] sm:$0xff] %vm439_vm0, %v8645_v30  ;;  %v8558_v45 = vadd.f32 1.0, %v23507_v50  ;;  %v17532_v52 = vmul.f32 -1.442695, %v26663_v39  ;;  %v20637_v33 = vpop.f32.mrb[40].mxu0  ;;  %v23068_v48 = vpack.i.bf16 %v8646_v5, %v8645_v30 }
 0x785   : > { %v23511_v35 = vpop.eup %23510  ;;  %v26670_v25 = vmul.f32 %v23509_v57, %v26610_v41  ;;  %23528 = vrcp.f32 %v8555_v42  ;;  %v26673_v56 = vadd.f32 %v20637_v33, %v26599_v27  ;;  %v8303_v2 = vpop.f32.mrb[41].mxu0 }
 0x786   : > { %v23513_v22 = vpop.eup %23512  ;;  %v26676_v61 = vmul.f32 %v23511_v35, %v26613_v11  ;;  %23530 = vrcp.f32 %v8558_v45  ;;  %v26679_v63 = vadd.f32 %v26599_v27, %v8303_v2  ;;  %23069 = vrot.lane.b32.xlu1 %v23068_v48, %s29549_s24 }
 0x787   : > { %29911 = vst [vmem:[#allocation42_spill] sm:$0xff] %v26670_v25  ;;  %v23515_v1 = vpop.eup %23514  ;;  %8680 = vst.msk [vmem:[#allocation2 + $0x39] sm:$0xff] %vm439_vm0, %v26670_v25  ;;  %v8557_v41 = vadd.f32 1.0, %v23513_v22  ;;  %23532 = vpow2.f32 %v17533_v59  ;;  %v17535_v46 = vmul.f32 -1.442695, %v26673_v56  ;;  %v9847_v25 = vld [vmem:[%s29378_s7 + $0x78] sm:$0xff] }
 0x788   : > { %29912 = vst [vmem:[#allocation44_spill] sm:$0xff] %v26676_v61  ;;  %v23517_v4 = vpop.eup %23516  ;;  %8679 = vst.msk [vmem:[#allocation2 + $0x31] sm:$0xff] %vm439_vm0, %v26676_v61  ;;  %v8560_v11 = vadd.f32 1.0, %v23515_v1  ;;  %23534 = vpow2.f32 %v17532_v52  ;;  %v17534_v62 = vmul.f32 -1.442695, %v26679_v63  ;;  %v20640_v37 = vpop.f32.mrb[42].mxu0 }
 0x789   : > { %v23519_v16 = vpop.eup %23518  ;;  %v26691_v58 = vmul.f32 %v23517_v4, %v26618_v17  ;;  %23536 = vrcp.f32 %v8557_v41  ;;  %v26694_v13 = vadd.f32 %v20640_v37, %v26599_v27  ;;  %v8313_v14 = vpop.f32.mrb[43].mxu0  ;;  %v9846_v61 = vld [vmem:[%s29378_s7 + $0x70] sm:$0xff] }
 0x78a   : > { %v23521_v55 = vpop.eup %23520  ;;  %v26697_v32 = vmul.f32 %v23519_v16, %v26621_v44  ;;  %23538 = vrcp.f32 %v8560_v11  ;;  %v26700_v31 = vadd.f32 %v26599_v27, %v8313_v14  ;;  %v26711_v15 = vld [vmem:[#allocation2 + $0x21] sm:$0xff] }
 0x78b   : > { %29913 = vst [vmem:[#allocation45_spill] sm:$0xff] %v26691_v58  ;;  %v23523_v29 = vpop.eup %23522  ;;  %8682 = vst.msk [vmem:[#allocation2 + $0x51] sm:$0xff] %vm439_vm0, %v26691_v58  ;;  %v8559_v20 = vadd.f32 1.0, %v23521_v55  ;;  %23540 = vpow2.f32 %v17535_v46  ;;  %v17537_v17 = vmul.f32 -1.442695, %v26694_v13  ;;  %v26705_v60 = vld [vmem:[#allocation2 + $0x19] sm:$0xff] }
 0x78c   : > { %29914 = vst [vmem:[#allocation46_spill] sm:$0xff] %v26697_v32  ;;  %v23525_v54 = vpop.eup %23524  ;;  %8681 = vst.msk [vmem:[#allocation2 + $0x49] sm:$0xff] %vm439_vm0, %v26697_v32  ;;  %v8562_v44 = vadd.f32 1.0, %v23523_v29  ;;  %23542 = vpow2.f32 %v17534_v62  ;;  %v20643_v28 = vpop.f32.mrb[44].mxu0  ;;  %20670 = vmatprep.mubr.msk.f32.mxu1 %vm439_vm0, %v26705_v60  ;;  %v17536_v43 = vmul.f32 -1.442695, %v26700_v31 }
 0x78d   : > { %v23527_v23 = vpop.eup %23526  ;;  %v26716_v6 = vmul.f32 %v23525_v54, %v26626_v26  ;;  %23544 = vrcp.f32 %v8559_v20  ;;  %v26720_v8 = vadd.f32 %v20643_v28, %v26599_v27  ;;  %v8323_v10 = vpop.f32.mrb[45].mxu0  ;;  %20671 = vmatmul.mubr.msk.f32.gmra.mrb[42].mxu1 %vm439_vm0, %v26711_v15  ;;  %v9423_v32 = vld [vmem:[#allocation2 + $0x2] sm:$0xff] }
 0x78e   : > { %23546 = vrcp.f32 %v8562_v44  ;;  %v8561_v53 = vadd.f32 1.0, %v23527_v23  ;;  %v26725_v19 = vadd.f32 %v26599_v27, %v8323_v10  ;;  %v26738_v50 = vld [vmem:[#allocation2 + $0x39] sm:$0xff] }
 0x78f   : > { %29915 = vst [vmem:[#allocation47_spill] sm:$0xff] %v26716_v6  ;;  %v23529_v3 = vpop.eup %23528  ;;  %8684 = vst.msk [vmem:[#allocation2 + $0x69] sm:$0xff] %vm439_vm0, %v26716_v6  ;;  %23548 = vpow2.f32 %v17537_v17  ;;  %v17539_v26 = vmul.f32 -1.442695, %v26720_v8  ;;  %v26730_v51 = vld [vmem:[#allocation2 + $0x31] sm:$0xff] }
 0x790   : > { %v23531_v5 = vpop.eup %23530  ;;  %v26733_v40 = vmul.f32 %v23529_v3, %v26629_v12  ;;  %23550 = vrcp.f32 %v8561_v53  ;;  %v17538_v24 = vmul.f32 -1.442695, %v26725_v19  ;;  %v20646_v30 = vpop.f32.mrb[46].mxu0  ;;  %20673 = vmatprep.mubr.msk.f32.mxu1 %vm439_vm0, %v26730_v51 }
 0x791   : > { %v23533_v42 = vpop.eup %23532  ;;  %v26741_v59 = vmul.f32 %v23531_v5, %v26634_v7  ;;  %23552 = vpow2.f32 %v17536_v43  ;;  %v26744_v57 = vadd.f32 %v20646_v30, %v26599_v27  ;;  %v8333_v45 = vpop.f32.mrb[47].mxu0  ;;  %20674 = vmatmul.mubr.msk.f32.gmra.mrb[44].mxu1 %vm439_vm0, %v26738_v50  ;;  %v9457_v7 = vld [vmem:[%s29378_s7 + $0x50] sm:$0xff] }
 0x792   : > { %29916 = vst [vmem:[#allocation48_spill] sm:$0xff] %v26733_v40  ;;  %v23535_v12 = vpop.eup %23534  ;;  %8683 = vst.msk [vmem:[#allocation2 + $0x61] sm:$0xff] %vm439_vm0, %v26733_v40  ;;  %v8564_v52 = vadd.f32 1.0, %v23533_v42  ;;  %23554 = vpow2.f32 %v17539_v26  ;;  %v26751_v33 = vadd.f32 %v26599_v27, %v8333_v45  ;;  %v26766_v11 = vld [vmem:[#allocation2 + $0x51] sm:$0xff]  ;;  %v21839_v9 = vpack.c.bf16 %v9458_v21, %v9457_v7  ;;  %v27048_v21 = vld [vmem:[#allocation2 + $0x20] sm:$0xff] }
 0x793   : > { %29917 = vst [vmem:[#allocation49_spill] sm:$0xff] %v26741_v59  ;;  %v23537_v48 = vpop.eup %23536  ;;  %8686 = vst.msk [vmem:[#allocation2 + $0x81] sm:$0xff] %vm439_vm0, %v26741_v59  ;;  %v8563_v35 = vadd.f32 1.0, %v23535_v12  ;;  %23556 = vpow2.f32 %v17538_v24  ;;  %v17541_v2 = vmul.f32 -1.442695, %v26744_v57  ;;  %v26758_v22 = vld [vmem:[#allocation2 + $0x49] sm:$0xff] }
 0x794   : > { %v23539_v1 = vpop.eup %23538  ;;  %v26761_v41 = vmul.f32 %v23537_v48, %v26637_v47  ;;  %23558 = vrcp.f32 %v8564_v52  ;;  %v17540_v46 = vmul.f32 -1.442695, %v26751_v33  ;;  %v20649_v4 = vpop.f32.mrb[48].mxu0  ;;  %20676 = vmatprep.mubr.msk.f32.mxu1 %vm439_vm0, %v26758_v22  ;;  %v27052_v7 = vld [vmem:[#allocation2 + $0x30] sm:$0xff] }
 0x795   : > { %v23541_v62 = vpop.eup %23540  ;;  %v26769_v37 = vmul.f32 %v23539_v1, %v26642_v36  ;;  %23560 = vrcp.f32 %v8563_v35  ;;  %v26772_v16 = vadd.f32 %v20649_v4, %v26599_v27  ;;  %v8343_v14 = vpop.f32.mrb[49].mxu0  ;;  %20677 = vmatmul.mubr.msk.f32.gmra.mrb[46].mxu1 %vm439_vm0, %v26766_v11 }
 0x796   : > { %29918 = vst [vmem:[#allocation67_spill] sm:$0xff] %v26761_v41  ;;  %v23543_v47 = vpop.eup %23542  ;;  %8685 = vst.msk [vmem:[#allocation2 + $0x79] sm:$0xff] %vm439_vm0, %v26761_v41  ;;  %v8566_v55 = vadd.f32 1.0, %v23541_v62  ;;  %23562 = vpow2.f32 %v17541_v2  ;;  %v26779_v29 = vadd.f32 %v26599_v27, %v8343_v14 }
 0x797   : > { %29919 = vst [vmem:[#allocation69_spill] sm:$0xff] %v26769_v37  ;;  %v23545_v20 = vpop.eup %23544  ;;  %8688 = vst.msk [vmem:[#allocation2 + $0x99] sm:$0xff] %vm439_vm0, %v26769_v37  ;;  %v8565_v17 = vadd.f32 1.0, %v23543_v47  ;;  %23564 = vpow2.f32 %v17540_v46  ;;  %v17543_v54 = vmul.f32 -1.442695, %v26772_v16 }
 0x798   : > { %v23547_v44 = vpop.eup %23546  ;;  %v26787_v28 = vmul.f32 %v23545_v20, %v26645_v34  ;;  %23566 = vrcp.f32 %v8566_v55  ;;  %v17542_v23 = vmul.f32 -1.442695, %v26779_v29  ;;  %v20652_v43 = vpop.f32.mrb[50].mxu0 }
 0x799   : > { %v23549_v10 = vpop.eup %23548  ;;  %v26791_v53 = vmul.f32 %v23547_v44, %v26650_v49  ;;  %23568 = vrcp.f32 %v8565_v17  ;;  %v26794_v3 = vadd.f32 %v20652_v43, %v26599_v27  ;;  %v26796_v26 = vld [vmem:[#allocation2 + $0x61] sm:$0xff]  ;;  %v8353_v5 = vpop.f32.mrb[51].mxu0  ;;  %v26805_v49 = vld [vmem:[#allocation2 + $0x69] sm:$0xff] }
 0x79a   : > { %29920 = vst [vmem:[#allocation50_spill] sm:$0xff] %v26787_v28  ;;  %v23551_v24 = vpop.eup %23550  ;;  %8687 = vst.msk [vmem:[#allocation2 + $0x91] sm:$0xff] %vm439_vm0, %v26787_v28  ;;  %v8568_v34 = vadd.f32 1.0, %v23549_v10  ;;  %23570 = vpow2.f32 %v17543_v54  ;;  %20679 = vmatprep.mubr.msk.f32.mxu1 %vm439_vm0, %v26796_v26  ;;  %v26803_v30 = vadd.f32 %v26599_v27, %v8353_v5  ;;  %v26832_v54 = vld [vmem:[#allocation2 + $0x81] sm:$0xff] }
 0x79b   : > { %29921 = vst [vmem:[#allocation51_spill] sm:$0xff] %v26791_v53  ;;  %v23553_v45 = vpop.eup %23552  ;;  %8690 = vst.msk [vmem:[#allocation2 + $0xb1] sm:$0xff] %vm439_vm0, %v26791_v53  ;;  %v26812_v12 = vmul.f32 %v23551_v24, %v26653_v0  ;;  %23572 = vpow2.f32 %v17542_v23  ;;  %v17545_v52 = vmul.f32 -1.442695, %v26794_v3  ;;  %20680 = vmatmul.mubr.msk.f32.gmra.mrb[48].mxu1 %vm439_vm0, %v26805_v49 }
 0x79c   : > { %v23555_v48 = vpop.eup %23554  ;;  %23574 = vrcp.f32 %v8568_v34  ;;  %v8567_v35 = vadd.f32 1.0, %v23553_v45  ;;  %v17544_v2 = vmul.f32 -1.442695, %v26803_v30  ;;  %v20655_v1 = vpop.f32.mrb[52].mxu0 }
 0x79d   : > { %29922 = vst [vmem:[#allocation52_spill] sm:$0xff] %v26812_v12  ;;  %v23557_v46 = vpop.eup %23556  ;;  %8689 = vst.msk [vmem:[#allocation2 + $0xa9] sm:$0xff] %vm439_vm0, %v26812_v12  ;;  %v8570_v4 = vadd.f32 1.0, %v23555_v48  ;;  %23576 = vpow2.f32 %v17545_v52  ;;  %v26821_v0 = vadd.f32 %v20655_v1, %v26599_v27  ;;  %v26823_v62 = vld [vmem:[#allocation2 + $0x79] sm:$0xff]  ;;  %v8363_v14 = vpop.f32.mrb[53].mxu0 }
 0x79e   : > { %v23559_v55 = vpop.eup %23558  ;;  %23578 = vrcp.f32 %v8567_v35  ;;  %v8569_v20 = vadd.f32 1.0, %v23557_v46  ;;  %20682 = vmatprep.mubr.msk.f32.mxu1 %vm439_vm0, %v26823_v62  ;;  %v26830_v17 = vadd.f32 %v26599_v27, %v8363_v14 }
 0x79f   : > { %v23561_v44 = vpop.eup %23560  ;;  %v26835_v23 = vmul.f32 %v23559_v55, %v26659_v38  ;;  %23580 = vrcp.f32 %v8570_v4  ;;  %v17547_v43 = vmul.f32 -1.442695, %v26821_v0  ;;  %20683 = vmatmul.mubr.msk.f32.gmra.mrb[50].mxu1 %vm439_vm0, %v26832_v54 }
 0x7a0   : > { %v23563_v10 = vpop.eup %23562  ;;  %v26841_v5 = vmul.f32 %v23561_v44, %v26663_v39  ;;  %23582 = vrcp.f32 %v8569_v20  ;;  %v20658_v24 = vpop.f32.mrb[54].mxu0  ;;  %v17546_v38 = vmul.f32 -1.442695, %v26830_v17 }
 0x7a1   : > { %29923 = vst [vmem:[#allocation53_spill] sm:$0xff] %v26835_v23  ;;  %v23565_v34 = vpop.eup %23564  ;;  %8692 = vst.msk [vmem:[#allocation2 + $0xc9] sm:$0xff] %vm439_vm0, %v26835_v23  ;;  %v8572_v45 = vadd.f32 1.0, %v23563_v10  ;;  %23584 = vpow2.f32 %v17544_v2  ;;  %v26847_v52 = vadd.f32 %v20658_v24, %v26599_v27  ;;  %v26849_v48 = vld [vmem:[#allocation2 + $0x91] sm:$0xff]  ;;  %v8373_v35 = vpop.f32.mrb[55].mxu0  ;;  %v26858_v2 = vld [vmem:[#allocation2 + $0x99] sm:$0xff] }
 0x7a2   : > { %29924 = vst [vmem:[#allocation54_spill] sm:$0xff] %v26841_v5  ;;  %v23567_v1 = vpop.eup %23566  ;;  %8691 = vst.msk [vmem:[#allocation2 + $0xc1] sm:$0xff] %vm439_vm0, %v26841_v5  ;;  %v8571_v39 = vadd.f32 1.0, %v23565_v34  ;;  %23586 = vpow2.f32 %v17547_v43  ;;  %20685 = vmatprep.mubr.msk.f32.mxu1 %vm439_vm0, %v26849_v48  ;;  %v26856_v46 = vadd.f32 %v26599_v27, %v8373_v35  ;;  %v26874_v35 = vld [vmem:[#allocation2 + $0xb1] sm:$0xff] }
 0x7a3   : > { %v23569_v14 = vpop.eup %23568  ;;  %v8662_v55 = vmul.f32 %v23567_v1, %v26673_v56  ;;  %23588 = vrcp.f32 %v8572_v45  ;;  %v17549_v20 = vmul.f32 -1.442695, %v26847_v52  ;;  %20686 = vmatmul.mubr.msk.f32.gmra.mrb[52].mxu1 %vm439_vm0, %v26858_v2 }
 0x7a4   : > { %v23571_v44 = vpop.eup %23570  ;;  %v8661_v43 = vmul.f32 %v23569_v14, %v26679_v63  ;;  %23590 = vrcp.f32 %v8571_v39  ;;  %v26867_v27 = vld [vmem:[#allocation2 + $0xa9] sm:$0xff]  ;;  %v17548_v34 = vmul.f32 -1.442695, %v26856_v46 }
 0x7a5   : > { %v23573_v10 = vpop.eup %23572  ;;  %8694 = vst.msk [vmem:[#allocation2 + $0xe1] sm:$0xff] %vm439_vm0, %v8662_v55  ;;  %v8574_v24 = vadd.f32 1.0, %v23571_v44  ;;  %23592 = vpow2.f32 %v17546_v38  ;;  %20688 = vmatprep.mubr.msk.f32.mxu1 %vm439_vm0, %v26867_v27 }
 0x7a6   : > { %v23575_v56 = vpop.eup %23574  ;;  %8693 = vst.msk [vmem:[#allocation2 + $0xd9] sm:$0xff] %vm439_vm0, %v8661_v43  ;;  %v8573_v45 = vadd.f32 1.0, %v23573_v10  ;;  %23594 = vpow2.f32 %v17549_v20  ;;  %v23073_v63 = vpack.i.bf16 %v8662_v55, %v8661_v43 }
 0x7a7   : > { %v23577_v1 = vpop.eup %23576  ;;  %v26877_v39 = vmul.f32 %v23575_v56, %v26694_v13  ;;  %23596 = vrcp.f32 %v8574_v24  ;;  %20689 = vmatmul.mubr.msk.f32.gmra.mrb[54].mxu1 %vm439_vm0, %v26874_v35 }
 0x7a8   : > { %v23579_v38 = vpop.eup %23578  ;;  %23598 = vrcp.f32 %v8573_v45  ;;  %v8576_v14 = vadd.f32 1.0, %v23577_v1  ;;  %23074 = vrot.lane.b32.xlu0 %v23073_v63, %s29549_s24  ;;  %v26894_v10 = vld [vmem:[#allocation2 + $0xc9] sm:$0xff]  ;;  %s30104_s24 = smov 64  }
 0x7a9   : > { %29925 = vst [vmem:[#allocation55_spill] sm:$0xff] %v26877_v39  ;;  %v23581_v44 = vpop.eup %23580  ;;  %8696 = vst.msk [vmem:[#allocation2 + $0xf9] sm:$0xff] %vm439_vm0, %v26877_v39  ;;  %v26885_v20 = vmul.f32 %v23579_v38, %v26700_v31  ;;  %23600 = vpow2.f32 %v17548_v34  ;;  %v26887_v55 = vld [vmem:[#allocation2 + $0xc1] sm:$0xff] }
 0x7aa   : > { %v23583_v13 = vpop.eup %23582  ;;  %v26890_v43 = vmul.f32 %v23581_v44, %v26720_v8  ;;  %23602 = vrcp.f32 %v8576_v14  ;;  %20691 = vmatprep.mubr.msk.f32.mxu1 %vm439_vm0, %v26887_v55  ;;  %v27105_v5 = vld [vmem:[#allocation2 + $0xc8] sm:$0xff] }
 0x7ab   : > { %29926 = vst [vmem:[#allocation56_spill] sm:$0xff] %v26885_v20  ;;  %v23585_v24 = vpop.eup %23584  ;;  %8695 = vst.msk [vmem:[#allocation2 + $0xf1] sm:$0xff] %vm439_vm0, %v26885_v20  ;;  %v26899_v31 = vmul.f32 %v23583_v13, %v26725_v19  ;;  %20692 = vmatmul.mubr.msk.f32.gmra.mrb[56].mxu1 %vm439_vm0, %v26894_v10 }
 0x7ac   : > { %29927 = vst [vmem:[#allocation57_spill] sm:$0xff] %v26890_v43  ;;  %v23587_v34 = vpop.eup %23586  ;;  %8698 = vst.msk [vmem:[#allocation2 + $0x111] sm:$0xff] %vm439_vm0, %v26890_v43  ;;  %v8575_v56 = vadd.f32 1.0, %v23585_v24  ;;  %v26918_v44 = vld [vmem:[#allocation2 + $0xe1] sm:$0xff] }
 0x7ad   : > { %29928 = vst [vmem:[#allocation58_spill] sm:$0xff] %v26899_v31  ;;  %v23589_v45 = vpop.eup %23588  ;;  %8697 = vst.msk [vmem:[#allocation2 + $0x109] sm:$0xff] %vm439_vm0, %v26899_v31  ;;  %v8578_v63 = vadd.f32 1.0, %v23587_v34  ;;  %v26909_v1 = vld [vmem:[#allocation2 + $0xd9] sm:$0xff] }
 0x7ae   : > { %v23591_v38 = vpop.eup %23590  ;;  %v26914_v14 = vmul.f32 %v23589_v45, %v26744_v57  ;;  %23604 = vrcp.f32 %v8575_v56  ;;  %20694 = vmatprep.mubr.msk.f32.mxu1 %vm439_vm0, %v26909_v1  ;;  %v27109_v23 = vld [vmem:[#allocation2 + $0xd8] sm:$0xff]  ;;  %v27113_v31 = vld [vmem:[#allocation2 + $0xe0] sm:$0xff] }
 0x7af   : > { %v23593_v13 = vpop.eup %23592  ;;  %v26921_v24 = vmul.f32 %v23591_v38, %v26751_v33  ;;  %23606 = vrcp.f32 %v8578_v63  ;;  %20695 = vmatmul.mubr.msk.f32.gmra.mrb[58].mxu1 %vm439_vm0, %v26918_v44 }
 0x7b0   : > { %29929 = vst [vmem:[#allocation59_spill] sm:$0xff] %v26914_v14  ;;  %v23595_v34 = vpop.eup %23594  ;;  %8700 = vst.msk [vmem:[#allocation2 + $0x129] sm:$0xff] %vm439_vm0, %v26914_v14  ;;  %v8577_v57 = vadd.f32 1.0, %v23593_v13  ;;  %v26941_v13 = vld [vmem:[#allocation2 + $0xf9] sm:$0xff] }
 0x7b1   : > { %29930 = vst [vmem:[#allocation60_spill] sm:$0xff] %v26921_v24  ;;  %v23597_v45 = vpop.eup %23596  ;;  %8699 = vst.msk [vmem:[#allocation2 + $0x121] sm:$0xff] %vm439_vm0, %v26921_v24  ;;  %v8580_v56 = vadd.f32 1.0, %v23595_v34  ;;  %v27097_v24 = vld [vmem:[#allocation2 + $0xb0] sm:$0xff]  ;;  %v27101_v14 = vld [vmem:[#allocation2 + $0xc0] sm:$0xff] }
 0x7b2   : > { %v23599_v19 = vpop.eup %23598  ;;  %v26932_v33 = vmul.f32 %v23597_v45, %v26772_v16  ;;  %23608 = vrcp.f32 %v8577_v57  ;;  %v26934_v63 = vld [vmem:[#allocation2 + $0xf1] sm:$0xff] }
 0x7b3   : > { %v23601_v38 = vpop.eup %23600  ;;  %v26937_v47 = vmul.f32 %v23599_v19, %v26779_v29  ;;  %23610 = vrcp.f32 %v8580_v56  ;;  %20697 = vmatprep.mubr.msk.f32.mxu1 %vm439_vm0, %v26934_v63  ;;  %v26960_v57 = vld [vmem:[#allocation2 + $0x111] sm:$0xff] }
 0x7b4   : > { %29931 = vst [vmem:[#allocation61_spill] sm:$0xff] %v26932_v33  ;;  %v23603_v34 = vpop.eup %23602  ;;  %8702 = vst.msk [vmem:[#allocation2 + $0x141] sm:$0xff] %vm439_vm0, %v26932_v33  ;;  %v8579_v4 = vadd.f32 1.0, %v23601_v38  ;;  %20698 = vmatmul.mubr.msk.f32.gmra.mrb[60].mxu1 %vm439_vm0, %v26941_v13  ;;  %v26947_v16 = vld [vmem:[#allocation2 + $0x109] sm:$0xff]  ;;  %v27121_v12 = vld [vmem:[#allocation2 + $0xf8] sm:$0xff] }
 0x7b5   : > { %29932 = vst [vmem:[#allocation62_spill] sm:$0xff] %v26937_v47  ;;  %8701 = vst.msk [vmem:[#allocation2 + $0x139] sm:$0xff] %vm439_vm0, %v26937_v47  ;;  %v26952_v29 = vmul.f32 %v23603_v34, %v26794_v3  ;;  %20700 = vmatprep.mubr.msk.f32.mxu1 %vm439_vm0, %v26947_v16  ;;  %v27089_v47 = vld [vmem:[#allocation2 + $0x98] sm:$0xff]  ;;  %v27093_v33 = vld [vmem:[#allocation2 + $0xa8] sm:$0xff] }
 0x7b6   : > { %23612 = vrcp.f32 %v8579_v4  ;;  %v27117_v43 = vld [vmem:[#allocation2 + $0xf0] sm:$0xff]  ;;  %v27125_v53 = vld [vmem:[#allocation2 + $0x108] sm:$0xff] }
 0x7b7   : > { %29933 = vst [vmem:[#allocation63_spill] sm:$0xff] %v26952_v29  ;;  %8704 = vst.msk [vmem:[#allocation2 + $0x159] sm:$0xff] %vm439_vm0, %v26952_v29  ;;  %v26976_v34 = vld [vmem:[#allocation2 + $0x129] sm:$0xff] }
 0x7b8   : > { %v23605_v45 = vpop.eup %23604  ;;  %20701 = vmatmul.mubr.msk.f32.gmra.mrb[62].mxu1 %vm439_vm0, %v26960_v57  ;;  %v26964_v56 = vld [vmem:[#allocation2 + $0x121] sm:$0xff]  ;;  %v27085_v29 = vld [vmem:[#allocation2 + $0x90] sm:$0xff] }
 0x7b9   : > { %v23607_v3 = vpop.eup %23606  ;;  %v26967_v38 = vmul.f32 %v23605_v45, %v26803_v30  ;;  %20703 = vmatprep.mubr.msk.f32.mxu1 %vm439_vm0, %v26964_v56  ;;  %v27129_v20 = vld [vmem:[#allocation2 + $0x110] sm:$0xff]  ;;  %v27133_v39 = vld [vmem:[#allocation2 + $0x120] sm:$0xff]  ;;  %v27137_v28 = vld [vmem:[#allocation2 + $0x128] sm:$0xff] }
 0x7ba   : > { %v26972_v4 = vmul.f32 %v23607_v3, %v26821_v0 }
 0x7bb   : > { %29934 = vst [vmem:[#allocation64_spill] sm:$0xff] %v26967_v38  ;;  %8703 = vst.msk [vmem:[#allocation2 + $0x151] sm:$0xff] %vm439_vm0, %v26967_v38  ;;  %v26996_v19 = vld [vmem:[#allocation2 + $0x141] sm:$0xff] }
 0x7bc   : > { %29935 = vst [vmem:[#allocation65_spill] sm:$0xff] %v26972_v4  ;;  %v23609_v8 = vpop.eup %23608  ;;  %8706 = vst.msk [vmem:[#allocation2 + $0x171] sm:$0xff] %vm439_vm0, %v26972_v4  ;;  %20704 = vmatmul.mubr.msk.f32.gmra.mrb[64].mxu1 %vm439_vm0, %v26976_v34  ;;  %v26984_v30 = vld [vmem:[#allocation2 + $0x139] sm:$0xff] }
 0x7bd   : > { %v23611_v45 = vpop.eup %23610  ;;  %v26987_v0 = vmul.f32 %v23609_v8, %v26830_v17  ;;  %20706 = vmatprep.mubr.msk.f32.mxu1 %vm439_vm0, %v26984_v30  ;;  %29938 = vst [vmem:[#allocation70_spill] sm:$0xff] %v26996_v19  ;;  %v27077_v4 = vld [vmem:[#allocation2 + $0x78] sm:$0xff]  ;;  %v27081_v38 = vld [vmem:[#allocation2 + $0x80] sm:$0xff] }
 0x7be   : > { %v26992_v3 = vmul.f32 %v23611_v45, %v26847_v52  ;;  %v27013_v8 = vld [vmem:[#allocation2 + $0x159] sm:$0xff]  ;;  %v8710_v45 = vld [vmem:[#allocation2 + $0x8] sm:$0xff] }
 0x7bf   : > { %29936 = vst [vmem:[#allocation66_spill] sm:$0xff] %v26987_v0  ;;  %8705 = vst.msk [vmem:[#allocation2 + $0x169] sm:$0xff] %vm439_vm0, %v26987_v0  ;;  %v27041_v0 = vld [vmem:[#allocation2 + $0x18] sm:$0xff]  ;;  %v27145_v41 = vld [vmem:[#allocation2 + $0x140] sm:$0xff] }
 0x7c0   : > { %29937 = vst [vmem:[#allocation68_spill] sm:$0xff] %v26992_v3  ;;  %v23613_v36 = vpop.eup %23612  ;;  %8708 = vst.msk [vmem:[#allocation2 + $0x189] sm:$0xff] %vm439_vm0, %v26992_v3  ;;  %20707 = vmatmul.mubr.msk.f32.gmra.mrb[66].mxu1 %vm439_vm0, %v26996_v19  ;;  %v9845_v3 = vld [vmem:[%s29378_s7 + $0x68] sm:$0xff]  ;;  %v27141_v37 = vld [vmem:[#allocation2 + $0x138] sm:$0xff] }
 0x7c1   : > { %v27005_v17 = vmul.f32 %v23613_v36, %v26856_v46  ;;  %29941 = vst [vmem:[#allocation41_spill] sm:$0xff] %v27013_v8  ;;  %v8709_v36 = vld [vmem:[#allocation2] sm:$0xff] }
 0x7c2   : > { %v27007_v52 = vld [vmem:[#allocation2 + $0x151] sm:$0xff]  ;;  %v27179_v19 = vld [vmem:[#allocation2 + $0x1a] sm:$0xff] }
 0x7c3   : > { %29939 = vst [vmem:[#allocation71_spill] sm:$0xff] %v27005_v17  ;;  %29940 = vst [vmem:[#allocation39_spill] sm:$0xff] %v27007_v52  ;;  %20709 = vmatprep.mubr.msk.f32.mxu1 %vm439_vm0, %v27007_v52  ;;  %v27023_v46 = vld [vmem:[#allocation2 + $0x171] sm:$0xff]  ;;  %v10234_v52 = vld [vmem:[%s29378_s7 + $0x88] sm:$0xff] }
 0x7c4   : > { %8707 = vst.msk [vmem:[#allocation2 + $0x181] sm:$0xff] %vm439_vm0, %v27005_v17  ;;  %20710 = vmatmul.mubr.msk.f32.gmra.mrb[68].mxu1 %vm439_vm0, %v27013_v8  ;;  %29943 = vst [vmem:[#allocation43_spill] sm:$0xff] %v27023_v46  ;;  %v9844_v17 = vld [vmem:[%s29378_s7 + $0x60] sm:$0xff]  ;;  %v27149_v59 = vld [vmem:[#allocation2 + $0x150] sm:$0xff] }
 0x7c5   : > { %v27153_v40 = vld [vmem:[#allocation2 + $0x158] sm:$0xff]  ;;  %v10233_v8 = vld [vmem:[%s29378_s7 + $0x80] sm:$0xff] }
 0x7c6   : > { %v27019_v42 = vld [vmem:[#allocation2 + $0x169] sm:$0xff] }
 0x7c7   : > { %29942 = vst [vmem:[#allocation40_spill] sm:$0xff] %v27019_v42  ;;  %20712 = vmatprep.mubr.msk.f32.mxu1 %vm439_vm0, %v27019_v42  ;;  %v27157_v6 = vld [vmem:[#allocation2 + $0x168] sm:$0xff]  ;;  %v27161_v58 = vld [vmem:[#allocation2 + $0x170] sm:$0xff]  ;;  %v21847_v42 = vpack.c.bf16 %v9847_v25, %v9846_v61 }
 0x7c8   : > { %20713 = vmatmul.mubr.msk.f32.gmra.mrb[70].mxu1 %vm439_vm0, %v27023_v46  ;;  %v9424_v46 = vld [vmem:[#allocation2 + $0xa] sm:$0xff]  ;;  %v27186_v25 = vld [vmem:[#allocation2 + $0x22] sm:$0xff]  ;;  %v27190_v61 = vld [vmem:[#allocation2 + $0x32] sm:$0xff] }
 0x7c9   : > { %20723 = vmatprep.mubr.msk.f32.mxu1 %vm439_vm0, %v8709_v36  ;;  %v27046_v36 = vpack.c.bf16 %v9845_v3, %v9844_v17  ;;  %v27065_v3 = vld [vmem:[#allocation2 + $0x50] sm:$0xff]  ;;  %v27069_v17 = vld [vmem:[#allocation2 + $0x60] sm:$0xff]  ;;  %29944 = vst [vmem:[#allocation72_spill] sm:$0xff] %v27190_v61 }
 0x7cc   : > { %20724 = vmatmul.mubr.msk.f32.vlgmr.msra.gmra.mrb[40].mxu1 %vm439_vm0, %v8710_v45  ;;  %v27057_v45 = vld [vmem:[#allocation2 + $0x38] sm:$0xff] }
 0x7cd   : > { %20726 = vmatprep.mubr.msk.f32.mxu1 %vm439_vm0, %v27041_v0  ;;  %21838 = vmatpush3.bf16.msra.mxu1 %v26593_v18  ;;  %v27061_v18 = vld [vmem:[#allocation2 + $0x48] sm:$0xff] }
 0x7ce   : > { %21840 = vmatprep.subr.bf16.mxu1 %v21839_v9 }
 0x7d0   : > { %20727 = vmatmul.mubr.msk.f32.gmra.mrb[42].mxu1 %vm439_vm0, %v27048_v21 }
 0x7d1   : > { %20729 = vmatprep.mubr.msk.f32.mxu1 %vm439_vm0, %v27052_v7  ;;  %21842 = vmatpush3.bf16.msra.mxu1 %v21839_v9  ;;  %v27073_v9 = vld [vmem:[#allocation2 + $0x68] sm:$0xff] }
 0x7d2   : > { %21844 = vmatprep.subr.bf16.mxu1 %v27046_v36 }
 0x7d4   : > { %20730 = vmatmul.mubr.msk.f32.gmra.mrb[44].mxu1 %vm439_vm0, %v27057_v45 }
 0x7d5   : > { %20732 = vmatprep.mubr.msk.f32.mxu1 %vm439_vm0, %v27061_v18 }
 0x7d8   : > { %20733 = vmatmul.mubr.msk.f32.gmra.mrb[46].mxu1 %vm439_vm0, %v27065_v3 }
 0x7d9   : > { %20735 = vmatprep.mubr.msk.f32.mxu1 %vm439_vm0, %v27069_v17 }
 0x7dc   : > { %20736 = vmatmul.mubr.msk.f32.gmra.mrb[48].mxu1 %vm439_vm0, %v27073_v9 }
 0x7dd   : > { %20738 = vmatprep.mubr.msk.f32.mxu1 %vm439_vm0, %v27077_v4 }
 0x7e0   : > { %20739 = vmatmul.mubr.msk.f32.gmra.mrb[50].mxu1 %vm439_vm0, %v27081_v38 }
 0x7e1   : > { %20741 = vmatprep.mubr.msk.f32.mxu1 %vm439_vm0, %v27085_v29 }
 0x7e4   : > { %20742 = vmatmul.mubr.msk.f32.gmra.mrb[52].mxu1 %vm439_vm0, %v27089_v47 }
 0x7e5   : > { %20744 = vmatprep.mubr.msk.f32.mxu1 %vm439_vm0, %v27093_v33 }
 0x7e8   : > { %20745 = vmatmul.mubr.msk.f32.gmra.mrb[54].mxu1 %vm439_vm0, %v27097_v24 }
 0x7e9   : > { %20747 = vmatprep.mubr.msk.f32.mxu1 %vm439_vm0, %v27101_v14 }
 0x7ec   : > { %20748 = vmatmul.mubr.msk.f32.gmra.mrb[56].mxu1 %vm439_vm0, %v27105_v5 }
 0x7ed   : > { %20750 = vmatprep.mubr.msk.f32.mxu1 %vm439_vm0, %v27109_v23 }
 0x7f0   : > { %20751 = vmatmul.mubr.msk.f32.gmra.mrb[58].mxu1 %vm439_vm0, %v27113_v31 }
 0x7f1   : > { %20753 = vmatprep.mubr.msk.f32.mxu1 %vm439_vm0, %v27117_v43 }
 0x7f4   : > { %20754 = vmatmul.mubr.msk.f32.gmra.mrb[60].mxu1 %vm439_vm0, %v27121_v12 }
 0x7f5   : > { %20756 = vmatprep.mubr.msk.f32.mxu1 %vm439_vm0, %v27125_v53 }
 0x7f8   : > { %20757 = vmatmul.mubr.msk.f32.gmra.mrb[62].mxu1 %vm439_vm0, %v27129_v20 }
 0x7f9   : > { %20759 = vmatprep.mubr.msk.f32.mxu1 %vm439_vm0, %v27133_v39 }
 0x7fc   : > { %20760 = vmatmul.mubr.msk.f32.gmra.mrb[64].mxu1 %vm439_vm0, %v27137_v28 }
 0x7fd   : > { %20762 = vmatprep.mubr.msk.f32.mxu1 %vm439_vm0, %v27141_v37 }
 0x800   : > { %20763 = vmatmul.mubr.msk.f32.gmra.mrb[66].mxu1 %vm439_vm0, %v27145_v41 }
 0x801   : > { %20765 = vmatprep.mubr.msk.f32.mxu1 %vm439_vm0, %v27149_v59 }
 0x804   : > { %20766 = vmatmul.mubr.msk.f32.gmra.mrb[68].mxu1 %vm439_vm0, %v27153_v40 }
 0x805   : > { %20768 = vmatprep.mubr.msk.f32.mxu1 %vm439_vm0, %v27157_v6 }
 0x808   : > { %20769 = vmatmul.mubr.msk.f32.gmra.mrb[70].mxu1 %vm439_vm0, %v27161_v58 }
 0x809   : > { %20779 = vmatprep.mubr.msk.f32.mxu1 %vm439_vm0, %v9423_v32  ;;  %v27184_v32 = vpack.c.bf16 %v10234_v52, %v10233_v8  ;;  %v27199_v52 = vld [vmem:[#allocation2 + $0x4a] sm:$0xff]  ;;  %v27203_v8 = vld [vmem:[#allocation2 + $0x52] sm:$0xff] }
 0x80a   : > { %29946 = vst [vmem:[#allocation74_spill] sm:$0xff] %v27199_v52  ;;  %29947 = vst [vmem:[#allocation75_spill] sm:$0xff] %v27203_v8 }
 0x80c   : > { %20780 = vmatmul.mubr.msk.f32.vlgmr.msra.gmra.mrb[40].mxu1 %vm439_vm0, %v9424_v46  ;;  %v27195_v46 = vld [vmem:[#allocation2 + $0x3a] sm:$0xff] }
 0x80d   : > { %20782 = vmatprep.mubr.msk.f32.mxu1 %vm439_vm0, %v27179_v19  ;;  %21846 = vmatpush3.bf16.msra.mxu1 %v27046_v36  ;;  %29945 = vst [vmem:[#allocation73_spill] sm:$0xff] %v27195_v46  ;;  %v27207_v36 = vld [vmem:[#allocation2 + $0x62] sm:$0xff] }
 0x80e   : > { %21848 = vmatprep.subr.bf16.mxu1 %v21847_v42  ;;  %29948 = vst [vmem:[#allocation76_spill] sm:$0xff] %v27207_v36 }
 0x810   : > { %20783 = vmatmul.mubr.msk.f32.gmra.mrb[42].mxu1 %vm439_vm0, %v27186_v25 }
 0x811   : > { %20785 = vmatprep.mubr.msk.f32.mxu1 %vm439_vm0, %v27190_v61  ;;  %21850 = vmatpush3.bf16.msra.mxu1 %v21847_v42  ;;  %v27211_v42 = vld [vmem:[#allocation2 + $0x6a] sm:$0xff] }
 0x812   : > { %21852 = vmatprep.subr.bf16.mxu1 %v27184_v32  ;;  %29949 = vst [vmem:[#allocation77_spill] sm:$0xff] %v27211_v42  ;;  %v10623_v61 = vld [vmem:[%s29378_s7 + $0xa8] sm:$0xff] }
 0x814   : > { %20786 = vmatmul.mubr.msk.f32.gmra.mrb[44].mxu1 %vm439_vm0, %v27195_v46  ;;  %v27215_v46 = vld [vmem:[#allocation2 + $0x7a] sm:$0xff] }
 0x815   : > { %20788 = vmatprep.mubr.msk.f32.mxu1 %vm439_vm0, %v27199_v52  ;;  %29950 = vst [vmem:[#allocation78_spill] sm:$0xff] %v27215_v46  ;;  %v27219_v52 = vld [vmem:[#allocation2 + $0x82] sm:$0xff] }
 0x816   : > { %29951 = vst [vmem:[#allocation79_spill] sm:$0xff] %v27219_v52 }
 0x818   : > { %20789 = vmatmul.mubr.msk.f32.gmra.mrb[46].mxu1 %vm439_vm0, %v27203_v8  ;;  %v27223_v8 = vld [vmem:[#allocation2 + $0x92] sm:$0xff] }
 0x819   : > { %20791 = vmatprep.mubr.msk.f32.mxu1 %vm439_vm0, %v27207_v36  ;;  %29952 = vst [vmem:[#allocation80_spill] sm:$0xff] %v27223_v8  ;;  %v27227_v36 = vld [vmem:[#allocation2 + $0x9a] sm:$0xff] }
 0x81a   : > { %29953 = vst [vmem:[#allocation81_spill] sm:$0xff] %v27227_v36 }
 0x81c   : > { %20792 = vmatmul.mubr.msk.f32.gmra.mrb[48].mxu1 %vm439_vm0, %v27211_v42  ;;  %v27231_v42 = vld [vmem:[#allocation2 + $0xaa] sm:$0xff] }
 0x81d   : > { %20794 = vmatprep.mubr.msk.f32.mxu1 %vm439_vm0, %v27215_v46  ;;  %29954 = vst [vmem:[#allocation82_spill] sm:$0xff] %v27231_v42  ;;  %v27235_v46 = vld [vmem:[#allocation2 + $0xb2] sm:$0xff] }
 0x81e   : > { %29955 = vst [vmem:[#allocation83_spill] sm:$0xff] %v27235_v46 }
 0x820   : > { %20795 = vmatmul.mubr.msk.f32.gmra.mrb[50].mxu1 %vm439_vm0, %v27219_v52  ;;  %v27239_v52 = vld [vmem:[#allocation2 + $0xc2] sm:$0xff] }
 0x821   : > { %20797 = vmatprep.mubr.msk.f32.mxu1 %vm439_vm0, %v27223_v8  ;;  %29956 = vst [vmem:[#allocation84_spill] sm:$0xff] %v27239_v52  ;;  %v27243_v8 = vld [vmem:[#allocation2 + $0xca] sm:$0xff] }
 0x822   : > { %29957 = vst [vmem:[#allocation85_spill] sm:$0xff] %v27243_v8 }
 0x824   : > { %20798 = vmatmul.mubr.msk.f32.gmra.mrb[52].mxu1 %vm439_vm0, %v27227_v36  ;;  %v27247_v36 = vld [vmem:[#allocation2 + $0xda] sm:$0xff] }
 0x825   : > { %20800 = vmatprep.mubr.msk.f32.mxu1 %vm439_vm0, %v27231_v42  ;;  %29958 = vst [vmem:[#allocation86_spill] sm:$0xff] %v27247_v36  ;;  %v27251_v42 = vld [vmem:[#allocation2 + $0xe2] sm:$0xff] }
 0x826   : > { %29959 = vst [vmem:[#allocation87_spill] sm:$0xff] %v27251_v42 }
 0x828   : > { %20801 = vmatmul.mubr.msk.f32.gmra.mrb[54].mxu1 %vm439_vm0, %v27235_v46  ;;  %v27255_v46 = vld [vmem:[#allocation2 + $0xf2] sm:$0xff] }
 0x829   : > { %20803 = vmatprep.mubr.msk.f32.mxu1 %vm439_vm0, %v27239_v52  ;;  %29960 = vst [vmem:[#allocation88_spill] sm:$0xff] %v27255_v46  ;;  %v27259_v52 = vld [vmem:[#allocation2 + $0xfa] sm:$0xff] }
 0x82a   : > { %29961 = vst [vmem:[#allocation89_spill] sm:$0xff] %v27259_v52 }
 0x82c   : > { %20804 = vmatmul.mubr.msk.f32.gmra.mrb[56].mxu1 %vm439_vm0, %v27243_v8  ;;  %v27263_v8 = vld [vmem:[#allocation2 + $0x10a] sm:$0xff] }
 0x82d   : > { %20806 = vmatprep.mubr.msk.f32.mxu1 %vm439_vm0, %v27247_v36  ;;  %29962 = vst [vmem:[#allocation90_spill] sm:$0xff] %v27263_v8  ;;  %v27267_v36 = vld [vmem:[#allocation2 + $0x112] sm:$0xff] }
 0x82e   : > { %29963 = vst [vmem:[#allocation91_spill] sm:$0xff] %v27267_v36 }
 0x830   : > { %20807 = vmatmul.mubr.msk.f32.gmra.mrb[58].mxu1 %vm439_vm0, %v27251_v42  ;;  %v27271_v42 = vld [vmem:[#allocation2 + $0x122] sm:$0xff] }
 0x831   : > { %20809 = vmatprep.mubr.msk.f32.mxu1 %vm439_vm0, %v27255_v46  ;;  %29964 = vst [vmem:[#allocation92_spill] sm:$0xff] %v27271_v42  ;;  %v27275_v46 = vld [vmem:[#allocation2 + $0x12a] sm:$0xff] }
 0x832   : > { %29965 = vst [vmem:[#allocation93_spill] sm:$0xff] %v27275_v46 }
 0x834   : > { %20810 = vmatmul.mubr.msk.f32.gmra.mrb[60].mxu1 %vm439_vm0, %v27259_v52  ;;  %v27279_v52 = vld [vmem:[#allocation2 + $0x13a] sm:$0xff] }
 0x835   : > { %20812 = vmatprep.mubr.msk.f32.mxu1 %vm439_vm0, %v27263_v8  ;;  %29966 = vst [vmem:[#allocation94_spill] sm:$0xff] %v27279_v52  ;;  %v27283_v8 = vld [vmem:[#allocation2 + $0x142] sm:$0xff] }
 0x836   : > { %29967 = vst [vmem:[#allocation95_spill] sm:$0xff] %v27283_v8 }
 0x838   : > { %20813 = vmatmul.mubr.msk.f32.gmra.mrb[62].mxu1 %vm439_vm0, %v27267_v36  ;;  %v27287_v36 = vld [vmem:[#allocation2 + $0x152] sm:$0xff] }
 0x839   : > { %20815 = vmatprep.mubr.msk.f32.mxu1 %vm439_vm0, %v27271_v42  ;;  %29968 = vst [vmem:[#allocation96_spill] sm:$0xff] %v27287_v36  ;;  %v27291_v42 = vld [vmem:[#allocation2 + $0x15a] sm:$0xff] }
 0x83a   : > { %29969 = vst [vmem:[#allocation97_spill] sm:$0xff] %v27291_v42 }
 0x83c   : > { %20816 = vmatmul.mubr.msk.f32.gmra.mrb[64].mxu1 %vm439_vm0, %v27275_v46  ;;  %v27295_v46 = vld [vmem:[#allocation2 + $0x16a] sm:$0xff] }
 0x83d   : > { %20818 = vmatprep.mubr.msk.f32.mxu1 %vm439_vm0, %v27279_v52  ;;  %29970 = vst [vmem:[#allocation98_spill] sm:$0xff] %v27295_v46  ;;  %v27299_v52 = vld [vmem:[#allocation2 + $0x172] sm:$0xff] }
 0x83e   : > { %29971 = vst [vmem:[#allocation99_spill] sm:$0xff] %v27299_v52 }
 0x840   : > { %20819 = vmatmul.mubr.msk.f32.gmra.mrb[66].mxu1 %vm439_vm0, %v27283_v8  ;;  %v10235_v8 = vld [vmem:[%s29378_s7 + $0x90] sm:$0xff] }
 0x841   : > { %20821 = vmatprep.mubr.msk.f32.mxu1 %vm439_vm0, %v27287_v36  ;;  %v10236_v36 = vld [vmem:[%s29378_s7 + $0x98] sm:$0xff] }
 0x844   : > { %20822 = vmatmul.mubr.msk.f32.gmra.mrb[68].mxu1 %vm439_vm0, %v27291_v42  ;;  %v21855_v42 = vpack.c.bf16 %v10236_v36, %v10235_v8  ;;  %v11011_v8 = vld [vmem:[%s29378_s7 + $0xc0] sm:$0xff]  ;;  %v11012_v36 = vld [vmem:[%s29378_s7 + $0xc8] sm:$0xff] }
 0x845   : > { %20824 = vmatprep.mubr.msk.f32.mxu1 %vm439_vm0, %v27295_v46  ;;  %v10622_v46 = vld [vmem:[%s29378_s7 + $0xa0] sm:$0xff] }
 0x848   : > { %20825 = vmatmul.mubr.msk.f32.gmra.mrb[70].mxu1 %vm439_vm0, %v27299_v52  ;;  %v21859_v52 = vpack.c.bf16 %v10623_v61, %v10622_v46  ;;  %v10625_v61 = vld [vmem:[%s29378_s7 + $0xb8] sm:$0xff] }
 0x849   : > { %20835 = vmatprep.mubr.msk.f32.mxu1 %vm439_vm0, %v27041_v0  ;;  %v27376_v0 = vld [vmem:[#allocation2 + $0x180] sm:$0xff] }
 0x84c   : > { %20836 = vmatmul.mubr.msk.f32.vlgmr.msra.gmra.mrb[40].mxu1 %vm439_vm0, %v27048_v21  ;;  %v27380_v21 = vld [vmem:[#allocation2 + $0x188] sm:$0xff] }
 0x84d   : > { %20838 = vmatprep.mubr.msk.f32.mxu1 %vm439_vm0, %v27052_v7  ;;  %21854 = vmatpush3.bf16.msra.mxu1 %v27184_v32  ;;  %v10624_v32 = vld [vmem:[%s29378_s7 + $0xb0] sm:$0xff] }
 0x84e   : > { %21856 = vmatprep.subr.bf16.mxu1 %v21855_v42  ;;  %v21863_v46 = vpack.c.bf16 %v10625_v61, %v10624_v32  ;;  %v29992_v32 = vld [vmem:[#allocation87_spill] sm:$0xff]  ;;  %v29993_v61 = vld [vmem:[#allocation88_spill] sm:$0xff] }
 0x850   : > { %20839 = vmatmul.mubr.msk.f32.gmra.mrb[42].mxu1 %vm439_vm0, %v27057_v45 }
 0x851   : > { %20841 = vmatprep.mubr.msk.f32.mxu1 %vm439_vm0, %v27061_v18  ;;  %21858 = vmatpush3.bf16.msra.mxu1 %v21855_v42  ;;  %v21867_v42 = vpack.c.bf16 %v11012_v36, %v11011_v8  ;;  %v29995_v8 = vld [vmem:[#allocation90_spill] sm:$0xff]  ;;  %v29996_v36 = vld [vmem:[#allocation91_spill] sm:$0xff] }
 0x852   : > { %21860 = vmatprep.subr.bf16.mxu1 %v21859_v52 }
 0x854   : > { %20842 = vmatmul.mubr.msk.f32.gmra.mrb[44].mxu1 %vm439_vm0, %v27065_v3 }
 0x855   : > { %20844 = vmatprep.mubr.msk.f32.mxu1 %vm439_vm0, %v27069_v17 }
 0x858   : > { %20845 = vmatmul.mubr.msk.f32.gmra.mrb[46].mxu1 %vm439_vm0, %v27073_v9 }
 0x859   : > { %20847 = vmatprep.mubr.msk.f32.mxu1 %vm439_vm0, %v27077_v4 }
 0x85c   : > { %20848 = vmatmul.mubr.msk.f32.gmra.mrb[48].mxu1 %vm439_vm0, %v27081_v38 }
 0x85d   : > { %20850 = vmatprep.mubr.msk.f32.mxu1 %vm439_vm0, %v27085_v29 }
 0x860   : > { %20851 = vmatmul.mubr.msk.f32.gmra.mrb[50].mxu1 %vm439_vm0, %v27089_v47 }
 0x861   : > { %20853 = vmatprep.mubr.msk.f32.mxu1 %vm439_vm0, %v27093_v33 }
 0x864   : > { %20854 = vmatmul.mubr.msk.f32.gmra.mrb[52].mxu1 %vm439_vm0, %v27097_v24 }
 0x865   : > { %20856 = vmatprep.mubr.msk.f32.mxu1 %vm439_vm0, %v27101_v14 }
 0x868   : > { %20857 = vmatmul.mubr.msk.f32.gmra.mrb[54].mxu1 %vm439_vm0, %v27105_v5 }
 0x869   : > { %20859 = vmatprep.mubr.msk.f32.mxu1 %vm439_vm0, %v27109_v23 }
 0x86c   : > { %20860 = vmatmul.mubr.msk.f32.gmra.mrb[56].mxu1 %vm439_vm0, %v27113_v31 }
 0x86d   : > { %20862 = vmatprep.mubr.msk.f32.mxu1 %vm439_vm0, %v27117_v43 }
 0x870   : > { %20863 = vmatmul.mubr.msk.f32.gmra.mrb[58].mxu1 %vm439_vm0, %v27121_v12 }
 0x871   : > { %20865 = vmatprep.mubr.msk.f32.mxu1 %vm439_vm0, %v27125_v53 }
 0x874   : > { %20866 = vmatmul.mubr.msk.f32.gmra.mrb[60].mxu1 %vm439_vm0, %v27129_v20 }
 0x875   : > { %20868 = vmatprep.mubr.msk.f32.mxu1 %vm439_vm0, %v27133_v39 }
 0x878   : > { %20869 = vmatmul.mubr.msk.f32.gmra.mrb[62].mxu1 %vm439_vm0, %v27137_v28 }
 0x879   : > { %20871 = vmatprep.mubr.msk.f32.mxu1 %vm439_vm0, %v27141_v37 }
 0x87c   : > { %20872 = vmatmul.mubr.msk.f32.gmra.mrb[64].mxu1 %vm439_vm0, %v27145_v41 }
 0x87d   : > { %20874 = vmatprep.mubr.msk.f32.mxu1 %vm439_vm0, %v27149_v59 }
 0x880   : > { %20875 = vmatmul.mubr.msk.f32.gmra.mrb[66].mxu1 %vm439_vm0, %v27153_v40 }
 0x881   : > { %20877 = vmatprep.mubr.msk.f32.mxu1 %vm439_vm0, %v27157_v6 }
 0x884   : > { %20878 = vmatmul.mubr.msk.f32.gmra.mrb[68].mxu1 %vm439_vm0, %v27161_v58 }
 0x885   : > { %20880 = vmatprep.mubr.msk.f32.mxu1 %vm439_vm0, %v27376_v0 }
 0x888   : > { %20881 = vmatmul.mubr.msk.f32.gmra.mrb[70].mxu1 %vm439_vm0, %v27380_v21 }
 0x889   : > { %20891 = vmatprep.mubr.msk.f32.mxu1 %vm439_vm0, %v26705_v60  ;;  %v29972_v60 = vld [vmem:[#allocation70_spill] sm:$0xff] }
 0x88c   : > { %20892 = vmatmul.mubr.msk.f32.vlgmr.msra.gmra.mrb[40].mxu1 %vm439_vm0, %v26711_v15  ;;  %v29973_v15 = vld [vmem:[#allocation39_spill] sm:$0xff] }
 0x88d   : > { %20894 = vmatprep.mubr.msk.f32.mxu1 %vm439_vm0, %v26730_v51  ;;  %21862 = vmatpush3.bf16.msra.mxu1 %v21859_v52  ;;  %v29974_v51 = vld [vmem:[#allocation41_spill] sm:$0xff]  ;;  %v29991_v52 = vld [vmem:[#allocation86_spill] sm:$0xff] }
 0x88e   : > { %21864 = vmatprep.subr.bf16.mxu1 %v21863_v46 }
 0x890   : > { %20895 = vmatmul.mubr.msk.f32.gmra.mrb[42].mxu1 %vm439_vm0, %v26738_v50  ;;  %v29975_v50 = vld [vmem:[#allocation40_spill] sm:$0xff] }
 0x891   : > { %20897 = vmatprep.mubr.msk.f32.mxu1 %vm439_vm0, %v26758_v22  ;;  %21866 = vmatpush3.bf16.msra.mxu1 %v21863_v46  ;;  %v29976_v22 = vld [vmem:[#allocation43_spill] sm:$0xff]  ;;  %v29994_v46 = vld [vmem:[#allocation89_spill] sm:$0xff] }
 0x892   : > { %21868 = vmatprep.subr.bf16.mxu1 %v21867_v42 }
 0x894   : > { %20898 = vmatmul.mubr.msk.f32.gmra.mrb[44].mxu1 %vm439_vm0, %v26766_v11  ;;  %v27456_v11 = vld [vmem:[#allocation2 + $0x181] sm:$0xff] }
 0x895   : > { %20900 = vmatprep.mubr.msk.f32.mxu1 %vm439_vm0, %v26796_v26  ;;  %v27460_v26 = vld [vmem:[#allocation2 + $0x189] sm:$0xff] }
 0x898   : > { %20901 = vmatmul.mubr.msk.f32.gmra.mrb[46].mxu1 %vm439_vm0, %v26805_v49  ;;  %v11013_v49 = vld [vmem:[%s29378_s7 + $0xd0] sm:$0xff] }
 0x899   : > { %20903 = vmatprep.mubr.msk.f32.mxu1 %vm439_vm0, %v26823_v62  ;;  %v11014_v62 = vld [vmem:[%s29378_s7 + $0xd8] sm:$0xff] }
 0x89c   : > { %20904 = vmatmul.mubr.msk.f32.gmra.mrb[48].mxu1 %vm439_vm0, %v26832_v54  ;;  %v21871_v54 = vpack.c.bf16 %v11014_v62, %v11013_v49  ;;  %v30003_v49 = vld [vmem:[#allocation98_spill] sm:$0xff]  ;;  %v30004_v62 = vld [vmem:[#allocation99_spill] sm:$0xff] }
 0x89d   : > { %20906 = vmatprep.mubr.msk.f32.mxu1 %vm439_vm0, %v26849_v48  ;;  %v11400_v48 = vld [vmem:[%s29378_s7 + $0xe0] sm:$0xff] }
 0x8a0   : > { %20907 = vmatmul.mubr.msk.f32.gmra.mrb[50].mxu1 %vm439_vm0, %v26858_v2  ;;  %v11401_v2 = vld [vmem:[%s29378_s7 + $0xe8] sm:$0xff] }
 0x8a1   : > { %20909 = vmatprep.mubr.msk.f32.mxu1 %vm439_vm0, %v26867_v27  ;;  %v29977_v27 = vld [vmem:[#allocation72_spill] sm:$0xff] }
 0x8a4   : > { %20910 = vmatmul.mubr.msk.f32.gmra.mrb[52].mxu1 %vm439_vm0, %v26874_v35  ;;  %v21875_v35 = vpack.c.bf16 %v11401_v2, %v11400_v48  ;;  %v27540_v48 = vld [vmem:[#allocation2 + $0x18a] sm:$0xff] }
 0x8a5   : > { %20912 = vmatprep.mubr.msk.f32.mxu1 %vm439_vm0, %v26887_v55  ;;  %v29978_v55 = vld [vmem:[#allocation73_spill] sm:$0xff]  ;;  %30006 = vst [vmem:[#allocation39_spill] sm:$0xff] %v27540_v48  ;;  %v11402_v2 = vld [vmem:[%s29378_s7 + $0xf0] sm:$0xff] }
 0x8a8   : > { %20913 = vmatmul.mubr.msk.f32.gmra.mrb[54].mxu1 %vm439_vm0, %v26894_v10  ;;  %v29979_v10 = vld [vmem:[#allocation74_spill] sm:$0xff] }
 0x8a9   : > { %20915 = vmatprep.mubr.msk.f32.mxu1 %vm439_vm0, %v26909_v1  ;;  %v29980_v1 = vld [vmem:[#allocation75_spill] sm:$0xff] }
 0x8ac   : > { %20916 = vmatmul.mubr.msk.f32.gmra.mrb[56].mxu1 %vm439_vm0, %v26918_v44  ;;  %v29981_v44 = vld [vmem:[#allocation76_spill] sm:$0xff] }
 0x8ad   : > { %20918 = vmatprep.mubr.msk.f32.mxu1 %vm439_vm0, %v26934_v63  ;;  %v29982_v63 = vld [vmem:[#allocation77_spill] sm:$0xff] }
 0x8b0   : > { %20919 = vmatmul.mubr.msk.f32.gmra.mrb[58].mxu1 %vm439_vm0, %v26941_v13  ;;  %v29983_v13 = vld [vmem:[#allocation78_spill] sm:$0xff] }
 0x8b1   : > { %20921 = vmatprep.mubr.msk.f32.mxu1 %vm439_vm0, %v26947_v16  ;;  %v29984_v16 = vld [vmem:[#allocation79_spill] sm:$0xff] }
 0x8b4   : > { %20922 = vmatmul.mubr.msk.f32.gmra.mrb[60].mxu1 %vm439_vm0, %v26960_v57  ;;  %v29986_v57 = vld [vmem:[#allocation81_spill] sm:$0xff] }
 0x8b5   : > { %20924 = vmatprep.mubr.msk.f32.mxu1 %vm439_vm0, %v26964_v56  ;;  %v29987_v56 = vld [vmem:[#allocation82_spill] sm:$0xff] }
 0x8b8   : > { %20925 = vmatmul.mubr.msk.f32.gmra.mrb[62].mxu1 %vm439_vm0, %v26976_v34  ;;  %v29988_v34 = vld [vmem:[#allocation83_spill] sm:$0xff] }
 0x8b9   : > { %20927 = vmatprep.mubr.msk.f32.mxu1 %vm439_vm0, %v26984_v30  ;;  %v29989_v30 = vld [vmem:[#allocation84_spill] sm:$0xff] }
 0x8bc   : > { %20928 = vmatmul.mubr.msk.f32.gmra.mrb[64].mxu1 %vm439_vm0, %v29972_v60  ;;  %v29998_v60 = vld [vmem:[#allocation93_spill] sm:$0xff] }
 0x8bd   : > { %20930 = vmatprep.mubr.msk.f32.mxu1 %vm439_vm0, %v29973_v15  ;;  %v29999_v15 = vld [vmem:[#allocation94_spill] sm:$0xff] }
 0x8c0   : > { %20931 = vmatmul.mubr.msk.f32.gmra.mrb[66].mxu1 %vm439_vm0, %v29974_v51  ;;  %v30000_v51 = vld [vmem:[#allocation95_spill] sm:$0xff] }
 0x8c1   : > { %20933 = vmatprep.mubr.msk.f32.mxu1 %vm439_vm0, %v29975_v50  ;;  %v30001_v50 = vld [vmem:[#allocation96_spill] sm:$0xff] }
 0x8c4   : > { %20934 = vmatmul.mubr.msk.f32.gmra.mrb[68].mxu1 %vm439_vm0, %v29976_v22  ;;  %v30002_v22 = vld [vmem:[#allocation97_spill] sm:$0xff] }
 0x8c5   : > { %20936 = vmatprep.mubr.msk.f32.mxu1 %vm439_vm0, %v27456_v11 }
 0x8c8   : > { %20937 = vmatmul.mubr.msk.f32.gmra.mrb[70].mxu1 %vm439_vm0, %v27460_v26 }
 0x8c9   : > { %20947 = vmatprep.mubr.msk.f32.mxu1 %vm439_vm0, %v27179_v19  ;;  %v29985_v19 = vld [vmem:[#allocation80_spill] sm:$0xff] }
 0x8cc   : > { %20948 = vmatmul.mubr.msk.f32.vlgmr.msra.gmra.mrb[40].mxu1 %vm439_vm0, %v27186_v25  ;;  %v29990_v25 = vld [vmem:[#allocation85_spill] sm:$0xff] }
 0x8cd   : > { %20950 = vmatprep.mubr.msk.f32.mxu1 %vm439_vm0, %v29977_v27  ;;  %21870 = vmatpush3.bf16.msra.mxu1 %v21867_v42  ;;  %v29997_v42 = vld [vmem:[#allocation92_spill] sm:$0xff] }
 0x8ce   : > { %21872 = vmatprep.subr.bf16.mxu1 %v21871_v54 }
 0x8d0   : > { %20951 = vmatmul.mubr.msk.f32.gmra.mrb[42].mxu1 %vm439_vm0, %v29978_v55 }
 0x8d1   : > { %20953 = vmatprep.mubr.msk.f32.mxu1 %vm439_vm0, %v29979_v10  ;;  %21874 = vmatpush3.bf16.msra.mxu1 %v21871_v54  ;;  %v27536_v54 = vld [vmem:[#allocation2 + $0x182] sm:$0xff] }
 0x8d2   : > { %21876 = vmatprep.subr.bf16.mxu1 %v21875_v35  ;;  %30005 = vst [vmem:[#allocation70_spill] sm:$0xff] %v27536_v54 }
 0x8d4   : > { %20954 = vmatmul.mubr.msk.f32.gmra.mrb[44].mxu1 %vm439_vm0, %v29980_v1 }
 0x8d5   : > { %20956 = vmatprep.mubr.msk.f32.mxu1 %vm439_vm0, %v29981_v44 }
 0x8d8   : > { %20957 = vmatmul.mubr.msk.f32.gmra.mrb[46].mxu1 %vm439_vm0, %v29982_v63 }
 0x8d9   : > { %20959 = vmatprep.mubr.msk.f32.mxu1 %vm439_vm0, %v29983_v13 }
 0x8dc   : > { %20960 = vmatmul.mubr.msk.f32.gmra.mrb[48].mxu1 %vm439_vm0, %v29984_v16 }
 0x8dd   : > { %20962 = vmatprep.mubr.msk.f32.mxu1 %vm439_vm0, %v29985_v19 }
 0x8e0   : > { %20963 = vmatmul.mubr.msk.f32.gmra.mrb[50].mxu1 %vm439_vm0, %v29986_v57 }
 0x8e1   : > { %20965 = vmatprep.mubr.msk.f32.mxu1 %vm439_vm0, %v29987_v56 }
 0x8e4   : > { %20966 = vmatmul.mubr.msk.f32.gmra.mrb[52].mxu1 %vm439_vm0, %v29988_v34 }
 0x8e5   : > { %20968 = vmatprep.mubr.msk.f32.mxu1 %vm439_vm0, %v29989_v30 }
 0x8e8   : > { %20969 = vmatmul.mubr.msk.f32.gmra.mrb[54].mxu1 %vm439_vm0, %v29990_v25 }
 0x8e9   : > { %20971 = vmatprep.mubr.msk.f32.mxu1 %vm439_vm0, %v29991_v52 }
 0x8ec   : > { %20972 = vmatmul.mubr.msk.f32.gmra.mrb[56].mxu1 %vm439_vm0, %v29992_v32 }
 0x8ed   : > { %20974 = vmatprep.mubr.msk.f32.mxu1 %vm439_vm0, %v29993_v61 }
 0x8f0   : > { %20975 = vmatmul.mubr.msk.f32.gmra.mrb[58].mxu1 %vm439_vm0, %v29994_v46 }
 0x8f1   : > { %20977 = vmatprep.mubr.msk.f32.mxu1 %vm439_vm0, %v29995_v8 }
 0x8f4   : > { %20978 = vmatmul.mubr.msk.f32.gmra.mrb[60].mxu1 %vm439_vm0, %v29996_v36 }
 0x8f5   : > { %20980 = vmatprep.mubr.msk.f32.mxu1 %vm439_vm0, %v29997_v42 }
 0x8f8   : > { %20981 = vmatmul.mubr.msk.f32.gmra.mrb[62].mxu1 %vm439_vm0, %v29998_v60 }
 0x8f9   : > { %20983 = vmatprep.mubr.msk.f32.mxu1 %vm439_vm0, %v29999_v15 }
 0x8fc   : > { %20984 = vmatmul.mubr.msk.f32.gmra.mrb[64].mxu1 %vm439_vm0, %v30000_v51 }
 0x8fd   : > { %20986 = vmatprep.mubr.msk.f32.mxu1 %vm439_vm0, %v30001_v50 }
 0x900   : > { %20987 = vmatmul.mubr.msk.f32.gmra.mrb[66].mxu1 %vm439_vm0, %v30002_v22  ;;  %v11403_v22 = vld [vmem:[%s29378_s7 + $0xf8] sm:$0xff] }
 0x901   : > { %20989 = vmatprep.mubr.msk.f32.mxu1 %vm439_vm0, %v30003_v49  ;;  %v11790_v49 = vld [vmem:[%s29378_s7 + $0x108] sm:$0xff] }
 0x904   : > { %20990 = vmatmul.mubr.msk.f32.gmra.mrb[68].mxu1 %vm439_vm0, %v30004_v62  ;;  %v21879_v62 = vpack.c.bf16 %v11403_v22, %v11402_v2  ;;  %v11391_v22 = vld [vmem:[#allocation2 + $0x141] sm:$0xff]  ;;  %v11398_v2 = vld [vmem:[#allocation2 + $0x199] sm:$0xff] }
 0x905   : > { %20992 = vmatprep.mubr.msk.f32.mxu1 %vm439_vm0, %v27536_v54  ;;  %v11789_v54 = vld [vmem:[%s29378_s7 + $0x100] sm:$0xff] }
 0x908   : > { %20993 = vmatmul.mubr.msk.f32.gmra.mrb[70].mxu1 %vm439_vm0, %v27540_v48  ;;  %v21883_v48 = vpack.c.bf16 %v11790_v49, %v11789_v54  ;;  %v11392_v49 = vld [vmem:[#allocation2 + $0x151] sm:$0xff]  ;;  %v11394_v54 = vld [vmem:[#allocation2 + $0x169] sm:$0xff] }
 0x909   : > { %21003 = vmatprep.mubr.msk.f32.mxu1 %vm439_vm0, %v27052_v7  ;;  %v11382_v7 = vld [vmem:[#allocation2 + $0xd9] sm:$0xff] }
 0x90c   : > { %21004 = vmatmul.mubr.msk.f32.vlgmr.msra.gmra.mrb[40].mxu1 %vm439_vm0, %v27057_v45  ;;  %v11383_v45 = vld [vmem:[#allocation2 + $0xe1] sm:$0xff] }
 0x90d   : > { %21006 = vmatprep.mubr.msk.f32.mxu1 %vm439_vm0, %v27061_v18  ;;  %21878 = vmatpush3.bf16.msra.mxu1 %v21875_v35  ;;  %v11384_v18 = vld [vmem:[#allocation2 + $0xf1] sm:$0xff]  ;;  %v11390_v35 = vld [vmem:[#allocation2 + $0x139] sm:$0xff] }
 0x90e   : > { %21880 = vmatprep.subr.bf16.mxu1 %v21879_v62 }
 0x910   : > { %21007 = vmatmul.mubr.msk.f32.gmra.mrb[42].mxu1 %vm439_vm0, %v27065_v3  ;;  %v11385_v3 = vld [vmem:[#allocation2 + $0xf9] sm:$0xff] }
 0x911   : > { %21009 = vmatprep.mubr.msk.f32.mxu1 %vm439_vm0, %v27069_v17  ;;  %21882 = vmatpush3.bf16.msra.mxu1 %v21879_v62  ;;  %v11386_v17 = vld [vmem:[#allocation2 + $0x109] sm:$0xff]  ;;  %v11393_v62 = vld [vmem:[#allocation2 + $0x159] sm:$0xff] }
 0x912   : > { %21884 = vmatprep.subr.bf16.mxu1 %v21883_v48 }
 0x914   : > { %21010 = vmatmul.mubr.msk.f32.gmra.mrb[44].mxu1 %vm439_vm0, %v27073_v9  ;;  %v11387_v9 = vld [vmem:[#allocation2 + $0x111] sm:$0xff] }
 0x915   : > { %21012 = vmatprep.mubr.msk.f32.mxu1 %vm439_vm0, %v27077_v4  ;;  %v11381_v4 = vld [vmem:[#allocation2 + $0xc9] sm:$0xff] }
 0x918   : > { %21013 = vmatmul.mubr.msk.f32.gmra.mrb[46].mxu1 %vm439_vm0, %v27081_v38  ;;  %v11380_v38 = vld [vmem:[#allocation2 + $0xc1] sm:$0xff] }
 0x919   : > { %21015 = vmatprep.mubr.msk.f32.mxu1 %vm439_vm0, %v27085_v29  ;;  %v11379_v29 = vld [vmem:[#allocation2 + $0xb1] sm:$0xff] }
 0x91c   : > { %21016 = vmatmul.mubr.msk.f32.gmra.mrb[48].mxu1 %vm439_vm0, %v27089_v47  ;;  %v11369_v47 = vld [vmem:[#allocation2 + $0x39] sm:$0xff] }
 0x91d   : > { %21018 = vmatprep.mubr.msk.f32.mxu1 %vm439_vm0, %v27093_v33  ;;  %v11378_v33 = vld [vmem:[#allocation2 + $0xa9] sm:$0xff] }
 0x920   : > { %21019 = vmatmul.mubr.msk.f32.gmra.mrb[50].mxu1 %vm439_vm0, %v27097_v24  ;;  %v11377_v24 = vld [vmem:[#allocation2 + $0x99] sm:$0xff] }
 0x921   : > { %21021 = vmatprep.mubr.msk.f32.mxu1 %vm439_vm0, %v27101_v14  ;;  %v11376_v14 = vld [vmem:[#allocation2 + $0x91] sm:$0xff] }
 0x924   : > { %21022 = vmatmul.mubr.msk.f32.gmra.mrb[52].mxu1 %vm439_vm0, %v27105_v5  ;;  %v11371_v5 = vld [vmem:[#allocation2 + $0x51] sm:$0xff] }
 0x925   : > { %21024 = vmatprep.mubr.msk.f32.mxu1 %vm439_vm0, %v27109_v23  ;;  %v11370_v23 = vld [vmem:[#allocation2 + $0x49] sm:$0xff] }
 0x928   : > { %21025 = vmatmul.mubr.msk.f32.gmra.mrb[54].mxu1 %vm439_vm0, %v27113_v31  ;;  %v11375_v31 = vld [vmem:[#allocation2 + $0x81] sm:$0xff] }
 0x929   : > { %21027 = vmatprep.mubr.msk.f32.mxu1 %vm439_vm0, %v27117_v43  ;;  %v11374_v43 = vld [vmem:[#allocation2 + $0x79] sm:$0xff] }
 0x92c   : > { %21028 = vmatmul.mubr.msk.f32.gmra.mrb[56].mxu1 %vm439_vm0, %v27121_v12 }
 0x92d   : > { %21030 = vmatprep.mubr.msk.f32.mxu1 %vm439_vm0, %v27125_v53 }
 0x930   : > { %21031 = vmatmul.mubr.msk.f32.gmra.mrb[58].mxu1 %vm439_vm0, %v27129_v20  ;;  %v11373_v20 = vld [vmem:[#allocation2 + $0x69] sm:$0xff] }
 0x931   : > { %21033 = vmatprep.mubr.msk.f32.mxu1 %vm439_vm0, %v27133_v39  ;;  %v11372_v39 = vld [vmem:[#allocation2 + $0x61] sm:$0xff] }
 0x934   : > { %21034 = vmatmul.mubr.msk.f32.gmra.mrb[60].mxu1 %vm439_vm0, %v27137_v28  ;;  %v11009_v28 = vld [vmem:[#allocation2 + $0x198] sm:$0xff] }
 0x935   : > { %21036 = vmatprep.mubr.msk.f32.mxu1 %vm439_vm0, %v27141_v37  ;;  %v12510_v37 = vld [vmem:[%s29380_s9 + $0x28] sm:$0xff] }
 0x938   : > { %21037 = vmatmul.mubr.msk.f32.gmra.mrb[62].mxu1 %vm439_vm0, %v27145_v41  ;;  %v11010_v41 = vld [vmem:[#allocation2 + $0x1a0] sm:$0xff] }
 0x939   : > { %21039 = vmatprep.mubr.msk.f32.mxu1 %vm439_vm0, %v27149_v59  ;;  %v12509_v59 = vld [vmem:[%s29380_s9 + $0x20] sm:$0xff] }
 0x93a   : > { %v21891_v53 = vpack.c.bf16 %v12510_v37, %v12509_v59 }
 0x93c   : > { %21040 = vmatmul.mubr.msk.f32.gmra.mrb[64].mxu1 %vm439_vm0, %v27153_v40  ;;  %v11791_v40 = vld [vmem:[%s29378_s7 + $0x110] sm:$0xff]  ;;  %21892 = vmatprep.subr.bf16.mxu0 %v21891_v53 }
 0x93d   : > { %21042 = vmatprep.mubr.msk.f32.mxu1 %vm439_vm0, %v27157_v6  ;;  %v11792_v6 = vld [vmem:[%s29378_s7 + $0x118] sm:$0xff]  ;;  %21894 = vmatpush3.bf16.msra.mxu0 %v21891_v53 }
 0x93e   : > { %v21887_v12 = vpack.c.bf16 %v11792_v6, %v11791_v40 }
 0x940   : > { %21043 = vmatmul.mubr.msk.f32.gmra.mrb[66].mxu1 %vm439_vm0, %v27161_v58  ;;  %v11368_v58 = vld [vmem:[#allocation2 + $0x31] sm:$0xff] }
 0x941   : > { %21045 = vmatprep.mubr.msk.f32.mxu1 %vm439_vm0, %v27376_v0  ;;  %v11388_v0 = vld [vmem:[#allocation2 + $0x121] sm:$0xff] }
 0x944   : > { %21046 = vmatmul.mubr.msk.f32.gmra.mrb[68].mxu1 %vm439_vm0, %v27380_v21  ;;  %v11389_v21 = vld [vmem:[#allocation2 + $0x129] sm:$0xff] }
 0x945   : > { %21048 = vmatprep.mubr.msk.f32.mxu1 %vm439_vm0, %v11009_v28  ;;  %v11399_v28 = vld [vmem:[#allocation2 + $0x1a1] sm:$0xff] }
 0x948   : > { %21049 = vmatmul.mubr.msk.f32.gmra.mrb[70].mxu1 %vm439_vm0, %v11010_v41 }
 0x949   : > { %21059 = vmatprep.mubr.msk.f32.mxu1 %vm439_vm0, %v11368_v58 }
 0x94c   : > { %21060 = vmatmul.mubr.msk.f32.vlgmr.msra.gmra.mrb[40].mxu1 %vm439_vm0, %v11369_v47 }
 0x94d   : > { %21062 = vmatprep.mubr.msk.f32.mxu1 %vm439_vm0, %v11370_v23  ;;  %21886 = vmatpush3.bf16.msra.mxu1 %v21883_v48  ;;  %v11395_v48 = vld [vmem:[#allocation2 + $0x171] sm:$0xff] }
 0x94e   : > { %21888 = vmatprep.subr.bf16.mxu1 %v21887_v12 }
 0x950   : > { %21063 = vmatmul.mubr.msk.f32.gmra.mrb[42].mxu1 %vm439_vm0, %v11371_v5 }
 0x951   : > { %21065 = vmatprep.mubr.msk.f32.mxu1 %vm439_vm0, %v11372_v39  ;;  %21890 = vmatpush3.bf16.msra.mxu1 %v21887_v12 }
 0x954   : > { %21066 = vmatmul.mubr.msk.f32.gmra.mrb[44].mxu1 %vm439_vm0, %v11373_v20 }
 0x955   : > { %21068 = vmatprep.mubr.msk.f32.mxu1 %vm439_vm0, %v11374_v43 }
 0x958   : > { %21069 = vmatmul.mubr.msk.f32.gmra.mrb[46].mxu1 %vm439_vm0, %v11375_v31 }
 0x959   : > { %21071 = vmatprep.mubr.msk.f32.mxu1 %vm439_vm0, %v11376_v14 }
 0x95c   : > { %21072 = vmatmul.mubr.msk.f32.gmra.mrb[48].mxu1 %vm439_vm0, %v11377_v24 }
 0x95d   : > { %21074 = vmatprep.mubr.msk.f32.mxu1 %vm439_vm0, %v11378_v33 }
 0x960   : > { %21075 = vmatmul.mubr.msk.f32.gmra.mrb[50].mxu1 %vm439_vm0, %v11379_v29 }
 0x961   : > { %21077 = vmatprep.mubr.msk.f32.mxu1 %vm439_vm0, %v11380_v38 }
 0x964   : > { %21078 = vmatmul.mubr.msk.f32.gmra.mrb[52].mxu1 %vm439_vm0, %v11381_v4 }
 0x965   : > { %21080 = vmatprep.mubr.msk.f32.mxu1 %vm439_vm0, %v11382_v7 }
 0x968   : > { %21081 = vmatmul.mubr.msk.f32.gmra.mrb[54].mxu1 %vm439_vm0, %v11383_v45 }
 0x969   : > { %21083 = vmatprep.mubr.msk.f32.mxu1 %vm439_vm0, %v11384_v18 }
 0x96c   : > { %21084 = vmatmul.mubr.msk.f32.gmra.mrb[56].mxu1 %vm439_vm0, %v11385_v3 }
 0x96d   : > { %21086 = vmatprep.mubr.msk.f32.mxu1 %vm439_vm0, %v11386_v17 }
 0x970   : > { %21087 = vmatmul.mubr.msk.f32.gmra.mrb[58].mxu1 %vm439_vm0, %v11387_v9 }
 0x971   : > { %21089 = vmatprep.mubr.msk.f32.mxu1 %vm439_vm0, %v11388_v0 }
 0x974   : > { %21090 = vmatmul.mubr.msk.f32.gmra.mrb[60].mxu1 %vm439_vm0, %v11389_v21 }
 0x975   : > { %21092 = vmatprep.mubr.msk.f32.mxu1 %vm439_vm0, %v11390_v35 }
 0x978   : > { %21093 = vmatmul.mubr.msk.f32.gmra.mrb[62].mxu1 %vm439_vm0, %v11391_v22 }
 0x979   : > { %21095 = vmatprep.mubr.msk.f32.mxu1 %vm439_vm0, %v11392_v49 }
 0x97c   : > { %21096 = vmatmul.mubr.msk.f32.gmra.mrb[64].mxu1 %vm439_vm0, %v11393_v62 }
 0x97d   : > { %21098 = vmatprep.mubr.msk.f32.mxu1 %vm439_vm0, %v11394_v54 }
 0x980   : > { %21099 = vmatmul.mubr.msk.f32.gmra.mrb[66].mxu1 %vm439_vm0, %v11395_v48 }
 0x981   : > { %21101 = vmatprep.mubr.msk.f32.mxu1 %vm439_vm0, %v27456_v11  ;;  %v30007_v11 = vld [vmem:[#allocation97_spill] sm:$0xff] }
 0x984   : > { %21102 = vmatmul.mubr.msk.f32.gmra.mrb[68].mxu1 %vm439_vm0, %v27460_v26  ;;  %v30008_v26 = vld [vmem:[#allocation98_spill] sm:$0xff] }
 0x985   : > { %21104 = vmatprep.mubr.msk.f32.mxu1 %vm439_vm0, %v11398_v2 }
 0x988   : > { %21105 = vmatmul.mubr.msk.f32.gmra.mrb[70].mxu1 %vm439_vm0, %v11399_v28 }
 0x989   : > { %21115 = vmatprep.mubr.msk.f32.mxu1 %vm439_vm0, %v29977_v27  ;;  %v30009_v27 = vld [vmem:[#allocation99_spill] sm:$0xff] }
 0x98c   : > { %21116 = vmatmul.mubr.msk.f32.vlgmr.msra.gmra.mrb[40].mxu1 %vm439_vm0, %v29978_v55  ;;  %v30010_v55 = vld [vmem:[#allocation70_spill] sm:$0xff] }
 0x98d   : > { %21118 = vmatprep.mubr.msk.f32.mxu1 %vm439_vm0, %v29979_v10  ;;  %v11787_v10 = vld [vmem:[#allocation2 + $0x19a] sm:$0xff] }
 0x990   : > { %21119 = vmatmul.mubr.msk.f32.gmra.mrb[42].mxu1 %vm439_vm0, %v29980_v1  ;;  %v30011_v1 = vld [vmem:[#allocation39_spill] sm:$0xff] }
 0x991   : > { %21121 = vmatprep.mubr.msk.f32.mxu1 %vm439_vm0, %v29981_v44  ;;  %v11788_v44 = vld [vmem:[#allocation2 + $0x1a2] sm:$0xff] }
 0x994   : > { %21122 = vmatmul.mubr.msk.f32.gmra.mrb[44].mxu1 %vm439_vm0, %v29982_v63  ;;  %v12511_v63 = vld [vmem:[%s29380_s9 + $0x30] sm:$0xff] }
 0x995   : > { %21124 = vmatprep.mubr.msk.f32.mxu1 %vm439_vm0, %v29983_v13  ;;  %v12512_v13 = vld [vmem:[%s29380_s9 + $0x38] sm:$0xff] }
 0x998   : > { %21125 = vmatmul.mubr.msk.f32.gmra.mrb[46].mxu1 %vm439_vm0, %v29984_v16  ;;  %v21895_v16 = vpack.c.bf16 %v12512_v13, %v12511_v63 }
 0x999   : > { %21127 = vmatprep.mubr.msk.f32.mxu1 %vm439_vm0, %v29985_v19  ;;  %v12477_v19 = vld [vmem:[#allocation2 + $0x1] sm:$0xff] }
 0x99a   : > { %21896 = vmatprep.subr.bf16.mxu0 %v21895_v16  ;;  %21171 = vmatprep.mubr.msk.f32.mxu0 %vm439_vm0, %v12477_v19 }
 0x99b   : > { %21898 = vmatpush3.bf16.msra.mxu0 %v21895_v16 }
 0x99c   : > { %21128 = vmatmul.mubr.msk.f32.gmra.mrb[48].mxu1 %vm439_vm0, %v29986_v57  ;;  %v12478_v57 = vld [vmem:[#allocation2 + $0x9] sm:$0xff] }
 0x99d   : > { %21130 = vmatprep.mubr.msk.f32.mxu1 %vm439_vm0, %v29987_v56  ;;  %v12473_v56 = vld [vmem:[%s29380_s9] sm:$0xff] }
 0x99e   : > { %21172 = vmatmul.mubr.msk.f32.vlgmr.msra.gmra.mrb[56].mxu0 %vm439_vm0, %v12478_v57 }
 0x9a0   : > { %21131 = vmatmul.mubr.msk.f32.gmra.mrb[50].mxu1 %vm439_vm0, %v29988_v34  ;;  %v12474_v34 = vld [vmem:[%s29380_s9 + $0x8] sm:$0xff] }
 0x9a1   : > { %21133 = vmatprep.mubr.msk.f32.mxu1 %vm439_vm0, %v29989_v30  ;;  %v21899_v30 = vpack.c.bf16 %v12474_v34, %v12473_v56 }
 0x9a3   : > { %21900 = vmatprep.subr.bf16.mxu0 %v21899_v30 }
 0x9a4   : > { %21134 = vmatmul.mubr.msk.f32.gmra.mrb[52].mxu1 %vm439_vm0, %v29990_v25  ;;  %21902 = vmatpush3.bf16.msra.mxu0 %v21899_v30  ;;  %v12475_v25 = vld [vmem:[%s29380_s9 + $0x10] sm:$0xff] }
 0x9a5   : > { %21136 = vmatprep.mubr.msk.f32.mxu1 %vm439_vm0, %v29991_v52  ;;  %v12476_v52 = vld [vmem:[%s29380_s9 + $0x18] sm:$0xff] }
 0x9a8   : > { %21137 = vmatmul.mubr.msk.f32.gmra.mrb[54].mxu1 %vm439_vm0, %v29992_v32  ;;  %v21903_v32 = vpack.c.bf16 %v12476_v52, %v12475_v25 }
 0x9a9   : > { %21139 = vmatprep.mubr.msk.f32.mxu1 %vm439_vm0, %v29993_v61  ;;  %v13187_v61 = vld [vmem:[%s29380_s9 + $0x40] sm:$0xff] }
 0x9aa   : > { %21904 = vmatprep.subr.bf16.mxu0 %v21903_v32 }
 0x9ab   : > { %21906 = vmatpush3.bf16.msra.mxu0 %v21903_v32 }
 0x9ac   : > { %21140 = vmatmul.mubr.msk.f32.gmra.mrb[56].mxu1 %vm439_vm0, %v29994_v46  ;;  %v13188_v46 = vld [vmem:[%s29380_s9 + $0x48] sm:$0xff] }
 0x9ad   : > { %21142 = vmatprep.mubr.msk.f32.mxu1 %vm439_vm0, %v29995_v8  ;;  %v27752_v8 = vpack.c.bf16 %v13188_v46, %v13187_v61 }
 0x9af   : > { %21908 = vmatprep.subr.bf16.mxu0 %v27752_v8 }
 0x9b0   : > { %21143 = vmatmul.mubr.msk.f32.gmra.mrb[58].mxu1 %vm439_vm0, %v29996_v36  ;;  %v27758_v36 = vld [vmem:[%s29379_s8] ss:$0 sm:$0xff] }
 0x9b1   : > { %21145 = vmatprep.mubr.msk.f32.mxu1 %vm439_vm0, %v29997_v42 }
 0x9b4   : > { %21146 = vmatmul.mubr.msk.f32.gmra.mrb[60].mxu1 %vm439_vm0, %v29998_v60 }
 0x9b5   : > { %21148 = vmatprep.mubr.msk.f32.mxu1 %vm439_vm0, %v29999_v15 }
 0x9b8   : > { %21149 = vmatmul.mubr.msk.f32.gmra.mrb[62].mxu1 %vm439_vm0, %v30000_v51 }
 0x9b9   : > { %21151 = vmatprep.mubr.msk.f32.mxu1 %vm439_vm0, %v30001_v50 }
 0x9bc   : > { %21152 = vmatmul.mubr.msk.f32.gmra.mrb[64].mxu1 %vm439_vm0, %v30007_v11 }
 0x9bd   : > { %21154 = vmatprep.mubr.msk.f32.mxu1 %vm439_vm0, %v30008_v26 }
 0x9c0   : > { %21155 = vmatmul.mubr.msk.f32.gmra.mrb[66].mxu1 %vm439_vm0, %v30009_v27 }
 0x9c1   : > { %21157 = vmatprep.mubr.msk.f32.mxu1 %vm439_vm0, %v30010_v55 }
 0x9c4   : > { %21158 = vmatmul.mubr.msk.f32.gmra.mrb[68].mxu1 %vm439_vm0, %v30011_v1 }
 0x9c5   : > { %21160 = vmatprep.mubr.msk.f32.mxu1 %vm439_vm0, %v11787_v10 }
 0x9c8   : > { %21161 = vmatmul.mubr.msk.f32.gmra.mrb[70].mxu1 %vm439_vm0, %v11788_v44 }
 0xa5f   : > { %v21117_v42 = vpop.f32.mrb[40].mxu1 }
 0xa60   : > { %v27761_v60 = vadd.f32 %v21117_v42, %v27758_v36  ;;  %v11955_v15 = vpop.f32.mrb[41].mxu1 }
 0xa61   : > { %v27764_v51 = vadd.f32 %v27758_v36, %v11955_v15 }
 0xa62   : > { %v17840_v50 = vmul.f32 -1.442695, %v27761_v60 }
 0xa63   : > { %v17839_v41 = vmul.f32 -1.442695, %v27764_v51  ;;  %v21120_v40 = vpop.f32.mrb[42].mxu1 }
 0xa64   : > { %23614 = vpow2.f32 %v17840_v50  ;;  %v27769_v6 = vadd.f32 %v21120_v40, %v27758_v36  ;;  %v11965_v58 = vpop.f32.mrb[43].mxu1 }
 0xa65   : > { %23616 = vpow2.f32 %v17839_v41  ;;  %v27772_v59 = vadd.f32 %v27758_v36, %v11965_v58 }
 0xa66   : > { %v17842_v37 = vmul.f32 -1.442695, %v27769_v6 }
 0xa67   : > { %v17841_v53 = vmul.f32 -1.442695, %v27772_v59  ;;  %v21123_v12 = vpop.f32.mrb[44].mxu1 }
 0xa68   : > { %23618 = vpow2.f32 %v17842_v37  ;;  %v27777_v47 = vadd.f32 %v21123_v12, %v27758_v36  ;;  %v11975_v23 = vpop.f32.mrb[45].mxu1 }
 0xa69   : > { %23620 = vpow2.f32 %v17841_v53  ;;  %v27780_v5 = vadd.f32 %v27758_v36, %v11975_v23 }
 0xa6a   : > { %v17844_v39 = vmul.f32 -1.442695, %v27777_v47 }
 0xa6b   : > { %v17843_v20 = vmul.f32 -1.442695, %v27780_v5  ;;  %v21126_v43 = vpop.f32.mrb[46].mxu1 }
 0xa6c   : > { %23622 = vpow2.f32 %v17844_v39  ;;  %v27785_v31 = vadd.f32 %v21126_v43, %v27758_v36  ;;  %v11985_v14 = vpop.f32.mrb[47].mxu1 }
 0xa6d   : > { %23624 = vpow2.f32 %v17843_v20  ;;  %v27788_v24 = vadd.f32 %v27758_v36, %v11985_v14 }
 0xa6e   : > { %v23615_v33 = vpop.eup %23614  ;;  %v17846_v29 = vmul.f32 -1.442695, %v27785_v31 }
 0xa6f   : > { %v23617_v38 = vpop.eup %23616  ;;  %v12282_v4 = vadd.f32 1.0, %v23615_v33  ;;  %v17845_v7 = vmul.f32 -1.442695, %v27788_v24  ;;  %v21129_v45 = vpop.f32.mrb[48].mxu1 }
 0xa70   : > { %v12281_v18 = vadd.f32 1.0, %v23617_v38  ;;  %23626 = vpow2.f32 %v17846_v29  ;;  %v27793_v3 = vadd.f32 %v21129_v45, %v27758_v36  ;;  %v11995_v17 = vpop.f32.mrb[49].mxu1 }
 0xa71   : > { %23628 = vrcp.f32 %v12282_v4  ;;  %v27796_v9 = vadd.f32 %v27758_v36, %v11995_v17 }
 0xa72   : > { %v23619_v0 = vpop.eup %23618  ;;  %23630 = vrcp.f32 %v12281_v18  ;;  %v17848_v21 = vmul.f32 -1.442695, %v27793_v3 }
 0xa73   : > { %v23621_v35 = vpop.eup %23620  ;;  %v12284_v22 = vadd.f32 1.0, %v23619_v0  ;;  %23632 = vpow2.f32 %v17845_v7  ;;  %v17847_v49 = vmul.f32 -1.442695, %v27796_v9  ;;  %v21132_v62 = vpop.f32.mrb[50].mxu1 }
 0xa74   : > { %v12283_v54 = vadd.f32 1.0, %v23621_v35  ;;  %23634 = vpow2.f32 %v17848_v21  ;;  %v27801_v48 = vadd.f32 %v21132_v62, %v27758_v36  ;;  %v12005_v2 = vpop.f32.mrb[51].mxu1 }
 0xa75   : > { %23636 = vrcp.f32 %v12284_v22  ;;  %v27804_v28 = vadd.f32 %v27758_v36, %v12005_v2 }
 0xa76   : > { %v23623_v11 = vpop.eup %23622  ;;  %23638 = vrcp.f32 %v12283_v54  ;;  %v17850_v26 = vmul.f32 -1.442695, %v27801_v48 }
 0xa77   : > { %v23625_v27 = vpop.eup %23624  ;;  %v12286_v55 = vadd.f32 1.0, %v23623_v11  ;;  %23640 = vpow2.f32 %v17847_v49  ;;  %v17849_v10 = vmul.f32 -1.442695, %v27804_v28  ;;  %v21135_v1 = vpop.f32.mrb[52].mxu1 }
 0xa78   : > { %v12285_v44 = vadd.f32 1.0, %v23625_v27  ;;  %23642 = vpow2.f32 %v17850_v26  ;;  %v27809_v63 = vadd.f32 %v21135_v1, %v27758_v36  ;;  %v12015_v13 = vpop.f32.mrb[53].mxu1 }
 0xa79   : > { %23644 = vrcp.f32 %v12286_v55  ;;  %v27812_v16 = vadd.f32 %v27758_v36, %v12015_v13 }
 0xa7a   : > { %v23627_v19 = vpop.eup %23626  ;;  %23646 = vrcp.f32 %v12285_v44  ;;  %v17852_v57 = vmul.f32 -1.442695, %v27809_v63 }
 0xa7b   : > { %v23629_v56 = vpop.eup %23628  ;;  %v12288_v34 = vadd.f32 1.0, %v23627_v19  ;;  %23648 = vpow2.f32 %v17849_v10  ;;  %v17851_v30 = vmul.f32 -1.442695, %v27812_v16  ;;  %v21138_v25 = vpop.f32.mrb[54].mxu1 }
 0xa7c   : > { %v23631_v52 = vpop.eup %23630  ;;  %v12378_v32 = vmul.f32 %v23629_v56, %v27761_v60  ;;  %23650 = vpow2.f32 %v17852_v57  ;;  %v27818_v61 = vadd.f32 %v21138_v25, %v27758_v36  ;;  %v12025_v46 = vpop.f32.mrb[55].mxu1 }
 0xa7d   : > { %v23633_v42 = vpop.eup %23632  ;;  %v12377_v15 = vmul.f32 %v23631_v52, %v27764_v51  ;;  %23652 = vrcp.f32 %v12288_v34  ;;  %v27822_v50 = vadd.f32 %v27758_v36, %v12025_v46 }
 0xa7e   : > { %v23635_v41 = vpop.eup %23634  ;;  %12410 = vst.msk [vmem:[#allocation2 + $0x21] sm:$0xff] %vm439_vm0, %v12378_v32  ;;  %v12287_v40 = vadd.f32 1.0, %v23633_v42  ;;  %23654 = vpow2.f32 %v17851_v30  ;;  %v17854_v58 = vmul.f32 -1.442695, %v27818_v61 }
 0xa7f   : > { %v23637_v60 = vpop.eup %23636  ;;  %12409 = vst.msk [vmem:[#allocation2 + $0x19] sm:$0xff] %vm439_vm0, %v12377_v15  ;;  %v12290_v37 = vadd.f32 1.0, %v23635_v41  ;;  %v17853_v53 = vmul.f32 -1.442695, %v27822_v50  ;;  %v21141_v12 = vpop.f32.mrb[56].mxu1 }
 0xa80   : > { %v23639_v23 = vpop.eup %23638  ;;  %v12380_v51 = vmul.f32 %v23637_v60, %v27769_v6  ;;  %23656 = vrcp.f32 %v12287_v40  ;;  %v27830_v39 = vadd.f32 %v21141_v12, %v27758_v36  ;;  %v12035_v20 = vpop.f32.mrb[57].mxu1 }
 0xa81   : > { %v23641_v43 = vpop.eup %23640  ;;  %v12379_v14 = vmul.f32 %v23639_v23, %v27772_v59  ;;  %23658 = vrcp.f32 %v12290_v37  ;;  %v27834_v33 = vadd.f32 %v27758_v36, %v12035_v20 }
 0xa82   : > { %v23643_v29 = vpop.eup %23642  ;;  %12412 = vst.msk [vmem:[#allocation2 + $0x39] sm:$0xff] %vm439_vm0, %v12380_v51  ;;  %v12289_v38 = vadd.f32 1.0, %v23641_v43  ;;  %23660 = vpow2.f32 %v17854_v58  ;;  %v17856_v4 = vmul.f32 -1.442695, %v27830_v39 }
 0xa83   : > { %v23645_v6 = vpop.eup %23644  ;;  %12411 = vst.msk [vmem:[#allocation2 + $0x31] sm:$0xff] %vm439_vm0, %v12379_v14  ;;  %v12292_v7 = vadd.f32 1.0, %v23643_v29  ;;  %23662 = vpow2.f32 %v17853_v53  ;;  %v17855_v45 = vmul.f32 -1.442695, %v27834_v33  ;;  %v21144_v18 = vpop.f32.mrb[58].mxu1 }
 0xa84   : > { %v23647_v59 = vpop.eup %23646  ;;  %v12382_v17 = vmul.f32 %v23645_v6, %v27777_v47  ;;  %23664 = vrcp.f32 %v12289_v38  ;;  %v27842_v0 = vadd.f32 %v21144_v18, %v27758_v36  ;;  %v12045_v21 = vpop.f32.mrb[59].mxu1 }
 0xa85   : > { %v23649_v35 = vpop.eup %23648  ;;  %v12381_v22 = vmul.f32 %v23647_v59, %v27780_v5  ;;  %23666 = vrcp.f32 %v12292_v7  ;;  %v27846_v49 = vadd.f32 %v27758_v36, %v12045_v21  ;;  %v27855_v5 = vld [vmem:[#allocation2 + $0x21] sm:$0xff] }
 0xa86   : > { %v23651_v62 = vpop.eup %23650  ;;  %12414 = vst.msk [vmem:[#allocation2 + $0x51] sm:$0xff] %vm439_vm0, %v12382_v17  ;;  %v12291_v54 = vadd.f32 1.0, %v23649_v35  ;;  %23668 = vpow2.f32 %v17856_v4  ;;  %v17858_v2 = vmul.f32 -1.442695, %v27842_v0  ;;  %v27850_v47 = vld [vmem:[#allocation2 + $0x19] sm:$0xff] }
 0xa87   : > { %v23653_v11 = vpop.eup %23652  ;;  %12413 = vst.msk [vmem:[#allocation2 + $0x49] sm:$0xff] %vm439_vm0, %v12381_v22  ;;  %v12294_v26 = vadd.f32 1.0, %v23651_v62  ;;  %23670 = vpow2.f32 %v17855_v45  ;;  %v21147_v27 = vpop.f32.mrb[60].mxu1  ;;  %21174 = vmatprep.mubr.msk.f32.mxu0 %vm439_vm0, %v27850_v47  ;;  %v17857_v1 = vmul.f32 -1.442695, %v27846_v49 }
 0xa88   : > { %v23655_v55 = vpop.eup %23654  ;;  %v12384_v10 = vmul.f32 %v23653_v11, %v27785_v31  ;;  %23672 = vrcp.f32 %v12291_v54  ;;  %v27860_v44 = vadd.f32 %v21147_v27, %v27758_v36  ;;  %v12055_v13 = vpop.f32.mrb[61].mxu1  ;;  %21175 = vmatmul.mubr.msk.f32.gmra.mrb[58].mxu0 %vm439_vm0, %v27855_v5 }
 0xa89   : > { %23674 = vrcp.f32 %v12294_v26  ;;  %v12293_v19 = vadd.f32 1.0, %v23655_v55  ;;  %v27865_v57 = vadd.f32 %v27758_v36, %v12055_v13  ;;  %v27875_v46 = vld [vmem:[#allocation2 + $0x39] sm:$0xff] }
 0xa8a   : > { %v23657_v56 = vpop.eup %23656  ;;  %12416 = vst.msk [vmem:[#allocation2 + $0x69] sm:$0xff] %vm439_vm0, %v12384_v10  ;;  %23676 = vpow2.f32 %v17858_v2  ;;  %v17860_v31 = vmul.f32 -1.442695, %v27860_v44  ;;  %v27869_v34 = vld [vmem:[#allocation2 + $0x31] sm:$0xff] }
 0xa8b   : > { %v23659_v30 = vpop.eup %23658  ;;  %v12383_v25 = vmul.f32 %v23657_v56, %v27788_v24  ;;  %23678 = vrcp.f32 %v12293_v19  ;;  %v17859_v52 = vmul.f32 -1.442695, %v27865_v57  ;;  %v21150_v32 = vpop.f32.mrb[62].mxu1  ;;  %21177 = vmatprep.mubr.msk.f32.mxu0 %vm439_vm0, %v27869_v34 }
 0xa8c   : > { %v23661_v42 = vpop.eup %23660  ;;  %v12386_v15 = vmul.f32 %v23659_v30, %v27793_v3  ;;  %23680 = vpow2.f32 %v17857_v1  ;;  %v27879_v41 = vadd.f32 %v21150_v32, %v27758_v36  ;;  %v12065_v40 = vpop.f32.mrb[63].mxu1  ;;  %21178 = vmatmul.mubr.msk.f32.gmra.mrb[60].mxu0 %vm439_vm0, %v27875_v46 }
 0xa8d   : > { %v23663_v24 = vpop.eup %23662  ;;  %12415 = vst.msk [vmem:[#allocation2 + $0x61] sm:$0xff] %vm439_vm0, %v12383_v25  ;;  %v12296_v58 = vadd.f32 1.0, %v23661_v42  ;;  %23682 = vpow2.f32 %v17860_v31  ;;  %v27885_v60 = vadd.f32 %v27758_v36, %v12065_v40  ;;  %v27895_v14 = vld [vmem:[#allocation2 + $0x51] sm:$0xff] }
 0xa8e   : > { %v23665_v37 = vpop.eup %23664  ;;  %12418 = vst.msk [vmem:[#allocation2 + $0x81] sm:$0xff] %vm439_vm0, %v12386_v15  ;;  %v12295_v3 = vadd.f32 1.0, %v23663_v24  ;;  %23684 = vpow2.f32 %v17859_v52  ;;  %v17862_v53 = vmul.f32 -1.442695, %v27879_v41  ;;  %v27889_v12 = vld [vmem:[#allocation2 + $0x49] sm:$0xff] }
 0xa8f   : > { %v23667_v23 = vpop.eup %23666  ;;  %v12385_v51 = vmul.f32 %v23665_v37, %v27796_v9  ;;  %23686 = vrcp.f32 %v12296_v58  ;;  %v17861_v20 = vmul.f32 -1.442695, %v27885_v60  ;;  %v21153_v43 = vpop.f32.mrb[64].mxu1  ;;  %21180 = vmatprep.mubr.msk.f32.mxu0 %vm439_vm0, %v27889_v12 }
 0xa90   : > { %v23669_v29 = vpop.eup %23668  ;;  %v12388_v38 = vmul.f32 %v23667_v23, %v27801_v48  ;;  %23688 = vrcp.f32 %v12295_v3  ;;  %v27899_v4 = vadd.f32 %v21153_v43, %v27758_v36  ;;  %v12075_v6 = vpop.f32.mrb[65].mxu1  ;;  %21181 = vmatmul.mubr.msk.f32.gmra.mrb[62].mxu0 %vm439_vm0, %v27895_v14 }
 0xa91   : > { %v23671_v9 = vpop.eup %23670  ;;  %12417 = vst.msk [vmem:[#allocation2 + $0x79] sm:$0xff] %vm439_vm0, %v12385_v51  ;;  %v12298_v7 = vadd.f32 1.0, %v23669_v29  ;;  %23690 = vpow2.f32 %v17862_v53  ;;  %v27905_v45 = vadd.f32 %v27758_v36, %v12075_v6  ;;  %v27923_v10 = vld [vmem:[#allocation2 + $0x69] sm:$0xff] }
 0xa92   : > { %v23673_v18 = vpop.eup %23672  ;;  %12420 = vst.msk [vmem:[#allocation2 + $0x99] sm:$0xff] %vm439_vm0, %v12388_v38  ;;  %v12297_v48 = vadd.f32 1.0, %v23671_v9  ;;  %23692 = vpow2.f32 %v17861_v20  ;;  %v17864_v59 = vmul.f32 -1.442695, %v27899_v4 }
 0xa93   : > { %v23675_v17 = vpop.eup %23674  ;;  %v12387_v21 = vmul.f32 %v23673_v18, %v27804_v28  ;;  %23694 = vrcp.f32 %v12298_v7  ;;  %v17863_v35 = vmul.f32 -1.442695, %v27905_v45  ;;  %v21156_v22 = vpop.f32.mrb[66].mxu1 }
 0xa94   : > { %v23677_v62 = vpop.eup %23676  ;;  %v12390_v54 = vmul.f32 %v23675_v17, %v27809_v63  ;;  %23696 = vrcp.f32 %v12297_v48  ;;  %v27913_v2 = vadd.f32 %v21156_v22, %v27758_v36  ;;  %v27915_v11 = vld [vmem:[#allocation2 + $0x61] sm:$0xff]  ;;  %v12085_v26 = vpop.f32.mrb[67].mxu1 }
 0xa95   : > { %v23679_v27 = vpop.eup %23678  ;;  %12419 = vst.msk [vmem:[#allocation2 + $0x91] sm:$0xff] %vm439_vm0, %v12387_v21  ;;  %v12300_v55 = vadd.f32 1.0, %v23677_v62  ;;  %23698 = vpow2.f32 %v17864_v59  ;;  %21183 = vmatprep.mubr.msk.f32.mxu0 %vm439_vm0, %v27915_v11  ;;  %v27921_v28 = vadd.f32 %v27758_v36, %v12085_v26  ;;  %v27942_v58 = vld [vmem:[#allocation2 + $0x81] sm:$0xff] }
 0xa96   : > { %v23681_v63 = vpop.eup %23680  ;;  %12422 = vst.msk [vmem:[#allocation2 + $0xb1] sm:$0xff] %vm439_vm0, %v12390_v54  ;;  %v12389_v1 = vmul.f32 %v23679_v27, %v27812_v16  ;;  %23700 = vpow2.f32 %v17863_v35  ;;  %v17866_v13 = vmul.f32 -1.442695, %v27913_v2  ;;  %21184 = vmatmul.mubr.msk.f32.gmra.mrb[64].mxu0 %vm439_vm0, %v27923_v10 }
 0xa97   : > { %v23683_v19 = vpop.eup %23682  ;;  %23702 = vrcp.f32 %v12300_v55  ;;  %v12299_v56 = vadd.f32 1.0, %v23681_v63  ;;  %v21159_v31 = vpop.f32.mrb[68].mxu1  ;;  %v17865_v52 = vmul.f32 -1.442695, %v27921_v28 }
 0xa98   : > { %v23685_v30 = vpop.eup %23684  ;;  %12421 = vst.msk [vmem:[#allocation2 + $0xa9] sm:$0xff] %vm439_vm0, %v12389_v1  ;;  %v12302_v25 = vadd.f32 1.0, %v23683_v19  ;;  %23704 = vpow2.f32 %v17866_v13  ;;  %v27933_v32 = vadd.f32 %v21159_v31, %v27758_v36  ;;  %v27935_v16 = vld [vmem:[#allocation2 + $0x79] sm:$0xff]  ;;  %v12095_v42 = vpop.f32.mrb[69].mxu1 }
 0xa99   : > { %v23687_v15 = vpop.eup %23686  ;;  %23706 = vrcp.f32 %v12299_v56  ;;  %v12301_v40 = vadd.f32 1.0, %v23685_v30  ;;  %21186 = vmatprep.mubr.msk.f32.mxu0 %vm439_vm0, %v27935_v16  ;;  %v27940_v24 = vadd.f32 %v27758_v36, %v12095_v42  ;;  %v27962_v48 = vld [vmem:[#allocation2 + $0x99] sm:$0xff] }
 0xa9a   : > { %v23689_v37 = vpop.eup %23688  ;;  %v12392_v3 = vmul.f32 %v23687_v15, %v27818_v61  ;;  %23708 = vrcp.f32 %v12302_v25  ;;  %v17868_v53 = vmul.f32 -1.442695, %v27933_v32  ;;  %21187 = vmatmul.mubr.msk.f32.gmra.mrb[66].mxu0 %vm439_vm0, %v27942_v58 }
 0xa9b   : > { %v23691_v23 = vpop.eup %23690  ;;  %v12391_v51 = vmul.f32 %v23689_v37, %v27822_v50  ;;  %23710 = vrcp.f32 %v12301_v40  ;;  %v21162_v20 = vpop.f32.mrb[70].mxu1  ;;  %v17867_v38 = vmul.f32 -1.442695, %v27940_v24 }
 0xa9c   : > { %v23693_v43 = vpop.eup %23692  ;;  %12424 = vst.msk [vmem:[#allocation2 + $0xc9] sm:$0xff] %vm439_vm0, %v12392_v3  ;;  %v12304_v29 = vadd.f32 1.0, %v23691_v23  ;;  %23712 = vpow2.f32 %v17865_v52  ;;  %v27952_v61 = vadd.f32 %v21162_v20, %v27758_v36  ;;  %v27954_v6 = vld [vmem:[#allocation2 + $0x91] sm:$0xff]  ;;  %v12105_v9 = vpop.f32.mrb[71].mxu1 }
 0xa9d   : > { %v23695_v7 = vpop.eup %23694  ;;  %12423 = vst.msk [vmem:[#allocation2 + $0xc1] sm:$0xff] %vm439_vm0, %v12391_v51  ;;  %v12303_v18 = vadd.f32 1.0, %v23693_v43  ;;  %23714 = vpow2.f32 %v17868_v53  ;;  %21189 = vmatprep.mubr.msk.f32.mxu0 %vm439_vm0, %v27954_v6  ;;  %v27960_v50 = vadd.f32 %v27758_v36, %v12105_v9  ;;  %v27976_v55 = vld [vmem:[#allocation2 + $0xb1] sm:$0xff] }
 0xa9e   : > { %v23697_v59 = vpop.eup %23696  ;;  %v12394_v17 = vmul.f32 %v23695_v7, %v27830_v39  ;;  %23716 = vrcp.f32 %v12304_v29  ;;  %v17870_v21 = vmul.f32 -1.442695, %v27952_v61  ;;  %21190 = vmatmul.mubr.msk.f32.gmra.mrb[68].mxu0 %vm439_vm0, %v27962_v48 }
 0xa9f   : > { %v23699_v35 = vpop.eup %23698  ;;  %v12393_v22 = vmul.f32 %v23697_v59, %v27834_v33  ;;  %23718 = vrcp.f32 %v12303_v18  ;;  %v27969_v62 = vld [vmem:[#allocation2 + $0xa9] sm:$0xff]  ;;  %v17869_v26 = vmul.f32 -1.442695, %v27960_v50 }
 0xaa0   : > { %v23701_v54 = vpop.eup %23700  ;;  %12426 = vst.msk [vmem:[#allocation2 + $0xe1] sm:$0xff] %vm439_vm0, %v12394_v17  ;;  %v12306_v36 = vadd.f32 1.0, %v23699_v35  ;;  %23720 = vpow2.f32 %v17867_v38  ;;  %21192 = vmatprep.mubr.msk.f32.mxu0 %vm439_vm0, %v27969_v62 }
 0xaa1   : > { %v23703_v39 = vpop.eup %23702  ;;  %12425 = vst.msk [vmem:[#allocation2 + $0xd9] sm:$0xff] %vm439_vm0, %v12393_v22  ;;  %v12305_v27 = vadd.f32 1.0, %v23701_v54  ;;  %23722 = vpow2.f32 %v17870_v21 }
 0xaa2   : > { %v23705_v33 = vpop.eup %23704  ;;  %v12396_v63 = vmul.f32 %v23703_v39, %v27842_v0  ;;  %23724 = vrcp.f32 %v12306_v36  ;;  %21193 = vmatmul.mubr.msk.f32.gmra.mrb[70].mxu0 %vm439_vm0, %v27976_v55 }
 0xaa3   : > { %v23707_v1 = vpop.eup %23706  ;;  %23726 = vrcp.f32 %v12305_v27  ;;  %v12308_v13 = vadd.f32 1.0, %v23705_v33  ;;  %v27988_v0 = vld [vmem:[#allocation2 + $0xc9] sm:$0xff] }
 0xaa4   : > { %v23709_v19 = vpop.eup %23708  ;;  %12428 = vst.msk [vmem:[#allocation2 + $0xf9] sm:$0xff] %vm439_vm0, %v12396_v63  ;;  %v12395_v56 = vmul.f32 %v23707_v1, %v27846_v49  ;;  %23728 = vpow2.f32 %v17869_v26  ;;  %v27983_v31 = vld [vmem:[#allocation2 + $0xc1] sm:$0xff] }
 0xaa5   : > { %v23711_v30 = vpop.eup %23710  ;;  %v12398_v25 = vmul.f32 %v23709_v19, %v27860_v44  ;;  %23730 = vrcp.f32 %v12308_v13  ;;  %21195 = vmatprep.mubr.msk.f32.mxu0 %vm439_vm0, %v27983_v31 }
 0xaa6   : > { %v23713_v52 = vpop.eup %23712  ;;  %12427 = vst.msk [vmem:[#allocation2 + $0xf1] sm:$0xff] %vm439_vm0, %v12395_v56  ;;  %v12397_v42 = vmul.f32 %v23711_v30, %v27865_v57  ;;  %21196 = vmatmul.mubr.msk.f32.gmra.mrb[72].mxu0 %vm439_vm0, %v27988_v0  ;;  %v12441_v30 = vld [vmem:[#allocation2] sm:$0xff] }
 0xaa7   : > { %v23715_v49 = vpop.eup %23714  ;;  %12430 = vst.msk [vmem:[#allocation2 + $0x111] sm:$0xff] %vm439_vm0, %v12398_v25  ;;  %v12307_v15 = vadd.f32 1.0, %v23713_v52  ;;  %v28001_v57 = vld [vmem:[#allocation2 + $0xe1] sm:$0xff]  ;;  %v13190_v52 = vld [vmem:[%s29380_s9 + $0x58] sm:$0xff] }
 0xaa8   : > { %v23717_v40 = vpop.eup %23716  ;;  %12429 = vst.msk [vmem:[#allocation2 + $0x109] sm:$0xff] %vm439_vm0, %v12397_v42  ;;  %v12310_v44 = vadd.f32 1.0, %v23715_v49  ;;  %v27996_v37 = vld [vmem:[#allocation2 + $0xd9] sm:$0xff]  ;;  %v12442_v42 = vld [vmem:[#allocation2 + $0x8] sm:$0xff] }
 0xaa9   : > { %v23719_v3 = vpop.eup %23718  ;;  %v12400_v53 = vmul.f32 %v23717_v40, %v27879_v41  ;;  %23732 = vrcp.f32 %v12307_v15  ;;  %21198 = vmatprep.mubr.msk.f32.mxu0 %vm439_vm0, %v27996_v37  ;;  %v13576_v15 = vld [vmem:[%s29380_s9 + $0x60] sm:$0xff]  ;;  %v13577_v40 = vld [vmem:[%s29380_s9 + $0x68] sm:$0xff] }
 0xaaa   : > { %v23721_v23 = vpop.eup %23720  ;;  %v12399_v51 = vmul.f32 %v23719_v3, %v27885_v60  ;;  %23734 = vrcp.f32 %v12310_v44  ;;  %21199 = vmatmul.mubr.msk.f32.gmra.mrb[74].mxu0 %vm439_vm0, %v28001_v57  ;;  %v28086_v44 = vld [vmem:[#allocation2 + $0x18] sm:$0xff]  ;;  %v28091_v3 = vpack.c.bf16 %v13577_v40, %v13576_v15  ;;  %v13578_v15 = vld [vmem:[%s29380_s9 + $0x70] sm:$0xff] }
 0xaab   : > { %v23723_v20 = vpop.eup %23722  ;;  %12432 = vst.msk [vmem:[#allocation2 + $0x129] sm:$0xff] %vm439_vm0, %v12400_v53  ;;  %v12309_v43 = vadd.f32 1.0, %v23721_v23  ;;  %v28014_v59 = vld [vmem:[#allocation2 + $0xf9] sm:$0xff]  ;;  %v28097_v23 = vld [vmem:[#allocation2 + $0x30] sm:$0xff] }
 0xaac   : > { %v23725_v29 = vpop.eup %23724  ;;  %12431 = vst.msk [vmem:[#allocation2 + $0x121] sm:$0xff] %vm439_vm0, %v12399_v51  ;;  %v12312_v41 = vadd.f32 1.0, %v23723_v20  ;;  %v28093_v53 = vld [vmem:[#allocation2 + $0x20] sm:$0xff]  ;;  %v28102_v51 = vld [vmem:[#allocation2 + $0x38] sm:$0xff]  ;;  %v28110_v20 = vld [vmem:[#allocation2 + $0x50] sm:$0xff] }
 0xaad   : > { %v23727_v38 = vpop.eup %23726  ;;  %v12402_v9 = vmul.f32 %v23725_v29, %v27899_v4  ;;  %23736 = vrcp.f32 %v12309_v43  ;;  %v28009_v7 = vld [vmem:[#allocation2 + $0xf1] sm:$0xff]  ;;  %v28114_v43 = vld [vmem:[#allocation2 + $0x60] sm:$0xff]  ;;  %v28118_v29 = vld [vmem:[#allocation2 + $0x68] sm:$0xff] }
 0xaae   : > { %v23729_v18 = vpop.eup %23728  ;;  %v12401_v60 = vmul.f32 %v23727_v38, %v27905_v45  ;;  %23738 = vrcp.f32 %v12312_v41  ;;  %21201 = vmatprep.mubr.msk.f32.mxu0 %vm439_vm0, %v28009_v7  ;;  %v28026_v45 = vld [vmem:[#allocation2 + $0x111] sm:$0xff]  ;;  %v28126_v38 = vld [vmem:[#allocation2 + $0x80] sm:$0xff] }
 0xaaf   : > { %v23731_v17 = vpop.eup %23730  ;;  %12434 = vst.msk [vmem:[#allocation2 + $0x141] sm:$0xff] %vm439_vm0, %v12402_v9  ;;  %v12311_v21 = vadd.f32 1.0, %v23729_v18  ;;  %21202 = vmatmul.mubr.msk.f32.gmra.mrb[76].mxu0 %vm439_vm0, %v28014_v59  ;;  %v28019_v4 = vld [vmem:[#allocation2 + $0x109] sm:$0xff]  ;;  %v28122_v41 = vld [vmem:[#allocation2 + $0x78] sm:$0xff] }
 0xab0   : > { %12433 = vst.msk [vmem:[#allocation2 + $0x139] sm:$0xff] %vm439_vm0, %v12401_v60  ;;  %v12404_v35 = vmul.f32 %v23731_v17, %v27913_v2  ;;  %21204 = vmatprep.mubr.msk.f32.mxu0 %vm439_vm0, %v28019_v4  ;;  %v28130_v9 = vld [vmem:[#allocation2 + $0x90] sm:$0xff]  ;;  %v28134_v18 = vld [vmem:[#allocation2 + $0x98] sm:$0xff]  ;;  %v28138_v60 = vld [vmem:[#allocation2 + $0xa8] sm:$0xff] }
 0xab1   : > { %23740 = vrcp.f32 %v12311_v21  ;;  %v28142_v17 = vld [vmem:[#allocation2 + $0xb0] sm:$0xff]  ;;  %v28146_v21 = vld [vmem:[#allocation2 + $0xc0] sm:$0xff]  ;;  %v13579_v40 = vld [vmem:[%s29380_s9 + $0x78] sm:$0xff] }
 0xab2   : > { %12436 = vst.msk [vmem:[#allocation2 + $0x159] sm:$0xff] %vm439_vm0, %v12404_v35  ;;  %v28037_v39 = vld [vmem:[#allocation2 + $0x129] sm:$0xff] }
 0xab3   : > { %v23733_v22 = vpop.eup %23732  ;;  %21205 = vmatmul.mubr.msk.f32.gmra.mrb[78].mxu0 %vm439_vm0, %v28026_v45  ;;  %v28030_v54 = vld [vmem:[#allocation2 + $0x121] sm:$0xff] }
 0xab4   : > { %v23735_v36 = vpop.eup %23734  ;;  %v12403_v26 = vmul.f32 %v23733_v22, %v27921_v28  ;;  %21207 = vmatprep.mubr.msk.f32.mxu0 %vm439_vm0, %v28030_v54  ;;  %v28150_v35 = vld [vmem:[#allocation2 + $0xc8] sm:$0xff]  ;;  %v28154_v22 = vld [vmem:[#allocation2 + $0xd8] sm:$0xff] }
 0xab5   : > { %v12406_v2 = vmul.f32 %v23735_v36, %v27933_v32  ;;  %v28158_v36 = vld [vmem:[#allocation2 + $0xe0] sm:$0xff] }
 0xab6   : > { %12435 = vst.msk [vmem:[#allocation2 + $0x151] sm:$0xff] %vm439_vm0, %v12403_v26  ;;  %v28049_v1 = vld [vmem:[#allocation2 + $0x141] sm:$0xff]  ;;  %v28162_v26 = vld [vmem:[#allocation2 + $0xf0] sm:$0xff] }
 0xab7   : > { %v23737_v27 = vpop.eup %23736  ;;  %12438 = vst.msk [vmem:[#allocation2 + $0x171] sm:$0xff] %vm439_vm0, %v12406_v2  ;;  %21208 = vmatmul.mubr.msk.f32.gmra.mrb[80].mxu0 %vm439_vm0, %v28037_v39  ;;  %v28042_v33 = vld [vmem:[#allocation2 + $0x139] sm:$0xff]  ;;  %30012 = vst [vmem:[#allocation41_spill] sm:$0xff] %v28049_v1 }
 0xab8   : > { %v23739_v63 = vpop.eup %23738  ;;  %v12405_v28 = vmul.f32 %v23737_v27, %v27940_v24  ;;  %21210 = vmatprep.mubr.msk.f32.mxu0 %vm439_vm0, %v28042_v33  ;;  %v28166_v2 = vld [vmem:[#allocation2 + $0xf8] sm:$0xff]  ;;  %v28170_v27 = vld [vmem:[#allocation2 + $0x108] sm:$0xff] }
 0xab9   : > { %v12408_v32 = vmul.f32 %v23739_v63, %v27952_v61  ;;  %v28060_v24 = vld [vmem:[#allocation2 + $0x159] sm:$0xff]  ;;  %v28174_v63 = vld [vmem:[#allocation2 + $0x110] sm:$0xff] }
 0xaba   : > { %12437 = vst.msk [vmem:[#allocation2 + $0x169] sm:$0xff] %vm439_vm0, %v12405_v28  ;;  %30014 = vst [vmem:[#allocation43_spill] sm:$0xff] %v28060_v24  ;;  %v28178_v28 = vld [vmem:[#allocation2 + $0x120] sm:$0xff] }
 0xabb   : > { %v23741_v13 = vpop.eup %23740  ;;  %12440 = vst.msk [vmem:[#allocation2 + $0x189] sm:$0xff] %vm439_vm0, %v12408_v32  ;;  %21211 = vmatmul.mubr.msk.f32.gmra.mrb[82].mxu0 %vm439_vm0, %v28049_v1  ;;  %v28182_v32 = vld [vmem:[#allocation2 + $0x128] sm:$0xff]  ;;  %v28224_v1 = vld [vmem:[#allocation2 + $0x1a] sm:$0xff] }
 0xabc   : > { %v12407_v19 = vmul.f32 %v23741_v13, %v27960_v50  ;;  %v13189_v50 = vld [vmem:[%s29380_s9 + $0x50] sm:$0xff]  ;;  %v28186_v13 = vld [vmem:[#allocation2 + $0x138] sm:$0xff] }
 0xabd   : > { %v28055_v56 = vld [vmem:[#allocation2 + $0x151] sm:$0xff]  ;;  %v21911_v49 = vpack.c.bf16 %v13190_v52, %v13189_v50 }
 0xabe   : > { %30013 = vst [vmem:[#allocation40_spill] sm:$0xff] %v28055_v56  ;;  %12439 = vst.msk [vmem:[#allocation2 + $0x181] sm:$0xff] %vm439_vm0, %v12407_v19  ;;  %21213 = vmatprep.mubr.msk.f32.mxu0 %vm439_vm0, %v28055_v56  ;;  %v28068_v25 = vld [vmem:[#allocation2 + $0x171] sm:$0xff]  ;;  %v28190_v19 = vld [vmem:[#allocation2 + $0x140] sm:$0xff] }
 0xabf   : > { %21214 = vmatmul.mubr.msk.f32.gmra.mrb[84].mxu0 %vm439_vm0, %v28060_v24  ;;  %30016 = vst [vmem:[#allocation73_spill] sm:$0xff] %v28068_v25  ;;  %v28198_v50 = vld [vmem:[#allocation2 + $0x158] sm:$0xff]  ;;  %v13965_v24 = vld [vmem:[%s29380_s9 + $0x80] sm:$0xff]  ;;  %v13966_v56 = vld [vmem:[%s29380_s9 + $0x88] sm:$0xff] }
 0xac1   : > { %v28064_v61 = vld [vmem:[#allocation2 + $0x169] sm:$0xff] }
 0xac2   : > { %30015 = vst [vmem:[#allocation72_spill] sm:$0xff] %v28064_v61  ;;  %21216 = vmatprep.mubr.msk.f32.mxu0 %vm439_vm0, %v28064_v61  ;;  %v28202_v52 = vld [vmem:[#allocation2 + $0x168] sm:$0xff]  ;;  %v21919_v61 = vpack.c.bf16 %v13579_v40, %v13578_v15  ;;  %v28235_v40 = vld [vmem:[#allocation2 + $0x32] sm:$0xff] }
 0xac3   : > { %21217 = vmatmul.mubr.msk.f32.gmra.mrb[86].mxu0 %vm439_vm0, %v28068_v25  ;;  %v13156_v25 = vld [vmem:[#allocation2 + $0xa] sm:$0xff]  ;;  %v28231_v15 = vld [vmem:[#allocation2 + $0x22] sm:$0xff]  ;;  %30017 = vst [vmem:[#allocation74_spill] sm:$0xff] %v28235_v40 }
 0xac4   : > { %21227 = vmatprep.mubr.msk.f32.mxu0 %vm439_vm0, %v12441_v30  ;;  %v28194_v30 = vld [vmem:[#allocation2 + $0x150] sm:$0xff] }
 0xac7   : > { %21228 = vmatmul.mubr.msk.f32.vlgmr.msra.gmra.mrb[56].mxu0 %vm439_vm0, %v12442_v42  ;;  %v13155_v42 = vld [vmem:[#allocation2 + $0x2] sm:$0xff] }
 0xac8   : > { %21230 = vmatprep.mubr.msk.f32.mxu0 %vm439_vm0, %v28086_v44  ;;  %21910 = vmatpush3.bf16.msra.mxu0 %v27752_v8  ;;  %v28106_v8 = vld [vmem:[#allocation2 + $0x48] sm:$0xff] }
 0xac9   : > { %21912 = vmatprep.subr.bf16.mxu0 %v21911_v49 }
 0xacb   : > { %21231 = vmatmul.mubr.msk.f32.gmra.mrb[58].mxu0 %vm439_vm0, %v28093_v53 }
 0xacc   : > { %21233 = vmatprep.mubr.msk.f32.mxu0 %vm439_vm0, %v28097_v23  ;;  %21914 = vmatpush3.bf16.msra.mxu0 %v21911_v49  ;;  %v28206_v49 = vld [vmem:[#allocation2 + $0x170] sm:$0xff] }
 0xacd   : > { %21916 = vmatprep.subr.bf16.mxu0 %v28091_v3 }
 0xacf   : > { %21234 = vmatmul.mubr.msk.f32.gmra.mrb[60].mxu0 %vm439_vm0, %v28102_v51 }
 0xad0   : > { %21236 = vmatprep.mubr.msk.f32.mxu0 %vm439_vm0, %v28106_v8 }
 0xad3   : > { %21237 = vmatmul.mubr.msk.f32.gmra.mrb[62].mxu0 %vm439_vm0, %v28110_v20 }
 0xad4   : > { %21239 = vmatprep.mubr.msk.f32.mxu0 %vm439_vm0, %v28114_v43 }
 0xad7   : > { %21240 = vmatmul.mubr.msk.f32.gmra.mrb[64].mxu0 %vm439_vm0, %v28118_v29 }
 0xad8   : > { %21242 = vmatprep.mubr.msk.f32.mxu0 %vm439_vm0, %v28122_v41 }
 0xadb   : > { %21243 = vmatmul.mubr.msk.f32.gmra.mrb[66].mxu0 %vm439_vm0, %v28126_v38 }
 0xadc   : > { %21245 = vmatprep.mubr.msk.f32.mxu0 %vm439_vm0, %v28130_v9 }
 0xadf   : > { %21246 = vmatmul.mubr.msk.f32.gmra.mrb[68].mxu0 %vm439_vm0, %v28134_v18 }
 0xae0   : > { %21248 = vmatprep.mubr.msk.f32.mxu0 %vm439_vm0, %v28138_v60 }
 0xae3   : > { %21249 = vmatmul.mubr.msk.f32.gmra.mrb[70].mxu0 %vm439_vm0, %v28142_v17 }
 0xae4   : > { %21251 = vmatprep.mubr.msk.f32.mxu0 %vm439_vm0, %v28146_v21 }
 0xae7   : > { %21252 = vmatmul.mubr.msk.f32.gmra.mrb[72].mxu0 %vm439_vm0, %v28150_v35 }
 0xae8   : > { %21254 = vmatprep.mubr.msk.f32.mxu0 %vm439_vm0, %v28154_v22 }
 0xaeb   : > { %21255 = vmatmul.mubr.msk.f32.gmra.mrb[74].mxu0 %vm439_vm0, %v28158_v36 }
 0xaec   : > { %21257 = vmatprep.mubr.msk.f32.mxu0 %vm439_vm0, %v28162_v26 }
 0xaef   : > { %21258 = vmatmul.mubr.msk.f32.gmra.mrb[76].mxu0 %vm439_vm0, %v28166_v2 }
 0xaf0   : > { %21260 = vmatprep.mubr.msk.f32.mxu0 %vm439_vm0, %v28170_v27 }
 0xaf3   : > { %21261 = vmatmul.mubr.msk.f32.gmra.mrb[78].mxu0 %vm439_vm0, %v28174_v63 }
 0xaf4   : > { %21263 = vmatprep.mubr.msk.f32.mxu0 %vm439_vm0, %v28178_v28 }
 0xaf7   : > { %21264 = vmatmul.mubr.msk.f32.gmra.mrb[80].mxu0 %vm439_vm0, %v28182_v32 }
 0xaf8   : > { %21266 = vmatprep.mubr.msk.f32.mxu0 %vm439_vm0, %v28186_v13 }
 0xafb   : > { %21267 = vmatmul.mubr.msk.f32.gmra.mrb[82].mxu0 %vm439_vm0, %v28190_v19 }
 0xafc   : > { %21269 = vmatprep.mubr.msk.f32.mxu0 %vm439_vm0, %v28194_v30 }
 0xaff   : > { %21270 = vmatmul.mubr.msk.f32.gmra.mrb[84].mxu0 %vm439_vm0, %v28198_v50 }
 0xb00   : > { %21272 = vmatprep.mubr.msk.f32.mxu0 %vm439_vm0, %v28202_v52 }
 0xb03   : > { %21273 = vmatmul.mubr.msk.f32.gmra.mrb[86].mxu0 %vm439_vm0, %v28206_v49 }
 0xb04   : > { %21283 = vmatprep.mubr.msk.f32.mxu0 %vm439_vm0, %v13155_v42  ;;  %v28229_v42 = vpack.c.bf16 %v13966_v56, %v13965_v24  ;;  %v28244_v56 = vld [vmem:[#allocation2 + $0x4a] sm:$0xff]  ;;  %v28248_v24 = vld [vmem:[#allocation2 + $0x52] sm:$0xff] }
 0xb05   : > { %30019 = vst [vmem:[#allocation76_spill] sm:$0xff] %v28244_v56  ;;  %30020 = vst [vmem:[#allocation77_spill] sm:$0xff] %v28248_v24 }
 0xb07   : > { %21284 = vmatmul.mubr.msk.f32.vlgmr.msra.gmra.mrb[56].mxu0 %vm439_vm0, %v13156_v25  ;;  %v28240_v25 = vld [vmem:[#allocation2 + $0x3a] sm:$0xff] }
 0xb08   : > { %21286 = vmatprep.mubr.msk.f32.mxu0 %vm439_vm0, %v28224_v1  ;;  %21918 = vmatpush3.bf16.msra.mxu0 %v28091_v3  ;;  %30018 = vst [vmem:[#allocation75_spill] sm:$0xff] %v28240_v25  ;;  %v28252_v3 = vld [vmem:[#allocation2 + $0x62] sm:$0xff] }
 0xb09   : > { %21920 = vmatprep.subr.bf16.mxu0 %v21919_v61  ;;  %30021 = vst [vmem:[#allocation78_spill] sm:$0xff] %v28252_v3 }
 0xb0b   : > { %21287 = vmatmul.mubr.msk.f32.gmra.mrb[58].mxu0 %vm439_vm0, %v28231_v15 }
 0xb0c   : > { %21289 = vmatprep.mubr.msk.f32.mxu0 %vm439_vm0, %v28235_v40  ;;  %21922 = vmatpush3.bf16.msra.mxu0 %v21919_v61  ;;  %v28256_v61 = vld [vmem:[#allocation2 + $0x6a] sm:$0xff] }
 0xb0d   : > { %21924 = vmatprep.subr.bf16.mxu0 %v28229_v42  ;;  %30022 = vst [vmem:[#allocation79_spill] sm:$0xff] %v28256_v61  ;;  %v14355_v40 = vld [vmem:[%s29380_s9 + $0xa8] sm:$0xff] }
 0xb0f   : > { %21290 = vmatmul.mubr.msk.f32.gmra.mrb[60].mxu0 %vm439_vm0, %v28240_v25  ;;  %v28260_v25 = vld [vmem:[#allocation2 + $0x7a] sm:$0xff] }
 0xb10   : > { %21292 = vmatprep.mubr.msk.f32.mxu0 %vm439_vm0, %v28244_v56  ;;  %30023 = vst [vmem:[#allocation80_spill] sm:$0xff] %v28260_v25  ;;  %v28264_v56 = vld [vmem:[#allocation2 + $0x82] sm:$0xff] }
 0xb11   : > { %30024 = vst [vmem:[#allocation81_spill] sm:$0xff] %v28264_v56 }
 0xb13   : > { %21293 = vmatmul.mubr.msk.f32.gmra.mrb[62].mxu0 %vm439_vm0, %v28248_v24  ;;  %v28268_v24 = vld [vmem:[#allocation2 + $0x92] sm:$0xff] }
 0xb14   : > { %21295 = vmatprep.mubr.msk.f32.mxu0 %vm439_vm0, %v28252_v3  ;;  %30025 = vst [vmem:[#allocation82_spill] sm:$0xff] %v28268_v24  ;;  %v28272_v3 = vld [vmem:[#allocation2 + $0x9a] sm:$0xff] }
 0xb15   : > { %30026 = vst [vmem:[#allocation83_spill] sm:$0xff] %v28272_v3 }
 0xb17   : > { %21296 = vmatmul.mubr.msk.f32.gmra.mrb[64].mxu0 %vm439_vm0, %v28256_v61  ;;  %v28276_v61 = vld [vmem:[#allocation2 + $0xaa] sm:$0xff] }
 0xb18   : > { %21298 = vmatprep.mubr.msk.f32.mxu0 %vm439_vm0, %v28260_v25  ;;  %30027 = vst [vmem:[#allocation84_spill] sm:$0xff] %v28276_v61  ;;  %v28280_v25 = vld [vmem:[#allocation2 + $0xb2] sm:$0xff] }
 0xb19   : > { %30028 = vst [vmem:[#allocation85_spill] sm:$0xff] %v28280_v25 }
 0xb1b   : > { %21299 = vmatmul.mubr.msk.f32.gmra.mrb[66].mxu0 %vm439_vm0, %v28264_v56  ;;  %v28284_v56 = vld [vmem:[#allocation2 + $0xc2] sm:$0xff] }
 0xb1c   : > { %21301 = vmatprep.mubr.msk.f32.mxu0 %vm439_vm0, %v28268_v24  ;;  %30029 = vst [vmem:[#allocation86_spill] sm:$0xff] %v28284_v56  ;;  %v28288_v24 = vld [vmem:[#allocation2 + $0xca] sm:$0xff] }
 0xb1d   : > { %30030 = vst [vmem:[#allocation87_spill] sm:$0xff] %v28288_v24 }
 0xb1f   : > { %21302 = vmatmul.mubr.msk.f32.gmra.mrb[68].mxu0 %vm439_vm0, %v28272_v3  ;;  %v28292_v3 = vld [vmem:[#allocation2 + $0xda] sm:$0xff] }
 0xb20   : > { %21304 = vmatprep.mubr.msk.f32.mxu0 %vm439_vm0, %v28276_v61  ;;  %30031 = vst [vmem:[#allocation88_spill] sm:$0xff] %v28292_v3  ;;  %v28296_v61 = vld [vmem:[#allocation2 + $0xe2] sm:$0xff] }
 0xb21   : > { %30032 = vst [vmem:[#allocation89_spill] sm:$0xff] %v28296_v61 }
 0xb23   : > { %21305 = vmatmul.mubr.msk.f32.gmra.mrb[70].mxu0 %vm439_vm0, %v28280_v25  ;;  %v28300_v25 = vld [vmem:[#allocation2 + $0xf2] sm:$0xff] }
 0xb24   : > { %21307 = vmatprep.mubr.msk.f32.mxu0 %vm439_vm0, %v28284_v56  ;;  %30033 = vst [vmem:[#allocation90_spill] sm:$0xff] %v28300_v25  ;;  %v28304_v56 = vld [vmem:[#allocation2 + $0xfa] sm:$0xff] }
 0xb25   : > { %30034 = vst [vmem:[#allocation91_spill] sm:$0xff] %v28304_v56 }
 0xb27   : > { %21308 = vmatmul.mubr.msk.f32.gmra.mrb[72].mxu0 %vm439_vm0, %v28288_v24  ;;  %v28308_v24 = vld [vmem:[#allocation2 + $0x10a] sm:$0xff] }
 0xb28   : > { %21310 = vmatprep.mubr.msk.f32.mxu0 %vm439_vm0, %v28292_v3  ;;  %30035 = vst [vmem:[#allocation92_spill] sm:$0xff] %v28308_v24  ;;  %v28312_v3 = vld [vmem:[#allocation2 + $0x112] sm:$0xff] }
 0xb29   : > { %30036 = vst [vmem:[#allocation93_spill] sm:$0xff] %v28312_v3 }
 0xb2b   : > { %21311 = vmatmul.mubr.msk.f32.gmra.mrb[74].mxu0 %vm439_vm0, %v28296_v61  ;;  %v28316_v61 = vld [vmem:[#allocation2 + $0x122] sm:$0xff] }
 0xb2c   : > { %21313 = vmatprep.mubr.msk.f32.mxu0 %vm439_vm0, %v28300_v25  ;;  %30037 = vst [vmem:[#allocation94_spill] sm:$0xff] %v28316_v61  ;;  %v28320_v25 = vld [vmem:[#allocation2 + $0x12a] sm:$0xff] }
 0xb2d   : > { %30038 = vst [vmem:[#allocation95_spill] sm:$0xff] %v28320_v25 }
 0xb2f   : > { %21314 = vmatmul.mubr.msk.f32.gmra.mrb[76].mxu0 %vm439_vm0, %v28304_v56  ;;  %v28324_v56 = vld [vmem:[#allocation2 + $0x13a] sm:$0xff] }
 0xb30   : > { %21316 = vmatprep.mubr.msk.f32.mxu0 %vm439_vm0, %v28308_v24  ;;  %30039 = vst [vmem:[#allocation96_spill] sm:$0xff] %v28324_v56  ;;  %v28328_v24 = vld [vmem:[#allocation2 + $0x142] sm:$0xff] }
 0xb31   : > { %30040 = vst [vmem:[#allocation97_spill] sm:$0xff] %v28328_v24 }
 0xb33   : > { %21317 = vmatmul.mubr.msk.f32.gmra.mrb[78].mxu0 %vm439_vm0, %v28312_v3  ;;  %v28332_v3 = vld [vmem:[#allocation2 + $0x152] sm:$0xff] }
 0xb34   : > { %21319 = vmatprep.mubr.msk.f32.mxu0 %vm439_vm0, %v28316_v61  ;;  %30041 = vst [vmem:[#allocation98_spill] sm:$0xff] %v28332_v3  ;;  %v28336_v61 = vld [vmem:[#allocation2 + $0x15a] sm:$0xff] }
 0xb35   : > { %30042 = vst [vmem:[#allocation99_spill] sm:$0xff] %v28336_v61 }
 0xb37   : > { %21320 = vmatmul.mubr.msk.f32.gmra.mrb[80].mxu0 %vm439_vm0, %v28320_v25  ;;  %v28340_v25 = vld [vmem:[#allocation2 + $0x16a] sm:$0xff] }
 0xb38   : > { %21322 = vmatprep.mubr.msk.f32.mxu0 %vm439_vm0, %v28324_v56  ;;  %30043 = vst [vmem:[#allocation70_spill] sm:$0xff] %v28340_v25  ;;  %v28344_v56 = vld [vmem:[#allocation2 + $0x172] sm:$0xff] }
 0xb39   : > { %30044 = vst [vmem:[#allocation39_spill] sm:$0xff] %v28344_v56 }
 0xb3b   : > { %21323 = vmatmul.mubr.msk.f32.gmra.mrb[82].mxu0 %vm439_vm0, %v28328_v24  ;;  %v13967_v24 = vld [vmem:[%s29380_s9 + $0x90] sm:$0xff] }
 0xb3c   : > { %21325 = vmatprep.mubr.msk.f32.mxu0 %vm439_vm0, %v28332_v3  ;;  %v13968_v3 = vld [vmem:[%s29380_s9 + $0x98] sm:$0xff] }
 0xb3f   : > { %21326 = vmatmul.mubr.msk.f32.gmra.mrb[84].mxu0 %vm439_vm0, %v28336_v61  ;;  %v21927_v61 = vpack.c.bf16 %v13968_v3, %v13967_v24  ;;  %v14743_v24 = vld [vmem:[%s29380_s9 + $0xc0] sm:$0xff]  ;;  %v14744_v3 = vld [vmem:[%s29380_s9 + $0xc8] sm:$0xff] }
 0xb40   : > { %21328 = vmatprep.mubr.msk.f32.mxu0 %vm439_vm0, %v28340_v25  ;;  %v14354_v25 = vld [vmem:[%s29380_s9 + $0xa0] sm:$0xff] }
 0xb43   : > { %21329 = vmatmul.mubr.msk.f32.gmra.mrb[86].mxu0 %vm439_vm0, %v28344_v56  ;;  %v21931_v56 = vpack.c.bf16 %v14355_v40, %v14354_v25  ;;  %v14357_v40 = vld [vmem:[%s29380_s9 + $0xb8] sm:$0xff] }
 0xb44   : > { %21339 = vmatprep.mubr.msk.f32.mxu0 %vm439_vm0, %v28086_v44  ;;  %v28421_v44 = vld [vmem:[#allocation2 + $0x180] sm:$0xff] }
 0xb47   : > { %21340 = vmatmul.mubr.msk.f32.vlgmr.msra.gmra.mrb[56].mxu0 %vm439_vm0, %v28093_v53  ;;  %v28425_v53 = vld [vmem:[#allocation2 + $0x188] sm:$0xff] }
 0xb48   : > { %21342 = vmatprep.mubr.msk.f32.mxu0 %vm439_vm0, %v28097_v23  ;;  %21926 = vmatpush3.bf16.msra.mxu0 %v28229_v42  ;;  %v14356_v42 = vld [vmem:[%s29380_s9 + $0xb0] sm:$0xff] }
 0xb49   : > { %21928 = vmatprep.subr.bf16.mxu0 %v21927_v61  ;;  %v21935_v25 = vpack.c.bf16 %v14357_v40, %v14356_v42  ;;  %v30050_v42 = vld [vmem:[#allocation74_spill] sm:$0xff] }
 0xb4b   : > { %21343 = vmatmul.mubr.msk.f32.gmra.mrb[58].mxu0 %vm439_vm0, %v28102_v51 }
 0xb4c   : > { %21345 = vmatprep.mubr.msk.f32.mxu0 %vm439_vm0, %v28106_v8  ;;  %21930 = vmatpush3.bf16.msra.mxu0 %v21927_v61  ;;  %v21939_v61 = vpack.c.bf16 %v14744_v3, %v14743_v24  ;;  %v30053_v24 = vld [vmem:[#allocation77_spill] sm:$0xff]  ;;  %v30054_v3 = vld [vmem:[#allocation78_spill] sm:$0xff] }
 0xb4d   : > { %21932 = vmatprep.subr.bf16.mxu0 %v21931_v56 }
 0xb4f   : > { %21346 = vmatmul.mubr.msk.f32.gmra.mrb[60].mxu0 %vm439_vm0, %v28110_v20 }
 0xb50   : > { %21348 = vmatprep.mubr.msk.f32.mxu0 %vm439_vm0, %v28114_v43 }
 0xb53   : > { %21349 = vmatmul.mubr.msk.f32.gmra.mrb[62].mxu0 %vm439_vm0, %v28118_v29 }
 0xb54   : > { %21351 = vmatprep.mubr.msk.f32.mxu0 %vm439_vm0, %v28122_v41 }
 0xb57   : > { %21352 = vmatmul.mubr.msk.f32.gmra.mrb[64].mxu0 %vm439_vm0, %v28126_v38 }
 0xb58   : > { %21354 = vmatprep.mubr.msk.f32.mxu0 %vm439_vm0, %v28130_v9 }
 0xb5b   : > { %21355 = vmatmul.mubr.msk.f32.gmra.mrb[66].mxu0 %vm439_vm0, %v28134_v18 }
 0xb5c   : > { %21357 = vmatprep.mubr.msk.f32.mxu0 %vm439_vm0, %v28138_v60 }
 0xb5f   : > { %21358 = vmatmul.mubr.msk.f32.gmra.mrb[68].mxu0 %vm439_vm0, %v28142_v17 }
 0xb60   : > { %21360 = vmatprep.mubr.msk.f32.mxu0 %vm439_vm0, %v28146_v21 }
 0xb63   : > { %21361 = vmatmul.mubr.msk.f32.gmra.mrb[70].mxu0 %vm439_vm0, %v28150_v35 }
 0xb64   : > { %21363 = vmatprep.mubr.msk.f32.mxu0 %vm439_vm0, %v28154_v22 }
 0xb67   : > { %21364 = vmatmul.mubr.msk.f32.gmra.mrb[72].mxu0 %vm439_vm0, %v28158_v36 }
 0xb68   : > { %21366 = vmatprep.mubr.msk.f32.mxu0 %vm439_vm0, %v28162_v26 }
 0xb6b   : > { %21367 = vmatmul.mubr.msk.f32.gmra.mrb[74].mxu0 %vm439_vm0, %v28166_v2 }
 0xb6c   : > { %21369 = vmatprep.mubr.msk.f32.mxu0 %vm439_vm0, %v28170_v27 }
 0xb6f   : > { %21370 = vmatmul.mubr.msk.f32.gmra.mrb[76].mxu0 %vm439_vm0, %v28174_v63 }
 0xb70   : > { %21372 = vmatprep.mubr.msk.f32.mxu0 %vm439_vm0, %v28178_v28 }
 0xb73   : > { %21373 = vmatmul.mubr.msk.f32.gmra.mrb[78].mxu0 %vm439_vm0, %v28182_v32 }
 0xb74   : > { %21375 = vmatprep.mubr.msk.f32.mxu0 %vm439_vm0, %v28186_v13 }
 0xb77   : > { %21376 = vmatmul.mubr.msk.f32.gmra.mrb[80].mxu0 %vm439_vm0, %v28190_v19 }
 0xb78   : > { %21378 = vmatprep.mubr.msk.f32.mxu0 %vm439_vm0, %v28194_v30 }
 0xb7b   : > { %21379 = vmatmul.mubr.msk.f32.gmra.mrb[82].mxu0 %vm439_vm0, %v28198_v50 }
 0xb7c   : > { %21381 = vmatprep.mubr.msk.f32.mxu0 %vm439_vm0, %v28202_v52 }
 0xb7f   : > { %21382 = vmatmul.mubr.msk.f32.gmra.mrb[84].mxu0 %vm439_vm0, %v28206_v49 }
 0xb80   : > { %21384 = vmatprep.mubr.msk.f32.mxu0 %vm439_vm0, %v28421_v44 }
 0xb83   : > { %21385 = vmatmul.mubr.msk.f32.gmra.mrb[86].mxu0 %vm439_vm0, %v28425_v53 }
 0xb84   : > { %21395 = vmatprep.mubr.msk.f32.mxu0 %vm439_vm0, %v27850_v47  ;;  %v30045_v47 = vld [vmem:[#allocation41_spill] sm:$0xff] }
 0xb87   : > { %21396 = vmatmul.mubr.msk.f32.vlgmr.msra.gmra.mrb[56].mxu0 %vm439_vm0, %v27855_v5  ;;  %v30046_v5 = vld [vmem:[#allocation40_spill] sm:$0xff] }
 0xb88   : > { %21398 = vmatprep.mubr.msk.f32.mxu0 %vm439_vm0, %v27869_v34  ;;  %21934 = vmatpush3.bf16.msra.mxu0 %v21931_v56  ;;  %v30047_v34 = vld [vmem:[#allocation43_spill] sm:$0xff]  ;;  %v15133_v56 = vld [vmem:[%s29380_s9 + $0xe8] sm:$0xff] }
 0xb89   : > { %21936 = vmatprep.subr.bf16.mxu0 %v21935_v25 }
 0xb8b   : > { %21399 = vmatmul.mubr.msk.f32.gmra.mrb[58].mxu0 %vm439_vm0, %v27875_v46  ;;  %v30048_v46 = vld [vmem:[#allocation72_spill] sm:$0xff] }
 0xb8c   : > { %21401 = vmatprep.mubr.msk.f32.mxu0 %vm439_vm0, %v27889_v12  ;;  %21938 = vmatpush3.bf16.msra.mxu0 %v21935_v25  ;;  %v30049_v12 = vld [vmem:[#allocation73_spill] sm:$0xff]  ;;  %v30051_v25 = vld [vmem:[#allocation75_spill] sm:$0xff] }
 0xb8d   : > { %21940 = vmatprep.subr.bf16.mxu0 %v21939_v61 }
 0xb8f   : > { %21402 = vmatmul.mubr.msk.f32.gmra.mrb[60].mxu0 %vm439_vm0, %v27895_v14  ;;  %v28501_v14 = vld [vmem:[#allocation2 + $0x181] sm:$0xff] }
 0xb90   : > { %21404 = vmatprep.mubr.msk.f32.mxu0 %vm439_vm0, %v27915_v11  ;;  %v28505_v11 = vld [vmem:[#allocation2 + $0x189] sm:$0xff] }
 0xb93   : > { %21405 = vmatmul.mubr.msk.f32.gmra.mrb[62].mxu0 %vm439_vm0, %v27923_v10  ;;  %v14745_v10 = vld [vmem:[%s29380_s9 + $0xd0] sm:$0xff] }
 0xb94   : > { %21407 = vmatprep.mubr.msk.f32.mxu0 %vm439_vm0, %v27935_v16  ;;  %v14746_v16 = vld [vmem:[%s29380_s9 + $0xd8] sm:$0xff] }
 0xb97   : > { %21408 = vmatmul.mubr.msk.f32.gmra.mrb[64].mxu0 %vm439_vm0, %v27942_v58  ;;  %v21943_v58 = vpack.c.bf16 %v14746_v16, %v14745_v10  ;;  %v30057_v10 = vld [vmem:[#allocation81_spill] sm:$0xff]  ;;  %v30058_v16 = vld [vmem:[#allocation82_spill] sm:$0xff] }
 0xb98   : > { %21410 = vmatprep.mubr.msk.f32.mxu0 %vm439_vm0, %v27954_v6  ;;  %v15132_v6 = vld [vmem:[%s29380_s9 + $0xe0] sm:$0xff] }
 0xb99   : > { %v21947_v40 = vpack.c.bf16 %v15133_v56, %v15132_v6  ;;  %v30060_v6 = vld [vmem:[#allocation84_spill] sm:$0xff]  ;;  %v30061_v56 = vld [vmem:[#allocation85_spill] sm:$0xff] }
 0xb9b   : > { %21411 = vmatmul.mubr.msk.f32.gmra.mrb[66].mxu0 %vm439_vm0, %v27962_v48 }
 0xb9c   : > { %21413 = vmatprep.mubr.msk.f32.mxu0 %vm439_vm0, %v27969_v62 }
 0xb9f   : > { %21414 = vmatmul.mubr.msk.f32.gmra.mrb[68].mxu0 %vm439_vm0, %v27976_v55 }
 0xba0   : > { %21416 = vmatprep.mubr.msk.f32.mxu0 %vm439_vm0, %v27983_v31 }
 0xba3   : > { %21417 = vmatmul.mubr.msk.f32.gmra.mrb[70].mxu0 %vm439_vm0, %v27988_v0 }
 0xba4   : > { %21419 = vmatprep.mubr.msk.f32.mxu0 %vm439_vm0, %v27996_v37 }
 0xba7   : > { %21420 = vmatmul.mubr.msk.f32.gmra.mrb[72].mxu0 %vm439_vm0, %v28001_v57 }
 0xba8   : > { %21422 = vmatprep.mubr.msk.f32.mxu0 %vm439_vm0, %v28009_v7 }
 0xbab   : > { %21423 = vmatmul.mubr.msk.f32.gmra.mrb[74].mxu0 %vm439_vm0, %v28014_v59 }
 0xbac   : > { %21425 = vmatprep.mubr.msk.f32.mxu0 %vm439_vm0, %v28019_v4 }
 0xbaf   : > { %21426 = vmatmul.mubr.msk.f32.gmra.mrb[76].mxu0 %vm439_vm0, %v28026_v45 }
 0xbb0   : > { %21428 = vmatprep.mubr.msk.f32.mxu0 %vm439_vm0, %v28030_v54 }
 0xbb3   : > { %21429 = vmatmul.mubr.msk.f32.gmra.mrb[78].mxu0 %vm439_vm0, %v28037_v39 }
 0xbb4   : > { %21431 = vmatprep.mubr.msk.f32.mxu0 %vm439_vm0, %v28042_v33 }
 0xbb7   : > { %21432 = vmatmul.mubr.msk.f32.gmra.mrb[80].mxu0 %vm439_vm0, %v30045_v47 }
 0xbb8   : > { %21434 = vmatprep.mubr.msk.f32.mxu0 %vm439_vm0, %v30046_v5 }
 0xbbb   : > { %21435 = vmatmul.mubr.msk.f32.gmra.mrb[82].mxu0 %vm439_vm0, %v30047_v34 }
 0xbbc   : > { %21437 = vmatprep.mubr.msk.f32.mxu0 %vm439_vm0, %v30048_v46 }
 0xbbf   : > { %21438 = vmatmul.mubr.msk.f32.gmra.mrb[84].mxu0 %vm439_vm0, %v30049_v12 }
 0xbc0   : > { %21440 = vmatprep.mubr.msk.f32.mxu0 %vm439_vm0, %v28501_v14 }
 0xbc3   : > { %21441 = vmatmul.mubr.msk.f32.gmra.mrb[86].mxu0 %vm439_vm0, %v28505_v11 }
 0xbc4   : > { %21451 = vmatprep.mubr.msk.f32.mxu0 %vm439_vm0, %v28224_v1  ;;  %v30052_v1 = vld [vmem:[#allocation76_spill] sm:$0xff] }
 0xbc7   : > { %21452 = vmatmul.mubr.msk.f32.vlgmr.msra.gmra.mrb[56].mxu0 %vm439_vm0, %v28231_v15  ;;  %v30055_v15 = vld [vmem:[#allocation79_spill] sm:$0xff] }
 0xbc8   : > { %21454 = vmatprep.mubr.msk.f32.mxu0 %vm439_vm0, %v30050_v42  ;;  %21942 = vmatpush3.bf16.msra.mxu0 %v21939_v61  ;;  %v30056_v61 = vld [vmem:[#allocation80_spill] sm:$0xff] }
 0xbc9   : > { %21944 = vmatprep.subr.bf16.mxu0 %v21943_v58 }
 0xbcb   : > { %21455 = vmatmul.mubr.msk.f32.gmra.mrb[58].mxu0 %vm439_vm0, %v30051_v25 }
 0xbcc   : > { %21457 = vmatprep.mubr.msk.f32.mxu0 %vm439_vm0, %v30052_v1  ;;  %21946 = vmatpush3.bf16.msra.mxu0 %v21943_v58  ;;  %v30059_v58 = vld [vmem:[#allocation83_spill] sm:$0xff] }
 0xbcd   : > { %21948 = vmatprep.subr.bf16.mxu0 %v21947_v40 }
 0xbcf   : > { %21458 = vmatmul.mubr.msk.f32.gmra.mrb[60].mxu0 %vm439_vm0, %v30053_v24 }
 0xbd0   : > { %21460 = vmatprep.mubr.msk.f32.mxu0 %vm439_vm0, %v30054_v3  ;;  %v30062_v3 = vld [vmem:[#allocation86_spill] sm:$0xff] }
 0xbd3   : > { %21461 = vmatmul.mubr.msk.f32.gmra.mrb[62].mxu0 %vm439_vm0, %v30055_v15  ;;  %v30063_v15 = vld [vmem:[#allocation87_spill] sm:$0xff] }
 0xbd4   : > { %21463 = vmatprep.mubr.msk.f32.mxu0 %vm439_vm0, %v30056_v61  ;;  %v30064_v61 = vld [vmem:[#allocation88_spill] sm:$0xff] }
 0xbd7   : > { %21464 = vmatmul.mubr.msk.f32.gmra.mrb[64].mxu0 %vm439_vm0, %v30057_v10  ;;  %v30065_v10 = vld [vmem:[#allocation89_spill] sm:$0xff] }
 0xbd8   : > { %21466 = vmatprep.mubr.msk.f32.mxu0 %vm439_vm0, %v30058_v16  ;;  %v30066_v16 = vld [vmem:[#allocation90_spill] sm:$0xff] }
 0xbdb   : > { %21467 = vmatmul.mubr.msk.f32.gmra.mrb[66].mxu0 %vm439_vm0, %v30059_v58  ;;  %v30067_v58 = vld [vmem:[#allocation91_spill] sm:$0xff] }
 0xbdc   : > { %21469 = vmatprep.mubr.msk.f32.mxu0 %vm439_vm0, %v30060_v6  ;;  %v30068_v6 = vld [vmem:[#allocation92_spill] sm:$0xff] }
 0xbdf   : > { %21470 = vmatmul.mubr.msk.f32.gmra.mrb[68].mxu0 %vm439_vm0, %v30061_v56  ;;  %v30069_v56 = vld [vmem:[#allocation93_spill] sm:$0xff] }
 0xbe0   : > { %21472 = vmatprep.mubr.msk.f32.mxu0 %vm439_vm0, %v30062_v3  ;;  %v30070_v3 = vld [vmem:[#allocation94_spill] sm:$0xff] }
 0xbe3   : > { %21473 = vmatmul.mubr.msk.f32.gmra.mrb[70].mxu0 %vm439_vm0, %v30063_v15  ;;  %v30071_v15 = vld [vmem:[#allocation95_spill] sm:$0xff] }
 0xbe4   : > { %21475 = vmatprep.mubr.msk.f32.mxu0 %vm439_vm0, %v30064_v61  ;;  %v30072_v61 = vld [vmem:[#allocation96_spill] sm:$0xff] }
 0xbe7   : > { %21476 = vmatmul.mubr.msk.f32.gmra.mrb[72].mxu0 %vm439_vm0, %v30065_v10  ;;  %v30073_v10 = vld [vmem:[#allocation97_spill] sm:$0xff] }
 0xbe8   : > { %21478 = vmatprep.mubr.msk.f32.mxu0 %vm439_vm0, %v30066_v16  ;;  %v30074_v16 = vld [vmem:[#allocation98_spill] sm:$0xff] }
 0xbeb   : > { %21479 = vmatmul.mubr.msk.f32.gmra.mrb[74].mxu0 %vm439_vm0, %v30067_v58  ;;  %v30075_v58 = vld [vmem:[#allocation99_spill] sm:$0xff] }
 0xbec   : > { %21481 = vmatprep.mubr.msk.f32.mxu0 %vm439_vm0, %v30068_v6  ;;  %v30076_v6 = vld [vmem:[#allocation70_spill] sm:$0xff] }
 0xbef   : > { %21482 = vmatmul.mubr.msk.f32.gmra.mrb[76].mxu0 %vm439_vm0, %v30069_v56  ;;  %v30077_v56 = vld [vmem:[#allocation39_spill] sm:$0xff] }
 0xbf0   : > { %21484 = vmatprep.mubr.msk.f32.mxu0 %vm439_vm0, %v30070_v3  ;;  %v28581_v3 = vld [vmem:[#allocation2 + $0x182] sm:$0xff] }
 0xbf1   : > { %30078 = vst [vmem:[#allocation41_spill] sm:$0xff] %v28581_v3 }
 0xbf3   : > { %21485 = vmatmul.mubr.msk.f32.gmra.mrb[78].mxu0 %vm439_vm0, %v30071_v15 }
 0xbf4   : > { %21487 = vmatprep.mubr.msk.f32.mxu0 %vm439_vm0, %v30072_v61  ;;  %v28585_v61 = vld [vmem:[#allocation2 + $0x18a] sm:$0xff] }
 0xbf5   : > { %30079 = vst [vmem:[#allocation40_spill] sm:$0xff] %v28585_v61 }
 0xbf7   : > { %21488 = vmatmul.mubr.msk.f32.gmra.mrb[80].mxu0 %vm439_vm0, %v30073_v10 }
 0xbf8   : > { %21490 = vmatprep.mubr.msk.f32.mxu0 %vm439_vm0, %v30074_v16  ;;  %v15134_v16 = vld [vmem:[%s29380_s9 + $0xf0] sm:$0xff] }
 0xbfb   : > { %21491 = vmatmul.mubr.msk.f32.gmra.mrb[82].mxu0 %vm439_vm0, %v30075_v58  ;;  %v15135_v58 = vld [vmem:[%s29380_s9 + $0xf8] sm:$0xff] }
 0xbfc   : > { %21493 = vmatprep.mubr.msk.f32.mxu0 %vm439_vm0, %v30076_v6  ;;  %v15522_v6 = vld [vmem:[%s29380_s9 + $0x108] sm:$0xff] }
 0xbff   : > { %21494 = vmatmul.mubr.msk.f32.gmra.mrb[84].mxu0 %vm439_vm0, %v30077_v56  ;;  %v21951_v56 = vpack.c.bf16 %v15135_v58, %v15134_v16 }
 0xc00   : > { %21496 = vmatprep.mubr.msk.f32.mxu0 %vm439_vm0, %v28581_v3  ;;  %v15521_v3 = vld [vmem:[%s29380_s9 + $0x100] sm:$0xff] }
 0xc03   : > { %21497 = vmatmul.mubr.msk.f32.gmra.mrb[86].mxu0 %vm439_vm0, %v28585_v61  ;;  %v21955_v61 = vpack.c.bf16 %v15522_v6, %v15521_v3 }
 0xc04   : > { %21507 = vmatprep.mubr.msk.f32.mxu0 %vm439_vm0, %v28097_v23  ;;  %v14741_v23 = vld [vmem:[#allocation2 + $0x198] sm:$0xff] }
 0xc07   : > { %21508 = vmatmul.mubr.msk.f32.vlgmr.msra.gmra.mrb[56].mxu0 %vm439_vm0, %v28102_v51  ;;  %v14742_v51 = vld [vmem:[#allocation2 + $0x1a0] sm:$0xff] }
 0xc08   : > { %21510 = vmatprep.mubr.msk.f32.mxu0 %vm439_vm0, %v28106_v8  ;;  %21950 = vmatpush3.bf16.msra.mxu0 %v21947_v40  ;;  %v15523_v8 = vld [vmem:[%s29380_s9 + $0x110] sm:$0xff] }
 0xc09   : > { %21952 = vmatprep.subr.bf16.mxu0 %v21951_v56 }
 0xc0b   : > { %21511 = vmatmul.mubr.msk.f32.gmra.mrb[58].mxu0 %vm439_vm0, %v28110_v20  ;;  %v15524_v20 = vld [vmem:[%s29380_s9 + $0x118] sm:$0xff] }
 0xc0c   : > { %21513 = vmatprep.mubr.msk.f32.mxu0 %vm439_vm0, %v28114_v43  ;;  %21954 = vmatpush3.bf16.msra.mxu0 %v21951_v56  ;;  %v15100_v43 = vld [vmem:[#allocation2 + $0x31] sm:$0xff] }
 0xc0d   : > { %21956 = vmatprep.subr.bf16.mxu0 %v21955_v61 }
 0xc0f   : > { %21514 = vmatmul.mubr.msk.f32.gmra.mrb[60].mxu0 %vm439_vm0, %v28118_v29  ;;  %v21959_v29 = vpack.c.bf16 %v15524_v20, %v15523_v8 }
 0xc10   : > { %21516 = vmatprep.mubr.msk.f32.mxu0 %vm439_vm0, %v28122_v41  ;;  %v15101_v41 = vld [vmem:[#allocation2 + $0x39] sm:$0xff] }
 0xc13   : > { %21517 = vmatmul.mubr.msk.f32.gmra.mrb[62].mxu0 %vm439_vm0, %v28126_v38  ;;  %v15102_v38 = vld [vmem:[#allocation2 + $0x49] sm:$0xff] }
 0xc14   : > { %21519 = vmatprep.mubr.msk.f32.mxu0 %vm439_vm0, %v28130_v9  ;;  %v15103_v9 = vld [vmem:[#allocation2 + $0x51] sm:$0xff] }
 0xc17   : > { %21520 = vmatmul.mubr.msk.f32.gmra.mrb[64].mxu0 %vm439_vm0, %v28134_v18  ;;  %v15104_v18 = vld [vmem:[#allocation2 + $0x61] sm:$0xff] }
 0xc18   : > { %21522 = vmatprep.mubr.msk.f32.mxu0 %vm439_vm0, %v28138_v60  ;;  %v15105_v60 = vld [vmem:[#allocation2 + $0x69] sm:$0xff] }
 0xc1b   : > { %21523 = vmatmul.mubr.msk.f32.gmra.mrb[66].mxu0 %vm439_vm0, %v28142_v17  ;;  %v15106_v17 = vld [vmem:[#allocation2 + $0x79] sm:$0xff] }
 0xc1c   : > { %21525 = vmatprep.mubr.msk.f32.mxu0 %vm439_vm0, %v28146_v21  ;;  %v15107_v21 = vld [vmem:[#allocation2 + $0x81] sm:$0xff] }
 0xc1f   : > { %21526 = vmatmul.mubr.msk.f32.gmra.mrb[68].mxu0 %vm439_vm0, %v28150_v35  ;;  %v15108_v35 = vld [vmem:[#allocation2 + $0x91] sm:$0xff] }
 0xc20   : > { %21528 = vmatprep.mubr.msk.f32.mxu0 %vm439_vm0, %v28154_v22  ;;  %v30092_v22 = vld [vmem:[#allocation90_spill] sm:$0xff] }
 0xc23   : > { %21529 = vmatmul.mubr.msk.f32.gmra.mrb[70].mxu0 %vm439_vm0, %v28158_v36  ;;  %v30093_v36 = vld [vmem:[#allocation91_spill] sm:$0xff] }
 0xc24   : > { %21531 = vmatprep.mubr.msk.f32.mxu0 %vm439_vm0, %v28162_v26  ;;  %v30094_v26 = vld [vmem:[#allocation92_spill] sm:$0xff] }
 0xc27   : > { %21532 = vmatmul.mubr.msk.f32.gmra.mrb[72].mxu0 %vm439_vm0, %v28166_v2  ;;  %v30095_v2 = vld [vmem:[#allocation93_spill] sm:$0xff] }
 0xc28   : > { %21534 = vmatprep.mubr.msk.f32.mxu0 %vm439_vm0, %v28170_v27  ;;  %v30096_v27 = vld [vmem:[#allocation94_spill] sm:$0xff] }
 0xc2b   : > { %21535 = vmatmul.mubr.msk.f32.gmra.mrb[74].mxu0 %vm439_vm0, %v28174_v63  ;;  %v30097_v63 = vld [vmem:[#allocation96_spill] sm:$0xff] }
 0xc2c   : > { %21537 = vmatprep.mubr.msk.f32.mxu0 %vm439_vm0, %v28178_v28  ;;  %v30098_v28 = vld [vmem:[#allocation98_spill] sm:$0xff] }
 0xc2f   : > { %21538 = vmatmul.mubr.msk.f32.gmra.mrb[76].mxu0 %vm439_vm0, %v28182_v32  ;;  %v30099_v32 = vld [vmem:[#allocation99_spill] sm:$0xff] }
 0xc30   : > { %21540 = vmatprep.mubr.msk.f32.mxu0 %vm439_vm0, %v28186_v13  ;;  %v30100_v13 = vld [vmem:[#allocation70_spill] sm:$0xff] }
 0xc33   : > { %21541 = vmatmul.mubr.msk.f32.gmra.mrb[78].mxu0 %vm439_vm0, %v28190_v19  ;;  %v30101_v19 = vld [vmem:[#allocation39_spill] sm:$0xff] }
 0xc34   : > { %21543 = vmatprep.mubr.msk.f32.mxu0 %vm439_vm0, %v28194_v30  ;;  %v30102_v30 = vld [vmem:[#allocation41_spill] sm:$0xff] }
 0xc37   : > { %21544 = vmatmul.mubr.msk.f32.gmra.mrb[80].mxu0 %vm439_vm0, %v28198_v50  ;;  %v15519_v50 = vld [vmem:[#allocation2 + $0x19a] sm:$0xff] }
 0xc38   : > { %21546 = vmatprep.mubr.msk.f32.mxu0 %vm439_vm0, %v28202_v52  ;;  %v30103_v52 = vld [vmem:[#allocation40_spill] sm:$0xff] }
 0xc3b   : > { %21547 = vmatmul.mubr.msk.f32.gmra.mrb[82].mxu0 %vm439_vm0, %v28206_v49  ;;  %v15520_v49 = vld [vmem:[#allocation2 + $0x1a2] sm:$0xff] }
 0xc3c   : > { %21549 = vmatprep.mubr.msk.f32.mxu0 %vm439_vm0, %v28421_v44  ;;  %v28787_v44 = vld [vmem:[%s29381_s10] ss:$0 sm:$0xff] }
 0xc3f   : > { %21550 = vmatmul.mubr.msk.f32.gmra.mrb[84].mxu0 %vm439_vm0, %v28425_v53 }
 0xc40   : > { %21552 = vmatprep.mubr.msk.f32.mxu0 %vm439_vm0, %v14741_v23 }
 0xc43   : > { %21553 = vmatmul.mubr.msk.f32.gmra.mrb[86].mxu0 %vm439_vm0, %v14742_v51 }
 0xc44   : > { %21563 = vmatprep.mubr.msk.f32.mxu0 %vm439_vm0, %v15100_v43 }
 0xc47   : > { %21564 = vmatmul.mubr.msk.f32.vlgmr.msra.gmra.mrb[56].mxu0 %vm439_vm0, %v15101_v41 }
 0xc48   : > { %21566 = vmatprep.mubr.msk.f32.mxu0 %vm439_vm0, %v15102_v38  ;;  %21958 = vmatpush3.bf16.msra.mxu0 %v21955_v61 }
 0xc49   : > { %21960 = vmatprep.subr.bf16.mxu0 %v21959_v29 }
 0xc4b   : > { %21567 = vmatmul.mubr.msk.f32.gmra.mrb[58].mxu0 %vm439_vm0, %v15103_v9 }
 0xc4c   : > { %21569 = vmatprep.mubr.msk.f32.mxu0 %vm439_vm0, %v15104_v18  ;;  %21962 = vmatpush3.bf16.msra.mxu0 %v21959_v29 }
 0xc4f   : > { %21570 = vmatmul.mubr.msk.f32.gmra.mrb[60].mxu0 %vm439_vm0, %v15105_v60 }
 0xc50   : > { %21572 = vmatprep.mubr.msk.f32.mxu0 %vm439_vm0, %v15106_v17 }
 0xc53   : > { %21573 = vmatmul.mubr.msk.f32.gmra.mrb[62].mxu0 %vm439_vm0, %v15107_v21 }
 0xc54   : > { %21575 = vmatprep.mubr.msk.f32.mxu0 %vm439_vm0, %v15108_v35 }
 0xc57   : > { %21576 = vmatmul.mubr.msk.f32.gmra.mrb[64].mxu0 %vm439_vm0, %v27962_v48  ;;  %v15130_v48 = vld [vmem:[#allocation2 + $0x199] sm:$0xff] }
 0xc58   : > { %21578 = vmatprep.mubr.msk.f32.mxu0 %vm439_vm0, %v27969_v62  ;;  %v15131_v62 = vld [vmem:[#allocation2 + $0x1a1] sm:$0xff] }
 0xc5b   : > { %21579 = vmatmul.mubr.msk.f32.gmra.mrb[66].mxu0 %vm439_vm0, %v27976_v55  ;;  %v30080_v55 = vld [vmem:[#allocation78_spill] sm:$0xff] }
 0xc5c   : > { %21581 = vmatprep.mubr.msk.f32.mxu0 %vm439_vm0, %v27983_v31  ;;  %v30081_v31 = vld [vmem:[#allocation79_spill] sm:$0xff] }
 0xc5f   : > { %21582 = vmatmul.mubr.msk.f32.gmra.mrb[68].mxu0 %vm439_vm0, %v27988_v0  ;;  %v30082_v0 = vld [vmem:[#allocation80_spill] sm:$0xff] }
 0xc60   : > { %21584 = vmatprep.mubr.msk.f32.mxu0 %vm439_vm0, %v27996_v37  ;;  %v30083_v37 = vld [vmem:[#allocation81_spill] sm:$0xff] }
 0xc63   : > { %21585 = vmatmul.mubr.msk.f32.gmra.mrb[70].mxu0 %vm439_vm0, %v28001_v57  ;;  %v30084_v57 = vld [vmem:[#allocation82_spill] sm:$0xff] }
 0xc64   : > { %21587 = vmatprep.mubr.msk.f32.mxu0 %vm439_vm0, %v28009_v7  ;;  %v30085_v7 = vld [vmem:[#allocation83_spill] sm:$0xff] }
 0xc67   : > { %21588 = vmatmul.mubr.msk.f32.gmra.mrb[72].mxu0 %vm439_vm0, %v28014_v59  ;;  %v30086_v59 = vld [vmem:[#allocation84_spill] sm:$0xff] }
 0xc68   : > { %21590 = vmatprep.mubr.msk.f32.mxu0 %vm439_vm0, %v28019_v4  ;;  %v30087_v4 = vld [vmem:[#allocation85_spill] sm:$0xff] }
 0xc6b   : > { %21591 = vmatmul.mubr.msk.f32.gmra.mrb[74].mxu0 %vm439_vm0, %v28026_v45  ;;  %v30088_v45 = vld [vmem:[#allocation86_spill] sm:$0xff] }
 0xc6c   : > { %21593 = vmatprep.mubr.msk.f32.mxu0 %vm439_vm0, %v28030_v54  ;;  %v30089_v54 = vld [vmem:[#allocation87_spill] sm:$0xff] }
 0xc6f   : > { %21594 = vmatmul.mubr.msk.f32.gmra.mrb[76].mxu0 %vm439_vm0, %v28037_v39  ;;  %v30090_v39 = vld [vmem:[#allocation88_spill] sm:$0xff] }
 0xc70   : > { %21596 = vmatprep.mubr.msk.f32.mxu0 %vm439_vm0, %v28042_v33  ;;  %v30091_v33 = vld [vmem:[#allocation89_spill] sm:$0xff] }
 0xc73   : > { %21597 = vmatmul.mubr.msk.f32.gmra.mrb[78].mxu0 %vm439_vm0, %v30045_v47 }
 0xc74   : > { %21599 = vmatprep.mubr.msk.f32.mxu0 %vm439_vm0, %v30046_v5 }
 0xc77   : > { %21600 = vmatmul.mubr.msk.f32.gmra.mrb[80].mxu0 %vm439_vm0, %v30047_v34 }
 0xc78   : > { %21602 = vmatprep.mubr.msk.f32.mxu0 %vm439_vm0, %v30048_v46 }
 0xc7b   : > { %21603 = vmatmul.mubr.msk.f32.gmra.mrb[82].mxu0 %vm439_vm0, %v30049_v12 }
 0xc7c   : > { %21605 = vmatprep.mubr.msk.f32.mxu0 %vm439_vm0, %v28501_v14 }
 0xc7f   : > { %21606 = vmatmul.mubr.msk.f32.gmra.mrb[84].mxu0 %vm439_vm0, %v28505_v11 }
 0xc80   : > { %21608 = vmatprep.mubr.msk.f32.mxu0 %vm439_vm0, %v15130_v48 }
 0xc83   : > { %21609 = vmatmul.mubr.msk.f32.gmra.mrb[86].mxu0 %vm439_vm0, %v15131_v62 }
 0xc84   : > { %21619 = vmatprep.mubr.msk.f32.mxu0 %vm439_vm0, %v30050_v42 }
 0xc87   : > { %21620 = vmatmul.mubr.msk.f32.vlgmr.msra.gmra.mrb[56].mxu0 %vm439_vm0, %v30051_v25 }
 0xc88   : > { %21622 = vmatprep.mubr.msk.f32.mxu0 %vm439_vm0, %v30052_v1 }
 0xc8b   : > { %21623 = vmatmul.mubr.msk.f32.gmra.mrb[58].mxu0 %vm439_vm0, %v30053_v24 }
 0xc8c   : > { %21625 = vmatprep.mubr.msk.f32.mxu0 %vm439_vm0, %v30080_v55 }
 0xc8f   : > { %21626 = vmatmul.mubr.msk.f32.gmra.mrb[60].mxu0 %vm439_vm0, %v30081_v31 }
 0xc90   : > { %21628 = vmatprep.mubr.msk.f32.mxu0 %vm439_vm0, %v30082_v0 }
 0xc93   : > { %21629 = vmatmul.mubr.msk.f32.gmra.mrb[62].mxu0 %vm439_vm0, %v30083_v37 }
 0xc94   : > { %21631 = vmatprep.mubr.msk.f32.mxu0 %vm439_vm0, %v30084_v57 }
 0xc97   : > { %21632 = vmatmul.mubr.msk.f32.gmra.mrb[64].mxu0 %vm439_vm0, %v30085_v7 }
 0xc98   : > { %21634 = vmatprep.mubr.msk.f32.mxu0 %vm439_vm0, %v30086_v59 }
 0xc9b   : > { %21635 = vmatmul.mubr.msk.f32.gmra.mrb[66].mxu0 %vm439_vm0, %v30087_v4 }
 0xc9c   : > { %21637 = vmatprep.mubr.msk.f32.mxu0 %vm439_vm0, %v30088_v45 }
 0xc9f   : > { %21638 = vmatmul.mubr.msk.f32.gmra.mrb[68].mxu0 %vm439_vm0, %v30089_v54 }
 0xca0   : > { %21640 = vmatprep.mubr.msk.f32.mxu0 %vm439_vm0, %v30090_v39 }
 0xca3   : > { %21641 = vmatmul.mubr.msk.f32.gmra.mrb[70].mxu0 %vm439_vm0, %v30091_v33 }
 0xca4   : > { %21643 = vmatprep.mubr.msk.f32.mxu0 %vm439_vm0, %v30092_v22 }
 0xca7   : > { %21644 = vmatmul.mubr.msk.f32.gmra.mrb[72].mxu0 %vm439_vm0, %v30093_v36 }
 0xca8   : > { %21646 = vmatprep.mubr.msk.f32.mxu0 %vm439_vm0, %v30094_v26 }
 0xcab   : > { %21647 = vmatmul.mubr.msk.f32.gmra.mrb[74].mxu0 %vm439_vm0, %v30095_v2 }
 0xcac   : > { %21649 = vmatprep.mubr.msk.f32.mxu0 %vm439_vm0, %v30096_v27 }
 0xcaf   : > { %21650 = vmatmul.mubr.msk.f32.gmra.mrb[76].mxu0 %vm439_vm0, %v30071_v15 }
 0xcb0   : > { %21652 = vmatprep.mubr.msk.f32.mxu0 %vm439_vm0, %v30097_v63 }
 0xcb3   : > { %21653 = vmatmul.mubr.msk.f32.gmra.mrb[78].mxu0 %vm439_vm0, %v30073_v10 }
 0xcb4   : > { %21655 = vmatprep.mubr.msk.f32.mxu0 %vm439_vm0, %v30098_v28 }
 0xcb7   : > { %21656 = vmatmul.mubr.msk.f32.gmra.mrb[80].mxu0 %vm439_vm0, %v30099_v32 }
 0xcb8   : > { %21658 = vmatprep.mubr.msk.f32.mxu0 %vm439_vm0, %v30100_v13 }
 0xcbb   : > { %21659 = vmatmul.mubr.msk.f32.gmra.mrb[82].mxu0 %vm439_vm0, %v30101_v19 }
 0xcbc   : > { %21661 = vmatprep.mubr.msk.f32.mxu0 %vm439_vm0, %v30102_v30 }
 0xcbf   : > { %21662 = vmatmul.mubr.msk.f32.gmra.mrb[84].mxu0 %vm439_vm0, %v30103_v52 }
 0xcc0   : > { %21664 = vmatprep.mubr.msk.f32.mxu0 %vm439_vm0, %v15519_v50 }
 0xcc3   : > { %21665 = vmatmul.mubr.msk.f32.gmra.mrb[86].mxu0 %vm439_vm0, %v15520_v49 }
 0xd5a   : > { %v21621_v53 = vpop.f32.mrb[56].mxu0 }
 0xd5b   : > { %v28790_v47 = vadd.f32 %v21621_v53, %v28787_v44  ;;  %v15687_v5 = vpop.f32.mrb[57].mxu0 }
 0xd5c   : > { %v28793_v34 = vadd.f32 %v28787_v44, %v15687_v5 }
 0xd5d   : > { %v18161_v46 = vmul.f32 -1.442695, %v28790_v47 }
 0xd5e   : > { %v18160_v12 = vmul.f32 -1.442695, %v28793_v34  ;;  %v21624_v14 = vpop.f32.mrb[58].mxu0 }
 0xd5f   : > { %23742 = vpow2.f32 %v18161_v46  ;;  %v28798_v11 = vadd.f32 %v21624_v14, %v28787_v44  ;;  %v15697_v42 = vpop.f32.mrb[59].mxu0 }
 0xd60   : > { %23744 = vpow2.f32 %v18160_v12  ;;  %v28801_v40 = vadd.f32 %v28787_v44, %v15697_v42 }
 0xd61   : > { %v18163_v25 = vmul.f32 -1.442695, %v28798_v11 }
 0xd62   : > { %v18162_v1 = vmul.f32 -1.442695, %v28801_v40  ;;  %v21627_v24 = vpop.f32.mrb[60].mxu0 }
 0xd63   : > { %23746 = vpow2.f32 %v18163_v25  ;;  %v28806_v3 = vadd.f32 %v21627_v24, %v28787_v44  ;;  %v15707_v15 = vpop.f32.mrb[61].mxu0 }
 0xd64   : > { %23748 = vpow2.f32 %v18162_v1  ;;  %v28809_v61 = vadd.f32 %v28787_v44, %v15707_v15 }
 0xd65   : > { %v18165_v10 = vmul.f32 -1.442695, %v28806_v3 }
 0xd66   : > { %v18164_v16 = vmul.f32 -1.442695, %v28809_v61  ;;  %v21630_v58 = vpop.f32.mrb[62].mxu0 }
 0xd67   : > { %23750 = vpow2.f32 %v18165_v10  ;;  %v28814_v6 = vadd.f32 %v21630_v58, %v28787_v44  ;;  %v15717_v56 = vpop.f32.mrb[63].mxu0 }
 0xd68   : > { %23752 = vpow2.f32 %v18164_v16  ;;  %v28817_v23 = vadd.f32 %v28787_v44, %v15717_v56 }
 0xd69   : > { %v23743_v51 = vpop.eup %23742  ;;  %v18167_v8 = vmul.f32 -1.442695, %v28814_v6 }
 0xd6a   : > { %v23745_v20 = vpop.eup %23744  ;;  %v16014_v43 = vadd.f32 1.0, %v23743_v51  ;;  %v18166_v29 = vmul.f32 -1.442695, %v28817_v23  ;;  %v21633_v41 = vpop.f32.mrb[64].mxu0 }
 0xd6b   : > { %v16013_v38 = vadd.f32 1.0, %v23745_v20  ;;  %23754 = vpow2.f32 %v18167_v8  ;;  %v28822_v9 = vadd.f32 %v21633_v41, %v28787_v44  ;;  %v15727_v18 = vpop.f32.mrb[65].mxu0 }
 0xd6c   : > { %23756 = vrcp.f32 %v16014_v43  ;;  %v28825_v60 = vadd.f32 %v28787_v44, %v15727_v18 }
 0xd6d   : > { %v23747_v17 = vpop.eup %23746  ;;  %23758 = vrcp.f32 %v16013_v38  ;;  %v18169_v21 = vmul.f32 -1.442695, %v28822_v9 }
 0xd6e   : > { %v23749_v35 = vpop.eup %23748  ;;  %v16016_v48 = vadd.f32 1.0, %v23747_v17  ;;  %23760 = vpow2.f32 %v18166_v29  ;;  %v18168_v62 = vmul.f32 -1.442695, %v28825_v60  ;;  %v21636_v55 = vpop.f32.mrb[66].mxu0 }
 0xd6f   : > { %v16015_v31 = vadd.f32 1.0, %v23749_v35  ;;  %23762 = vpow2.f32 %v18169_v21  ;;  %v28830_v0 = vadd.f32 %v21636_v55, %v28787_v44  ;;  %v15737_v37 = vpop.f32.mrb[67].mxu0 }
 0xd70   : > { %23764 = vrcp.f32 %v16016_v48  ;;  %v28833_v57 = vadd.f32 %v28787_v44, %v15737_v37  ;;  %v30106_v37 = vld [vmem:[#allocation44_spill] sm:$0xff] }
 0xd71   : > { %v23751_v7 = vpop.eup %23750  ;;  %23766 = vrcp.f32 %v16015_v31  ;;  %v18171_v59 = vmul.f32 -1.442695, %v28830_v0  ;;  %v30105_v31 = vld [vmem:[#allocation42_spill] sm:$0xff] }
 0xd72   : > { %v23753_v4 = vpop.eup %23752  ;;  %v16018_v45 = vadd.f32 1.0, %v23751_v7  ;;  %23768 = vpow2.f32 %v18168_v62  ;;  %v18170_v54 = vmul.f32 -1.442695, %v28833_v57  ;;  %v21639_v39 = vpop.f32.mrb[68].mxu0  ;;  %v30107_v7 = vpack.i.bf16 %v30105_v31, %v30106_v37 }
 0xd73   : > { %v16017_v33 = vadd.f32 1.0, %v23753_v4  ;;  %23770 = vpow2.f32 %v18171_v59  ;;  %v28838_v22 = vadd.f32 %v21639_v39, %v28787_v44  ;;  %v15747_v36 = vpop.f32.mrb[69].mxu0 }
 0xd74   : > { %23772 = vrcp.f32 %v16018_v45  ;;  %v28841_v26 = vadd.f32 %v28787_v44, %v15747_v36 }
 0xd75   : > { %v23755_v2 = vpop.eup %23754  ;;  %23774 = vrcp.f32 %v16017_v33  ;;  %v18173_v27 = vmul.f32 -1.442695, %v28838_v22 }
 0xd76   : > { %v23757_v63 = vpop.eup %23756  ;;  %v16020_v28 = vadd.f32 1.0, %v23755_v2  ;;  %23776 = vpow2.f32 %v18170_v54  ;;  %v18172_v32 = vmul.f32 -1.442695, %v28841_v26  ;;  %v21642_v13 = vpop.f32.mrb[70].mxu0 }
 0xd77   : > { %v23759_v19 = vpop.eup %23758  ;;  %v16110_v30 = vmul.f32 %v23757_v63, %v28790_v47  ;;  %23778 = vpow2.f32 %v18173_v27  ;;  %v28847_v50 = vadd.f32 %v21642_v13, %v28787_v44  ;;  %v15757_v52 = vpop.f32.mrb[71].mxu0 }
 0xd78   : > { %v23761_v49 = vpop.eup %23760  ;;  %v16109_v53 = vmul.f32 %v23759_v19, %v28793_v34  ;;  %23780 = vrcp.f32 %v16020_v28  ;;  %v28851_v5 = vadd.f32 %v28787_v44, %v15757_v52 }
 0xd79   : > { %v23763_v46 = vpop.eup %23762  ;;  %v16019_v12 = vadd.f32 1.0, %v23761_v49  ;;  %23782 = vpow2.f32 %v18172_v32  ;;  %v18175_v14 = vmul.f32 -1.442695, %v28847_v50 }
 0xd7a   : > { %v23765_v42 = vpop.eup %23764  ;;  %v16022_v25 = vadd.f32 1.0, %v23763_v46  ;;  %v18174_v47 = vmul.f32 -1.442695, %v28851_v5  ;;  %v21645_v1 = vpop.f32.mrb[72].mxu0  ;;  %v23078_v24 = vpack.i.bf16 %v16110_v30, %v16109_v53 }
 0xd7b   : > { %v23767_v15 = vpop.eup %23766  ;;  %v16112_v10 = vmul.f32 %v23765_v42, %v28798_v11  ;;  %23784 = vrcp.f32 %v16019_v12  ;;  %v28857_v34 = vadd.f32 %v21645_v1, %v28787_v44  ;;  %v15767_v16 = vpop.f32.mrb[73].mxu0  ;;  %v30109_v1 = vld [vmem:[#allocation46_spill] sm:$0xff] }
 0xd7c   : > { %v23769_v58 = vpop.eup %23768  ;;  %v16111_v56 = vmul.f32 %v23767_v15, %v28801_v40  ;;  %23786 = vrcp.f32 %v16022_v25  ;;  %v28861_v51 = vadd.f32 %v28787_v44, %v15767_v16  ;;  %23079 = vrot.lane.b32.xlu1 %v23078_v24, %s23999_s20 }
 0xd7d   : > { %v23771_v8 = vpop.eup %23770  ;;  %v16021_v20 = vadd.f32 1.0, %v23769_v58  ;;  %23788 = vpow2.f32 %v18175_v14  ;;  %v18177_v43 = vmul.f32 -1.442695, %v28857_v34 }
 0xd7e   : > { %v23773_v11 = vpop.eup %23772  ;;  %v16024_v29 = vadd.f32 1.0, %v23771_v8  ;;  %23790 = vpow2.f32 %v18174_v47  ;;  %v18176_v41 = vmul.f32 -1.442695, %v28861_v51  ;;  %v21648_v38 = vpop.f32.mrb[74].mxu0  ;;  %v23098_v18 = vpack.i.bf16 %v16112_v10, %v16111_v56 }
 0xd7f   : > { %v23775_v17 = vpop.eup %23774  ;;  %v28867_v40 = vmul.f32 %v23773_v11, %v28806_v3  ;;  %23792 = vrcp.f32 %v16021_v20  ;;  %v28870_v21 = vadd.f32 %v21648_v38, %v28787_v44  ;;  %v15777_v35 = vpop.f32.mrb[75].mxu0 }
 0xd80   : > { %v23777_v48 = vpop.eup %23776  ;;  %v16113_v62 = vmul.f32 %v23775_v17, %v28809_v61  ;;  %23794 = vrcp.f32 %v16024_v29  ;;  %v28874_v55 = vadd.f32 %v28787_v44, %v15777_v35  ;;  %23094 = vrot.lane.b32.xlu1 %v30107_v7, %s30104_s24 }
 0xd81   : > { %v23779_v59 = vpop.eup %23778  ;;  %v16023_v3 = vadd.f32 1.0, %v23777_v48  ;;  %23796 = vpow2.f32 %v18177_v43  ;;  %v18179_v4 = vmul.f32 -1.442695, %v28870_v21 }
 0xd82   : > { %v23781_v45 = vpop.eup %23780  ;;  %v16026_v54 = vadd.f32 1.0, %v23779_v59  ;;  %23798 = vpow2.f32 %v18176_v41  ;;  %v21651_v39 = vpop.f32.mrb[76].mxu0  ;;  %v23118_v61 = vpack.i.bf16 %v28867_v40, %v16113_v62  ;;  %v18178_v36 = vmul.f32 -1.442695, %v28874_v55 }
 0xd83   : > { %v23783_v33 = vpop.eup %23782  ;;  %23800 = vrcp.f32 %v16023_v3  ;;  %v28884_v2 = vadd.f32 %v21651_v39, %v28787_v44  ;;  %v15787_v27 = vpop.f32.mrb[77].mxu0  ;;  %v28887_v63 = vmul.f32 %v23781_v45, %v28814_v6 }
 0xd84   : > { %23802 = vrcp.f32 %v16026_v54  ;;  %v16025_v28 = vadd.f32 1.0, %v23783_v33  ;;  %v28890_v32 = vadd.f32 %v28787_v44, %v15787_v27  ;;  %23099 = vrot.lane.b32.xlu1 %v23098_v18, %s23999_s20 }
 0xd85   : > { %v23785_v13 = vpop.eup %23784  ;;  %23804 = vpow2.f32 %v18179_v4  ;;  %v18181_v19 = vmul.f32 -1.442695, %v28884_v2 }
 0xd86   : > { %v23787_v30 = vpop.eup %23786  ;;  %v28895_v52 = vmul.f32 %v23785_v13, %v28817_v23  ;;  %23806 = vrcp.f32 %v16025_v28  ;;  %v18180_v49 = vmul.f32 -1.442695, %v28890_v32  ;;  %v21654_v6 = vpop.f32.mrb[78].mxu0  ;;  %v30108_v23 = vld [vmem:[#allocation45_spill] sm:$0xff] }
 0xd87   : > { %v23789_v53 = vpop.eup %23788  ;;  %v28899_v46 = vmul.f32 %v23787_v30, %v28822_v9  ;;  %23808 = vpow2.f32 %v18178_v36  ;;  %v28902_v12 = vadd.f32 %v21654_v6, %v28787_v44  ;;  %v15797_v14 = vpop.f32.mrb[79].mxu0  ;;  %v30110_v24 = vpack.i.bf16 %v30108_v23, %v30109_v1 }
 0xd88   : > { %v23791_v42 = vpop.eup %23790  ;;  %v16028_v25 = vadd.f32 1.0, %v23789_v53  ;;  %23810 = vpow2.f32 %v18181_v19  ;;  %v28905_v47 = vadd.f32 %v28787_v44, %v15797_v14  ;;  %v23138_v9 = vpack.i.bf16 %v28887_v63, %v28895_v52 }
 0xd89   : > { %23114 = vrot.lane.b32.xlu1 %v30110_v24, %s30104_s24  ;;  %v23793_v15 = vpop.eup %23792  ;;  %v16027_v10 = vadd.f32 1.0, %v23791_v42  ;;  %23812 = vpow2.f32 %v18180_v49  ;;  %v18183_v16 = vmul.f32 -1.442695, %v28902_v12 }
 0xd8a   : > { %v23795_v58 = vpop.eup %23794  ;;  %v28915_v56 = vmul.f32 %v23793_v15, %v28825_v60  ;;  %23814 = vrcp.f32 %v16028_v25  ;;  %v18182_v8 = vmul.f32 -1.442695, %v28905_v47  ;;  %v21657_v20 = vpop.f32.mrb[80].mxu0 }
 0xd8b   : > { %v23797_v43 = vpop.eup %23796  ;;  %v28919_v11 = vmul.f32 %v23795_v58, %v28830_v0  ;;  %23816 = vrcp.f32 %v16027_v10  ;;  %v28922_v29 = vadd.f32 %v21657_v20, %v28787_v44  ;;  %v15807_v41 = vpop.f32.mrb[81].mxu0 }
 0xd8c   : > { %v23799_v38 = vpop.eup %23798  ;;  %v16030_v18 = vadd.f32 1.0, %v23797_v43  ;;  %23818 = vpow2.f32 %v18183_v16  ;;  %v28925_v17 = vadd.f32 %v28787_v44, %v15807_v41  ;;  %v23158_v60 = vpack.i.bf16 %v28899_v46, %v28915_v56  ;;  %v30117_v46 = vld [vmem:[#allocation69_spill] sm:$0xff]  ;;  %v30118_v56 = vld [vmem:[#allocation50_spill] sm:$0xff] }
 0xd8d   : > { %23119 = vrot.lane.b32.xlu1 %v23118_v61, %s23999_s20  ;;  %v23801_v40 = vpop.eup %23800  ;;  %v16029_v35 = vadd.f32 1.0, %v23799_v38  ;;  %23820 = vpow2.f32 %v18182_v8  ;;  %v18185_v0 = vmul.f32 -1.442695, %v28922_v29  ;;  %v30112_v61 = vld [vmem:[#allocation48_spill] sm:$0xff] }
 0xd8e   : > { %v23803_v48 = vpop.eup %23802  ;;  %v28932_v62 = vmul.f32 %v23801_v40, %v28833_v57  ;;  %23822 = vrcp.f32 %v16030_v18  ;;  %v18184_v31 = vmul.f32 -1.442695, %v28925_v17  ;;  %v21660_v37 = vpop.f32.mrb[82].mxu0  ;;  %v30111_v57 = vld [vmem:[#allocation47_spill] sm:$0xff] }
 0xd8f   : > { %v23805_v7 = vpop.eup %23804  ;;  %v28936_v59 = vmul.f32 %v23803_v48, %v28838_v22  ;;  %23824 = vrcp.f32 %v16029_v35  ;;  %v28939_v3 = vadd.f32 %v21660_v37, %v28787_v44  ;;  %v15817_v4 = vpop.f32.mrb[83].mxu0  ;;  %v30113_v33 = vpack.i.bf16 %v30111_v57, %v30112_v61  ;;  %v30115_v18 = vld [vmem:[#allocation67_spill] sm:$0xff] }
 0xd90   : > { %v23807_v45 = vpop.eup %23806  ;;  %v16032_v54 = vadd.f32 1.0, %v23805_v7  ;;  %23826 = vpow2.f32 %v18185_v0  ;;  %v28942_v39 = vadd.f32 %v28787_v44, %v15817_v4  ;;  %v23178_v22 = vpack.i.bf16 %v28919_v11, %v28932_v62 }
 0xd91   : > { %23134 = vrot.lane.b32.xlu1 %v30113_v33, %s30104_s24  ;;  %v23809_v36 = vpop.eup %23808  ;;  %v28951_v27 = vmul.f32 %v23807_v45, %v28841_v26  ;;  %23828 = vpow2.f32 %v18184_v31  ;;  %v18187_v63 = vmul.f32 -1.442695, %v28939_v3 }
 0xd92   : > { %v23811_v28 = vpop.eup %23810  ;;  %23830 = vrcp.f32 %v16032_v54  ;;  %v16031_v13 = vadd.f32 1.0, %v23809_v36  ;;  %v18186_v19 = vmul.f32 -1.442695, %v28942_v39  ;;  %v21663_v30 = vpop.f32.mrb[84].mxu0 }
 0xd93   : > { %v23813_v52 = vpop.eup %23812  ;;  %v16034_v49 = vadd.f32 1.0, %v23811_v28  ;;  %23832 = vpow2.f32 %v18187_v63  ;;  %v28956_v6 = vadd.f32 %v21663_v30, %v28787_v44  ;;  %v15827_v53 = vpop.f32.mrb[85].mxu0  ;;  %v23198_v26 = vpack.i.bf16 %v28936_v59, %v28951_v27  ;;  %v30132_v59 = vld [vmem:[#allocation59_spill] sm:$0xff]  ;;  %v30133_v27 = vld [vmem:[#allocation60_spill] sm:$0xff] }
 0xd94   : > { %v23815_v14 = vpop.eup %23814  ;;  %23834 = vrcp.f32 %v16031_v13  ;;  %v16033_v42 = vadd.f32 1.0, %v23813_v52  ;;  %v28961_v25 = vadd.f32 %v28787_v44, %v15827_v53 }
 0xd95   : > { %23139 = vrot.lane.b32.xlu1 %v23138_v9, %s23999_s20  ;;  %v23817_v23 = vpop.eup %23816  ;;  %v28965_v1 = vmul.f32 %v23815_v14, %v28847_v50  ;;  %23836 = vrcp.f32 %v16034_v49  ;;  %v18189_v24 = vmul.f32 -1.442695, %v28956_v6  ;;  %v30120_v14 = vld [vmem:[#allocation55_spill] sm:$0xff] }
 0xd96   : > { %v23819_v15 = vpop.eup %23818  ;;  %v28969_v10 = vmul.f32 %v23817_v23, %v28851_v5  ;;  %23838 = vrcp.f32 %v16033_v42  ;;  %v21666_v16 = vpop.f32.mrb[86].mxu0  ;;  %v18188_v20 = vmul.f32 -1.442695, %v28961_v25  ;;  %v30114_v5 = vld [vmem:[#allocation49_spill] sm:$0xff]  ;;  %v30121_v42 = vld [vmem:[#allocation56_spill] sm:$0xff] }
 0xd97   : > { %v23821_v58 = vpop.eup %23820  ;;  %v16036_v8 = vadd.f32 1.0, %v23819_v15  ;;  %23840 = vpow2.f32 %v18186_v19  ;;  %v28973_v9 = vadd.f32 %v21666_v16, %v28787_v44  ;;  %v15837_v43 = vpop.f32.mrb[87].mxu0  ;;  %v30116_v40 = vpack.i.bf16 %v30114_v5, %v30115_v18  ;;  %v30123_v18 = vld [vmem:[#allocation51_spill] sm:$0xff] }
 0xd98   : > { %v23823_v50 = vpop.eup %23822  ;;  %v16035_v41 = vadd.f32 1.0, %v23821_v58  ;;  %23842 = vpow2.f32 %v18189_v24  ;;  %v28976_v38 = vadd.f32 %v28787_v44, %v15837_v43  ;;  %v23223_v35 = vpack.i.bf16 %v28965_v1, %v28969_v10  ;;  %v30139_v1 = vld [vmem:[#allocation64_spill] sm:$0xff] }
 0xd99   : > { %23154 = vrot.lane.b32.xlu1 %v30116_v40, %s30104_s24  ;;  %v23825_v0 = vpop.eup %23824  ;;  %v16126_v48 = vmul.f32 %v23823_v50, %v28857_v34  ;;  %23844 = vrcp.f32 %v16036_v8  ;;  %v18191_v31 = vmul.f32 -1.442695, %v28973_v9  ;;  %v30124_v40 = vld [vmem:[#allocation52_spill] sm:$0xff] }
 0xd9a   : > { %v23827_v37 = vpop.eup %23826  ;;  %v16125_v7 = vmul.f32 %v23825_v0, %v28861_v51  ;;  %23846 = vrcp.f32 %v16035_v41  ;;  %v18190_v45 = vmul.f32 -1.442695, %v28976_v38  ;;  %v30125_v11 = vpack.i.bf16 %v30123_v18, %v30124_v40 }
 0xd9b   : > { %v23829_v44 = vpop.eup %23828  ;;  %v16038_v4 = vadd.f32 1.0, %v23827_v37  ;;  %23848 = vpow2.f32 %v18188_v20 }
 0xd9c   : > { %v23831_v54 = vpop.eup %23830  ;;  %v16037_v57 = vadd.f32 1.0, %v23829_v44  ;;  %23850 = vpow2.f32 %v18191_v31  ;;  %v23083_v34 = vpack.i.bf16 %v16126_v48, %v16125_v7  ;;  %v30126_v48 = vld [vmem:[#allocation57_spill] sm:$0xff]  ;;  %v30127_v31 = vld [vmem:[#allocation58_spill] sm:$0xff] }
 0xd9d   : > { %23159 = vrot.lane.b32.xlu1 %v23158_v60, %s23999_s20  ;;  %v23833_v61 = vpop.eup %23832  ;;  %v16128_v33 = vmul.f32 %v23831_v54, %v28870_v21  ;;  %23852 = vrcp.f32 %v16038_v4  ;;  %v30119_v60 = vpack.i.bf16 %v30117_v46, %v30118_v56  ;;  %v30128_v37 = vpack.i.bf16 %v30126_v48, %v30127_v31  ;;  %v30130_v54 = vld [vmem:[#allocation54_spill] sm:$0xff] }
 0xd9e   : > { %v23835_v51 = vpop.eup %23834  ;;  %23854 = vrcp.f32 %v16037_v57  ;;  %v16040_v36 = vadd.f32 1.0, %v23833_v61  ;;  %23084 = vrot.lane.b32.xlu0 %v23083_v34, %s23999_s20 }
 0xd9f   : > { %v23837_v63 = vpop.eup %23836  ;;  %v16127_v28 = vmul.f32 %v23835_v51, %v28874_v55  ;;  %23856 = vpow2.f32 %v18190_v45  ;;  %v30122_v55 = vpack.i.bf16 %v30120_v14, %v30121_v42  ;;  %v30129_v45 = vld [vmem:[#allocation53_spill] sm:$0xff]  ;;  %v16472_v14 = vld [vmem:[%s29383_s12 + $0x8] sm:$0xff]  ;;  %v24001_v42 = vmov 0  }
 0xda0   : > { %v23839_v13 = vpop.eup %23838  ;;  %v16130_v19 = vmul.f32 %v23837_v63, %v28884_v2  ;;  %23858 = vrcp.f32 %v16040_v36  ;;  %v30131_v57 = vpack.i.bf16 %v30129_v45, %v30130_v54  ;;  %23228 = vset.pattern.permute.xlu0 %v24001_v42  ;;  %23229 = vset.pattern.permute.xlu1 %v24001_v42 }
 0xda1   : > { %23174 = vrot.lane.b32.xlu1 %v30119_v60, %s30104_s24  ;;  %v23841_v21 = vpop.eup %23840  ;;  %v16129_v30 = vmul.f32 %v23839_v13, %v28890_v32  ;;  %v23103_v52 = vpack.i.bf16 %v16128_v33, %v16127_v28  ;;  %v30135_v13 = vld [vmem:[#allocation61_spill] sm:$0xff]  ;;  %v30144_v60 = vld [vmem:[#allocation68_spill] sm:$0xff] }
 0xda2   : > { %v23843_v49 = vpop.eup %23842  ;;  %v16039_v53 = vadd.f32 1.0, %v23841_v21  ;;  %23089 = vrot.lane.b32.xlu0 %v30122_v55, %s30104_s24  ;;  %v30145_v21 = vld [vmem:[#allocation71_spill] sm:$0xff] }
 0xda3   : > { %v23845_v23 = vpop.eup %23844  ;;  %v16042_v24 = vadd.f32 1.0, %v23843_v49  ;;  %v23123_v2 = vpack.i.bf16 %v16130_v19, %v16129_v30  ;;  %v30136_v19 = vld [vmem:[#allocation62_spill] sm:$0xff]  ;;  %v30146_v30 = vpack.i.bf16 %v30144_v60, %v30145_v21 }
 0xda4   : > { %v23847_v15 = vpop.eup %23846  ;;  %v16132_v16 = vmul.f32 %v23845_v23, %v28902_v12  ;;  %23860 = vrcp.f32 %v16039_v53  ;;  %v30137_v46 = vpack.i.bf16 %v30135_v13, %v30136_v19  ;;  %v16471_v53 = vld [vmem:[%s29383_s12] sm:$0xff]  ;;  %v16473_v23 = vld [vmem:[%s29383_s12 + $0x10] sm:$0xff]  ;;  %v30154_v60 = vld [vmem:[#allocation26_spill] sm:$0xff] }
 0xda5   : > { %23179 = vrot.lane.b32.xlu1 %v23178_v22, %s23999_s20  ;;  %v23849_v32 = vpop.eup %23848  ;;  %v16131_v58 = vmul.f32 %v23847_v15, %v28905_v47  ;;  %23862 = vrcp.f32 %v16042_v24  ;;  %v16474_v24 = vld [vmem:[%s29383_s12 + $0x18] sm:$0xff]  ;;  %v16476_v15 = vld [vmem:[%s29383_s12 + $0x28] sm:$0xff]  ;;  %v30152_v13 = vld [vmem:[#allocation9_spill] sm:$0xff] }
 0xda6   : > { %v23851_v8 = vpop.eup %23850  ;;  %v16041_v20 = vadd.f32 1.0, %v23849_v32  ;;  %23104 = vrot.lane.b32.xlu0 %v23103_v52, %s23999_s20  ;;  %v23070_v52 = vpop.permute.xlu1 %23069  ;;  %v16477_v32 = vld [vmem:[%s29383_s12 + $0x30] sm:$0xff] }
 0xda7   : > { %v23853_v43 = vpop.eup %23852  ;;  %v16044_v50 = vadd.f32 1.0, %v23851_v8  ;;  %v23143_v41 = vpack.i.bf16 %v16132_v16, %v16131_v58  ;;  %v16478_v58 = vld [vmem:[%s29383_s12 + $0x38] sm:$0xff] }
 0xda8   : > { %v23855_v5 = vpop.eup %23854  ;;  %v16134_v12 = vmul.f32 %v23853_v43, %v28922_v29  ;;  %23864 = vrcp.f32 %v16041_v20  ;;  %v23075_v43 = vpop.permute.xlu0 %23074 }
 0xda9   : > { %23194 = vrot.lane.b32.xlu1 %v30125_v11, %s30104_s24  ;;  %v23857_v62 = vpop.eup %23856  ;;  %v16133_v47 = vmul.f32 %v23855_v5, %v28925_v17  ;;  %23866 = vrcp.f32 %v16044_v50  ;;  %v23072_v50 = vunpack.i.h.bf16 %v23070_v52  ;;  %v23076_v18 = vunpack.i.l.bf16 %v23075_v43 }
 0xdaa   : > { %v23859_v22 = vpop.eup %23858  ;;  %v16043_v0 = vadd.f32 1.0, %v23857_v62  ;;  %23109 = vrot.lane.b32.xlu0 %v30128_v37, %s30104_s24 }
 0xdab   : > { %v23163_v7 = vpack.i.bf16 %v16134_v12, %v16133_v47  ;;  %v16136_v29 = vmul.f32 %v23859_v22, %v28939_v3  ;;  %v23077_v12 = vunpack.i.h.bf16 %v23075_v43  ;;  %v30147_v47 = vld [vmem:[#allocation8_spill] sm:$0xff] }
 0xdac   : > { %23868 = vrcp.f32 %v16043_v0  ;;  %v16399_v22 = vsel %vm16397_vm2, %v30147_v47, %v23072_v50  ;;  %v30148_v0 = vld [vmem:[#allocation7_spill] sm:$0xff] }
 0xdad   : > { %23199 = vrot.lane.b32.xlu1 %v23198_v26, %s23999_s20  ;;  %v30134_v26 = vpack.i.bf16 %v30132_v59, %v30133_v27  ;;  %v30156_v50 = vld [vmem:[#allocation11_spill] sm:$0xff] }
 0xdae   : > { %v23861_v44 = vpop.eup %23860  ;;  %23124 = vrot.lane.b32.xlu0 %v23123_v2, %s23999_s20  ;;  %v16475_v2 = vld [vmem:[%s29383_s12 + $0x20] sm:$0xff] }
 0xdaf   : > { %v23863_v17 = vpop.eup %23862  ;;  %v16135_v4 = vmul.f32 %v23861_v44, %v28942_v39  ;;  %v30150_v44 = vld [vmem:[#allocation24_spill] sm:$0xff] }
 0xdb0   : > { %v16138_v34 = vmul.f32 %v23863_v17, %v28956_v6  ;;  %v16414_v17 = vsel %vm16397_vm2, %v30150_v44, %v23076_v18 }
 0xdb1   : > { %23214 = vrot.lane.b32.xlu1 %v30131_v57, %s30104_s24  ;;  %v23183_v61 = vpack.i.bf16 %v16136_v29, %v16135_v4 }
 0xdb2   : > { %v23865_v33 = vpop.eup %23864  ;;  %23129 = vrot.lane.b32.xlu0 %v30134_v26, %s30104_s24 }
 0xdb3   : > { %v23867_v3 = vpop.eup %23866  ;;  %v16137_v51 = vmul.f32 %v23865_v33, %v28961_v25  ;;  %v30138_v25 = vld [vmem:[#allocation63_spill] sm:$0xff] }
 0xdb4   : > { %v16140_v39 = vmul.f32 %v23867_v3, %v28973_v9  ;;  %v30140_v10 = vpack.i.bf16 %v30138_v25, %v30139_v1  ;;  %v30141_v9 = vld [vmem:[#allocation65_spill] sm:$0xff] }
 0xdb5   : > { %23224 = vrot.lane.b32.xlu1 %v23223_v35, %s23999_s20  ;;  %v23203_v36 = vpack.i.bf16 %v16138_v34, %v16137_v51  ;;  %v30142_v35 = vld [vmem:[#allocation66_spill] sm:$0xff] }
 0xdb6   : > { %v23869_v63 = vpop.eup %23868  ;;  %23144 = vrot.lane.b32.xlu0 %v23143_v41, %s23999_s20  ;;  %v30143_v56 = vpack.i.bf16 %v30141_v9, %v30142_v35  ;;  %v23071_v41 = vunpack.i.l.bf16 %v23070_v52  ;;  %v30153_v35 = vld [vmem:[#allocation25_spill] sm:$0xff] }
 0xdb7   : > { %v16139_v6 = vmul.f32 %v23869_v63, %v28976_v38  ;;  %v29064_v38 = vld [vmem:[%s29382_s11] sm:$0xff] }
 0xdb8   : > { %19579 = vmatprep.mubr.f32.mxu1 %v29064_v38  ;;  %v16398_v48 = vsel %vm16397_vm2, %v30148_v0, %v23071_v41 }
 0xdb9   : > { %v23218_v28 = vpack.i.bf16 %v16140_v39, %v16139_v6  ;;  %16486 = vperm.xlu1 %23229, %v16472_v14   ;;  %v30151_v6 = vld [vmem:[#allocation10_spill] sm:$0xff] }
 0xdba   : > { %23149 = vrot.lane.b32.xlu0 %v30137_v46, %s30104_s24 }
 0xdbd   : > { %16491 = vperm.xlu1 %23229, %v16473_v23  }
 0xdbe   : > { %23164 = vrot.lane.b32.xlu0 %v23163_v7, %s23999_s20  ;;  %v30149_v7 = vld [vmem:[#allocation23_spill] sm:$0xff] }
 0xdbf   : > { %v16415_v29 = vsel %vm16397_vm2, %v30149_v7, %v23077_v12 }
 0xdc1   : > { %16501 = vperm.xlu1 %23229, %v16475_v2  }
 0xdc2   : > { %23169 = vrot.lane.b32.xlu0 %v30140_v10, %s30104_s24 }
 0xdc5   : > { %16511 = vperm.xlu1 %23229, %v16477_v32  }
 0xdc6   : > { %23184 = vrot.lane.b32.xlu0 %v23183_v61, %s23999_s20 }
 0xdca   : > { %23189 = vrot.lane.b32.xlu0 %v30143_v56, %s30104_s24 }
 0xdce   : > { %23204 = vrot.lane.b32.xlu0 %v23203_v36, %s23999_s20 }
 0xdd2   : > { %23209 = vrot.lane.b32.xlu0 %v30146_v30, %s30104_s24  ;;  %s29285_s24 = scalar_lea.vmem [#allocation3], %s16840_s17  ;;  %s24002_s17 = smov [#allocation3]  }
 0xdd3   : > { %s16774_s30 = sshll.u32 %s29285_s24, 4  ;;  %s29323_s30 = int_to_ptr.vmem [resolvable:$true] %s16774_s30 }
 0xdd4   : > { %s23934_s22 = scalar_lea.vmem %s29323_s30, 2048 }
 0xdd5   : > { %p23935_p11 = scmp.ne.s32.totalorder %s29323_s30, %s23934_s22 }
 0xdd6   : > { %23219 = vrot.lane.b32.xlu0 %v23218_v28, %s23999_s20  ;;  %s18214_s20 = sshll.u32 %s24096_s29, 11  ;;  %s29330_s29 = scalar_lea.sflag [#allocation4], %s431_s23 }
 0xdd7   : > { %s29321_s21 = scalar_lea.hbm %s29384_s13, %s18214_s20  ;;  %p23936_p12 = pnand %p23935_p11, %p24113_p5 }
 0xdd8   : > { %s23938_s20 = sshll.u32 %s24002_s17, 4  ;;  %s23939_s20 = int_to_ptr.vmem [resolvable:$false] %s23938_s20 }
 0xdd9   : > { %p23937_p13 = pneg %p23936_p12  ;;  %s23940_s15 = scalar_lea.vmem %s23939_s20, 4096 }
 0xdda   : > { %16481 = vperm.xlu0 %23228, %v16471_v53   ;;  %p23941_p0 = scmp.lt.s32.totalorder %s29323_s30, %s23939_s20  ;;  %p23942_p1 = scmp.lt.s32.totalorder %s23940_s15, %s23934_s22 }
 0xddc   : > { %p23943_p2 = por %p23942_p1, %p23941_p0 }
 0xdde   : > { %16496 = vperm.xlu0 %23228, %v16474_v24   ;;  %p23944_p3 = pnand %p23943_p2, %p23937_p13 }
 0xde2   : > { %16506 = vperm.xlu0 %23228, %v16476_v15  }
 0xde6   : > { %16516 = vperm.xlu0 %23228, %v16478_v58   ;;  %v30155_v58 = vld [vmem:[#allocation12_spill] sm:$0xff] }
 0xdee   : > { %v23080_v49 = vpop.permute.xlu1 %23079 }
 0xdef   : > { %v23082_v40 = vunpack.i.h.bf16 %v23080_v49  ;;  %v23081_v11 = vunpack.i.l.bf16 %v23080_v49 }
 0xdf1   : > { %v16432_v4 = vsel %vm16430_vm3, %v16399_v22, %v23082_v40  ;;  %v16431_v45 = vsel %vm16430_vm3, %v16398_v48, %v23081_v11  ;;  %v30157_v11 = vld [vmem:[#allocation27_spill] sm:$0xff] }
 0xdf2   : > { %v23095_v55 = vpop.permute.xlu1 %23094  ;;  %v21965_v59 = vpack.c.bf16 %v16432_v4, %v16431_v45 }
 0xdf3   : > { %v23097_v27 = vunpack.i.h.bf16 %v23095_v55  ;;  %v23096_v26 = vunpack.i.l.bf16 %v23095_v55 }
 0xdf5   : > { %v16401_v28 = vsel %vm16397_vm2, %v30151_v6, %v23097_v27  ;;  %v16400_v19 = vsel %vm16397_vm2, %v30152_v13, %v23096_v26 }
 0xdf6   : > { %v23100_v16 = vpop.permute.xlu1 %23099 }
 0xdf7   : > { %v23102_v3 = vunpack.i.h.bf16 %v23100_v16  ;;  %v23101_v51 = vunpack.i.l.bf16 %v23100_v16 }
 0xdf9   : > { %v16434_v10 = vsel %vm16430_vm3, %v16401_v28, %v23102_v3  ;;  %v16433_v9 = vsel %vm16430_vm3, %v16400_v19, %v23101_v51 }
 0xdfa   : > { %v21969_v14 = vpack.c.bf16 %v16434_v10, %v16433_v9 }
 0xdfb   : > { %v29096_v8 = vpop.permute.xlu1 %23114 }
 0xdfc   : > { %v23117_v42 = vunpack.i.h.bf16 %v29096_v8  ;;  %v23116_v55 = vunpack.i.l.bf16 %v29096_v8 }
 0xdfe   : > { %v16403_v43 = vsel %vm16397_vm2, %v30155_v58, %v23117_v42  ;;  %v16402_v41 = vsel %vm16397_vm2, %v30156_v50, %v23116_v55 }
 0xdff   : > { %v29098_v20 = vpop.permute.xlu1 %23119 }
 0xe00   : > { %v23122_v23 = vunpack.i.h.bf16 %v29098_v20  ;;  %v23121_v24 = vunpack.i.l.bf16 %v29098_v20 }
 0xe02   : > { %v16436_v8 = vsel %vm16430_vm3, %v16403_v43, %v23122_v23  ;;  %v16435_v40 = vsel %vm16430_vm3, %v16402_v41, %v23121_v24 }
 0xe03   : > { %v29100_v5 = vpop.permute.xlu1 %23134 }
 0xe04   : > { %v23137_v7 = vunpack.i.h.bf16 %v29100_v5 }
 0xe07   : > { %v29112_v54 = vpop.permute.xlu1 %23139 }
 0xe08   : > { %v23141_v4 = vunpack.i.l.bf16 %v29112_v54 }
 0xe0b   : > { %v29120_v46 = vpop.permute.xlu1 %23154 }
 0xe0c   : > { %v23157_v10 = vunpack.i.h.bf16 %v29120_v46  ;;  %v23156_v9 = vunpack.i.l.bf16 %v29120_v46 }
 0xe0f   : > { %v23160_v16 = vpop.permute.xlu1 %23159 }
 0xe10   : > { %v23085_v62 = vpop.permute.xlu0 %23084 }
 0xe11   : > { %v23087_v31 = vunpack.i.h.bf16 %v23085_v62  ;;  %v23086_v37 = vunpack.i.l.bf16 %v23085_v62  ;;  %v30158_v62 = vld [vmem:[#allocation28_spill] sm:$0xff] }
 0xe13   : > { %v16447_v57 = vsel %vm16430_vm3, %v16414_v17, %v23086_v37  ;;  %v16448_v34 = vsel %vm16430_vm3, %v16415_v29, %v23087_v31  ;;  %v21973_v37 = vpack.c.bf16 %v16436_v8, %v16435_v40  ;;  %v23136_v29 = vunpack.i.l.bf16 %v29100_v5  ;;  %v23175_v44 = vpop.permute.xlu1 %23174 }
 0xe14   : > { %v23090_v61 = vpop.permute.xlu0 %23089  ;;  %v21963_v33 = vpack.c.bf16 %v16448_v34, %v16447_v57  ;;  %v23142_v17 = vunpack.i.h.bf16 %v29112_v54  ;;  %v23176_v8 = vunpack.i.l.bf16 %v23175_v44 }
 0xe15   : > { %v23092_v39 = vunpack.i.h.bf16 %v23090_v61  ;;  %v23091_v36 = vunpack.i.l.bf16 %v23090_v61  ;;  %v30159_v61 = vld [vmem:[#allocation14_spill] sm:$0xff] }
 0xe16   : > { %21964 = vmatprep.subr.bf16.mxu1 %v21963_v33  ;;  %v16405_v33 = vsel %vm16397_vm2, %v30159_v61, %v23137_v7 }
 0xe17   : > { %21966 = vmatpush3.bf16.xpose.msra.mxu1 %v21965_v59  ;;  %v16417_v56 = vsel %vm16397_vm2, %v30153_v35, %v23092_v39  ;;  %v16416_v21 = vsel %vm16397_vm2, %v30154_v60, %v23091_v36  ;;  %v30160_v59 = vld [vmem:[#allocation13_spill] sm:$0xff]  ;;  %v16438_v5 = vsel %vm16430_vm3, %v16405_v33, %v23142_v17  ;;  %v30161_v39 = vld [vmem:[#allocation30_spill] sm:$0xff]  ;;  %v23180_v6 = vpop.permute.xlu1 %23179  ;;  %v23162_v35 = vunpack.i.h.bf16 %v23160_v16 }
 0xe18   : > { %v23105_v63 = vpop.permute.xlu0 %23104  ;;  %v16404_v27 = vsel %vm16397_vm2, %v30160_v59, %v23136_v29  ;;  %v30162_v36 = vld [vmem:[#allocation29_spill] sm:$0xff]  ;;  %v23182_v40 = vunpack.i.h.bf16 %v23180_v6 }
 0xe19   : > { %v23107_v25 = vunpack.i.h.bf16 %v23105_v63  ;;  %v23106_v1 = vunpack.i.l.bf16 %v23105_v63  ;;  %v16437_v51 = vsel %vm16430_vm3, %v16404_v27, %v23141_v4  ;;  %v30169_v4 = vld [vmem:[#allocation33_spill] sm:$0xff] }
 0xe1b   : > { %v16449_v30 = vsel %vm16430_vm3, %v16416_v21, %v23106_v1  ;;  %v16450_v52 = vsel %vm16430_vm3, %v16417_v56, %v23107_v25  ;;  %v21977_v1 = vpack.c.bf16 %v16438_v5, %v16437_v51  ;;  %v23161_v56 = vunpack.i.l.bf16 %v23160_v16  ;;  %v23195_v42 = vpop.permute.xlu1 %23194  ;;  %v30166_v16 = vld [vmem:[#allocation32_spill] sm:$0xff] }
 0xe1c   : > { %v23110_v49 = vpop.permute.xlu0 %23109  ;;  %v21967_v53 = vpack.c.bf16 %v16450_v52, %v16449_v30  ;;  %v30163_v52 = vld [vmem:[#allocation16_spill] sm:$0xff]  ;;  %v23196_v5 = vunpack.i.l.bf16 %v23195_v42 }
 0xe1d   : > { %v23112_v2 = vunpack.i.h.bf16 %v23110_v49  ;;  %v23111_v15 = vunpack.i.l.bf16 %v23110_v49  ;;  %v16407_v49 = vsel %vm16397_vm2, %v30163_v52, %v23157_v10 }
 0xe1e   : > { %21968 = vmatprep.subr.bf16.mxu1 %v21967_v53  ;;  %v30164_v53 = vld [vmem:[#allocation15_spill] sm:$0xff]  ;;  %v16440_v24 = vsel %vm16430_vm3, %v16407_v49, %v23162_v35 }
 0xe1f   : > { %21970 = vmatpush3.bf16.xpose.msra.mxu1 %v21969_v14  ;;  %v16419_v20 = vsel %vm16397_vm2, %v30157_v11, %v23112_v2  ;;  %v16418_v47 = vsel %vm16397_vm2, %v30158_v62, %v23111_v15  ;;  %v16406_v14 = vsel %vm16397_vm2, %v30164_v53, %v23156_v9  ;;  %v30165_v2 = vld [vmem:[#allocation31_spill] sm:$0xff]  ;;  %v23181_v11 = vunpack.i.l.bf16 %v23180_v6 }
 0xe20   : > { %v23125_v32 = vpop.permute.xlu0 %23124  ;;  %v16439_v46 = vsel %vm16430_vm3, %v16406_v14, %v23161_v56  ;;  %v30173_v56 = vld [vmem:[#allocation35_spill] sm:$0xff] }
 0xe21   : > { %v23127_v12 = vunpack.i.h.bf16 %v23125_v32  ;;  %v23126_v18 = vunpack.i.l.bf16 %v23125_v32 }
 0xe23   : > { %v16451_v22 = vsel %vm16430_vm3, %v16418_v47, %v23126_v18  ;;  %v16452_v0 = vsel %vm16430_vm3, %v16419_v20, %v23127_v12  ;;  %v21981_v12 = vpack.c.bf16 %v16440_v24, %v16439_v46  ;;  %v23177_v18 = vunpack.i.h.bf16 %v23175_v44  ;;  %v23200_v47 = vpop.permute.xlu1 %23199 }
 0xe24   : > { %v23130_v48 = vpop.permute.xlu0 %23129  ;;  %v21971_v31 = vpack.c.bf16 %v16452_v0, %v16451_v22  ;;  %v30167_v0 = vld [vmem:[#allocation18_spill] sm:$0xff] }
 0xe25   : > { %v23132_v45 = vunpack.i.h.bf16 %v23130_v48  ;;  %v23131_v57 = vunpack.i.l.bf16 %v23130_v48  ;;  %v16409_v48 = vsel %vm16397_vm2, %v30167_v0, %v23177_v18 }
 0xe26   : > { %21972 = vmatprep.subr.bf16.mxu1 %v21971_v31  ;;  %v30168_v31 = vld [vmem:[#allocation17_spill] sm:$0xff]  ;;  %v16442_v17 = vsel %vm16430_vm3, %v16409_v48, %v23182_v40 }
 0xe27   : > { %21974 = vmatpush3.bf16.xpose.msra.mxu1 %v21973_v37  ;;  %v16421_v54 = vsel %vm16397_vm2, %v30161_v39, %v23132_v45  ;;  %v16420_v63 = vsel %vm16397_vm2, %v30162_v36, %v23131_v57  ;;  %v16408_v37 = vsel %vm16397_vm2, %v30168_v31, %v23176_v8  ;;  %v30170_v57 = vld [vmem:[#allocation34_spill] sm:$0xff]  ;;  %v23215_v51 = vpop.permute.xlu1 %23214  ;;  %v23202_v39 = vunpack.i.h.bf16 %v23200_v47 }
 0xe28   : > { %v23145_v34 = vpop.permute.xlu0 %23144  ;;  %v16441_v44 = vsel %vm16430_vm3, %v16408_v37, %v23181_v11  ;;  %v23216_v24 = vunpack.i.l.bf16 %v23215_v51  ;;  %v30177_v11 = vld [vmem:[#allocation37_spill] sm:$0xff]  ;;  %v16464_v37 = vld [vmem:[%s29382_s11 + $0x8] sm:$0xff] }
 0xe29   : > { %v23147_v26 = vunpack.i.h.bf16 %v23145_v34  ;;  %v23146_v3 = vunpack.i.l.bf16 %v23145_v34 }
 0xe2b   : > { %v16453_v28 = vsel %vm16430_vm3, %v16420_v63, %v23146_v3  ;;  %v16454_v13 = vsel %vm16430_vm3, %v16421_v54, %v23147_v26  ;;  %v21985_v26 = vpack.c.bf16 %v16442_v17, %v16441_v44  ;;  %v23197_v3 = vunpack.i.h.bf16 %v23195_v42  ;;  %v23225_v52 = vpop.permute.xlu1 %23224  ;;  %v16467_v17 = vld [vmem:[%s29382_s11 + $0x20] sm:$0xff]  ;;  %v16469_v44 = vld [vmem:[%s29382_s11 + $0x30] sm:$0xff] }
 0xe2c   : > { %v23150_v19 = vpop.permute.xlu0 %23149  ;;  %v21975_v25 = vpack.c.bf16 %v16454_v13, %v16453_v28  ;;  %v23201_v54 = vunpack.i.l.bf16 %v23200_v47  ;;  %v30171_v28 = vld [vmem:[#allocation20_spill] sm:$0xff]  ;;  %v23227_v46 = vunpack.i.h.bf16 %v23225_v52 }
 0xe2d   : > { %v23152_v60 = vunpack.i.h.bf16 %v23150_v19  ;;  %v23151_v21 = vunpack.i.l.bf16 %v23150_v19  ;;  %v16411_v13 = vsel %vm16397_vm2, %v30171_v28, %v23197_v3  ;;  %v30172_v19 = vld [vmem:[#allocation19_spill] sm:$0xff] }
 0xe2e   : > { %21976 = vmatprep.subr.bf16.mxu1 %v21975_v25  ;;  %v16410_v25 = vsel %vm16397_vm2, %v30172_v19, %v23196_v5  ;;  %v16444_v9 = vsel %vm16430_vm3, %v16411_v13, %v23202_v39 }
 0xe2f   : > { %21978 = vmatpush3.bf16.xpose.msra.mxu1 %v21977_v1  ;;  %v16423_v15 = vsel %vm16397_vm2, %v30165_v2, %v23152_v60  ;;  %v16422_v32 = vsel %vm16397_vm2, %v30166_v16, %v23151_v21  ;;  %v16443_v35 = vsel %vm16430_vm3, %v16410_v25, %v23201_v54  ;;  %v30174_v21 = vld [vmem:[#allocation36_spill] sm:$0xff]  ;;  %v23226_v2 = vunpack.i.l.bf16 %v23225_v52 }
 0xe30   : > { %v23165_v30 = vpop.permute.xlu0 %23164 }
 0xe31   : > { %v23167_v55 = vunpack.i.h.bf16 %v23165_v30  ;;  %v23166_v23 = vunpack.i.l.bf16 %v23165_v30 }
 0xe33   : > { %v16455_v58 = vsel %vm16430_vm3, %v16422_v32, %v23166_v23  ;;  %v16456_v43 = vsel %vm16430_vm3, %v16423_v15, %v23167_v55  ;;  %v21989_v55 = vpack.c.bf16 %v16444_v9, %v16443_v35  ;;  %v23217_v23 = vunpack.i.h.bf16 %v23215_v51 }
 0xe34   : > { %v23170_v50 = vpop.permute.xlu0 %23169  ;;  %v21979_v41 = vpack.c.bf16 %v16456_v43, %v16455_v58  ;;  %v30175_v58 = vld [vmem:[#allocation21_spill] sm:$0xff] }
 0xe35   : > { %v23172_v20 = vunpack.i.h.bf16 %v23170_v50  ;;  %v23171_v62 = vunpack.i.l.bf16 %v23170_v50  ;;  %v16413_v43 = vsel %vm16397_vm2, %v30175_v58, %v23217_v23  ;;  %v30176_v50 = vld [vmem:[#allocation22_spill] sm:$0xff] }
 0xe36   : > { %21980 = vmatprep.subr.bf16.mxu1 %v21979_v41  ;;  %v16412_v41 = vsel %vm16397_vm2, %v30176_v50, %v23216_v24  ;;  %v16446_v8 = vsel %vm16430_vm3, %v16413_v43, %v23227_v46 }
 0xe37   : > { %21982 = vmatpush3.bf16.xpose.msra.mxu1 %v21981_v12  ;;  %v16425_v45 = vsel %vm16397_vm2, %v30169_v4, %v23172_v20  ;;  %v16424_v34 = vsel %vm16397_vm2, %v30170_v57, %v23171_v62  ;;  %v16445_v40 = vsel %vm16430_vm3, %v16412_v41, %v23226_v2  ;;  %v30178_v62 = vld [vmem:[#allocation38_spill] sm:$0xff]  ;;  %v16470_v4 = vld [vmem:[%s29382_s11 + $0x38] sm:$0xff] }
 0xe38   : > { %v23185_v22 = vpop.permute.xlu0 %23184  ;;  %v21993_v31 = vpack.c.bf16 %v16446_v8, %v16445_v40 }
 0xe39   : > { %v23187_v7 = vunpack.i.h.bf16 %v23185_v22  ;;  %v23186_v29 = vunpack.i.l.bf16 %v23185_v22 }
 0xe3b   : > { %v16457_v61 = vsel %vm16430_vm3, %v16424_v34, %v23186_v29  ;;  %v16458_v33 = vsel %vm16430_vm3, %v16425_v45, %v23187_v7  ;;  %v16465_v7 = vld [vmem:[%s29382_s11 + $0x10] sm:$0xff]  ;;  %v16466_v29 = vld [vmem:[%s29382_s11 + $0x18] sm:$0xff]  ;;  %v16487_v34 = vpop.permute.xlu1 %16486 }
 0xe3c   : > { %v23190_v59 = vpop.permute.xlu0 %23189  ;;  %v21983_v27 = vpack.c.bf16 %v16458_v33, %v16457_v61 }
 0xe3d   : > { %v23192_v36 = vunpack.i.h.bf16 %v23190_v59  ;;  %v23191_v63 = vunpack.i.l.bf16 %v23190_v59 }
 0xe3e   : > { %21984 = vmatprep.subr.bf16.mxu1 %v21983_v27 }
 0xe3f   : > { %21986 = vmatpush3.bf16.xpose.msra.mxu1 %v21985_v26  ;;  %v16427_v60 = vsel %vm16397_vm2, %v30173_v56, %v23192_v36  ;;  %v16426_v30 = vsel %vm16397_vm2, %v30174_v21, %v23191_v63  ;;  %v16492_v54 = vpop.permute.xlu1 %16491 }
 0xe40   : > { %v23205_v6 = vpop.permute.xlu0 %23204 }
 0xe41   : > { %v23207_v1 = vunpack.i.h.bf16 %v23205_v6  ;;  %v23206_v10 = vunpack.i.l.bf16 %v23205_v6 }
 0xe43   : > { %v16459_v49 = vsel %vm16430_vm3, %v16426_v30, %v23206_v10  ;;  %v16460_v53 = vsel %vm16430_vm3, %v16427_v60, %v23207_v1 }
 0xe44   : > { %v23210_v14 = vpop.permute.xlu0 %23209  ;;  %v21987_v42 = vpack.c.bf16 %v16460_v53, %v16459_v49 }
 0xe45   : > { %v23212_v15 = vunpack.i.h.bf16 %v23210_v14  ;;  %v23211_v16 = vunpack.i.l.bf16 %v23210_v14  ;;  %v16502_v14 = vpop.permute.xlu1 %16501 }
 0xe46   : > { %21988 = vmatprep.subr.bf16.mxu1 %v21987_v42 }
 0xe47   : > { %21990 = vmatpush3.bf16.xpose.msra.mxu1 %v21989_v55  ;;  %v16429_v20 = vsel %vm16397_vm2, %v30177_v11, %v23212_v15  ;;  %v16428_v47 = vsel %vm16397_vm2, %v30178_v62, %v23211_v16 }
 0xe48   : > { %v23220_v32 = vpop.permute.xlu0 %23219 }
 0xe49   : > { %v23222_v12 = vunpack.i.h.bf16 %v23220_v32  ;;  %v23221_v18 = vunpack.i.l.bf16 %v23220_v32 }
 0xe4b   : > { %v16461_v22 = vsel %vm16430_vm3, %v16428_v47, %v23221_v18  ;;  %v16462_v0 = vsel %vm16430_vm3, %v16429_v20, %v23222_v12  ;;  %v16512_v47 = vpop.permute.xlu1 %16511 }
 0xe4c   : > { %v21991_v48 = vpack.c.bf16 %v16462_v0, %v16461_v22 }
 0xe4e   : > { %21992 = vmatprep.subr.bf16.mxu1 %v21991_v48 }
 0xe4f   : > { %21994 = vmatpush3.bf16.xpose.msra.mxu1 %v21993_v31 }
 0xe56   : > { %19580 = vmatmul.mubr.f32.vlgmr.msra.gmra.mrb[72].mxu1 %v29064_v38  ;;  %v16468_v38 = vld [vmem:[%s29382_s11 + $0x28] sm:$0xff] }
 0xe57   : > { %19581 = vmatprep.mubr.f32.mxu1 %v16464_v37 }
 0xe59   : > { %v16482_v45 = vpop.permute.xlu0 %16481 }
 0xe5a   : > { %19582 = vmatmul.mubr.f32.gmra.mrb[74].mxu1 %v16464_v37 }
 0xe5b   : > { %19583 = vmatprep.mubr.f32.mxu1 %v16465_v7 }
 0xe5d   : > { %v16497_v10 = vpop.permute.xlu0 %16496 }
 0xe5e   : > { %19584 = vmatmul.mubr.f32.gmra.mrb[76].mxu1 %v16465_v7 }
 0xe5f   : > { %19585 = vmatprep.mubr.f32.mxu1 %v16466_v29 }
 0xe61   : > { %v16507_v58 = vpop.permute.xlu0 %16506 }
 0xe62   : > { %19586 = vmatmul.mubr.f32.gmra.mrb[78].mxu1 %v16466_v29 }
 0xe63   : > { %19587 = vmatprep.mubr.f32.mxu1 %v16467_v17 }
 0xe66   : > { %19588 = vmatmul.mubr.f32.gmra.mrb[80].mxu1 %v16467_v17 }
 0xe67   : > { %19589 = vmatprep.mubr.f32.mxu1 %v16468_v38 }
 0xe6a   : > { %19590 = vmatmul.mubr.f32.gmra.mrb[82].mxu1 %v16468_v38 }
 0xe6b   : > { %19591 = vmatprep.mubr.f32.mxu1 %v16469_v44 }
 0xe6e   : > { %19592 = vmatmul.mubr.f32.gmra.mrb[84].mxu1 %v16469_v44 }
 0xe6f   : > { %19593 = vmatprep.mubr.f32.mxu1 %v16470_v4 }
 0xe72   : > { %19594 = vmatmul.mubr.f32.gmra.mrb[86].mxu1 %v16470_v4  ;;  %v16517_v4 = vpop.permute.xlu0 %16516 }
 0xf29   : > { %v16585_v57 = vpop.f32.mrb[72].mxu1 }
 0xf2a   : > { %v29234_v61 = vadd.f32 %v16585_v57, %v16482_v45  ;;  %v16587_v33 = vpop.f32.mrb[73].mxu1 }
 0xf2b   : > { %v29236_v59 = vadd.f32 %v16587_v33, %v16482_v45 }
 0xf2c   : > { %v18192_v27 = vmul.f32 -1.442695, %v29234_v61 }
 0xf2d   : > { %v18193_v26 = vmul.f32 -1.442695, %v29236_v59  ;;  %v16591_v3 = vpop.f32.mrb[74].mxu1 }
 0xf2e   : > { %23870 = vpow2.f32 %v18192_v27  ;;  %v29240_v5 = vadd.f32 %v16591_v3, %v16487_v34  ;;  %v16593_v51 = vpop.f32.mrb[75].mxu1 }
 0xf2f   : > { %23872 = vpow2.f32 %v18193_v26  ;;  %v29242_v39 = vadd.f32 %v16593_v51, %v16487_v34 }
 0xf30   : > { %v18194_v36 = vmul.f32 -1.442695, %v29240_v5 }
 0xf31   : > { %v18195_v63 = vmul.f32 -1.442695, %v29242_v39  ;;  %v16597_v6 = vpop.f32.mrb[76].mxu1 }
 0xf32   : > { %23874 = vpow2.f32 %v18194_v36  ;;  %v29246_v28 = vadd.f32 %v16597_v6, %v16492_v54  ;;  %v16599_v13 = vpop.f32.mrb[77].mxu1 }
 0xf33   : > { %23876 = vpow2.f32 %v18195_v63  ;;  %v29248_v19 = vadd.f32 %v16599_v13, %v16492_v54 }
 0xf34   : > { %v18196_v25 = vmul.f32 -1.442695, %v29246_v28 }
 0xf35   : > { %v18197_v1 = vmul.f32 -1.442695, %v29248_v19  ;;  %v16603_v9 = vpop.f32.mrb[78].mxu1 }
 0xf36   : > { %23878 = vpow2.f32 %v18196_v25  ;;  %v29252_v35 = vadd.f32 %v16603_v9, %v16497_v10  ;;  %v16605_v56 = vpop.f32.mrb[79].mxu1 }
 0xf37   : > { %23880 = vpow2.f32 %v18197_v1  ;;  %v29254_v60 = vadd.f32 %v16605_v56, %v16497_v10 }
 0xf38   : > { %v23871_v21 = vpop.eup %23870  ;;  %v18198_v30 = vmul.f32 -1.442695, %v29252_v35 }
 0xf39   : > { %v23873_v52 = vpop.eup %23872  ;;  %v16680_v49 = vadd.f32 1.0, %v23871_v21  ;;  %v18199_v53 = vmul.f32 -1.442695, %v29254_v60  ;;  %v16609_v42 = vpop.f32.mrb[80].mxu1 }
 0xf3a   : > { %v16681_v55 = vadd.f32 1.0, %v23873_v52  ;;  %23882 = vpow2.f32 %v18198_v30  ;;  %v29258_v23 = vadd.f32 %v16609_v42, %v16502_v14  ;;  %v16611_v24 = vpop.f32.mrb[81].mxu1 }
 0xf3b   : > { %23884 = vrcp.f32 %v16680_v49  ;;  %v29260_v46 = vadd.f32 %v16611_v24, %v16502_v14 }
 0xf3c   : > { %v23875_v2 = vpop.eup %23874  ;;  %23886 = vrcp.f32 %v16681_v55  ;;  %v18200_v15 = vmul.f32 -1.442695, %v29258_v23 }
 0xf3d   : > { %v23877_v16 = vpop.eup %23876  ;;  %v16682_v32 = vadd.f32 1.0, %v23875_v2  ;;  %23888 = vpow2.f32 %v18199_v53  ;;  %v18201_v43 = vmul.f32 -1.442695, %v29260_v46  ;;  %v16615_v50 = vpop.f32.mrb[82].mxu1 }
 0xf3e   : > { %v16683_v41 = vadd.f32 1.0, %v23877_v16  ;;  %23890 = vpow2.f32 %v18200_v15  ;;  %v29264_v12 = vadd.f32 %v16615_v50, %v16507_v58  ;;  %v16617_v18 = vpop.f32.mrb[83].mxu1 }
 0xf3f   : > { %23892 = vrcp.f32 %v16682_v32  ;;  %v29267_v8 = vadd.f32 %v16617_v18, %v16507_v58 }
 0xf40   : > { %v23879_v40 = vpop.eup %23878  ;;  %23894 = vrcp.f32 %v16683_v41  ;;  %v18202_v11 = vmul.f32 -1.442695, %v29264_v12 }
 0xf41   : > { %v23881_v20 = vpop.eup %23880  ;;  %v16684_v62 = vadd.f32 1.0, %v23879_v40  ;;  %23896 = vpow2.f32 %v18201_v43  ;;  %v18203_v22 = vmul.f32 -1.442695, %v29267_v8  ;;  %v16621_v0 = vpop.f32.mrb[84].mxu1 }
 0xf42   : > { %v16685_v48 = vadd.f32 1.0, %v23881_v20  ;;  %23898 = vpow2.f32 %v18202_v11  ;;  %v29273_v31 = vadd.f32 %v16621_v0, %v16512_v47  ;;  %v16623_v37 = vpop.f32.mrb[85].mxu1 }
 0xf43   : > { %23900 = vrcp.f32 %v16684_v62  ;;  %v29275_v7 = vadd.f32 %v16623_v37, %v16512_v47 }
 0xf44   : > { %v23883_v29 = vpop.eup %23882  ;;  %23902 = vrcp.f32 %v16685_v48  ;;  %v18204_v17 = vmul.f32 -1.442695, %v29273_v31 }
 0xf45   : > { %v23885_v38 = vpop.eup %23884  ;;  %v16686_v44 = vadd.f32 1.0, %v23883_v29  ;;  %23904 = vpow2.f32 %v18203_v22  ;;  %v18205_v45 = vmul.f32 -1.442695, %v29275_v7  ;;  %v16627_v57 = vpop.f32.mrb[86].mxu1 }
 0xf46   : > { %v23887_v34 = vpop.eup %23886  ;;  %v16728_v33 = vmul.f32 %v23885_v38, %v29234_v61  ;;  %23906 = vpow2.f32 %v18204_v17  ;;  %v29280_v27 = vadd.f32 %v16627_v57, %v16517_v4  ;;  %v16629_v26 = vpop.f32.mrb[87].mxu1 }
 0xf47   : > { %v23889_v3 = vpop.eup %23888  ;;  %v16729_v51 = vmul.f32 %v23887_v34, %v29236_v59  ;;  %23908 = vrcp.f32 %v16686_v44  ;;  %v29283_v54 = vadd.f32 %v16629_v26, %v16517_v4 }
 0xf48   : > { %v23891_v36 = vpop.eup %23890  ;;  %16744 = vst [vmem:[%s29285_s24] sm:$0xff] %v16728_v33  ;;  %v16687_v63 = vadd.f32 1.0, %v23889_v3  ;;  %23910 = vpow2.f32 %v18205_v45  ;;  %v18206_v61 = vmul.f32 -1.442695, %v29280_v27 }
 0xf49   : > { %v23893_v6 = vpop.eup %23892  ;;  %16745 = vst [vmem:[%s29285_s24 + $0x8] sm:$0xff] %v16729_v51  ;;  %v16688_v13 = vadd.f32 1.0, %v23891_v36  ;;  %v18207_v59 = vmul.f32 -1.442695, %v29283_v54 }
 0xf4a   : > { %v23895_v25 = vpop.eup %23894  ;;  %v16730_v1 = vmul.f32 %v23893_v6, %v29240_v5  ;;  %23912 = vrcp.f32 %v16687_v63 }
 0xf4b   : > { %v23897_v10 = vpop.eup %23896  ;;  %v16731_v9 = vmul.f32 %v23895_v25, %v29242_v39  ;;  %23914 = vrcp.f32 %v16688_v13 }
 0xf4c   : > { %v23899_v56 = vpop.eup %23898  ;;  %16746 = vst [vmem:[%s29285_s24 + $0x10] sm:$0xff] %v16730_v1  ;;  %v16689_v21 = vadd.f32 1.0, %v23897_v10  ;;  %23916 = vpow2.f32 %v18206_v61 }
 0xf4d   : > { %v23901_v30 = vpop.eup %23900  ;;  %16747 = vst [vmem:[%s29285_s24 + $0x18] sm:$0xff] %v16731_v9  ;;  %v16690_v52 = vadd.f32 1.0, %v23899_v56  ;;  %23918 = vpow2.f32 %v18207_v59 }
 0xf4e   : > { %v23903_v49 = vpop.eup %23902  ;;  %v16732_v53 = vmul.f32 %v23901_v30, %v29246_v28  ;;  %23920 = vrcp.f32 %v16689_v21 }
 0xf4f   : > { %v23905_v5 = vpop.eup %23904  ;;  %v16733_v14 = vmul.f32 %v23903_v49, %v29248_v19  ;;  %23922 = vrcp.f32 %v16690_v52 }
 0xf50   : > { %v23907_v39 = vpop.eup %23906  ;;  %16748 = vst [vmem:[%s29285_s24 + $0x20] sm:$0xff] %v16732_v53  ;;  %v16691_v42 = vadd.f32 1.0, %v23905_v5 }
 0xf51   : > { %v23909_v55 = vpop.eup %23908  ;;  %16749 = vst [vmem:[%s29285_s24 + $0x28] sm:$0xff] %v16733_v14  ;;  %v16692_v24 = vadd.f32 1.0, %v23907_v39 }
 0xf52   : > { %v23911_v2 = vpop.eup %23910  ;;  %v16734_v15 = vmul.f32 %v23909_v55, %v29252_v35  ;;  %23924 = vrcp.f32 %v16691_v42 }
 0xf53   : > { %23926 = vrcp.f32 %v16692_v24  ;;  %v16693_v28 = vadd.f32 1.0, %v23911_v2 }
 0xf54   : > { %v23913_v16 = vpop.eup %23912  ;;  %16750 = vst [vmem:[%s29285_s24 + $0x30] sm:$0xff] %v16734_v15 }
 0xf55   : > { %v23915_v32 = vpop.eup %23914  ;;  %v16735_v19 = vmul.f32 %v23913_v16, %v29254_v60  ;;  %23928 = vrcp.f32 %v16693_v28 }
 0xf56   : > { %v23917_v58 = vpop.eup %23916  ;;  %v16736_v43 = vmul.f32 %v23915_v32, %v29258_v23 }
 0xf57   : > { %v23919_v50 = vpop.eup %23918  ;;  %16751 = vst [vmem:[%s29285_s24 + $0x38] sm:$0xff] %v16735_v19  ;;  %v16694_v41 = vadd.f32 1.0, %v23917_v58 }
 0xf58   : > { %v23921_v18 = vpop.eup %23920  ;;  %16752 = vst [vmem:[%s29285_s24 + $0x40] sm:$0xff] %v16736_v43  ;;  %v16695_v35 = vadd.f32 1.0, %v23919_v50 }
 0xf59   : > { %v23923_v40 = vpop.eup %23922  ;;  %v16737_v11 = vmul.f32 %v23921_v18, %v29260_v46  ;;  %23930 = vrcp.f32 %v16694_v41 }
 0xf5a   : > { %v16738_v60 = vmul.f32 %v23923_v40, %v29264_v12  ;;  %23932 = vrcp.f32 %v16695_v35 }
 0xf5b   : > { %16753 = vst [vmem:[%s29285_s24 + $0x48] sm:$0xff] %v16737_v11 }
 0xf5c   : > { %v23925_v23 = vpop.eup %23924  ;;  %16754 = vst [vmem:[%s29285_s24 + $0x50] sm:$0xff] %v16738_v60 }
 0xf5d   : > { %v23927_v20 = vpop.eup %23926  ;;  %v16739_v62 = vmul.f32 %v23925_v23, %v29267_v8 }
 0xf5e   : > { %v16740_v47 = vmul.f32 %v23927_v20, %v29273_v31 }
 0xf5f   : > { %v23929_v22 = vpop.eup %23928  ;;  %16755 = vst [vmem:[%s29285_s24 + $0x58] sm:$0xff] %v16739_v62 }
 0xf60   : > { %16756 = vst [vmem:[%s29285_s24 + $0x60] sm:$0xff] %v16740_v47  ;;  %v16741_v46 = vmul.f32 %v23929_v22, %v29275_v7 }
 0xf62   : > { %16757 = vst [vmem:[%s29285_s24 + $0x68] sm:$0xff] %v16741_v46 }
 0xf63   : > { %v23931_v12 = vpop.eup %23930 }
 0xf64   : > { %v23933_v0 = vpop.eup %23932  ;;  %v16742_v48 = vmul.f32 %v23931_v12, %v29280_v27 }
 0xf65   : > { %v16743_v8 = vmul.f32 %v23933_v0, %v29283_v54 }
 0xf66   : > { %16758 = vst [vmem:[%s29285_s24 + $0x70] sm:$0xff] %v16742_v48 }
 0xf67   : > { %16759 = vst [vmem:[%s29285_s24 + $0x78] sm:$0xff] %v16743_v8 }
 0xf68   : > { %23947 = shalt.err (!%p23944_p3)
}
 0xf69   : > { %s23948_s23 = scalar_lea.hbm %s29321_s21, 2048  ;;  %s23952_s17 = scalar_lea.hbm %s29384_s13, 4096 }
 0xf6a   : > { %p23949_p4 = scmp.ne.s32.totalorder %s29321_s21, %s23948_s23  ;;  %p23953_p9 = scmp.lt.u32.totalorder %s29321_s21, %s29384_s13 }
 0xf6b   : > { %p23954_p10 = scmp.lt.u32.totalorder %s23952_s17, %s23948_s23  ;;  %p23956_p12 = scmp.lt.u32.totalorder %s23948_s23, %s29321_s21 }
 0xf6c   : > { %p23950_p7 = pnand %p23949_p4, %p24113_p5 }
 0xf6d   : > { %p23955_p11 = por %p23954_p10, %p23953_p9 }
 0xf6e   : > { %p23951_p8 = pneg %p23950_p7 }
 0xf6f   : > { %p23957_p13 = por %p23956_p12, %p23955_p11 }
 0xf71   : > { %p23958_p0 = pnand %p23957_p13, %p23951_p8 }
 0xf73   : > { %23961 = shalt.err (!%p23958_p0)
}
 0xf74   : > { %s24003_s22 = smov 256   ;;  %s24004_s15 = smov 16  }
 0xf75   : > { %23023 = dma.vmem_to_hbm [thread:$0]  (%p24113_p5), %s29323_s30, 2048, %s29321_s21, %s29330_s29, %s24003_s22, %s24003_s22, %s24004_s15  }
 0xf76 PF: > { %p23029_p1 = scmp.ge.s32.totalorder %s23996_s28, 2  ;;  %s16789_s0 = sand.u32 1, %s23984_s25  }
 0xf77   : > { %s16790_s23 = scalar_lea.sflag [#allocation4], %s16789_s0 }
 0xf78   : > { %p23026_p2 = pnand %p23029_p1, %p24117_p6 }
 0xf7a   : > { %23979 = dma.done.wait (!%p23026_p2), %s16790_s23, 2048  }
 0xf7b   : > { %23981 = vsyncadd (!%p23026_p2), %s16790_s23, 4294965248  ;;  %s30179_s24 = sld [smem:[#allocation6_spill]]  ;;  %p23_p3 = scmp.ge.s32.totalorder %s24100_s14, 4  }
 0xf7c   : > { %s30180_s25 = smov %s23988_s26  ;;  %s30181_s26 = smov %s23992_s27 }
 0xf7d   : > { %s30183_s28 = smov %s24100_s14  ;;  %25 = sbr.rel (!%p23_p3) target bundleno = 5 (0x5), region = 109 }
 0xf81   : > { %s30182_s27 = smov %s30179_s24 }
 0xf84   :  { %16795 = vsyncpa [#allocation4], 1 }
 0xf85   :  { %16797 = vsyncpa [#allocation4 + $0x1], 1 }

</bundles_post_ra>
